<compile_context>
chip_gen: v6e
topology: v6e:2x2x1
jax: 0.10.0
libtpu: 0.0.40
codegen_flags: <defaults>
</compile_context>

<pallas_src>
import functools

import jax
import jax.numpy as jnp
from jax import lax
from jax.experimental import pallas as pl
from jax.experimental.pallas import tpu as pltpu

_BN_EPS = 1e-5


def _round_up(x, m):
    return (x + m - 1) // m * m


def _pick_batch_tile(n, hw, *, max_rows=512):
    """Largest divisor of n with tile*hw <= max_rows, preferring >=2 grid steps."""
    divs = [d for d in range(1, n + 1) if n % d == 0]
    cands = [d for d in divs if d * hw <= max_rows] or [1]
    bt = max(cands)
    if n // bt < 2:
        smaller = [d for d in cands if n // d >= 2]
        if smaller:
            bt = max(smaller)
    return bt


def _bottleneck_kernel(B, H, W, Cin, DC, Cout, Rp, R_acc, has_shortcut, *refs):
    if has_shortcut:
        (x_ref, w_red_ref, b_red_ref, w3_ref, b3_ref, w_exp_ref, b_exp_ref,
         w_sc_ref, b_sc_ref, out_ref, pad_ref, acc_ref) = refs
    else:
        (x_ref, w_red_ref, b_red_ref, w3_ref, b3_ref, w_exp_ref, b_exp_ref,
         out_ref, pad_ref, acc_ref) = refs
        w_sc_ref = b_sc_ref = None

    M = B * H * W
    WP = W + 2

    # ---- conv_reduce (1x1, BN scale folded into weights) + bias + relu --------
    x2d = x_ref[...].reshape(M, Cin)                                    # bf16
    t = jnp.dot(x2d, w_red_ref[...], preferred_element_type=jnp.float32)
    t = jnp.maximum(t + b_red_ref[...], 0.0)                            # (M, DC) f32
    t = t.astype(jnp.bfloat16)

    # ---- grouped 3x3 conv (stride 1, pad 1) ------------------------------------
    # Flat padded scratch: one row per padded spatial position, DC lanes.
    # Zero the whole scratch each step (megacore-safe: scratch persists across
    # grid steps but a "first step only" guard breaks when a parallel axis is
    # split across cores); only the border actually needs the zeros and the
    # store is a single cheap bf16 pass.
    pad_ref[...] = jnp.zeros(pad_ref.shape, pad_ref.dtype)
    for b in range(B):
        for h in range(H):
            src = (b * H + h) * W
            dst = b * Rp + (h + 1) * WP + 1
            pad_ref[dst:dst + W, :] = t[src:src + W, :]

    # 9 tap matmuls; each tap is a static row-offset slice of the flat scratch.
    # The accumulator lives in VMEM (fp32) to bound vreg pressure.
    for tap in range(9):
        dh, dw = divmod(tap, 3)
        off = dh * WP + dw
        contrib = jnp.dot(pad_ref[off:off + R_acc, :], w3_ref[tap],
                          preferred_element_type=jnp.float32)
        if tap == 0:
            acc_ref[...] = contrib
        else:
            acc_ref[...] += contrib

    # Gather the valid H*W rows per image back to compact (M, DC) form once.
    rows = []
    for b in range(B):
        for h in range(H):
            start = b * Rp + h * WP
            rows.append(acc_ref[start:start + W, :])
    t2 = jnp.concatenate(rows, axis=0)                                  # (M, DC) f32
    t2 = jnp.maximum(t2 + b3_ref[...], 0.0).astype(jnp.bfloat16)

    # ---- conv_expand (1x1) + bias ---------------------------------------------
    bot = jnp.dot(t2, w_exp_ref[...], preferred_element_type=jnp.float32)
    bot = bot + b_exp_ref[...]                                          # (M, Cout) f32

    # ---- shortcut --------------------------------------------------------------
    if has_shortcut:
        xs = x_ref[...].reshape(M, Cin)
        res = jnp.dot(xs, w_sc_ref[...], preferred_element_type=jnp.float32)
        res = res + b_sc_ref[...]
    else:
        # identity shortcut (wrapper asserts Cin == Cout, stride == 1)
        res = x_ref[...].reshape(M, Cin).astype(jnp.float32)

    out = jnp.maximum(res + bot, 0.0)
    out_ref[...] = out.reshape(B, H, W, Cout).astype(out_ref.dtype)


def resnext_bottleneck_forward_nhwc(x_nhwc, params, *, stride=1):
    """NHWC forward pass (preferred entry point: no layout transposes)."""
    if stride != 1:
        # TODO(synk): stride > 1 not implemented in the Pallas kernel.
        raise NotImplementedError("only stride=1 is implemented in the Pallas kernel")

    N, H, W, Cin = x_nhwc.shape
    DC = params["w_reduce_mat"].shape[1]
    Cout = params["w_expand_mat"].shape[1]
    has_shortcut = params["has_shortcut"]
    if not has_shortcut:
        assert Cin == Cout, "identity shortcut requires in_channels == out_channels"

    B = _pick_batch_tile(N, H * W)
    assert N % B == 0
    Rp = (H + 2) * (W + 2)
    R_acc = _round_up(B * Rp, 8)
    pad_rows = _round_up(R_acc + 2 * (W + 2) + 2, 8)

    # bf16 activations into the kernel (halves the activation DMA bytes).
    x_bf = x_nhwc.astype(jnp.bfloat16)

    weight_args = [params["w_reduce_mat"], params["b_reduce"],
                   params["w_conv_bd"], params["b_conv"],
                   params["w_expand_mat"], params["b_expand"]]
    if has_shortcut:
        weight_args += [params["w_short_mat"], params["b_short"]]

    def full_spec(a):
        return pl.BlockSpec(a.shape, lambda b, _nd=a.ndim: (0,) * _nd)

    kernel = functools.partial(_bottleneck_kernel, B, H, W, Cin, DC, Cout,
                               Rp, R_acc, has_shortcut)

    # Explicit VMEM budget: double-buffered x/out blocks + weights + scratch,
    # with generous headroom, clamped below v7x's 64 MiB physical VMEM.
    est = 2 * (B * H * W * Cin * 2 + B * H * W * Cout * 4)
    est += 2 * sum(int(a.size) * a.dtype.itemsize for a in weight_args)
    est += pad_rows * DC * 2 + R_acc * DC * 4
    vmem_limit = int(min(max(4 * est, 16 * 2 ** 20), 56 * 2 ** 20))

    out_nhwc = pl.pallas_call(
        kernel,
        out_shape=jax.ShapeDtypeStruct((N, H, W, Cout), jnp.float32),
        grid_spec=pltpu.PrefetchScalarGridSpec(
            num_scalar_prefetch=0,
            grid=(N // B,),
            in_specs=[pl.BlockSpec((B, H, W, Cin), lambda b: (b, 0, 0, 0))]
                     + [full_spec(a) for a in weight_args],
            out_specs=pl.BlockSpec((B, H, W, Cout), lambda b: (b, 0, 0, 0)),
            scratch_shapes=[pltpu.VMEM((pad_rows, DC), jnp.bfloat16),
                            pltpu.VMEM((R_acc, DC), jnp.float32)],
        ),
        compiler_params=pltpu.CompilerParams(
            dimension_semantics=("parallel",),
            vmem_limit_bytes=vmem_limit),
    )(x_bf, *weight_args)
    return out_nhwc


def resnext_bottleneck_forward(x_nchw, params, *, stride=1):
    """NCHW (PyTorch-layout) wrapper.  If the surrounding model is NHWC, call
    resnext_bottleneck_forward_nhwc directly and skip these transposes."""
    x_nhwc = jnp.transpose(x_nchw, (0, 2, 3, 1))
    out_nhwc = resnext_bottleneck_forward_nhwc(x_nhwc, params, stride=stride)
    return jnp.transpose(out_nhwc, (0, 3, 1, 2))


def make_params(key, in_channels, out_channels, cardinality, divisor, stride=1):
    D = out_channels // divisor
    DC = D * cardinality
    k_it = iter(jax.random.split(key, 12))

    def conv_weight(k, co, ci, kh, kw):
        fan_in = ci * kh * kw
        return jax.random.normal(k, (co, ci, kh, kw), jnp.float32) / jnp.sqrt(fan_in)

    def bn_params(k, c):
        k1, k2, k3, k4 = jax.random.split(k, 4)
        gamma = 1.0 + 0.1 * jax.random.normal(k1, (c,), jnp.float32)
        beta = 0.1 * jax.random.normal(k2, (c,), jnp.float32)
        mean = 0.1 * jax.random.normal(k3, (c,), jnp.float32)
        var = 0.5 + jax.random.uniform(k4, (c,), jnp.float32)
        return gamma, beta, mean, var

    def bn_fold(bn):
        gamma, beta, mean, var = bn
        scale = gamma / jnp.sqrt(var + _BN_EPS)
        bias = beta - mean * scale
        return scale[None, :], bias[None, :]          # (1, C) fp32

    w_reduce = conv_weight(next(k_it), DC, in_channels, 1, 1)
    bn_reduce = bn_params(next(k_it), DC)
    w_conv = conv_weight(next(k_it), DC, D, 3, 3)      # grouped: in-ch per group = D
    bn_conv = bn_params(next(k_it), DC)
    w_expand = conv_weight(next(k_it), out_channels, DC, 1, 1)
    bn_expand = bn_params(next(k_it), out_channels)

    has_shortcut = (stride != 1) or (in_channels != out_channels)
    if has_shortcut:
        w_short = conv_weight(next(k_it), out_channels, in_channels, 1, 1)
        bn_short = bn_params(next(k_it), out_channels)
    else:
        w_short = jnp.zeros((out_channels, in_channels, 1, 1), jnp.float32)
        bn_short = (jnp.ones((out_channels,), jnp.float32),
                    jnp.zeros((out_channels,), jnp.float32),
                    jnp.zeros((out_channels,), jnp.float32),
                    jnp.ones((out_channels,), jnp.float32))

    s_reduce, b_reduce = bn_fold(bn_reduce)
    s_conv, b_conv = bn_fold(bn_conv)
    s_expand, b_expand = bn_fold(bn_expand)
    s_short, b_short = bn_fold(bn_short)

    # Kernel-side matmul layouts: BN scale folded into the weights, bf16 storage.
    w_reduce_mat = (jnp.transpose(w_reduce[:, :, 0, 0]) * s_reduce).astype(jnp.bfloat16)   # (Cin, DC)
    w_expand_mat = (jnp.transpose(w_expand[:, :, 0, 0]) * s_expand).astype(jnp.bfloat16)   # (DC, Cout)
    w_short_mat = (jnp.transpose(w_short[:, :, 0, 0]) * s_short).astype(jnp.bfloat16)      # (Cin, Cout)

    # Block-diagonal per-tap weights for the grouped 3x3 conv: (9, DC, DC), (tap, ci, co).
    # (Dense block-diag is fine for DC <= 256; see TODO above for larger widths.)
    w_conv_bd = jnp.zeros((9, DC, DC), jnp.float32)
    for g in range(cardinality):
        blk = w_conv[g * D:(g + 1) * D]                          # (D, D, 3, 3) [co_l, ci_l, kh, kw]
        blk = jnp.transpose(blk, (2, 3, 1, 0)).reshape(9, D, D)  # (tap, ci_l, co_l)
        w_conv_bd = w_conv_bd.at[:, g * D:(g + 1) * D, g * D:(g + 1) * D].set(blk)
    w_conv_bd = (w_conv_bd * s_conv).astype(jnp.bfloat16)        # fold BN scale on co

    return dict(
        # PyTorch-layout weights + raw BN stats (used by the pure-JAX reference).
        w_reduce_pt=w_reduce, bn_reduce=bn_reduce,
        w_conv_pt=w_conv, bn_conv=bn_conv,
        w_expand_pt=w_expand, bn_expand=bn_expand,
        w_short_pt=w_short, bn_short=bn_short,
        # Folded / re-laid-out parameters consumed by the kernel.
        w_reduce_mat=w_reduce_mat, b_reduce=b_reduce,
        w_conv_bd=w_conv_bd, b_conv=b_conv,
        w_expand_mat=w_expand_mat, b_expand=b_expand,
        w_short_mat=w_short_mat, b_short=b_short,
        has_shortcut=has_shortcut,
    )


def reference_forward(x_nchw, params, *, cardinality, stride=1):
    """Pure-JAX (lax.conv) reference mirroring the PyTorch forward (eval-mode BN)."""
    dn = ("NCHW", "OIHW", "NCHW")
    prec = lax.Precision.HIGHEST

    def bn(y, p):
        gamma, beta, mean, var = p
        s = gamma / jnp.sqrt(var + _BN_EPS)
        return y * s[None, :, None, None] + (beta - mean * s)[None, :, None, None]

    t = lax.conv_general_dilated(x_nchw, params["w_reduce_pt"], (1, 1), "VALID",
                                 dimension_numbers=dn, precision=prec)
    t = jax.nn.relu(bn(t, params["bn_reduce"]))
    t = lax.conv_general_dilated(t, params["w_conv_pt"], (stride, stride),
                                 ((1, 1), (1, 1)), dimension_numbers=dn,
                                 feature_group_count=cardinality, precision=prec)
    t = jax.nn.relu(bn(t, params["bn_conv"]))
    t = lax.conv_general_dilated(t, params["w_expand_pt"], (1, 1), "VALID",
                                 dimension_numbers=dn, precision=prec)
    t = bn(t, params["bn_expand"])
    if params["has_shortcut"]:
        r = lax.conv_general_dilated(x_nchw, params["w_short_pt"], (stride, stride),
                                     "VALID", dimension_numbers=dn, precision=prec)
        r = bn(r, params["bn_short"])
    else:
        r = x_nchw
    return jax.nn.relu(r + t)


if __name__ == "__main__":
    key = jax.random.PRNGKey(0)
    kx, kp = jax.random.split(key)

    N, in_channels, out_channels = 8, 64, 128
    cardinality, divisor, stride = 4, 4, 1
    H = W = 8

    x = jax.random.normal(kx, (N, in_channels, H, W), jnp.float32)  # NCHW (PyTorch layout)
    params = make_params(kp, in_channels, out_channels, cardinality, divisor, stride)

    out = resnext_bottleneck_forward(x, params, stride=stride)
    out = jax.block_until_ready(out)

    ref = reference_forward(x, params, cardinality=cardinality, stride=stride)
    assert out.shape == ref.shape == (N, out_channels, H, W)

    # bf16-aware tolerance: max abs error relative to the output dynamic range.
    max_err = float(jnp.max(jnp.abs(out - ref)))
    ref_scale = float(jnp.max(jnp.abs(ref))) + 1e-6
    assert max_err / ref_scale < 2e-2, (
        f"relative error too large: {max_err} / {ref_scale}")
    print("KERNEL_OK")
</pallas_src>

<mosaic_0001>
module attributes {stable_mosaic.version = 11 : i64} {
  func.func @_bottleneck_kernel(%arg0: i32, %arg1: memref<4x8x8x64xbf16, #tpu.memory_space<vmem>>, %arg2: memref<64x128xbf16, #tpu.memory_space<vmem>>, %arg3: memref<1x128xf32, #tpu.memory_space<vmem>>, %arg4: memref<9x128x128xbf16, #tpu.memory_space<vmem>>, %arg5: memref<1x128xf32, #tpu.memory_space<vmem>>, %arg6: memref<128x128xbf16, #tpu.memory_space<vmem>>, %arg7: memref<1x128xf32, #tpu.memory_space<vmem>>, %arg8: memref<64x128xbf16, #tpu.memory_space<vmem>>, %arg9: memref<1x128xf32, #tpu.memory_space<vmem>>, %arg10: memref<4x8x8x128xf32, #tpu.memory_space<vmem>>, %arg11: memref<424x128xbf16, #tpu.memory_space<vmem>>, %arg12: memref<400x128xf32, #tpu.memory_space<vmem>>) attributes {dimension_semantics = [#tpu.dimension_semantics<parallel>], iteration_bounds = array<i64: 2>, scalar_prefetch = 0 : i64, scratch_operands = 2 : i64, tpu.core_type = #tpu.core_type<tc>, window_params = [{transform_indices = @transform_0, window_bounds = array<i64: 4, 8, 8, 64>}, {pipeline_mode = #tpu.pipeline_mode<synchronous>, transform_indices = @transform_1, window_bounds = array<i64: 64, 128>}, {pipeline_mode = #tpu.pipeline_mode<synchronous>, transform_indices = @transform_2, window_bounds = array<i64: 1, 128>}, {pipeline_mode = #tpu.pipeline_mode<synchronous>, transform_indices = @transform_3, window_bounds = array<i64: 9, 128, 128>}, {pipeline_mode = #tpu.pipeline_mode<synchronous>, transform_indices = @transform_4, window_bounds = array<i64: 1, 128>}, {pipeline_mode = #tpu.pipeline_mode<synchronous>, transform_indices = @transform_5, window_bounds = array<i64: 128, 128>}, {pipeline_mode = #tpu.pipeline_mode<synchronous>, transform_indices = @transform_6, window_bounds = array<i64: 1, 128>}, {pipeline_mode = #tpu.pipeline_mode<synchronous>, transform_indices = @transform_7, window_bounds = array<i64: 64, 128>}, {pipeline_mode = #tpu.pipeline_mode<synchronous>, transform_indices = @transform_8, window_bounds = array<i64: 1, 128>}, {transform_indices = @transform_9, window_bounds = array<i64: 4, 8, 8, 128>}]} {
    %c0 = arith.constant 0 : index
    %c0_0 = arith.constant 0 : index
    %c0_1 = arith.constant 0 : index
    %c0_2 = arith.constant 0 : index
    %0 = vector.load %arg1[%c0, %c0_0, %c0_1, %c0_2] : memref<4x8x8x64xbf16, #tpu.memory_space<vmem>>, vector<4x8x8x64xbf16>
    %1 = vector.shape_cast %0 : vector<4x8x8x64xbf16> to vector<256x64xbf16>
    %c0_3 = arith.constant 0 : index
    %c0_4 = arith.constant 0 : index
    %2 = vector.load %arg2[%c0_3, %c0_4] : memref<64x128xbf16, #tpu.memory_space<vmem>>, vector<64x128xbf16>
    %cst = arith.constant dense<0.000000e+00> : vector<256x128xf32>
    %3 = tpu.matmul %1, %2, %cst {dimension_numbers = #tpu.dot_dimension_numbers<[1], [0], [0], [1], [0, 0, 1, 1], [], []>} : vector<256x64xbf16>, vector<64x128xbf16>, vector<256x128xf32> -> vector<256x128xf32>
    %c0_5 = arith.constant 0 : index
    %c0_6 = arith.constant 0 : index
    %4 = vector.load %arg3[%c0_5, %c0_6] : memref<1x128xf32, #tpu.memory_space<vmem>>, vector<1x128xf32>
    %5 = vector.broadcast %4 : vector<1x128xf32> to vector<256x128xf32>
    %6 = arith.addf %3, %5 : vector<256x128xf32>
    %cst_7 = arith.constant 0.000000e+00 : f32
    %7 = vector.broadcast %cst_7 : f32 to vector<256x128xf32>
    %8 = arith.maximumf %6, %7 : vector<256x128xf32>
    %9 = arith.truncf %8 : vector<256x128xf32> to vector<256x128xbf16>
    %cst_8 = arith.constant 0.000000e+00 : bf16
    %10 = vector.broadcast %cst_8 : bf16 to vector<424x128xbf16>
    %c0_9 = arith.constant 0 : index
    %c0_10 = arith.constant 0 : index
    %11 = vector.load %arg11[%c0_9, %c0_10] : memref<424x128xbf16, #tpu.memory_space<vmem>>, vector<424x128xbf16>
    tpu.vector_store %arg11[%c0_9, %c0_10], %10 {strides = array<i32>} : memref<424x128xbf16, #tpu.memory_space<vmem>>, vector<424x128xbf16>,
    %12 = vector.extract_strided_slice %9 {offsets = [0, 0], sizes = [8, 128], strides = [1, 1]} : vector<256x128xbf16> to vector<8x128xbf16>
    %c11 = arith.constant 11 : index
    %c0_11 = arith.constant 0 : index
    %13 = vector.load %arg11[%c11, %c0_11] : memref<424x128xbf16, #tpu.memory_space<vmem>>, vector<8x128xbf16>
    tpu.vector_store %arg11[%c11, %c0_11], %12 {strides = array<i32>} : memref<424x128xbf16, #tpu.memory_space<vmem>>, vector<8x128xbf16>,
    %14 = vector.extract_strided_slice %9 {offsets = [8, 0], sizes = [8, 128], strides = [1, 1]} : vector<256x128xbf16> to vector<8x128xbf16>
    %c21 = arith.constant 21 : index
    %c0_12 = arith.constant 0 : index
    %15 = vector.load %arg11[%c21, %c0_12] : memref<424x128xbf16, #tpu.memory_space<vmem>>, vector<8x128xbf16>
    tpu.vector_store %arg11[%c21, %c0_12], %14 {strides = array<i32>} : memref<424x128xbf16, #tpu.memory_space<vmem>>, vector<8x128xbf16>,
    %16 = vector.extract_strided_slice %9 {offsets = [16, 0], sizes = [8, 128], strides = [1, 1]} : vector<256x128xbf16> to vector<8x128xbf16>
    %c31 = arith.constant 31 : index
    %c0_13 = arith.constant 0 : index
    %17 = vector.load %arg11[%c31, %c0_13] : memref<424x128xbf16, #tpu.memory_space<vmem>>, vector<8x128xbf16>
    tpu.vector_store %arg11[%c31, %c0_13], %16 {strides = array<i32>} : memref<424x128xbf16, #tpu.memory_space<vmem>>, vector<8x128xbf16>,
    %18 = vector.extract_strided_slice %9 {offsets = [24, 0], sizes = [8, 128], strides = [1, 1]} : vector<256x128xbf16> to vector<8x128xbf16>
    %c41 = arith.constant 41 : index
    %c0_14 = arith.constant 0 : index
    %19 = vector.load %arg11[%c41, %c0_14] : memref<424x128xbf16, #tpu.memory_space<vmem>>, vector<8x128xbf16>
    tpu.vector_store %arg11[%c41, %c0_14], %18 {strides = array<i32>} : memref<424x128xbf16, #tpu.memory_space<vmem>>, vector<8x128xbf16>,
    %20 = vector.extract_strided_slice %9 {offsets = [32, 0], sizes = [8, 128], strides = [1, 1]} : vector<256x128xbf16> to vector<8x128xbf16>
    %c51 = arith.constant 51 : index
    %c0_15 = arith.constant 0 : index
    %21 = vector.load %arg11[%c51, %c0_15] : memref<424x128xbf16, #tpu.memory_space<vmem>>, vector<8x128xbf16>
    tpu.vector_store %arg11[%c51, %c0_15], %20 {strides = array<i32>} : memref<424x128xbf16, #tpu.memory_space<vmem>>, vector<8x128xbf16>,
    %22 = vector.extract_strided_slice %9 {offsets = [40, 0], sizes = [8, 128], strides = [1, 1]} : vector<256x128xbf16> to vector<8x128xbf16>
    %c61 = arith.constant 61 : index
    %c0_16 = arith.constant 0 : index
    %23 = vector.load %arg11[%c61, %c0_16] : memref<424x128xbf16, #tpu.memory_space<vmem>>, vector<8x128xbf16>
    tpu.vector_store %arg11[%c61, %c0_16], %22 {strides = array<i32>} : memref<424x128xbf16, #tpu.memory_space<vmem>>, vector<8x128xbf16>,
    %24 = vector.extract_strided_slice %9 {offsets = [48, 0], sizes = [8, 128], strides = [1, 1]} : vector<256x128xbf16> to vector<8x128xbf16>
    %c71 = arith.constant 71 : index
    %c0_17 = arith.constant 0 : index
    %25 = vector.load %arg11[%c71, %c0_17] : memref<424x128xbf16, #tpu.memory_space<vmem>>, vector<8x128xbf16>
    tpu.vector_store %arg11[%c71, %c0_17], %24 {strides = array<i32>} : memref<424x128xbf16, #tpu.memory_space<vmem>>, vector<8x128xbf16>,
    %26 = vector.extract_strided_slice %9 {offsets = [56, 0], sizes = [8, 128], strides = [1, 1]} : vector<256x128xbf16> to vector<8x128xbf16>
    %c81 = arith.constant 81 : index
    %c0_18 = arith.constant 0 : index
    %27 = vector.load %arg11[%c81, %c0_18] : memref<424x128xbf16, #tpu.memory_space<vmem>>, vector<8x128xbf16>
    tpu.vector_store %arg11[%c81, %c0_18], %26 {strides = array<i32>} : memref<424x128xbf16, #tpu.memory_space<vmem>>, vector<8x128xbf16>,
    %28 = vector.extract_strided_slice %9 {offsets = [64, 0], sizes = [8, 128], strides = [1, 1]} : vector<256x128xbf16> to vector<8x128xbf16>
    %c111 = arith.constant 111 : index
    %c0_19 = arith.constant 0 : index
    %29 = vector.load %arg11[%c111, %c0_19] : memref<424x128xbf16, #tpu.memory_space<vmem>>, vector<8x128xbf16>
    tpu.vector_store %arg11[%c111, %c0_19], %28 {strides = array<i32>} : memref<424x128xbf16, #tpu.memory_space<vmem>>, vector<8x128xbf16>,
    %30 = vector.extract_strided_slice %9 {offsets = [72, 0], sizes = [8, 128], strides = [1, 1]} : vector<256x128xbf16> to vector<8x128xbf16>
    %c121 = arith.constant 121 : index
    %c0_20 = arith.constant 0 : index
    %31 = vector.load %arg11[%c121, %c0_20] : memref<424x128xbf16, #tpu.memory_space<vmem>>, vector<8x128xbf16>
    tpu.vector_store %arg11[%c121, %c0_20], %30 {strides = array<i32>} : memref<424x128xbf16, #tpu.memory_space<vmem>>, vector<8x128xbf16>,
    %32 = vector.extract_strided_slice %9 {offsets = [80, 0], sizes = [8, 128], strides = [1, 1]} : vector<256x128xbf16> to vector<8x128xbf16>
    %c131 = arith.constant 131 : index
    %c0_21 = arith.constant 0 : index
    %33 = vector.load %arg11[%c131, %c0_21] : memref<424x128xbf16, #tpu.memory_space<vmem>>, vector<8x128xbf16>
    tpu.vector_store %arg11[%c131, %c0_21], %32 {strides = array<i32>} : memref<424x128xbf16, #tpu.memory_space<vmem>>, vector<8x128xbf16>,
    %34 = vector.extract_strided_slice %9 {offsets = [88, 0], sizes = [8, 128], strides = [1, 1]} : vector<256x128xbf16> to vector<8x128xbf16>
    %c141 = arith.constant 141 : index
    %c0_22 = arith.constant 0 : index
    %35 = vector.load %arg11[%c141, %c0_22] : memref<424x128xbf16, #tpu.memory_space<vmem>>, vector<8x128xbf16>
    tpu.vector_store %arg11[%c141, %c0_22], %34 {strides = array<i32>} : memref<424x128xbf16, #tpu.memory_space<vmem>>, vector<8x128xbf16>,
    %36 = vector.extract_strided_slice %9 {offsets = [96, 0], sizes = [8, 128], strides = [1, 1]} : vector<256x128xbf16> to vector<8x128xbf16>
    %c151 = arith.constant 151 : index
    %c0_23 = arith.constant 0 : index
    %37 = vector.load %arg11[%c151, %c0_23] : memref<424x128xbf16, #tpu.memory_space<vmem>>, vector<8x128xbf16>
    tpu.vector_store %arg11[%c151, %c0_23], %36 {strides = array<i32>} : memref<424x128xbf16, #tpu.memory_space<vmem>>, vector<8x128xbf16>,
    %38 = vector.extract_strided_slice %9 {offsets = [104, 0], sizes = [8, 128], strides = [1, 1]} : vector<256x128xbf16> to vector<8x128xbf16>
    %c161 = arith.constant 161 : index
    %c0_24 = arith.constant 0 : index
    %39 = vector.load %arg11[%c161, %c0_24] : memref<424x128xbf16, #tpu.memory_space<vmem>>, vector<8x128xbf16>
    tpu.vector_store %arg11[%c161, %c0_24], %38 {strides = array<i32>} : memref<424x128xbf16, #tpu.memory_space<vmem>>, vector<8x128xbf16>,
    %40 = vector.extract_strided_slice %9 {offsets = [112, 0], sizes = [8, 128], strides = [1, 1]} : vector<256x128xbf16> to vector<8x128xbf16>
    %c171 = arith.constant 171 : index
    %c0_25 = arith.constant 0 : index
    %41 = vector.load %arg11[%c171, %c0_25] : memref<424x128xbf16, #tpu.memory_space<vmem>>, vector<8x128xbf16>
    tpu.vector_store %arg11[%c171, %c0_25], %40 {strides = array<i32>} : memref<424x128xbf16, #tpu.memory_space<vmem>>, vector<8x128xbf16>,
    %42 = vector.extract_strided_slice %9 {offsets = [120, 0], sizes = [8, 128], strides = [1, 1]} : vector<256x128xbf16> to vector<8x128xbf16>
    %c181 = arith.constant 181 : index
    %c0_26 = arith.constant 0 : index
    %43 = vector.load %arg11[%c181, %c0_26] : memref<424x128xbf16, #tpu.memory_space<vmem>>, vector<8x128xbf16>
    tpu.vector_store %arg11[%c181, %c0_26], %42 {strides = array<i32>} : memref<424x128xbf16, #tpu.memory_space<vmem>>, vector<8x128xbf16>,
    %44 = vector.extract_strided_slice %9 {offsets = [128, 0], sizes = [8, 128], strides = [1, 1]} : vector<256x128xbf16> to vector<8x128xbf16>
    %c211 = arith.constant 211 : index
    %c0_27 = arith.constant 0 : index
    %45 = vector.load %arg11[%c211, %c0_27] : memref<424x128xbf16, #tpu.memory_space<vmem>>, vector<8x128xbf16>
    tpu.vector_store %arg11[%c211, %c0_27], %44 {strides = array<i32>} : memref<424x128xbf16, #tpu.memory_space<vmem>>, vector<8x128xbf16>,
    %46 = vector.extract_strided_slice %9 {offsets = [136, 0], sizes = [8, 128], strides = [1, 1]} : vector<256x128xbf16> to vector<8x128xbf16>
    %c221 = arith.constant 221 : index
    %c0_28 = arith.constant 0 : index
    %47 = vector.load %arg11[%c221, %c0_28] : memref<424x128xbf16, #tpu.memory_space<vmem>>, vector<8x128xbf16>
    tpu.vector_store %arg11[%c221, %c0_28], %46 {strides = array<i32>} : memref<424x128xbf16, #tpu.memory_space<vmem>>, vector<8x128xbf16>,
    %48 = vector.extract_strided_slice %9 {offsets = [144, 0], sizes = [8, 128], strides = [1, 1]} : vector<256x128xbf16> to vector<8x128xbf16>
    %c231 = arith.constant 231 : index
    %c0_29 = arith.constant 0 : index
    %49 = vector.load %arg11[%c231, %c0_29] : memref<424x128xbf16, #tpu.memory_space<vmem>>, vector<8x128xbf16>
    tpu.vector_store %arg11[%c231, %c0_29], %48 {strides = array<i32>} : memref<424x128xbf16, #tpu.memory_space<vmem>>, vector<8x128xbf16>,
    %50 = vector.extract_strided_slice %9 {offsets = [152, 0], sizes = [8, 128], strides = [1, 1]} : vector<256x128xbf16> to vector<8x128xbf16>
    %c241 = arith.constant 241 : index
    %c0_30 = arith.constant 0 : index
    %51 = vector.load %arg11[%c241, %c0_30] : memref<424x128xbf16, #tpu.memory_space<vmem>>, vector<8x128xbf16>
    tpu.vector_store %arg11[%c241, %c0_30], %50 {strides = array<i32>} : memref<424x128xbf16, #tpu.memory_space<vmem>>, vector<8x128xbf16>,
    %52 = vector.extract_strided_slice %9 {offsets = [160, 0], sizes = [8, 128], strides = [1, 1]} : vector<256x128xbf16> to vector<8x128xbf16>
    %c251 = arith.constant 251 : index
    %c0_31 = arith.constant 0 : index
    %53 = vector.load %arg11[%c251, %c0_31] : memref<424x128xbf16, #tpu.memory_space<vmem>>, vector<8x128xbf16>
    tpu.vector_store %arg11[%c251, %c0_31], %52 {strides = array<i32>} : memref<424x128xbf16, #tpu.memory_space<vmem>>, vector<8x128xbf16>,
    %54 = vector.extract_strided_slice %9 {offsets = [168, 0], sizes = [8, 128], strides = [1, 1]} : vector<256x128xbf16> to vector<8x128xbf16>
    %c261 = arith.constant 261 : index
    %c0_32 = arith.constant 0 : index
    %55 = vector.load %arg11[%c261, %c0_32] : memref<424x128xbf16, #tpu.memory_space<vmem>>, vector<8x128xbf16>
    tpu.vector_store %arg11[%c261, %c0_32], %54 {strides = array<i32>} : memref<424x128xbf16, #tpu.memory_space<vmem>>, vector<8x128xbf16>,
    %56 = vector.extract_strided_slice %9 {offsets = [176, 0], sizes = [8, 128], strides = [1, 1]} : vector<256x128xbf16> to vector<8x128xbf16>
    %c271 = arith.constant 271 : index
    %c0_33 = arith.constant 0 : index
    %57 = vector.load %arg11[%c271, %c0_33] : memref<424x128xbf16, #tpu.memory_space<vmem>>, vector<8x128xbf16>
    tpu.vector_store %arg11[%c271, %c0_33], %56 {strides = array<i32>} : memref<424x128xbf16, #tpu.memory_space<vmem>>, vector<8x128xbf16>,
    %58 = vector.extract_strided_slice %9 {offsets = [184, 0], sizes = [8, 128], strides = [1, 1]} : vector<256x128xbf16> to vector<8x128xbf16>
    %c281 = arith.constant 281 : index
    %c0_34 = arith.constant 0 : index
    %59 = vector.load %arg11[%c281, %c0_34] : memref<424x128xbf16, #tpu.memory_space<vmem>>, vector<8x128xbf16>
    tpu.vector_store %arg11[%c281, %c0_34], %58 {strides = array<i32>} : memref<424x128xbf16, #tpu.memory_space<vmem>>, vector<8x128xbf16>,
    %60 = vector.extract_strided_slice %9 {offsets = [192, 0], sizes = [8, 128], strides = [1, 1]} : vector<256x128xbf16> to vector<8x128xbf16>
    %c311 = arith.constant 311 : index
    %c0_35 = arith.constant 0 : index
    %61 = vector.load %arg11[%c311, %c0_35] : memref<424x128xbf16, #tpu.memory_space<vmem>>, vector<8x128xbf16>
    tpu.vector_store %arg11[%c311, %c0_35], %60 {strides = array<i32>} : memref<424x128xbf16, #tpu.memory_space<vmem>>, vector<8x128xbf16>,
    %62 = vector.extract_strided_slice %9 {offsets = [200, 0], sizes = [8, 128], strides = [1, 1]} : vector<256x128xbf16> to vector<8x128xbf16>
    %c321 = arith.constant 321 : index
    %c0_36 = arith.constant 0 : index
    %63 = vector.load %arg11[%c321, %c0_36] : memref<424x128xbf16, #tpu.memory_space<vmem>>, vector<8x128xbf16>
    tpu.vector_store %arg11[%c321, %c0_36], %62 {strides = array<i32>} : memref<424x128xbf16, #tpu.memory_space<vmem>>, vector<8x128xbf16>,
    %64 = vector.extract_strided_slice %9 {offsets = [208, 0], sizes = [8, 128], strides = [1, 1]} : vector<256x128xbf16> to vector<8x128xbf16>
    %c331 = arith.constant 331 : index
    %c0_37 = arith.constant 0 : index
    %65 = vector.load %arg11[%c331, %c0_37] : memref<424x128xbf16, #tpu.memory_space<vmem>>, vector<8x128xbf16>
    tpu.vector_store %arg11[%c331, %c0_37], %64 {strides = array<i32>} : memref<424x128xbf16, #tpu.memory_space<vmem>>, vector<8x128xbf16>,
    %66 = vector.extract_strided_slice %9 {offsets = [216, 0], sizes = [8, 128], strides = [1, 1]} : vector<256x128xbf16> to vector<8x128xbf16>
    %c341 = arith.constant 341 : index
    %c0_38 = arith.constant 0 : index
    %67 = vector.load %arg11[%c341, %c0_38] : memref<424x128xbf16, #tpu.memory_space<vmem>>, vector<8x128xbf16>
    tpu.vector_store %arg11[%c341, %c0_38], %66 {strides = array<i32>} : memref<424x128xbf16, #tpu.memory_space<vmem>>, vector<8x128xbf16>,
    %68 = vector.extract_strided_slice %9 {offsets = [224, 0], sizes = [8, 128], strides = [1, 1]} : vector<256x128xbf16> to vector<8x128xbf16>
    %c351 = arith.constant 351 : index
    %c0_39 = arith.constant 0 : index
    %69 = vector.load %arg11[%c351, %c0_39] : memref<424x128xbf16, #tpu.memory_space<vmem>>, vector<8x128xbf16>
    tpu.vector_store %arg11[%c351, %c0_39], %68 {strides = array<i32>} : memref<424x128xbf16, #tpu.memory_space<vmem>>, vector<8x128xbf16>,
    %70 = vector.extract_strided_slice %9 {offsets = [232, 0], sizes = [8, 128], strides = [1, 1]} : vector<256x128xbf16> to vector<8x128xbf16>
    %c361 = arith.constant 361 : index
    %c0_40 = arith.constant 0 : index
    %71 = vector.load %arg11[%c361, %c0_40] : memref<424x128xbf16, #tpu.memory_space<vmem>>, vector<8x128xbf16>
    tpu.vector_store %arg11[%c361, %c0_40], %70 {strides = array<i32>} : memref<424x128xbf16, #tpu.memory_space<vmem>>, vector<8x128xbf16>,
    %72 = vector.extract_strided_slice %9 {offsets = [240, 0], sizes = [8, 128], strides = [1, 1]} : vector<256x128xbf16> to vector<8x128xbf16>
    %c371 = arith.constant 371 : index
    %c0_41 = arith.constant 0 : index
    %73 = vector.load %arg11[%c371, %c0_41] : memref<424x128xbf16, #tpu.memory_space<vmem>>, vector<8x128xbf16>
    tpu.vector_store %arg11[%c371, %c0_41], %72 {strides = array<i32>} : memref<424x128xbf16, #tpu.memory_space<vmem>>, vector<8x128xbf16>,
    %74 = vector.extract_strided_slice %9 {offsets = [248, 0], sizes = [8, 128], strides = [1, 1]} : vector<256x128xbf16> to vector<8x128xbf16>
    %c381 = arith.constant 381 : index
    %c0_42 = arith.constant 0 : index
    %75 = vector.load %arg11[%c381, %c0_42] : memref<424x128xbf16, #tpu.memory_space<vmem>>, vector<8x128xbf16>
    tpu.vector_store %arg11[%c381, %c0_42], %74 {strides = array<i32>} : memref<424x128xbf16, #tpu.memory_space<vmem>>, vector<8x128xbf16>,
    %c0_43 = arith.constant 0 : index
    %c0_44 = arith.constant 0 : index
    %76 = vector.load %arg11[%c0_43, %c0_44] : memref<424x128xbf16, #tpu.memory_space<vmem>>, vector<400x128xbf16>
    %c0_45 = arith.constant 0 : index
    %c0_46 = arith.constant 0 : index
    %c0_47 = arith.constant 0 : index
    %77 = vector.load %arg4[%c0_45, %c0_46, %c0_47] : memref<9x128x128xbf16, #tpu.memory_space<vmem>>, vector<1x128x128xbf16>
    %78 = vector.shape_cast %77 : vector<1x128x128xbf16> to vector<128x128xbf16>
    %cst_48 = arith.constant dense<0.000000e+00> : vector<400x128xf32>
    %79 = tpu.matmul %76, %78, %cst_48 {dimension_numbers = #tpu.dot_dimension_numbers<[1], [0], [0], [1], [0, 0, 1, 1], [], []>} : vector<400x128xbf16>, vector<128x128xbf16>, vector<400x128xf32> -> vector<400x128xf32>
    %c0_49 = arith.constant 0 : index
    %c0_50 = arith.constant 0 : index
    %80 = vector.load %arg12[%c0_49, %c0_50] : memref<400x128xf32, #tpu.memory_space<vmem>>, vector<400x128xf32>
    tpu.vector_store %arg12[%c0_49, %c0_50], %79 {strides = array<i32>} : memref<400x128xf32, #tpu.memory_space<vmem>>, vector<400x128xf32>,
    %c1 = arith.constant 1 : index
    %c0_51 = arith.constant 0 : index
    %81 = vector.load %arg11[%c1, %c0_51] : memref<424x128xbf16, #tpu.memory_space<vmem>>, vector<400x128xbf16>
    %c1_52 = arith.constant 1 : index
    %c0_53 = arith.constant 0 : index
    %c0_54 = arith.constant 0 : index
    %82 = vector.load %arg4[%c1_52, %c0_53, %c0_54] : memref<9x128x128xbf16, #tpu.memory_space<vmem>>, vector<1x128x128xbf16>
    %83 = vector.shape_cast %82 : vector<1x128x128xbf16> to vector<128x128xbf16>
    %cst_55 = arith.constant dense<0.000000e+00> : vector<400x128xf32>
    %84 = tpu.matmul %81, %83, %cst_55 {dimension_numbers = #tpu.dot_dimension_numbers<[1], [0], [0], [1], [0, 0, 1, 1], [], []>} : vector<400x128xbf16>, vector<128x128xbf16>, vector<400x128xf32> -> vector<400x128xf32>
    %c0_56 = arith.constant 0 : index
    %c0_57 = arith.constant 0 : index
    %85 = vector.load %arg12[%c0_56, %c0_57] : memref<400x128xf32, #tpu.memory_space<vmem>>, vector<400x128xf32>
    %86 = arith.addf %85, %84 : vector<400x128xf32>
    %c0_58 = arith.constant 0 : index
    %c0_59 = arith.constant 0 : index
    %87 = vector.load %arg12[%c0_58, %c0_59] : memref<400x128xf32, #tpu.memory_space<vmem>>, vector<400x128xf32>
    tpu.vector_store %arg12[%c0_58, %c0_59], %86 {strides = array<i32>} : memref<400x128xf32, #tpu.memory_space<vmem>>, vector<400x128xf32>,
    %c2 = arith.constant 2 : index
    %c0_60 = arith.constant 0 : index
    %88 = vector.load %arg11[%c2, %c0_60] : memref<424x128xbf16, #tpu.memory_space<vmem>>, vector<400x128xbf16>
    %c2_61 = arith.constant 2 : index
    %c0_62 = arith.constant 0 : index
    %c0_63 = arith.constant 0 : index
    %89 = vector.load %arg4[%c2_61, %c0_62, %c0_63] : memref<9x128x128xbf16, #tpu.memory_space<vmem>>, vector<1x128x128xbf16>
    %90 = vector.shape_cast %89 : vector<1x128x128xbf16> to vector<128x128xbf16>
    %cst_64 = arith.constant dense<0.000000e+00> : vector<400x128xf32>
    %91 = tpu.matmul %88, %90, %cst_64 {dimension_numbers = #tpu.dot_dimension_numbers<[1], [0], [0], [1], [0, 0, 1, 1], [], []>} : vector<400x128xbf16>, vector<128x128xbf16>, vector<400x128xf32> -> vector<400x128xf32>
    %c0_65 = arith.constant 0 : index
    %c0_66 = arith.constant 0 : index
    %92 = vector.load %arg12[%c0_65, %c0_66] : memref<400x128xf32, #tpu.memory_space<vmem>>, vector<400x128xf32>
    %93 = arith.addf %92, %91 : vector<400x128xf32>
    %c0_67 = arith.constant 0 : index
    %c0_68 = arith.constant 0 : index
    %94 = vector.load %arg12[%c0_67, %c0_68] : memref<400x128xf32, #tpu.memory_space<vmem>>, vector<400x128xf32>
    tpu.vector_store %arg12[%c0_67, %c0_68], %93 {strides = array<i32>} : memref<400x128xf32, #tpu.memory_space<vmem>>, vector<400x128xf32>,
    %c10 = arith.constant 10 : index
    %c0_69 = arith.constant 0 : index
    %95 = vector.load %arg11[%c10, %c0_69] : memref<424x128xbf16, #tpu.memory_space<vmem>>, vector<400x128xbf16>
    %c3 = arith.constant 3 : index
    %c0_70 = arith.constant 0 : index
    %c0_71 = arith.constant 0 : index
    %96 = vector.load %arg4[%c3, %c0_70, %c0_71] : memref<9x128x128xbf16, #tpu.memory_space<vmem>>, vector<1x128x128xbf16>
    %97 = vector.shape_cast %96 : vector<1x128x128xbf16> to vector<128x128xbf16>
    %cst_72 = arith.constant dense<0.000000e+00> : vector<400x128xf32>
    %98 = tpu.matmul %95, %97, %cst_72 {dimension_numbers = #tpu.dot_dimension_numbers<[1], [0], [0], [1], [0, 0, 1, 1], [], []>} : vector<400x128xbf16>, vector<128x128xbf16>, vector<400x128xf32> -> vector<400x128xf32>
    %c0_73 = arith.constant 0 : index
    %c0_74 = arith.constant 0 : index
    %99 = vector.load %arg12[%c0_73, %c0_74] : memref<400x128xf32, #tpu.memory_space<vmem>>, vector<400x128xf32>
    %100 = arith.addf %99, %98 : vector<400x128xf32>
    %c0_75 = arith.constant 0 : index
    %c0_76 = arith.constant 0 : index
    %101 = vector.load %arg12[%c0_75, %c0_76] : memref<400x128xf32, #tpu.memory_space<vmem>>, vector<400x128xf32>
    tpu.vector_store %arg12[%c0_75, %c0_76], %100 {strides = array<i32>} : memref<400x128xf32, #tpu.memory_space<vmem>>, vector<400x128xf32>,
    %c11_77 = arith.constant 11 : index
    %c0_78 = arith.constant 0 : index
    %102 = vector.load %arg11[%c11_77, %c0_78] : memref<424x128xbf16, #tpu.memory_space<vmem>>, vector<400x128xbf16>
    %c4 = arith.constant 4 : index
    %c0_79 = arith.constant 0 : index
    %c0_80 = arith.constant 0 : index
    %103 = vector.load %arg4[%c4, %c0_79, %c0_80] : memref<9x128x128xbf16, #tpu.memory_space<vmem>>, vector<1x128x128xbf16>
    %104 = vector.shape_cast %103 : vector<1x128x128xbf16> to vector<128x128xbf16>
    %cst_81 = arith.constant dense<0.000000e+00> : vector<400x128xf32>
    %105 = tpu.matmul %102, %104, %cst_81 {dimension_numbers = #tpu.dot_dimension_numbers<[1], [0], [0], [1], [0, 0, 1, 1], [], []>} : vector<400x128xbf16>, vector<128x128xbf16>, vector<400x128xf32> -> vector<400x128xf32>
    %c0_82 = arith.constant 0 : index
    %c0_83 = arith.constant 0 : index
    %106 = vector.load %arg12[%c0_82, %c0_83] : memref<400x128xf32, #tpu.memory_space<vmem>>, vector<400x128xf32>
    %107 = arith.addf %106, %105 : vector<400x128xf32>
    %c0_84 = arith.constant 0 : index
    %c0_85 = arith.constant 0 : index
    %108 = vector.load %arg12[%c0_84, %c0_85] : memref<400x128xf32, #tpu.memory_space<vmem>>, vector<400x128xf32>
    tpu.vector_store %arg12[%c0_84, %c0_85], %107 {strides = array<i32>} : memref<400x128xf32, #tpu.memory_space<vmem>>, vector<400x128xf32>,
    %c12 = arith.constant 12 : index
    %c0_86 = arith.constant 0 : index
    %109 = vector.load %arg11[%c12, %c0_86] : memref<424x128xbf16, #tpu.memory_space<vmem>>, vector<400x128xbf16>
    %c5 = arith.constant 5 : index
    %c0_87 = arith.constant 0 : index
    %c0_88 = arith.constant 0 : index
    %110 = vector.load %arg4[%c5, %c0_87, %c0_88] : memref<9x128x128xbf16, #tpu.memory_space<vmem>>, vector<1x128x128xbf16>
    %111 = vector.shape_cast %110 : vector<1x128x128xbf16> to vector<128x128xbf16>
    %cst_89 = arith.constant dense<0.000000e+00> : vector<400x128xf32>
    %112 = tpu.matmul %109, %111, %cst_89 {dimension_numbers = #tpu.dot_dimension_numbers<[1], [0], [0], [1], [0, 0, 1, 1], [], []>} : vector<400x128xbf16>, vector<128x128xbf16>, vector<400x128xf32> -> vector<400x128xf32>
    %c0_90 = arith.constant 0 : index
    %c0_91 = arith.constant 0 : index
    %113 = vector.load %arg12[%c0_90, %c0_91] : memref<400x128xf32, #tpu.memory_space<vmem>>, vector<400x128xf32>
    %114 = arith.addf %113, %112 : vector<400x128xf32>
    %c0_92 = arith.constant 0 : index
    %c0_93 = arith.constant 0 : index
    %115 = vector.load %arg12[%c0_92, %c0_93] : memref<400x128xf32, #tpu.memory_space<vmem>>, vector<400x128xf32>
    tpu.vector_store %arg12[%c0_92, %c0_93], %114 {strides = array<i32>} : memref<400x128xf32, #tpu.memory_space<vmem>>, vector<400x128xf32>,
    %c20 = arith.constant 20 : index
    %c0_94 = arith.constant 0 : index
    %116 = vector.load %arg11[%c20, %c0_94] : memref<424x128xbf16, #tpu.memory_space<vmem>>, vector<400x128xbf16>
    %c6 = arith.constant 6 : index
    %c0_95 = arith.constant 0 : index
    %c0_96 = arith.constant 0 : index
    %117 = vector.load %arg4[%c6, %c0_95, %c0_96] : memref<9x128x128xbf16, #tpu.memory_space<vmem>>, vector<1x128x128xbf16>
    %118 = vector.shape_cast %117 : vector<1x128x128xbf16> to vector<128x128xbf16>
    %cst_97 = arith.constant dense<0.000000e+00> : vector<400x128xf32>
    %119 = tpu.matmul %116, %118, %cst_97 {dimension_numbers = #tpu.dot_dimension_numbers<[1], [0], [0], [1], [0, 0, 1, 1], [], []>} : vector<400x128xbf16>, vector<128x128xbf16>, vector<400x128xf32> -> vector<400x128xf32>
    %c0_98 = arith.constant 0 : index
    %c0_99 = arith.constant 0 : index
    %120 = vector.load %arg12[%c0_98, %c0_99] : memref<400x128xf32, #tpu.memory_space<vmem>>, vector<400x128xf32>
    %121 = arith.addf %120, %119 : vector<400x128xf32>
    %c0_100 = arith.constant 0 : index
    %c0_101 = arith.constant 0 : index
    %122 = vector.load %arg12[%c0_100, %c0_101] : memref<400x128xf32, #tpu.memory_space<vmem>>, vector<400x128xf32>
    tpu.vector_store %arg12[%c0_100, %c0_101], %121 {strides = array<i32>} : memref<400x128xf32, #tpu.memory_space<vmem>>, vector<400x128xf32>,
    %c21_102 = arith.constant 21 : index
    %c0_103 = arith.constant 0 : index
    %123 = vector.load %arg11[%c21_102, %c0_103] : memref<424x128xbf16, #tpu.memory_space<vmem>>, vector<400x128xbf16>
    %c7 = arith.constant 7 : index
    %c0_104 = arith.constant 0 : index
    %c0_105 = arith.constant 0 : index
    %124 = vector.load %arg4[%c7, %c0_104, %c0_105] : memref<9x128x128xbf16, #tpu.memory_space<vmem>>, vector<1x128x128xbf16>
    %125 = vector.shape_cast %124 : vector<1x128x128xbf16> to vector<128x128xbf16>
    %cst_106 = arith.constant dense<0.000000e+00> : vector<400x128xf32>
    %126 = tpu.matmul %123, %125, %cst_106 {dimension_numbers = #tpu.dot_dimension_numbers<[1], [0], [0], [1], [0, 0, 1, 1], [], []>} : vector<400x128xbf16>, vector<128x128xbf16>, vector<400x128xf32> -> vector<400x128xf32>
    %c0_107 = arith.constant 0 : index
    %c0_108 = arith.constant 0 : index
    %127 = vector.load %arg12[%c0_107, %c0_108] : memref<400x128xf32, #tpu.memory_space<vmem>>, vector<400x128xf32>
    %128 = arith.addf %127, %126 : vector<400x128xf32>
    %c0_109 = arith.constant 0 : index
    %c0_110 = arith.constant 0 : index
    %129 = vector.load %arg12[%c0_109, %c0_110] : memref<400x128xf32, #tpu.memory_space<vmem>>, vector<400x128xf32>
    tpu.vector_store %arg12[%c0_109, %c0_110], %128 {strides = array<i32>} : memref<400x128xf32, #tpu.memory_space<vmem>>, vector<400x128xf32>,
    %c22 = arith.constant 22 : index
    %c0_111 = arith.constant 0 : index
    %130 = vector.load %arg11[%c22, %c0_111] : memref<424x128xbf16, #tpu.memory_space<vmem>>, vector<400x128xbf16>
    %c8 = arith.constant 8 : index
    %c0_112 = arith.constant 0 : index
    %c0_113 = arith.constant 0 : index
    %131 = vector.load %arg4[%c8, %c0_112, %c0_113] : memref<9x128x128xbf16, #tpu.memory_space<vmem>>, vector<1x128x128xbf16>
    %132 = vector.shape_cast %131 : vector<1x128x128xbf16> to vector<128x128xbf16>
    %cst_114 = arith.constant dense<0.000000e+00> : vector<400x128xf32>
    %133 = tpu.matmul %130, %132, %cst_114 {dimension_numbers = #tpu.dot_dimension_numbers<[1], [0], [0], [1], [0, 0, 1, 1], [], []>} : vector<400x128xbf16>, vector<128x128xbf16>, vector<400x128xf32> -> vector<400x128xf32>
    %c0_115 = arith.constant 0 : index
    %c0_116 = arith.constant 0 : index
    %134 = vector.load %arg12[%c0_115, %c0_116] : memref<400x128xf32, #tpu.memory_space<vmem>>, vector<400x128xf32>
    %135 = arith.addf %134, %133 : vector<400x128xf32>
    %c0_117 = arith.constant 0 : index
    %c0_118 = arith.constant 0 : index
    %136 = vector.load %arg12[%c0_117, %c0_118] : memref<400x128xf32, #tpu.memory_space<vmem>>, vector<400x128xf32>
    tpu.vector_store %arg12[%c0_117, %c0_118], %135 {strides = array<i32>} : memref<400x128xf32, #tpu.memory_space<vmem>>, vector<400x128xf32>,
    %c0_119 = arith.constant 0 : index
    %c0_120 = arith.constant 0 : index
    %137 = vector.load %arg12[%c0_119, %c0_120] : memref<400x128xf32, #tpu.memory_space<vmem>>, vector<8x128xf32>
    %c10_121 = arith.constant 10 : index
    %c0_122 = arith.constant 0 : index
    %138 = vector.load %arg12[%c10_121, %c0_122] : memref<400x128xf32, #tpu.memory_space<vmem>>, vector<8x128xf32>
    %c20_123 = arith.constant 20 : index
    %c0_124 = arith.constant 0 : index
    %139 = vector.load %arg12[%c20_123, %c0_124] : memref<400x128xf32, #tpu.memory_space<vmem>>, vector<8x128xf32>
    %c30 = arith.constant 30 : index
    %c0_125 = arith.constant 0 : index
    %140 = vector.load %arg12[%c30, %c0_125] : memref<400x128xf32, #tpu.memory_space<vmem>>, vector<8x128xf32>
    %c40 = arith.constant 40 : index
    %c0_126 = arith.constant 0 : index
    %141 = vector.load %arg12[%c40, %c0_126] : memref<400x128xf32, #tpu.memory_space<vmem>>, vector<8x128xf32>
    %c50 = arith.constant 50 : index
    %c0_127 = arith.constant 0 : index
    %142 = vector.load %arg12[%c50, %c0_127] : memref<400x128xf32, #tpu.memory_space<vmem>>, vector<8x128xf32>
    %c60 = arith.constant 60 : index
    %c0_128 = arith.constant 0 : index
    %143 = vector.load %arg12[%c60, %c0_128] : memref<400x128xf32, #tpu.memory_space<vmem>>, vector<8x128xf32>
    %c70 = arith.constant 70 : index
    %c0_129 = arith.constant 0 : index
    %144 = vector.load %arg12[%c70, %c0_129] : memref<400x128xf32, #tpu.memory_space<vmem>>, vector<8x128xf32>
    %c100 = arith.constant 100 : index
    %c0_130 = arith.constant 0 : index
    %145 = vector.load %arg12[%c100, %c0_130] : memref<400x128xf32, #tpu.memory_space<vmem>>, vector<8x128xf32>
    %c110 = arith.constant 110 : index
    %c0_131 = arith.constant 0 : index
    %146 = vector.load %arg12[%c110, %c0_131] : memref<400x128xf32, #tpu.memory_space<vmem>>, vector<8x128xf32>
    %c120 = arith.constant 120 : index
    %c0_132 = arith.constant 0 : index
    %147 = vector.load %arg12[%c120, %c0_132] : memref<400x128xf32, #tpu.memory_space<vmem>>, vector<8x128xf32>
    %c130 = arith.constant 130 : index
    %c0_133 = arith.constant 0 : index
    %148 = vector.load %arg12[%c130, %c0_133] : memref<400x128xf32, #tpu.memory_space<vmem>>, vector<8x128xf32>
    %c140 = arith.constant 140 : index
    %c0_134 = arith.constant 0 : index
    %149 = vector.load %arg12[%c140, %c0_134] : memref<400x128xf32, #tpu.memory_space<vmem>>, vector<8x128xf32>
    %c150 = arith.constant 150 : index
    %c0_135 = arith.constant 0 : index
    %150 = vector.load %arg12[%c150, %c0_135] : memref<400x128xf32, #tpu.memory_space<vmem>>, vector<8x128xf32>
    %c160 = arith.constant 160 : index
    %c0_136 = arith.constant 0 : index
    %151 = vector.load %arg12[%c160, %c0_136] : memref<400x128xf32, #tpu.memory_space<vmem>>, vector<8x128xf32>
    %c170 = arith.constant 170 : index
    %c0_137 = arith.constant 0 : index
    %152 = vector.load %arg12[%c170, %c0_137] : memref<400x128xf32, #tpu.memory_space<vmem>>, vector<8x128xf32>
    %c200 = arith.constant 200 : index
    %c0_138 = arith.constant 0 : index
    %153 = vector.load %arg12[%c200, %c0_138] : memref<400x128xf32, #tpu.memory_space<vmem>>, vector<8x128xf32>
    %c210 = arith.constant 210 : index
    %c0_139 = arith.constant 0 : index
    %154 = vector.load %arg12[%c210, %c0_139] : memref<400x128xf32, #tpu.memory_space<vmem>>, vector<8x128xf32>
    %c220 = arith.constant 220 : index
    %c0_140 = arith.constant 0 : index
    %155 = vector.load %arg12[%c220, %c0_140] : memref<400x128xf32, #tpu.memory_space<vmem>>, vector<8x128xf32>
    %c230 = arith.constant 230 : index
    %c0_141 = arith.constant 0 : index
    %156 = vector.load %arg12[%c230, %c0_141] : memref<400x128xf32, #tpu.memory_space<vmem>>, vector<8x128xf32>
    %c240 = arith.constant 240 : index
    %c0_142 = arith.constant 0 : index
    %157 = vector.load %arg12[%c240, %c0_142] : memref<400x128xf32, #tpu.memory_space<vmem>>, vector<8x128xf32>
    %c250 = arith.constant 250 : index
    %c0_143 = arith.constant 0 : index
    %158 = vector.load %arg12[%c250, %c0_143] : memref<400x128xf32, #tpu.memory_space<vmem>>, vector<8x128xf32>
    %c260 = arith.constant 260 : index
    %c0_144 = arith.constant 0 : index
    %159 = vector.load %arg12[%c260, %c0_144] : memref<400x128xf32, #tpu.memory_space<vmem>>, vector<8x128xf32>
    %c270 = arith.constant 270 : index
    %c0_145 = arith.constant 0 : index
    %160 = vector.load %arg12[%c270, %c0_145] : memref<400x128xf32, #tpu.memory_space<vmem>>, vector<8x128xf32>
    %c300 = arith.constant 300 : index
    %c0_146 = arith.constant 0 : index
    %161 = vector.load %arg12[%c300, %c0_146] : memref<400x128xf32, #tpu.memory_space<vmem>>, vector<8x128xf32>
    %c310 = arith.constant 310 : index
    %c0_147 = arith.constant 0 : index
    %162 = vector.load %arg12[%c310, %c0_147] : memref<400x128xf32, #tpu.memory_space<vmem>>, vector<8x128xf32>
    %c320 = arith.constant 320 : index
    %c0_148 = arith.constant 0 : index
    %163 = vector.load %arg12[%c320, %c0_148] : memref<400x128xf32, #tpu.memory_space<vmem>>, vector<8x128xf32>
    %c330 = arith.constant 330 : index
    %c0_149 = arith.constant 0 : index
    %164 = vector.load %arg12[%c330, %c0_149] : memref<400x128xf32, #tpu.memory_space<vmem>>, vector<8x128xf32>
    %c340 = arith.constant 340 : index
    %c0_150 = arith.constant 0 : index
    %165 = vector.load %arg12[%c340, %c0_150] : memref<400x128xf32, #tpu.memory_space<vmem>>, vector<8x128xf32>
    %c350 = arith.constant 350 : index
    %c0_151 = arith.constant 0 : index
    %166 = vector.load %arg12[%c350, %c0_151] : memref<400x128xf32, #tpu.memory_space<vmem>>, vector<8x128xf32>
    %c360 = arith.constant 360 : index
    %c0_152 = arith.constant 0 : index
    %167 = vector.load %arg12[%c360, %c0_152] : memref<400x128xf32, #tpu.memory_space<vmem>>, vector<8x128xf32>
    %c370 = arith.constant 370 : index
    %c0_153 = arith.constant 0 : index
    %168 = vector.load %arg12[%c370, %c0_153] : memref<400x128xf32, #tpu.memory_space<vmem>>, vector<8x128xf32>
    %169 = tpu.concatenate %137, %138, %139, %140, %141, %142, %143, %144, %145, %146, %147, %148, %149, %150, %151, %152 in 0 : vector<8x128xf32>, vector<8x128xf32>, vector<8x128xf32>, vector<8x128xf32>, vector<8x128xf32>, vector<8x128xf32>, vector<8x128xf32>, vector<8x128xf32>, vector<8x128xf32>, vector<8x128xf32>, vector<8x128xf32>, vector<8x128xf32>, vector<8x128xf32>, vector<8x128xf32>, vector<8x128xf32>, vector<8x128xf32> -> vector<128x128xf32>
    %170 = tpu.concatenate %153, %154, %155, %156, %157, %158, %159, %160, %161, %162, %163, %164, %165, %166, %167, %168 in 0 : vector<8x128xf32>, vector<8x128xf32>, vector<8x128xf32>, vector<8x128xf32>, vector<8x128xf32>, vector<8x128xf32>, vector<8x128xf32>, vector<8x128xf32>, vector<8x128xf32>, vector<8x128xf32>, vector<8x128xf32>, vector<8x128xf32>, vector<8x128xf32>, vector<8x128xf32>, vector<8x128xf32>, vector<8x128xf32> -> vector<128x128xf32>
    %171 = tpu.concatenate %169, %170 in 0 : vector<128x128xf32>, vector<128x128xf32> -> vector<256x128xf32>
    %c0_154 = arith.constant 0 : index
    %c0_155 = arith.constant 0 : index
    %172 = vector.load %arg5[%c0_154, %c0_155] : memref<1x128xf32, #tpu.memory_space<vmem>>, vector<1x128xf32>
    %173 = vector.broadcast %172 : vector<1x128xf32> to vector<256x128xf32>
    %174 = arith.addf %171, %173 : vector<256x128xf32>
    %cst_156 = arith.constant 0.000000e+00 : f32
    %175 = vector.broadcast %cst_156 : f32 to vector<256x128xf32>
    %176 = arith.maximumf %174, %175 : vector<256x128xf32>
    %177 = arith.truncf %176 : vector<256x128xf32> to vector<256x128xbf16>
    %c0_157 = arith.constant 0 : index
    %c0_158 = arith.constant 0 : index
    %178 = vector.load %arg6[%c0_157, %c0_158] : memref<128x128xbf16, #tpu.memory_space<vmem>>, vector<128x128xbf16>
    %cst_159 = arith.constant dense<0.000000e+00> : vector<256x128xf32>
    %179 = tpu.matmul %177, %178, %cst_159 {dimension_numbers = #tpu.dot_dimension_numbers<[1], [0], [0], [1], [0, 0, 1, 1], [], []>} : vector<256x128xbf16>, vector<128x128xbf16>, vector<256x128xf32> -> vector<256x128xf32>
    %c0_160 = arith.constant 0 : index
    %c0_161 = arith.constant 0 : index
    %180 = vector.load %arg7[%c0_160, %c0_161] : memref<1x128xf32, #tpu.memory_space<vmem>>, vector<1x128xf32>
    %181 = vector.broadcast %180 : vector<1x128xf32> to vector<256x128xf32>
    %182 = arith.addf %179, %181 : vector<256x128xf32>
    %c0_162 = arith.constant 0 : index
    %c0_163 = arith.constant 0 : index
    %c0_164 = arith.constant 0 : index
    %c0_165 = arith.constant 0 : index
    %183 = vector.load %arg1[%c0_162, %c0_163, %c0_164, %c0_165] : memref<4x8x8x64xbf16, #tpu.memory_space<vmem>>, vector<4x8x8x64xbf16>
    %184 = vector.shape_cast %183 : vector<4x8x8x64xbf16> to vector<256x64xbf16>
    %c0_166 = arith.constant 0 : index
    %c0_167 = arith.constant 0 : index
    %185 = vector.load %arg8[%c0_166, %c0_167] : memref<64x128xbf16, #tpu.memory_space<vmem>>, vector<64x128xbf16>
    %cst_168 = arith.constant dense<0.000000e+00> : vector<256x128xf32>
    %186 = tpu.matmul %184, %185, %cst_168 {dimension_numbers = #tpu.dot_dimension_numbers<[1], [0], [0], [1], [0, 0, 1, 1], [], []>} : vector<256x64xbf16>, vector<64x128xbf16>, vector<256x128xf32> -> vector<256x128xf32>
    %c0_169 = arith.constant 0 : index
    %c0_170 = arith.constant 0 : index
    %187 = vector.load %arg9[%c0_169, %c0_170] : memref<1x128xf32, #tpu.memory_space<vmem>>, vector<1x128xf32>
    %188 = vector.broadcast %187 : vector<1x128xf32> to vector<256x128xf32>
    %189 = arith.addf %186, %188 : vector<256x128xf32>
    %190 = arith.addf %189, %182 : vector<256x128xf32>
    %cst_171 = arith.constant 0.000000e+00 : f32
    %191 = vector.broadcast %cst_171 : f32 to vector<256x128xf32>
    %192 = arith.maximumf %190, %191 : vector<256x128xf32>
    %193 = vector.shape_cast %192 : vector<256x128xf32> to vector<4x8x8x128xf32>
    %c0_172 = arith.constant 0 : index
    %c0_173 = arith.constant 0 : index
    %c0_174 = arith.constant 0 : index
    %c0_175 = arith.constant 0 : index
    %194 = vector.load %arg10[%c0_172, %c0_173, %c0_174, %c0_175] : memref<4x8x8x128xf32, #tpu.memory_space<vmem>>, vector<4x8x8x128xf32>
    tpu.vector_store %arg10[%c0_172, %c0_173, %c0_174, %c0_175], %193 {strides = array<i32>} : memref<4x8x8x128xf32, #tpu.memory_space<vmem>>, vector<4x8x8x128xf32>,
    return
  }
  func.func @transform_0(%arg0: i32) -> (i32, i32, i32, i32) {
    %c0_i32 = arith.constant 0 : i32
    %c0_i32_0 = arith.constant 0 : i32
    %c0_i32_1 = arith.constant 0 : i32
    %c0_i32_2 = arith.constant 0 : i32
    return %arg0, %c0_i32, %c0_i32_0, %c0_i32_1 : i32, i32, i32, i32
  }
  func.func @transform_1(%arg0: i32) -> (i32, i32) {
    %c0_i32 = arith.constant 0 : i32
    %c0_i32_0 = arith.constant 0 : i32
    %c0_i32_1 = arith.constant 0 : i32
    return %c0_i32, %c0_i32_0 : i32, i32
  }
  func.func @transform_2(%arg0: i32) -> (i32, i32) {
    %c0_i32 = arith.constant 0 : i32
    %c0_i32_0 = arith.constant 0 : i32
    %c0_i32_1 = arith.constant 0 : i32
    return %c0_i32, %c0_i32_0 : i32, i32
  }
  func.func @transform_3(%arg0: i32) -> (i32, i32, i32) {
    %c0_i32 = arith.constant 0 : i32
    %c0_i32_0 = arith.constant 0 : i32
    %c0_i32_1 = arith.constant 0 : i32
    %c0_i32_2 = arith.constant 0 : i32
    return %c0_i32, %c0_i32_0, %c0_i32_1 : i32, i32, i32
  }
  func.func @transform_4(%arg0: i32) -> (i32, i32) {
    %c0_i32 = arith.constant 0 : i32
    %c0_i32_0 = arith.constant 0 : i32
    %c0_i32_1 = arith.constant 0 : i32
    return %c0_i32, %c0_i32_0 : i32, i32
  }
  func.func @transform_5(%arg0: i32) -> (i32, i32) {
    %c0_i32 = arith.constant 0 : i32
    %c0_i32_0 = arith.constant 0 : i32
    %c0_i32_1 = arith.constant 0 : i32
    return %c0_i32, %c0_i32_0 : i32, i32
  }
  func.func @transform_6(%arg0: i32) -> (i32, i32) {
    %c0_i32 = arith.constant 0 : i32
    %c0_i32_0 = arith.constant 0 : i32
    %c0_i32_1 = arith.constant 0 : i32
    return %c0_i32, %c0_i32_0 : i32, i32
  }
  func.func @transform_7(%arg0: i32) -> (i32, i32) {
    %c0_i32 = arith.constant 0 : i32
    %c0_i32_0 = arith.constant 0 : i32
    %c0_i32_1 = arith.constant 0 : i32
    return %c0_i32, %c0_i32_0 : i32, i32
  }
  func.func @transform_8(%arg0: i32) -> (i32, i32) {
    %c0_i32 = arith.constant 0 : i32
    %c0_i32_0 = arith.constant 0 : i32
    %c0_i32_1 = arith.constant 0 : i32
    return %c0_i32, %c0_i32_0 : i32, i32
  }
  func.func @transform_9(%arg0: i32) -> (i32, i32, i32, i32) {
    %c0_i32 = arith.constant 0 : i32
    %c0_i32_0 = arith.constant 0 : i32
    %c0_i32_1 = arith.constant 0 : i32
    %c0_i32_2 = arith.constant 0 : i32
    return %arg0, %c0_i32, %c0_i32_0, %c0_i32_1 : i32, i32, i32, i32
  }
}

</mosaic_0001>

<bundles_post_ra>
// kernel: tpu_custom_call.1
= control target key start
LH: loop header
LB: loop body
LE: loop exit
PB: predicated region body
PF: predicated region fallthrough
CT: control target
= control target key end

     0   :  { %s13491_s0 = inlined_call_operand.hbm [shape: bf16[8,8,8,64], index: 0, kind: input, shape index: {}]   ;;  %s13492_s1 = inlined_call_operand.hbm [shape: bf16[64,128], index: 1, kind: input, shape index: {}]   ;;  %s13493_s2 = inlined_call_operand.vmem [shape: f32[1,128], index: 2, kind: input, shape index: {}]   ;;  %s13494_s3 = inlined_call_operand.hbm [shape: bf16[9,128,128], index: 3, kind: input, shape index: {}]   ;;  %s13495_s4 = inlined_call_operand.vmem [shape: f32[1,128], index: 4, kind: input, shape index: {}]   ;;  %s13496_s5 = inlined_call_operand.hbm [shape: bf16[128,128], index: 5, kind: input, shape index: {}]   ;;  %s13497_s6 = inlined_call_operand.vmem [shape: f32[1,128], index: 6, kind: input, shape index: {}]   ;;  %s13498_s7 = inlined_call_operand.hbm [shape: bf16[64,128], index: 7, kind: input, shape index: {}]   ;;  %s13499_s8 = inlined_call_operand.vmem [shape: f32[1,128], index: 8, kind: input, shape index: {}]   ;;  %s13500_s9 = inlined_call_operand.hbm [shape: f32[8,8,8,128], index: 9, kind: output, shape index: {}]  }
   0x1   :  { %13510 = sst [smem:[#allocation18_spill]] %s13492_s1 }
   0x2   :  { %13511 = sst [smem:[#allocation19_spill]] %s13494_s3 }
   0x3   :  { %13512 = sst [smem:[#allocation20_spill]] %s13496_s5 }
   0x4   :  { %14 = vsyncpa [#allocation5], 0 }
   0x5   :  { %16 = vsyncpa [#allocation5 + $0x1], 0 }
   0x6   :  { %17 = vsyncpa [#allocation8], 0 }
   0x7   :  { %18 = vsyncpa [#allocation11], 0 }
   0x8   :  { %19 = vsyncpa [#allocation6], 0 }
   0x9   :  { %21 = vsyncpa [#allocation6 + $0x1], 0  ;;  %s11872_s30 = smov 0   ;;  %s11874_s10 = smov 0  }
   0xa   :  { %s11876_s11 = smov 0   ;;  %s11878_s12 = smov 0  }
   0xb LB: > { %s11893_s13 = sadd.s32 4294967295, %s11807_s12   ;;  %s9141_s14 = sadd.s32 4294967294, %s11807_s12   ;;  %s11807_s12 = sphi %s11878_s12, %s13569_s12   ;;  %s11803_s11 = sphi %s11876_s11, %s13568_s11   ;;  %s11799_s10 = sphi %s11874_s10, %s13567_s10   ;;  %s11795_s30 = sphi %s11872_s30, %s13566_s30  }
   0xc   : > { %p47_p0 = scmp.ne.s32.totalorder %s11799_s10, %s11795_s30  ;;  %p13501_p1 = scmp.eq.s32.totalorder %s11893_s13, 0 }
   0xd   : > { %p239_p2 = scmp.eq.s32.totalorder %s11893_s13, 1  ;;  %p245_p3 = scmp.eq.s32.totalorder %s9141_s14, 1 }
   0xe   : > { %p11902_p4 = por %p13501_p1, %p47_p0  ;;  %p9142_p5 = scmp.ge.s32.totalorder %s11807_s12, 1 }
   0xf   : > { %p11907_p6 = por %p245_p3, %p47_p0  ;;  %p252_p7 = scmp.lt.s32.totalorder %s11807_s12, 3 }
  0x10   : > { %s13513_s15 = scalar_select %p11902_p4, 1, 0 }
  0x11   : > { %s13514_s16 = scalar_select %p11907_p6, 1, 0 }
  0x12   : > { %p11912_p8 = pnand %p9142_p5, %p252_p7  ;;  %s11809_s18 = smov [#allocation7]  }
  0x13   : > { %s264_s19 = sshll.u32 %s11809_s18, 4  ;;  %s11810_s21 = smov [#allocation10]   ;;  %s265_s19 = int_to_ptr.vmem [resolvable:$true] %s264_s19 }
  0x14   : > { %s13515_s17 = scalar_select %p11912_p8, 1, 0 }
  0x15   : > { %p11175_p9 = pneg %p11912_p8  ;;  %s296_s22 = sshll.u32 %s11810_s21, 4  ;;  %s297_s22 = int_to_ptr.vmem [resolvable:$true] %s296_s22 }
  0x16   : > { %s11811_s23 = smov [#allocation9]   ;;  %s11614_s25 = scalar_lea.vmem %s265_s19, 512 }
  0x17   : > { %p11921_p11 = pnand %p11175_p9, %p13501_p1  ;;  %s280_s24 = sshll.u32 %s11811_s23, 4  ;;  %s281_s24 = int_to_ptr.vmem [resolvable:$true] %s280_s24 }
  0x18   : > { %p11615_p13 = scmp.ne.s32.totalorder %s265_s19, %s11614_s25  ;;  %p11622_p5 = scmp.lt.s32.totalorder %s265_s19, %s265_s19 }
  0x19   : > { %p11605_p12 = pneg %p11921_p11  ;;  %p11623_p7 = scmp.lt.s32.totalorder %s11614_s25, %s11614_s25 }
  0x1b   : > { %p11617_p0 = pnand %p11615_p13, %p11605_p12  ;;  %p11624_p9 = por %p11623_p7, %p11622_p5 }
  0x1d   : > { %p11618_p3 = pneg %p11617_p0 }
  0x1f   : > { %p11625_p10 = pnand %p11624_p9, %p11618_p3 }
  0x21   : > { %11628 = shalt.err (!%p11625_p10)
}
  0x22   : > { %s13502_s26 = smov 64   ;;  %s13503_s27 = smov 4  }
  0x23   : > { %s13517_s1 = sld [smem:[#allocation18_spill]]  ;;  %s11640_s14 = scalar_lea.vmem %s297_s22, 1024 }
  0x24   : > { %p11641_p13 = scmp.ne.s32.totalorder %s297_s22, %s11640_s14  ;;  %p11648_p3 = scmp.lt.s32.totalorder %s297_s22, %s297_s22 }
  0x25   : > { %p11649_p10 = scmp.lt.s32.totalorder %s11640_s14, %s11640_s14 }
  0x26   : > { %p11643_p0 = pnand %p11641_p13, %p11605_p12 }
  0x27   : > { %p11650_p7 = por %p11649_p10, %p11648_p3 }
  0x28   : > { %p11644_p5 = pneg %p11643_p0 }
  0x29   : > { %11178 = dma.hbm_to_vmem [thread:$0]  (!%p11921_p11), %s13517_s1, 512, %s265_s19, [#allocation8], %s13502_s26, %s13502_s26, %s13503_s27  }
  0x2a   : > { %p11651_p9 = pnand %p11650_p7, %p11644_p5 }
  0x2c   : > { %11654 = shalt.err (!%p11651_p9)
}
  0x2d   : > { %s13518_s5 = sld [smem:[#allocation20_spill]]  ;;  %s11666_s19 = scalar_lea.vmem %s281_s24, 9216 }
  0x2e   : > { %p11667_p1 = scmp.ne.s32.totalorder %s281_s24, %s11666_s19  ;;  %p11674_p3 = scmp.lt.s32.totalorder %s281_s24, %s281_s24 }
  0x2f   : > { %p11675_p5 = scmp.lt.s32.totalorder %s11666_s19, %s11666_s19 }
  0x30   : > { %p11669_p13 = pnand %p11667_p1, %p11605_p12 }
  0x31   : > { %p11676_p10 = por %p11675_p5, %p11674_p3 }
  0x32   : > { %p11670_p0 = pneg %p11669_p13 }
  0x33   : > { %11184 = dma.hbm_to_vmem [thread:$0]  (!%p11921_p11), %s13518_s5, 1024, %s297_s22, [#allocation11], %s13502_s26, %s13502_s26, %s13503_s27  }
  0x34   : > { %p11677_p7 = pnand %p11676_p10, %p11670_p0 }
  0x36   : > { %11680 = shalt.err (!%p11677_p7)
}
  0x37   : > { %s13519_s3 = sld [smem:[#allocation19_spill]]  ;;  %s11814_s22 = smov [#allocation12]  }
  0x38   : > { %s312_s28 = sshll.u32 %s11814_s22, 4  ;;  %s313_s28 = int_to_ptr.vmem [resolvable:$true] %s312_s28 }
  0x39   : > { %s11692_s29 = scalar_lea.vmem %s313_s28, 512  ;;  %p11700_p0 = scmp.lt.s32.totalorder %s313_s28, %s313_s28 }
  0x3a   : > { %p11693_p1 = scmp.ne.s32.totalorder %s313_s28, %s11692_s29  ;;  %p11701_p3 = scmp.lt.s32.totalorder %s11692_s29, %s11692_s29 }
  0x3c   : > { %p11695_p9 = pnand %p11693_p1, %p11605_p12  ;;  %p11702_p5 = por %p11701_p3, %p11700_p0 }
  0x3d   : > { %11181 = dma.hbm_to_vmem [thread:$0]  (!%p11921_p11), %s13519_s3, 9216, %s281_s24, [#allocation8], %s13502_s26, %s13502_s26, %s13503_s27  }
  0x3e   : > { %p11696_p13 = pneg %p11695_p9 }
  0x40   : > { %p11703_p10 = pnand %p11702_p5, %p11696_p13 }
  0x42   : > { %11706 = shalt.err (!%p11703_p10)
}
  0x43   : > { %11187 = dma.hbm_to_vmem [thread:$0]  (!%p11921_p11), %s13498_s7, 512, %s313_s28, [#allocation11], %s13502_s26, %s13502_s26, %s13503_s27  }
  0x44   : > { %s11972_s18 = sadd.s32 1, %s11807_s12   ;;  %s34_s20 = sadd.s32 1, %s11803_s11 }
  0x45   : > { %s31_s21 = ssub.s32 %s11807_s12, %s11972_s18  ;;  %p41_p12 = scmp.ne.s32.totalorder %s11803_s11, %s11799_s10 }
  0x46   : > { %p32_p7 = scmp.eq.s32.totalorder %s31_s21, 0  ;;  %p42_p1 = scmp.eq.s32.totalorder %s11807_s12, 0 }
  0x47   : > { %p11982_p9 = por %p239_p2, %p41_p12  ;;  %p11200_p13 = scmp.lt.s32.totalorder %s11807_s12, 2 }
  0x48   : > { %s11988_s23 = scalar_select %p32_p7, %s11803_s11, %s34_s20  }
  0x49   : > { %s13520_s19 = scalar_select %p11982_p9, 1, 0 }
  0x4a   : > { %p43_p0 = por %p42_p1, %p41_p12  ;;  %s329_s25 = sand.u32 1, %s11803_s11  }
  0x4b   : > { %s9148_s22 = sshll.u32 %s329_s25, 7  ;;  %s9587_s28 = sshll.u32 %s11807_s12, 11 }
  0x4c   : > { %s11995_s14 = scalar_lea.hbm %s13491_s0, %s9587_s28  ;;  %s333_s21 = scalar_lea.vmem [#allocation4], %s9148_s22 }
  0x4d   : > { %s341_s26 = sshll.u32 %s333_s21, 4  ;;  %p11999_p2 = pnand %p11200_p13, %p43_p0  ;;  %s11997_s26 = int_to_ptr.vmem [resolvable:$true] %s341_s26 }
  0x4e   : > { %s12003_s20 = scalar_lea.sflag [#allocation5], %s329_s25  ;;  %s11707_s1 = scalar_lea.hbm %s11995_s14, 2048 }
  0x4f   : > { %p11708_p11 = scmp.ne.s32.totalorder %s11995_s14, %s11707_s1  ;;  %p11709_p3 = pneg %p11999_p2 }
  0x50   : > { %s11712_s22 = scalar_lea.hbm %s13491_s0, 4096  ;;  %p11713_p12 = scmp.lt.s32.totalorder %s11995_s14, %s13491_s0 }
  0x51   : > { %p11710_p5 = pnand %p11709_p3, %p11708_p11  ;;  %p11714_p7 = scmp.lt.s32.totalorder %s11712_s22, %s11707_s1 }
  0x53   : > { %p11711_p10 = pneg %p11710_p5  ;;  %p11715_p1 = por %p11714_p7, %p11713_p12 }
  0x55   : > { %p11716_p13 = pnand %p11715_p1, %p11711_p10 }
  0x57   : > { %11719 = shalt.err (!%p11716_p13)
}
  0x58   : > { %s11720_s25 = scalar_lea.vmem %s11997_s26, 2048  ;;  %s11815_s3 = smov [#allocation4]  }
  0x59   : > { %p11721_p0 = scmp.ne.s32.totalorder %s11997_s26, %s11720_s25  ;;  %s11725_s5 = sshll.u32 %s11815_s3, 4  ;;  %s11726_s5 = int_to_ptr.vmem [resolvable:$false] %s11725_s5 }
  0x5a   : > { %s11727_s28 = scalar_lea.vmem %s11726_s5, 4096  ;;  %p11728_p5 = scmp.lt.s32.totalorder %s11997_s26, %s11726_s5 }
  0x5b   : > { %p11723_p6 = pnand %p11721_p0, %p11709_p3  ;;  %p11729_p9 = scmp.lt.s32.totalorder %s11727_s28, %s11720_s25 }
  0x5d   : > { %p11724_p11 = pneg %p11723_p6  ;;  %p11730_p4 = por %p11729_p9, %p11728_p5 }
  0x5f   : > { %p11731_p8 = pnand %p11730_p4, %p11724_p11 }
  0x61   : > { %11734 = shalt.err (!%p11731_p8)
}
  0x62   : > { %s13522_s1 = smov 4   ;;  %s13523_s29 = smov 64  }
  0x63   : > { %11191 = dma.hbm_to_vmem [thread:$0]  (!%p11999_p2), %s11995_s14, 2048, %s11997_s26, %s12003_s20, %s13523_s29, %s13523_s29, %s13522_s1  }
  0x64   : > { %p13524_p6 = scmp.ne.s32.totalorder %s13515_s17, 0 }
  0x65   : > { %s12030_s3 = sand.u32 (!%p13524_p6), 1, %s11799_s10   ;;  %p13525_p4 = scmp.ne.s32.totalorder (!%p13524_p6), %s13513_s15, 0 }
  0x66   : > { %353 = sbr.rel (%p13524_p6) target bundleno = 1828 (0x724), region = 56  ;;  %s9153_s5 = sshll.u32 (!%p13524_p6), %s12030_s3, 7 }
  0x67   : > { %s356_s22 = scalar_lea.sflag (!%p13524_p6), [#allocation5], %s12030_s3  ;;  %s12034_s24 = scalar_lea.vmem (!%p13524_p6), [#allocation4], %s9153_s5 }
  0x6b   : > { %11778 = dma.done.wait (%p13525_p4), %s356_s22, 2048  }
  0x6c   : > { %11780 = vsyncadd (%p13525_p4), %s356_s22, 4294965248  ;;  %p13526_p8 = scmp.eq.s32.totalorder %s11893_s13, 0 }
  0x6e   : > { %11782 = dma.done.wait (%p13526_p8), [#allocation8], 9728   ;;  %p13527_p9 = pmov %p13526_p8 }
  0x6f   : > { %p13528_p2 = pmov %p13526_p8 }
  0x70   : > { %11784 = vsyncadd (%p13527_p9), [#allocation8], 4294957568 }
  0x71   : > { %11786 = dma.done.wait (%p13528_p2), [#allocation11], 1536   ;;  %p13529_p3 = pmov %p13528_p2 }
  0x72   : > { %v11816_v0 = vmov 0.0   ;;  %v11249_v1 = vld [vmem:[#allocation7 + $0x18] sm:$0xff]   ;;  %v11250_v2 = vld [vmem:[#allocation7 + $0x10] sm:$0xff]   ;;  %v11251_v3 = vld [vmem:[#allocation7 + $0x8] sm:$0xff]   ;;  %vm13507_vm0 = vcmask 523264   ;;  %v11817_v24 = vmov 0  }
  0x73   : > { %11788 = vsyncadd (%p13529_p3), [#allocation11], 4294965760  ;;  %10023 = vmatprep.subr.bf16.mxu1 %v11816_v0  ;;  %9983 = vmatprep.subr.bf16.mxu0 %v11249_v1  ;;  %v11253_v4 = vld [vmem:[%s12034_s24] sm:$0xff]   ;;  %v11254_v6 = vld [vmem:[%s12034_s24 + $0x8] sm:$0xff]   ;;  %825 = vst [vmem:[#allocation2 + $0xc] sm:$0xf] %v11817_v24 }
  0x74   : > { %9984 = vmatpush3.bf16.msra.mxu0 %v11249_v1  ;;  %9991 = vmatprep.mubr.msk.bf16.mxu0 %vm13507_vm0, %v11253_v4  ;;  %v11252_v5 = vld [vmem:[#allocation7] sm:$0xff]   ;;  %v11255_v7 = vld [vmem:[%s12034_s24 + $0x10] sm:$0xff]   ;;  %v11256_v8 = vld [vmem:[%s12034_s24 + $0x18] sm:$0xff]   ;;  %826 = vst [vmem:[#allocation2 + $0x10] sm:$0xf] %v11817_v24  ;;  %vm13508_vm1 = vmmov 0  }
  0x75   : > { %9985 = vmatprep.subr.bf16.mxu0 %v11250_v2  ;;  %v11269_v9 = vld [vmem:[#allocation9 + $0x38] sm:$0xff]   ;;  %v11257_v10 = vld [vmem:[%s12034_s24 + $0x20] sm:$0xff]   ;;  %v11270_v11 = vld [vmem:[#allocation9 + $0x30] sm:$0xff]   ;;  %822 = vst [vmem:[#allocation2] sm:$0xf] %v11817_v24  ;;  %10039 = vmatprep.mubr.msk.bf16.mxu1 %vm13508_vm1, %v11816_v0  ;;  %vm940_vm2 = vcmask 1043459  }
  0x76   : > { %10024 = vmatpush3.bf16.msra.mxu1 %v11269_v9  ;;  %v11258_v12 = vld [vmem:[%s12034_s24 + $0x28] sm:$0xff]   ;;  %v11259_v13 = vld [vmem:[%s12034_s24 + $0x30] sm:$0xff]   ;;  %v11260_v14 = vld [vmem:[%s12034_s24 + $0x38] sm:$0xff]   ;;  %823 = vst [vmem:[#allocation2 + $0x4] sm:$0xf] %v11817_v24  ;;  %vm946_vm4 = vcmask 1043456  }
  0x77   : > { %10025 = vmatprep.subr.bf16.mxu1 %v11816_v0  ;;  %v11261_v15 = vld [vmem:[%s12034_s24 + $0x40] sm:$0xff]   ;;  %v11262_v16 = vld [vmem:[%s12034_s24 + $0x48] sm:$0xff]   ;;  %v11263_v17 = vld [vmem:[%s12034_s24 + $0x50] sm:$0xff]   ;;  %824 = vst [vmem:[#allocation2 + $0x8] sm:$0xf] %v11817_v24  ;;  %vm889_vm6 = vcmask 1043457  }
  0x78   : > { %9986 = vmatpush3.bf16.msra.mxu0 %v11250_v2  ;;  %v11264_v18 = vld [vmem:[%s12034_s24 + $0x58] sm:$0xff]   ;;  %v11265_v19 = vld [vmem:[%s12034_s24 + $0x60] sm:$0xff]   ;;  %v11266_v20 = vld [vmem:[%s12034_s24 + $0x68] sm:$0xff]   ;;  %827 = vst [vmem:[#allocation2 + $0x14] sm:$0xf] %v11817_v24  ;;  %vm895_vm9 = vcmask 1041408  }
  0x79   : > { %9987 = vmatprep.subr.bf16.mxu0 %v11251_v3  ;;  %v11267_v21 = vld [vmem:[%s12034_s24 + $0x70] sm:$0xff]   ;;  %v11268_v22 = vld [vmem:[%s12034_s24 + $0x78] sm:$0xff]   ;;  %v11271_v23 = vld [vmem:[#allocation9 + $0x28] sm:$0xff]   ;;  %828 = vst [vmem:[#allocation2 + $0x18] sm:$0xf] %v11817_v24  ;;  %vm969_vm11 = vcmask 1040384  }
  0x7a   : > { %10026 = vmatpush3.bf16.msra.mxu1 %v11270_v11  ;;  %829 = vst [vmem:[#allocation2 + $0x1c] sm:$0xf] %v11817_v24  ;;  %830 = vst [vmem:[#allocation2 + $0x20] sm:$0xf] %v11817_v24  ;;  %v11273_v25 = vld [vmem:[#allocation9 + $0x78] sm:$0xff]   ;;  %v11272_v26 = vld [vmem:[#allocation9 + $0x20] sm:$0xff]  }
  0x7b   : > { %10027 = vmatprep.subr.bf16.mxu1 %v11816_v0  ;;  %831 = vst [vmem:[#allocation2 + $0x24] sm:$0xf] %v11817_v24  ;;  %832 = vst [vmem:[#allocation2 + $0x28] sm:$0xf] %v11817_v24  ;;  %v11275_v27 = vld [vmem:[#allocation9 + $0x70] sm:$0xff]   ;;  %v11274_v28 = vld [vmem:[#allocation9 + $0x18] sm:$0xff]  }
  0x7c   : > { %9988 = vmatpush3.bf16.msra.mxu0 %v11251_v3  ;;  %833 = vst [vmem:[#allocation2 + $0x2c] sm:$0xf] %v11817_v24  ;;  %834 = vst [vmem:[#allocation2 + $0x30] sm:$0xf] %v11817_v24  ;;  %v11277_v29 = vld [vmem:[#allocation9 + $0x68] sm:$0xff]   ;;  %v11276_v30 = vld [vmem:[#allocation9 + $0x10] sm:$0xff]  }
  0x7d   : > { %9989 = vmatprep.subr.bf16.mxu0 %v11252_v5  ;;  %835 = vst [vmem:[#allocation2 + $0x34] sm:$0xf] %v11817_v24  ;;  %836 = vst [vmem:[#allocation2 + $0x38] sm:$0xf] %v11817_v24  ;;  %v11279_v31 = vld [vmem:[#allocation9 + $0x60] sm:$0xff]   ;;  %v11278_v32 = vld [vmem:[#allocation9 + $0x8] sm:$0xff]  }
  0x7e   : > { %10028 = vmatpush3.bf16.msra.mxu1 %v11271_v23  ;;  %837 = vst [vmem:[#allocation2 + $0x3c] sm:$0xf] %v11817_v24  ;;  %838 = vst [vmem:[#allocation2 + $0x40] sm:$0xf] %v11817_v24  ;;  %v11281_v33 = vld [vmem:[#allocation9 + $0x58] sm:$0xff]   ;;  %v11280_v34 = vld [vmem:[#allocation9] sm:$0xff]  }
  0x7f   : > { %839 = vst [vmem:[#allocation2 + $0x44] sm:$0xf] %v11817_v24  ;;  %840 = vst [vmem:[#allocation2 + $0x48] sm:$0xf] %v11817_v24  ;;  %10029 = vmatprep.subr.bf16.mxu1 %v11816_v0  ;;  %v11283_v35 = vld [vmem:[#allocation9 + $0x50] sm:$0xff]   ;;  %v11285_v36 = vld [vmem:[#allocation9 + $0x48] sm:$0xff]  }
  0x80   : > { %9990 = vmatpush3.bf16.msra.mxu0 %v11252_v5  ;;  %841 = vst [vmem:[#allocation2 + $0x4c] sm:$0xf] %v11817_v24  ;;  %842 = vst [vmem:[#allocation2 + $0x50] sm:$0xf] %v11817_v24  ;;  %v11287_v37 = vld [vmem:[#allocation9 + $0x40] sm:$0xff]   ;;  %vm914_vm14 = vcmask 1043458  }
  0x81   : > { %10139 = vmatprep.subr.bf16.mxu0 %v11816_v0  ;;  %843 = vst [vmem:[#allocation2 + $0x54] sm:$0xf] %v11817_v24  ;;  %844 = vst [vmem:[#allocation2 + $0x58] sm:$0xf] %v11817_v24  ;;  %v12105_v38 = vld [vmem:[%s13493_s2] ss:$0 sm:$0xff] }
  0x82   : > { %845 = vst [vmem:[#allocation2 + $0x5c] sm:$0xf] %v11817_v24  ;;  %846 = vst [vmem:[#allocation2 + $0x60] sm:$0xf] %v11817_v24  ;;  %10030 = vmatpush3.bf16.msra.mxu1 %v11272_v26  ;;  %vm941_vm3 = vsmask.f32 7950 }
  0x83   : > { %9992 = vmatmul.mubr.msk.bf16.vlgmr.msra.gmra.mxu0 %vm13507_vm0, %v11254_v6  ;;  %847 = vst [vmem:[#allocation2 + $0x64] sm:$0xf] %v11817_v24  ;;  %848 = vst [vmem:[#allocation2 + $0x68] sm:$0xf] %v11817_v24  ;;  %10031 = vmatprep.subr.bf16.mxu1 %v11816_v0  ;;  %vm947_vm5 = vsmask.f32 3328 }
  0x84   : > { %9995 = vmatprep.mubr.msk.bf16.mxu0 %vm13507_vm0, %v11255_v7  ;;  %849 = vst [vmem:[#allocation2 + $0x6c] sm:$0xf] %v11817_v24  ;;  %850 = vst [vmem:[#allocation2 + $0x70] sm:$0xf] %v11817_v24  ;;  %10140 = vmatpush3.bf16.msra.mxu0 %v11273_v25  ;;  %vm890_vm7 = vsmask.f32 7942 }
  0x85   : > { %851 = vst [vmem:[#allocation2 + $0x74] sm:$0xf] %v11817_v24  ;;  %852 = vst [vmem:[#allocation2 + $0x78] sm:$0xf] %v11817_v24  ;;  %10141 = vmatprep.subr.bf16.mxu0 %v11816_v0  ;;  %vm896_vm8 = vsmask.f32 1280 }
  0x86   : > { %853 = vst [vmem:[#allocation2 + $0x7c] sm:$0xf] %v11817_v24  ;;  %854 = vst [vmem:[#allocation2 + $0x80] sm:$0xf] %v11817_v24  ;;  %10032 = vmatpush3.bf16.msra.mxu1 %v11274_v28  ;;  %vm964_vm10 = vsmask.f32 7938 }
  0x87   : > { %855 = vst [vmem:[#allocation2 + $0x84] sm:$0xf] %v11817_v24  ;;  %856 = vst [vmem:[#allocation2 + $0x88] sm:$0xf] %v11817_v24  ;;  %10033 = vmatprep.subr.bf16.mxu1 %v11816_v0  ;;  %vm970_vm12 = vsmask.f32 256 }
  0x88   : > { %857 = vst [vmem:[#allocation2 + $0x8c] sm:$0xf] %v11817_v24  ;;  %858 = vst [vmem:[#allocation2 + $0x90] sm:$0xf] %v11817_v24  ;;  %10142 = vmatpush3.bf16.msra.mxu0 %v11275_v27  ;;  %v943_v54 = vld [vmem:[#allocation2 + $0xc] sm:$0x8] }
  0x89   : > { %859 = vst [vmem:[#allocation2 + $0x94] sm:$0xf] %v11817_v24  ;;  %860 = vst [vmem:[#allocation2 + $0x98] sm:$0xf] %v11817_v24  ;;  %10143 = vmatprep.subr.bf16.mxu0 %v11816_v0  ;;  %vm915_vm15 = vsmask.f32 7946 }
  0x8a   : > { %861 = vst [vmem:[#allocation2 + $0x9c] sm:$0xf] %v11817_v24  ;;  %862 = vst [vmem:[#allocation2 + $0xa0] sm:$0xf] %v11817_v24  ;;  %10034 = vmatpush3.bf16.msra.mxu1 %v11276_v30  ;;  %v949_v5 = vld [vmem:[#allocation2 + $0x10] sm:$0xf] }
  0x8b   : > { %9996 = vmatmul.mubr.msk.bf16.gmra.mxu0 %vm13507_vm0, %v11256_v8  ;;  %863 = vst [vmem:[#allocation2 + $0xa4] sm:$0xf] %v11817_v24  ;;  %864 = vst [vmem:[#allocation2 + $0xa8] sm:$0xf] %v11817_v24  ;;  %10035 = vmatprep.subr.bf16.mxu1 %v11816_v0  ;;  %v892_v9 = vld [vmem:[#allocation2 + $0x4] sm:$0xe] }
  0x8c   : > { %9999 = vmatprep.mubr.msk.bf16.mxu0 %vm13507_vm0, %v11257_v10  ;;  %865 = vst [vmem:[#allocation2 + $0xac] sm:$0xf] %v11817_v24  ;;  %866 = vst [vmem:[#allocation2 + $0xb0] sm:$0xf] %v11817_v24  ;;  %10144 = vmatpush3.bf16.msra.mxu0 %v11277_v29  ;;  %v966_v30 = vld [vmem:[#allocation2 + $0x14] sm:$0xf] }
  0x8d   : > { %867 = vst [vmem:[#allocation2 + $0xb4] sm:$0xf] %v11817_v24  ;;  %868 = vst [vmem:[#allocation2 + $0xb8] sm:$0xf] %v11817_v24  ;;  %10145 = vmatprep.subr.bf16.mxu0 %v11816_v0  ;;  %s9158_s29 = sshll.u32 %s12030_s3, 8  ;;  %s9621_s22 = sshll.u32 %s11893_s13, 12 }
  0x8e   : > { %869 = vst [vmem:[#allocation2 + $0xbc] sm:$0xf] %v11817_v24  ;;  %870 = vst [vmem:[#allocation2 + $0xc0] sm:$0xf] %v11817_v24  ;;  %10036 = vmatpush3.bf16.msra.mxu1 %v11278_v32  ;;  %v972_v32 = vld [vmem:[#allocation2 + $0x18] sm:$0x1]  ;;  %s13444_s26 = scalar_lea.hbm %s13500_s9, %s9621_s22 }
  0x8f   : > { %871 = vst [vmem:[#allocation2 + $0xc4] sm:$0xf] %v11817_v24  ;;  %872 = vst [vmem:[#allocation2 + $0xc8] sm:$0xf] %v11817_v24  ;;  %10037 = vmatprep.subr.bf16.mxu1 %v11816_v0  ;;  %s13325_s5 = scalar_lea.vmem [#allocation13], %s9158_s29  ;;  %s9016_s27 = scalar_lea.sflag [#allocation6], %s12030_s3 }
  0x90   : > { %873 = vst [vmem:[#allocation2 + $0xcc] sm:$0xf] %v11817_v24  ;;  %874 = vst [vmem:[#allocation2 + $0xd0] sm:$0xf] %v11817_v24  ;;  %10146 = vmatpush3.bf16.msra.mxu0 %v11279_v31  ;;  %p13563_p12 = scmp.ne.s32.totalorder %s13520_s19, 0  ;;  %s11819_s13 = smov [#allocation13]  }
  0x91   : > { %10147 = vmatprep.subr.bf16.mxu0 %v11816_v0  ;;  %vm12112_vm13 = vmand %vm940_vm2, %vm941_vm3  ;;  %s11739_s20 = sshll.u32 %s11819_s13, 4  ;;  %s11740_s20 = int_to_ptr.vmem [resolvable:$false] %s11739_s20 }
  0x92   : > { %10038 = vmatpush3.bf16.msra.mxu1 %v11280_v34  ;;  %vm12122_vm2 = vmand %vm946_vm4, %vm947_vm5  ;;  %s11741_s21 = scalar_lea.vmem %s11740_s20, 8192 }
  0x93   : > { %10000 = vmatmul.mubr.msk.bf16.gmra.mxu0 %vm13507_vm0, %v11258_v12  ;;  %10255 = vmatprep.subr.bf16.mxu1 %v11816_v0  ;;  %vm12128_vm3 = vmand %vm889_vm6, %vm890_vm7 }
  0x94   : > { %10003 = vmatprep.mubr.msk.bf16.mxu0 %vm13507_vm0, %v11259_v13  ;;  %10148 = vmatpush3.bf16.msra.mxu0 %v11281_v33  ;;  %vm12134_vm5 = vmand %vm895_vm9, %vm896_vm8  ;;  %vm3114_vm9 = vcmask 1046528  }
  0x95   : > { %10149 = vmatprep.subr.bf16.mxu0 %v11816_v0  ;;  %vm12142_vm6 = vmand %vm946_vm4, %vm964_vm10  ;;  %vm4521_vm10 = vsmask.f32 6400 }
  0x96   : > { %vm12152_vm7 = vmand %vm969_vm11, %vm970_vm12  ;;  %vm5407_vm11 = vcmask 1045504   ;;  %vm6814_vm12 = vsmask.f32 5376 }
  0x97   : > { %vm12160_vm4 = vmand %vm914_vm14, %vm915_vm15  ;;  %vm13547_vm14 = vcmask 523264  }
  0x98   : > { %10150 = vmatpush3.bf16.msra.mxu0 %v11283_v35  ;;  %vm13548_vm15 = vmmov %vm13547_vm14 }
  0x99   : > { %10151 = vmatprep.subr.bf16.mxu0 %v11816_v0 }
  0x9b   : > { %10004 = vmatmul.mubr.msk.bf16.gmra.mxu0 %vm13507_vm0, %v11260_v14 }
  0x9c   : > { %10007 = vmatprep.mubr.msk.bf16.mxu0 %vm13507_vm0, %v11261_v15  ;;  %10152 = vmatpush3.bf16.msra.mxu0 %v11285_v36 }
  0x9d   : > { %10153 = vmatprep.subr.bf16.mxu0 %v11816_v0 }
  0xa0   : > { %10154 = vmatpush3.bf16.msra.mxu0 %v11287_v37 }
  0xa1   : > { %10371 = vmatprep.subr.bf16.mxu0 %v11816_v0 }
  0xa3   : > { %10008 = vmatmul.mubr.msk.bf16.gmra.mxu0 %vm13507_vm0, %v11262_v16 }
  0xa4   : > { %10011 = vmatprep.mubr.msk.bf16.mxu0 %vm13507_vm0, %v11263_v17 }
  0xab   : > { %10012 = vmatmul.mubr.msk.bf16.gmra.mxu0 %vm13507_vm0, %v11264_v18 }
  0xac   : > { %10015 = vmatprep.mubr.msk.bf16.mxu0 %vm13507_vm0, %v11265_v19 }
  0xb3   : > { %10016 = vmatmul.mubr.msk.bf16.gmra.mxu0 %vm13507_vm0, %v11266_v20  ;;  %v898_v20 = vld [vmem:[#allocation2 + $0x8] sm:$0x3] }
  0xb4   : > { %10019 = vmatprep.mubr.msk.bf16.mxu0 %vm13507_vm0, %v11267_v21 }
  0xbb   : > { %10020 = vmatmul.mubr.msk.bf16.gmra.mxu0 %vm13507_vm0, %v11268_v22  ;;  %vm920_vm0 = vcmask 1042432  }
  0xbc   : > { %10155 = vmatprep.mubr.msk.bf16.mxu0 %vm13508_vm1, %v11816_v0  ;;  %vm921_vm1 = vsmask.f32 2304 }
  0xbd   : > { %vm12170_vm8 = vmand %vm920_vm0, %vm921_vm1  ;;  %vm13546_vm0 = vmmov 0   ;;  %vm2257_vm1 = vsmask.f32 7424 }
 0x143   : > { %v9993_v39 = vpop.f32.mrf.mxu0 }
 0x144   : > { %v656_v40 = vadd.f32 %v9993_v39, %v12105_v38 }
 0x145   : > { %v647_v41 = vpop.f32.mrf.mxu0 }
 0x146   : > { %v776_v42 = vmax.f32 %v656_v40, 0.0  ;;  %v648_v43 = vadd.f32 %v12105_v38, %v647_v41  ;;  %v1472_v41 = vld [vmem:[#allocation2 + $0xb8] sm:$0x1] }
 0x147   : > { %v9994_v44 = vpop.f32.mrf.mxu0 }
 0x148   : > { %v9590_v45 = vpack.c.bf16 %v776_v42, %v776_v42  ;;  %v774_v46 = vmax.f32 %v648_v43, 0.0  ;;  %v659_v47 = vadd.f32 %v9994_v44, %v12105_v38  ;;  %v917_v42 = vld [vmem:[#allocation2 + $0x8] sm:$0xc] }
 0x149   : > { %v650_v48 = vpop.f32.mrf.mxu0 }
 0x14a   : > { %v930_v49 = vshll.u32 %v9590_v45, 16  ;;  %v933_v50 = vshrl.u32 %v9590_v45, 16  ;;  %v9588_v51 = vpack.c.bf16 %v774_v46, %v774_v46  ;;  %v777_v52 = vmax.f32 %v659_v47, 0.0 }
 0x14b   : > { %v651_v55 = vadd.f32 %v12105_v38, %v650_v48  ;;  %v9997_v56 = vpop.f32.mrf.mxu0 }
 0x14c   : > { %v932_v57 = vrot.slane %v930_v49, 5  ;;  %v935_v58 = vrot.slane %v933_v50, 4  ;;  %v879_v59 = vshrl.u32 %v9588_v51, 16  ;;  %v882_v60 = vshll.u32 %v9588_v51, 16  ;;  %v1028_v49 = vld [vmem:[#allocation2 + $0x20] sm:$0x8] }
 0x14d   : > { %v9591_v61 = vpack.c.bf16 %v777_v52, %v777_v52  ;;  %v775_v62 = vmax.f32 %v651_v55, 0.0  ;;  %v672_v63 = vadd.f32 %v9997_v56, %v12105_v38  ;;  %v663_v1 = vpop.f32.mrf.mxu0 }
 0x14e   : > { %v936_v2 = vor.u32 %v935_v58, %v932_v57  ;;  %v944_v3 = vsel %vm12112_vm13, %v932_v57, %v943_v54  ;;  %v881_v6 = vrot.slane %v879_v59, 6  ;;  %v884_v7 = vrot.slane %v882_v60, 7  ;;  %v923_v54 = vld [vmem:[#allocation2 + $0xc] sm:$0x7] }
 0x14f   : > { %945 = vst [vmem:[#allocation2 + $0xc] sm:$0x8] %v944_v3  ;;  %v955_v10 = vshrl.u32 %v9591_v61, 16  ;;  %v958_v11 = vshll.u32 %v9591_v61, 16  ;;  %v9589_v12 = vpack.c.bf16 %v775_v62, %v775_v62  ;;  %v780_v13 = vmax.f32 %v672_v63, 0.0  ;;  %v9998_v14 = vpop.f32.mrf.mxu0 }
 0x150   : > { %v937_v15 = vrot.slane %v936_v2, 4  ;;  %v885_v16 = vor.u32 %v884_v7, %v881_v6  ;;  %v664_v18 = vadd.f32 %v12105_v38, %v663_v1  ;;  %v675_v19 = vadd.f32 %v9998_v14, %v12105_v38  ;;  %v1031_v3 = vld [vmem:[#allocation2 + $0x24] sm:$0xf]  ;;  %v989_v7 = vld [vmem:[#allocation2 + $0x18] sm:$0xe]  ;;  %v11284_v14 = vld [vmem:[#allocation9 + $0xb8] sm:$0xff]  }
 0x151   : > { %v957_v21 = vrot.slane %v955_v10, 7  ;;  %v904_v23 = vshrl.u32 %v9589_v12, 16  ;;  %v907_v24 = vshll.u32 %v9589_v12, 16  ;;  %v9594_v25 = vpack.c.bf16 %v780_v13, %v780_v13  ;;  %v666_v26 = vpop.f32.mrf.mxu0  ;;  %v992_v10 = vld [vmem:[#allocation2 + $0x1c] sm:$0x3] }
 0x152   : > { %v950_v27 = vsel %vm12122_vm2, %v937_v15, %v949_v5  ;;  %v886_v28 = vrot.slane %v885_v16, 4  ;;  %v893_v29 = vsel %vm12128_vm3, %v885_v16, %v892_v9  ;;  %v778_v33 = vmax.f32 %v664_v18, 0.0 }
 0x153   : > { %951 = vst [vmem:[#allocation2 + $0x10] sm:$0xf] %v950_v27  ;;  %894 = vst [vmem:[#allocation2 + $0x4] sm:$0xe] %v893_v29  ;;  %v960_v34 = vor.u32 %v958_v11, %v957_v21  ;;  %v961_v35 = vrot.slane %v957_v21, 4  ;;  %v906_v36 = vrot.slane %v904_v23, 5  ;;  %v10001_v39 = vpop.f32.mrf.mxu0  ;;  %v667_v62 = vadd.f32 %v12105_v38, %v666_v26 }
 0x154   : > { %v909_v37 = vrot.slane %v907_v24, 6  ;;  %v899_v40 = vsel %vm12134_vm5, %v886_v28, %v898_v20  ;;  %v1018_v43 = vshll.u32 %v9594_v25, 16  ;;  %v1021_v44 = vshrl.u32 %v9594_v25, 16 }
 0x155   : > { %v9592_v45 = vpack.c.bf16 %v778_v33, %v778_v33  ;;  %900 = vst [vmem:[#allocation2 + $0x8] sm:$0x3] %v899_v40  ;;  %v967_v46 = vsel %vm12142_vm6, %v960_v34, %v966_v30  ;;  %v973_v47 = vsel %vm12152_vm7, %v961_v35, %v972_v32  ;;  %v781_v50 = vmax.f32 %v675_v19, 0.0  ;;  %v679_v51 = vpop.f32.mrf.mxu0  ;;  %v1046_v32 = vld [vmem:[#allocation2 + $0x28] sm:$0xf] }
 0x156   : > { %v910_v48 = vor.u32 %v909_v37, %v906_v36  ;;  %968 = vst [vmem:[#allocation2 + $0x14] sm:$0xf] %v967_v46  ;;  %974 = vst [vmem:[#allocation2 + $0x18] sm:$0x1] %v973_v47  ;;  %v1020_v55 = vrot.slane %v1018_v43, 5  ;;  %v1023_v56 = vrot.slane %v1021_v44, 4  ;;  %v688_v19 = vadd.f32 %v10001_v39, %v12105_v38 }
 0x157   : > { %v979_v57 = vshrl.u32 %v9592_v45, 16  ;;  %v982_v58 = vshll.u32 %v9592_v45, 16  ;;  %v9595_v61 = vpack.c.bf16 %v781_v50, %v781_v50  ;;  %v10002_v63 = vpop.f32.mrf.mxu0  ;;  %v779_v13 = vmax.f32 %v667_v62, 0.0  ;;  %v1049_v33 = vld [vmem:[#allocation2 + $0x2c] sm:$0x1] }
 0x158   : > { %v911_v59 = vrot.slane %v910_v48, 4  ;;  %v918_v60 = vsel %vm12160_vm4, %v910_v48, %v917_v42  ;;  %v1024_v1 = vor.u32 %v1023_v56, %v1020_v55  ;;  %v1029_v2 = vsel %vm12112_vm13, %v1020_v55, %v1028_v49  ;;  %v11293_v42 = vld [vmem:[#allocation9 + $0xb0] sm:$0xff]   ;;  %v1008_v44 = vld [vmem:[#allocation2 + $0x1c] sm:$0xc] }
 0x159   : > { %919 = vst [vmem:[#allocation2 + $0x8] sm:$0xc] %v918_v60  ;;  %v981_v5 = vrot.slane %v979_v57, 6  ;;  %v984_v6 = vrot.slane %v982_v58, 7  ;;  %1030 = vst [vmem:[#allocation2 + $0x20] sm:$0x8] %v1029_v2  ;;  %v682_v15 = vpop.f32.mrf.mxu0  ;;  %v680_v20 = vadd.f32 %v12105_v38, %v679_v51  ;;  %v9593_v24 = vpack.c.bf16 %v779_v13, %v779_v13 }
 0x15a   : > { %v924_v9 = vsel %vm12170_vm8, %v911_v59, %v923_v54  ;;  %v1037_v11 = vshrl.u32 %v9595_v61, 16  ;;  %v1040_v12 = vshll.u32 %v9595_v61, 16  ;;  %v1025_v16 = vrot.slane %v1024_v1, 4  ;;  %v11282_v21 = vld [vmem:[#allocation2] sm:$0xff]   ;;  %v1066_v62 = vld [vmem:[#allocation2 + $0x34] sm:$0x8] }
 0x15b   : > { %925 = vst [vmem:[#allocation2 + $0xc] sm:$0x7] %v924_v9  ;;  %v985_v18 = vor.u32 %v984_v6, %v981_v5  ;;  %v12183_v25 = vld [vmem:[#allocation2] sm:$0xff]   ;;  %v691_v26 = vadd.f32 %v10002_v63, %v12105_v38  ;;  %v12187_v27 = vadd.f32 %v12105_v38, %v682_v15  ;;  %v784_v34 = vmax.f32 %v688_v19, 0.0  ;;  %10040 = vmatmul.mubr.bf16.vlgmr.msra.gmra.mxu1 %v11282_v21  ;;  %v10005_v35 = vpop.f32.mrf.mxu0 }
 0x15c   : > { %v1039_v23 = vrot.slane %v1037_v11, 7  ;;  %v1032_v28 = vsel %vm12122_vm2, %v1025_v16, %v1031_v3  ;;  %v998_v39 = vshrl.u32 %v9593_v24, 16  ;;  %v1001_v40 = vshll.u32 %v9593_v24, 16  ;;  %10256 = vmatpush3.bf16.msra.mxu1 %v11284_v14  ;;  %10043 = vmatprep.mubr.msk.bf16.mxu1 %vm13546_vm0, %v11816_v0  ;;  %v1011_v54 = vld [vmem:[#allocation2 + $0x20] sm:$0x7]  ;;  %v11300_v3 = vld [vmem:[#allocation9 + $0xa8] sm:$0xff]  }
 0x15d   : > { %v986_v29 = vrot.slane %v985_v18, 4  ;;  %v990_v30 = vsel %vm12128_vm3, %v985_v18, %v989_v7  ;;  %1033 = vst [vmem:[#allocation2 + $0x24] sm:$0xf] %v1032_v28  ;;  %v9598_v45 = vpack.c.bf16 %v784_v34, %v784_v34  ;;  %v782_v46 = vmax.f32 %v680_v20, 0.0  ;;  %10257 = vmatprep.subr.bf16.mxu1 %v11816_v0  ;;  %v695_v59 = vpop.f32.mrf.mxu0  ;;  %v1104_v61 = vld [vmem:[#allocation2 + $0x40] sm:$0xe] }
 0x15e   : > { %991 = vst [vmem:[#allocation2 + $0x18] sm:$0xe] %v990_v30  ;;  %v1042_v36 = vor.u32 %v1040_v12, %v1039_v23  ;;  %v1043_v37 = vrot.slane %v1039_v23, 4  ;;  %v2259_v47 = vshrl.u32 %v12183_v25, 16  ;;  %v1000_v50 = vrot.slane %v998_v39, 5  ;;  %v11308_v18 = vld [vmem:[#allocation9 + $0xa0] sm:$0xff]  }
 0x15f   : > { %v993_v43 = vsel %vm12134_vm5, %v986_v29, %v992_v10  ;;  %v1003_v51 = vrot.slane %v1001_v40, 6  ;;  %v1094_v55 = vshrl.u32 %v9598_v45, 16  ;;  %v1097_v56 = vshll.u32 %v9598_v45, 16  ;;  %v1107_v14 = vld [vmem:[#allocation2 + $0x44] sm:$0x3]  ;;  %v12211_v24 = vld [vmem:[#allocation2 + $0x10] sm:$0xff]  }
 0x160   : > { %994 = vst [vmem:[#allocation2 + $0x1c] sm:$0x3] %v993_v43  ;;  %v1047_v48 = vsel %vm12142_vm6, %v1042_v36, %v1046_v32  ;;  %v1050_v49 = vsel %vm12152_vm7, %v1043_v37, %v1049_v33  ;;  %v9596_v57 = vpack.c.bf16 %v782_v46, %v782_v46  ;;  %v2261_v58 = vshll.u32 %v12183_v25, 16  ;;  %10258 = vmatpush3.bf16.msra.mxu1 %v11293_v42  ;;  %v1123_v36 = vld [vmem:[#allocation2 + $0x44] sm:$0xc]  ;;  %v10006_v37 = vpop.f32.mrf.mxu0 }
 0x161   : > { %1048 = vst [vmem:[#allocation2 + $0x28] sm:$0xf] %v1047_v48  ;;  %1051 = vst [vmem:[#allocation2 + $0x2c] sm:$0x1] %v1050_v49  ;;  %v1004_v60 = vor.u32 %v1003_v51, %v1000_v50  ;;  %v785_v63 = vmax.f32 %v691_v26, 0.0  ;;  %v704_v1 = vadd.f32 %v10005_v35, %v12105_v38  ;;  %v12206_v2 = vadd.f32 %v12105_v38, %v695_v59 }
 0x162   : > { %v1096_v5 = vrot.slane %v1094_v55, 6  ;;  %v1099_v6 = vrot.slane %v1097_v56, 7  ;;  %v1056_v7 = vshll.u32 %v9596_v57, 16  ;;  %v1059_v9 = vshrl.u32 %v9596_v57, 16  ;;  %v11286_v10 = vld [vmem:[#allocation2 + $0x8] sm:$0xff]   ;;  %10259 = vmatprep.subr.bf16.mxu1 %v11816_v0  ;;  %v11315_v55 = vld [vmem:[#allocation9 + $0x98] sm:$0xff]  }
 0x163   : > { %v11289_v11 = vld [vmem:[#allocation2 + $0x8] sm:$0xff]   ;;  %v1005_v12 = vrot.slane %v1004_v60, 4  ;;  %v1009_v13 = vsel %vm12160_vm4, %v1004_v60, %v1008_v44  ;;  %v2263_v15 = vrot.slane %v2261_v58, 1  ;;  %v9599_v16 = vpack.c.bf16 %v785_v63, %v785_v63  ;;  %10044 = vmatmul.mubr.bf16.gmra.mxu1 %v11286_v10  ;;  %v1069_v26 = vld [vmem:[#allocation2 + $0x38] sm:$0xf]  ;;  %v698_v60 = vpop.f32.mrf.mxu0 }
 0x164   : > { %1010 = vst [vmem:[#allocation2 + $0x1c] sm:$0xc] %v1009_v13  ;;  %v1100_v19 = vor.u32 %v1099_v6, %v1096_v5  ;;  %v1058_v20 = vrot.slane %v1056_v7, 5  ;;  %v1061_v21 = vrot.slane %v1059_v9, 4  ;;  %v2266_v23 = vshll.u32 %v11289_v11, 16  ;;  %10047 = vmatprep.mubr.msk.bf16.mxu1 %vm13546_vm0, %v11816_v0  ;;  %10260 = vmatpush3.bf16.msra.mxu1 %v11300_v3 }
 0x165   : > { %v1012_v25 = vsel %vm12170_vm8, %v1005_v12, %v1011_v54  ;;  %v2264_v28 = vor.u32 %v2263_v15, %v2259_v47  ;;  %v1113_v29 = vshrl.u32 %v9599_v16, 16  ;;  %v1116_v30 = vshll.u32 %v9599_v16, 16  ;;  %10261 = vmatprep.subr.bf16.mxu1 %v11816_v0  ;;  %v1126_v46 = vld [vmem:[#allocation2 + $0x48] sm:$0x7]  ;;  %v1084_v3 = vld [vmem:[#allocation2 + $0x3c] sm:$0xf] }
 0x166   : > { %1013 = vst [vmem:[#allocation2 + $0x20] sm:$0x7] %v1012_v25  ;;  %v1101_v32 = vrot.slane %v1100_v19, 4  ;;  %v1105_v33 = vsel %vm12128_vm3, %v1100_v19, %v1104_v61  ;;  %v1062_v34 = vor.u32 %v1061_v21, %v1058_v20  ;;  %v1067_v35 = vsel %vm12112_vm13, %v1058_v20, %v1066_v62  ;;  %v1087_v5 = vld [vmem:[#allocation2 + $0x40] sm:$0x1]  ;;  %v11322_v16 = vld [vmem:[#allocation9 + $0x90] sm:$0xff]  }
 0x167   : > { %1106 = vst [vmem:[#allocation2 + $0x40] sm:$0xe] %v1105_v33  ;;  %1068 = vst [vmem:[#allocation2 + $0x34] sm:$0x8] %v1067_v35  ;;  %v2268_v39 = vrot.slane %v2266_v23, 1  ;;  %v1115_v40 = vrot.slane %v1113_v29, 5  ;;  %v699_v15 = vadd.f32 %v12105_v38, %v698_v60  ;;  %v10009_v23 = vpop.f32.mrf.mxu0 }
 0x168   : > { %v1118_v42 = vrot.slane %v1116_v30, 6  ;;  %v783_v43 = vmax.f32 %v12187_v27, 0.0  ;;  %v1108_v44 = vsel %vm12134_vm5, %v1101_v32, %v1107_v14  ;;  %v1063_v45 = vrot.slane %v1062_v34, 4  ;;  %10262 = vmatpush3.bf16.msra.mxu1 %v11308_v18  ;;  %v11290_v27 = vld [vmem:[#allocation2 + $0x10] sm:$0xff]   ;;  %v1143_v13 = vld [vmem:[#allocation2 + $0x48] sm:$0x8] }
 0x169   : > { %v788_v47 = vmax.f32 %v704_v1, 0.0  ;;  %v2270_v48 = vshrl.u32 %v11289_v11, 16  ;;  %1109 = vst [vmem:[#allocation2 + $0x44] sm:$0x3] %v1108_v44  ;;  %v2269_v49 = vsel %vm2257_vm1, %v2264_v28, %v2268_v39  ;;  %v2274_v54 = vshll.u32 %v12211_v24, 16  ;;  %10263 = vmatprep.subr.bf16.mxu1 %v11816_v0 }
 0x16a   : > { %v1119_v50 = vor.u32 %v1118_v42, %v1115_v40  ;;  %v9597_v51 = vpack.c.bf16 %v783_v43, %v783_v43  ;;  %v1070_v56 = vsel %vm12122_vm2, %v1063_v45, %v1069_v26  ;;  %10156 = vmatmul.mubr.bf16.vlgmr.msra.gmra.mxu0 %v2269_v49  ;;  %v786_v59 = vmax.f32 %v12206_v2, 0.0  ;;  %v1181_v12 = vld [vmem:[#allocation2 + $0x54] sm:$0xe]  ;;  %v1184_v28 = vld [vmem:[#allocation2 + $0x58] sm:$0x3]  ;;  %v711_v49 = vpop.f32.mrf.mxu0 }
 0x16b   : > { %v9602_v57 = vpack.c.bf16 %v788_v47, %v788_v47  ;;  %v2272_v58 = vor.u32 %v2270_v48, %v2268_v39  ;;  %1071 = vst [vmem:[#allocation2 + $0x38] sm:$0xf] %v1070_v56  ;;  %10159 = vmatprep.mubr.msk.bf16.mxu0 %vm13546_vm0, %v11816_v0  ;;  %10048 = vmatmul.mubr.bf16.gmra.mxu1 %v11290_v27  ;;  %v12235_v2 = vrot.slane %v2274_v54, 1  ;;  %v787_v34 = vmax.f32 %v699_v15, 0.0  ;;  %v11292_v35 = vld [vmem:[#allocation2 + $0x18] sm:$0xff]  }
 0x16c   : > { %v1120_v61 = vrot.slane %v1119_v50, 4  ;;  %v1124_v62 = vsel %vm12160_vm4, %v1119_v50, %v1123_v36  ;;  %v1075_v63 = vshrl.u32 %v9597_v51, 16  ;;  %v1078_v1 = vshll.u32 %v9597_v51, 16  ;;  %10051 = vmatprep.mubr.msk.bf16.mxu1 %vm13546_vm0, %v11816_v0  ;;  %10264 = vmatpush3.bf16.msra.mxu1 %v11315_v55  ;;  %v12246_v36 = vld [vmem:[#allocation2 + $0x18] sm:$0xff]   ;;  %v1146_v47 = vld [vmem:[#allocation2 + $0x4c] sm:$0xf]  ;;  %v10010_v60 = vpop.f32.mrf.mxu0 }
 0x16d   : > { %1125 = vst [vmem:[#allocation2 + $0x44] sm:$0xc] %v1124_v62  ;;  %v1171_v6 = vshrl.u32 %v9602_v57, 16  ;;  %v1174_v7 = vshll.u32 %v9602_v57, 16  ;;  %v9600_v9 = vpack.c.bf16 %v786_v59, %v786_v59  ;;  %v707_v14 = vadd.f32 %v10006_v37, %v12105_v38  ;;  %10265 = vmatprep.subr.bf16.mxu1 %v11816_v0  ;;  %v12253_v44 = vld [vmem:[#allocation2 + $0x20] sm:$0xff]   ;;  %v11329_v50 = vld [vmem:[#allocation9 + $0x88] sm:$0xff]  }
 0x16e   : > { %v1127_v10 = vsel %vm12170_vm8, %v1120_v61, %v1126_v46  ;;  %v1077_v11 = vrot.slane %v1075_v63, 7  ;;  %v2277_v20 = vsel %vm2257_vm1, %v2272_v58, %v12235_v2  ;;  %v2278_v37 = vshrl.u32 %v12211_v24, 16  ;;  %v1200_v27 = vld [vmem:[#allocation2 + $0x58] sm:$0xc] }
 0x16f   : > { %1128 = vst [vmem:[#allocation2 + $0x48] sm:$0x7] %v1127_v10  ;;  %v1173_v18 = vrot.slane %v1171_v6, 6  ;;  %v1176_v19 = vrot.slane %v1174_v7, 7  ;;  %v1133_v21 = vshll.u32 %v9600_v9, 16  ;;  %v1136_v29 = vshrl.u32 %v9600_v9, 16 }
 0x170   : > { %v1080_v25 = vor.u32 %v1078_v1, %v1077_v11  ;;  %v1081_v26 = vrot.slane %v1077_v11, 4  ;;  %v789_v30 = vmax.f32 %v707_v14, 0.0  ;;  %10266 = vmatpush3.bf16.msra.mxu1 %v11322_v16  ;;  %v9601_v48 = vpack.c.bf16 %v787_v34, %v787_v34  ;;  %v1161_v1 = vld [vmem:[#allocation2 + $0x50] sm:$0xf]  ;;  %v1164_v7 = vld [vmem:[#allocation2 + $0x54] sm:$0x1] }
 0x171   : > { %v1177_v32 = vor.u32 %v1176_v19, %v1173_v18  ;;  %v1135_v33 = vrot.slane %v1133_v21, 5  ;;  %v1138_v42 = vrot.slane %v1136_v29, 4  ;;  %10267 = vmatprep.subr.bf16.mxu1 %v11816_v0  ;;  %v2282_v59 = vshll.u32 %v12246_v36, 16  ;;  %v714_v19 = vpop.f32.mrf.mxu0 }
 0x172   : > { %v1085_v39 = vsel %vm12142_vm6, %v1080_v25, %v1084_v3  ;;  %v1088_v40 = vsel %vm12152_vm7, %v1081_v26, %v1087_v5  ;;  %v9603_v43 = vpack.c.bf16 %v789_v30, %v789_v30  ;;  %10160 = vmatmul.mubr.bf16.gmra.mxu0 %v2277_v20  ;;  %v1152_v57 = vshrl.u32 %v9601_v48, 16  ;;  %v12267_v3 = vld [vmem:[#allocation2 + $0x28] sm:$0xff]   ;;  %v1203_v5 = vld [vmem:[#allocation2 + $0x5c] sm:$0x7] }
 0x173   : > { %1086 = vst [vmem:[#allocation2 + $0x3c] sm:$0xf] %v1085_v39  ;;  %1089 = vst [vmem:[#allocation2 + $0x40] sm:$0x1] %v1088_v40  ;;  %v1178_v45 = vrot.slane %v1177_v32, 4  ;;  %v1182_v46 = vsel %vm12128_vm3, %v1177_v32, %v1181_v12  ;;  %v1144_v24 = vsel %vm12112_vm13, %v1135_v33, %v1143_v13  ;;  %v1139_v51 = vor.u32 %v1138_v42, %v1135_v33 }
 0x174   : > { %1183 = vst [vmem:[#allocation2 + $0x54] sm:$0xe] %v1182_v46  ;;  %1145 = vst [vmem:[#allocation2 + $0x48] sm:$0x8] %v1144_v24  ;;  %v1190_v54 = vshrl.u32 %v9603_v43, 16  ;;  %v1193_v55 = vshll.u32 %v9603_v43, 16  ;;  %10163 = vmatprep.mubr.msk.bf16.mxu0 %vm13546_vm0, %v11816_v0  ;;  %10052 = vmatmul.mubr.bf16.gmra.mxu1 %v11292_v35  ;;  %v2280_v9 = vor.u32 %v2278_v37, %v12235_v2  ;;  %v10013_v37 = vpop.f32.mrf.mxu0 }
 0x175   : > { %v1185_v56 = vsel %vm12134_vm5, %v1178_v45, %v1184_v28  ;;  %v1155_v58 = vshll.u32 %v9601_v48, 16  ;;  %v1140_v61 = vrot.slane %v1139_v51, 4  ;;  %10055 = vmatprep.mubr.msk.bf16.mxu1 %vm13546_vm0, %v11816_v0  ;;  %10268 = vmatpush3.bf16.msra.mxu1 %v11329_v50  ;;  %v1154_v6 = vrot.slane %v1152_v57, 7  ;;  %v11295_v28 = vld [vmem:[#allocation2 + $0x20] sm:$0xff]   ;;  %v12296_v48 = vld [vmem:[#allocation2 + $0x30] sm:$0xff]  }
 0x176   : > { %1186 = vst [vmem:[#allocation2 + $0x58] sm:$0x3] %v1185_v56  ;;  %v1192_v62 = vrot.slane %v1190_v54, 5  ;;  %v1195_v63 = vrot.slane %v1193_v55, 6  ;;  %v2284_v10 = vrot.slane %v2282_v59, 1  ;;  %10269 = vmatprep.subr.bf16.mxu1 %v11816_v0  ;;  %v2290_v13 = vshll.u32 %v12253_v44, 16  ;;  %v727_v57 = vpop.f32.mrf.mxu0 }
 0x177   : > { %v1147_v11 = vsel %vm12122_vm2, %v1140_v61, %v1146_v47  ;;  %v720_v14 = vadd.f32 %v10009_v23, %v12105_v38  ;;  %v1157_v15 = vor.u32 %v1155_v58, %v1154_v6  ;;  %v1158_v16 = vrot.slane %v1154_v6, 4  ;;  %v1259_v47 = vld [vmem:[#allocation2 + $0x70] sm:$0x8]  ;;  %v11297_v54 = vld [vmem:[#allocation2 + $0x28] sm:$0xff]   ;;  %v1262_v59 = vld [vmem:[#allocation2 + $0x74] sm:$0xf] }
 0x178   : > { %v1196_v12 = vor.u32 %v1195_v63, %v1192_v62  ;;  %1148 = vst [vmem:[#allocation2 + $0x4c] sm:$0xf] %v1147_v11  ;;  %v2286_v18 = vshrl.u32 %v12246_v36, 16  ;;  %v2285_v21 = vsel %vm2257_vm1, %v2280_v9, %v2284_v10  ;;  %v2298_v25 = vshll.u32 %v12267_v3, 16  ;;  %v1223_v9 = vld [vmem:[#allocation2 + $0x6c] sm:$0x3] }
 0x179   : > { %v1162_v26 = vsel %vm12142_vm6, %v1157_v15, %v1161_v1  ;;  %v1165_v23 = vsel %vm12152_vm7, %v1158_v16, %v1164_v7  ;;  %v792_v29 = vmax.f32 %v720_v14, 0.0  ;;  %v712_v30 = vadd.f32 %v12105_v38, %v711_v49  ;;  %v1277_v15 = vld [vmem:[#allocation2 + $0x78] sm:$0xf] }
 0x17a   : > { %v1197_v20 = vrot.slane %v1196_v12, 4  ;;  %v1201_v2 = vsel %vm12160_vm4, %v1196_v12, %v1200_v27  ;;  %10164 = vmatmul.mubr.bf16.gmra.mxu0 %v2285_v21  ;;  %1163 = vst [vmem:[#allocation2 + $0x50] sm:$0xf] %v1162_v26  ;;  %1166 = vst [vmem:[#allocation2 + $0x54] sm:$0x1] %v1165_v23  ;;  %v2288_v33 = vor.u32 %v2286_v18, %v2284_v10  ;;  %v2292_v34 = vrot.slane %v2290_v13, 1 }
 0x17b   : > { %1202 = vst [vmem:[#allocation2 + $0x58] sm:$0xc] %v1201_v2  ;;  %10167 = vmatprep.mubr.msk.bf16.mxu0 %vm13546_vm0, %v11816_v0  ;;  %v9606_v35 = vpack.c.bf16 %v792_v29, %v792_v29  ;;  %v790_v36 = vmax.f32 %v712_v30, 0.0  ;;  %v2294_v39 = vshrl.u32 %v12253_v44, 16  ;;  %v723_v40 = vadd.f32 %v10010_v60, %v12105_v38  ;;  %v1220_v60 = vld [vmem:[#allocation2 + $0x68] sm:$0xe] }
 0x17c   : > { %v1204_v32 = vsel %vm12170_vm8, %v1197_v20, %v1203_v5  ;;  %10056 = vmatmul.mubr.bf16.gmra.mxu1 %v11295_v28  ;;  %v12293_v42 = vrot.slane %v2298_v25, 1  ;;  %v2293_v24 = vsel %vm2257_vm1, %v2288_v33, %v2292_v34  ;;  %v715_v50 = vadd.f32 %v12105_v38, %v714_v19  ;;  %v10014_v19 = vpop.f32.mrf.mxu0  ;;  %v1280_v21 = vld [vmem:[#allocation2 + $0x7c] sm:$0x1]  ;;  %v1239_v30 = vld [vmem:[#allocation2 + $0x6c] sm:$0xc] }
 0x17d   : > { %1205 = vst [vmem:[#allocation2 + $0x5c] sm:$0x7] %v1204_v32  ;;  %10059 = vmatprep.mubr.msk.bf16.mxu1 %vm13546_vm0, %v11816_v0  ;;  %v1249_v43 = vshll.u32 %v9606_v35, 16  ;;  %v1252_v45 = vshrl.u32 %v9606_v35, 16  ;;  %v9604_v46 = vpack.c.bf16 %v790_v36, %v790_v36  ;;  %v793_v49 = vmax.f32 %v723_v40, 0.0  ;;  %v11299_v40 = vld [vmem:[#allocation2 + $0x30] sm:$0xff]  }
 0x17e   : > { %v736_v51 = vadd.f32 %v10013_v37, %v12105_v38  ;;  %v2296_v58 = vor.u32 %v2294_v39, %v2292_v34  ;;  %v2302_v61 = vshrl.u32 %v12267_v3, 16  ;;  %v791_v63 = vmax.f32 %v715_v50, 0.0  ;;  %v1336_v37 = vld [vmem:[#allocation2 + $0x84] sm:$0x8] }
 0x17f   : > { %v1251_v55 = vrot.slane %v1249_v43, 5  ;;  %v1254_v44 = vrot.slane %v1252_v45, 4  ;;  %v1210_v56 = vshrl.u32 %v9604_v46, 16  ;;  %v1213_v27 = vshll.u32 %v9604_v46, 16  ;;  %v12317_v43 = vld [vmem:[#allocation2 + $0x38] sm:$0xff]  }
 0x180   : > { %v9607_v62 = vpack.c.bf16 %v793_v49, %v793_v49  ;;  %v2306_v10 = vshll.u32 %v12296_v48, 16  ;;  %v9605_v13 = vpack.c.bf16 %v791_v63, %v791_v63  ;;  %v796_v16 = vmax.f32 %v736_v51, 0.0  ;;  %v1242_v45 = vld [vmem:[#allocation2 + $0x70] sm:$0x7]  ;;  %v730_v49 = vpop.f32.mrf.mxu0 }
 0x181   : > { %v1255_v1 = vor.u32 %v1254_v44, %v1251_v55  ;;  %v1260_v5 = vsel %vm12112_vm13, %v1251_v55, %v1259_v47  ;;  %v1212_v6 = vrot.slane %v1210_v56, 6  ;;  %v1215_v7 = vrot.slane %v1213_v27, 7 }
 0x182   : > { %10168 = vmatmul.mubr.bf16.gmra.mxu0 %v2293_v24  ;;  %1261 = vst [vmem:[#allocation2 + $0x70] sm:$0x8] %v1260_v5  ;;  %v1268_v11 = vshrl.u32 %v9607_v62, 16  ;;  %v1271_v12 = vshll.u32 %v9607_v62, 16  ;;  %v728_v18 = vadd.f32 %v12105_v38, %v727_v57  ;;  %v2301_v20 = vsel %vm2257_vm1, %v2296_v58, %v12293_v42  ;;  %v11336_v58 = vld [vmem:[#allocation9 + $0x80] sm:$0xff]  }
 0x183   : > { %10171 = vmatprep.mubr.msk.bf16.mxu0 %vm13546_vm0, %v11816_v0  ;;  %v1256_v3 = vrot.slane %v1255_v1, 4  ;;  %v1216_v14 = vor.u32 %v1215_v7, %v1212_v6  ;;  %v1229_v25 = vshrl.u32 %v9605_v13, 16  ;;  %v1232_v26 = vshll.u32 %v9605_v13, 16  ;;  %v10017_v7 = vpop.f32.mrf.mxu0  ;;  %10270 = vmatpush3.bf16.msra.mxu1 %v11336_v58 }
 0x184   : > { %10060 = vmatmul.mubr.bf16.gmra.mxu1 %v11297_v54  ;;  %v1270_v2 = vrot.slane %v1268_v11, 7  ;;  %v9610_v32 = vpack.c.bf16 %v796_v16, %v796_v16  ;;  %v794_v47 = vmax.f32 %v728_v18, 0.0  ;;  %v2304_v50 = vor.u32 %v2302_v61, %v12293_v42  ;;  %10487 = vmatprep.subr.bf16.mxu1 %v11816_v0 }
 0x185   : > { %10063 = vmatprep.mubr.msk.bf16.mxu1 %vm13546_vm0, %v11816_v0  ;;  %v1263_v23 = vsel %vm12122_vm2, %v1256_v3, %v1262_v59  ;;  %v1217_v28 = vrot.slane %v1216_v14, 4  ;;  %v1221_v29 = vsel %vm12128_vm3, %v1216_v14, %v1220_v60  ;;  %v1231_v35 = vrot.slane %v1229_v25, 5  ;;  %v1339_v60 = vld [vmem:[#allocation2 + $0x88] sm:$0xf]  ;;  %v12345_v25 = vld [vmem:[#allocation2 + $0x40] sm:$0xff]  }
 0x186   : > { %1264 = vst [vmem:[#allocation2 + $0x74] sm:$0xf] %v1263_v23  ;;  %1222 = vst [vmem:[#allocation2 + $0x68] sm:$0xe] %v1221_v29  ;;  %v1273_v33 = vor.u32 %v1271_v12, %v1270_v2  ;;  %v1274_v34 = vrot.slane %v1270_v2, 4  ;;  %v1234_v36 = vrot.slane %v1232_v26, 6  ;;  %v9608_v57 = vpack.c.bf16 %v794_v47, %v794_v47  ;;  %v743_v26 = vpop.f32.mrf.mxu0 }
 0x187   : > { %v1224_v39 = vsel %vm12134_vm5, %v1217_v28, %v1223_v9  ;;  %v1326_v46 = vshll.u32 %v9610_v32, 16  ;;  %v1329_v24 = vshrl.u32 %v9610_v32, 16  ;;  %v12324_v44 = vrot.slane %v2306_v10, 1  ;;  %v1297_v10 = vld [vmem:[#allocation2 + $0x7c] sm:$0xe] }
 0x188   : > { %1225 = vst [vmem:[#allocation2 + $0x6c] sm:$0x3] %v1224_v39  ;;  %v1278_v51 = vsel %vm12142_vm6, %v1273_v33, %v1277_v15  ;;  %v1281_v54 = vsel %vm12152_vm7, %v1274_v34, %v1280_v21  ;;  %v1235_v55 = vor.u32 %v1234_v36, %v1231_v35  ;;  %v739_v61 = vadd.f32 %v10014_v19, %v12105_v38  ;;  %v1300_v15 = vld [vmem:[#allocation2 + $0x80] sm:$0x3]  ;;  %v11302_v32 = vld [vmem:[#allocation2 + $0x38] sm:$0xff]   ;;  %v10018_v39 = vpop.f32.mrf.mxu0 }
 0x189   : > { %1279 = vst [vmem:[#allocation2 + $0x78] sm:$0xf] %v1278_v51  ;;  %1282 = vst [vmem:[#allocation2 + $0x7c] sm:$0x1] %v1281_v54  ;;  %v1328_v56 = vrot.slane %v1326_v46, 5  ;;  %v1331_v27 = vrot.slane %v1329_v24, 4  ;;  %v731_v62 = vadd.f32 %v12105_v38, %v730_v49  ;;  %v2309_v19 = vsel %vm2257_vm1, %v2304_v50, %v12324_v44 }
 0x18a   : > { %10172 = vmatmul.mubr.bf16.gmra.mxu0 %v2301_v20  ;;  %v1236_v42 = vrot.slane %v1235_v55, 4  ;;  %v1240_v59 = vsel %vm12160_vm4, %v1235_v55, %v1239_v30  ;;  %v1287_v5 = vshrl.u32 %v9608_v57, 16  ;;  %v1290_v6 = vshll.u32 %v9608_v57, 16  ;;  %v1357_v36 = vld [vmem:[#allocation2 + $0x90] sm:$0x1] }
 0x18b   : > { %10175 = vmatprep.mubr.msk.bf16.mxu0 %vm13546_vm0, %v11816_v0  ;;  %1241 = vst [vmem:[#allocation2 + $0x6c] sm:$0xc] %v1240_v59  ;;  %v1332_v63 = vor.u32 %v1331_v27, %v1328_v56  ;;  %v1337_v1 = vsel %vm12112_vm13, %v1328_v56, %v1336_v37  ;;  %v797_v11 = vmax.f32 %v739_v61, 0.0  ;;  %v795_v12 = vmax.f32 %v731_v62, 0.0  ;;  %v1316_v37 = vld [vmem:[#allocation2 + $0x80] sm:$0xc] }
 0x18c   : > { %10064 = vmatmul.mubr.bf16.gmra.mxu1 %v11299_v40  ;;  %v1243_v9 = vsel %vm12170_vm8, %v1236_v42, %v1242_v45  ;;  %1338 = vst [vmem:[#allocation2 + $0x84] sm:$0x8] %v1337_v1  ;;  %v2314_v38 = vshll.u32 %v12317_v43, 16  ;;  %v1289_v3 = vrot.slane %v1287_v5, 6  ;;  %v1292_v14 = vrot.slane %v1290_v6, 7  ;;  %v11339_v40 = vld [vmem:[#allocation9 + $0xf8] sm:$0xff]  }
 0x18d   : > { %10067 = vmatprep.mubr.msk.bf16.mxu1 %vm13546_vm0, %v11816_v0  ;;  %1244 = vst [vmem:[#allocation2 + $0x70] sm:$0x7] %v1243_v9  ;;  %v1333_v13 = vrot.slane %v1332_v63, 4  ;;  %v9611_v16 = vpack.c.bf16 %v797_v11, %v797_v11  ;;  %v9609_v18 = vpack.c.bf16 %v795_v12, %v795_v12  ;;  %v2310_v20 = vshrl.u32 %v12296_v48, 16  ;;  %v1354_v48 = vld [vmem:[#allocation2 + $0x8c] sm:$0xf]  ;;  %10372 = vmatpush3.bf16.msra.mxu0 %v11339_v40 }
 0x18e   : > { %v1293_v21 = vor.u32 %v1292_v14, %v1289_v3  ;;  %v2316_v33 = vrot.slane %v2314_v38, 1  ;;  %v12354_v47 = vld [vmem:[%s13493_s2] ss:$0 sm:$0xff]  ;;  %v2318_v54 = vshrl.u32 %v12317_v43, 16  ;;  %v2322_v55 = vshll.u32 %v12345_v25, 16  ;;  %v11341_v56 = vld [vmem:[#allocation9 + $0xf0] sm:$0xff]   ;;  %10373 = vmatprep.subr.bf16.mxu0 %v11816_v0 }
 0x18f   : > { %v1340_v2 = vsel %vm12122_vm2, %v1333_v13, %v1339_v60  ;;  %v1345_v23 = vshrl.u32 %v9611_v16, 16  ;;  %v1348_v28 = vshll.u32 %v9611_v16, 16  ;;  %v1306_v29 = vshrl.u32 %v9609_v18, 16  ;;  %v746_v60 = vpop.f32.mrf.mxu0  ;;  %v12372_v1 = vld [vmem:[#allocation2 + $0x48] sm:$0xff]   ;;  %v11304_v38 = vld [vmem:[#allocation2 + $0x40] sm:$0xff]  }
 0x190   : > { %1341 = vst [vmem:[#allocation2 + $0x88] sm:$0xf] %v1340_v2  ;;  %v1309_v30 = vshll.u32 %v9609_v18, 16  ;;  %v1294_v34 = vrot.slane %v1293_v21, 4  ;;  %v1298_v35 = vsel %vm12128_vm3, %v1293_v21, %v1297_v10  ;;  %v752_v49 = vadd.f32 %v12354_v47, %v10017_v7  ;;  %v11343_v2 = vld [vmem:[#allocation9 + $0xe8] sm:$0xff]  }
 0x191   : > { %1299 = vst [vmem:[#allocation2 + $0x7c] sm:$0xe] %v1298_v35  ;;  %v1347_v45 = vrot.slane %v1345_v23, 7  ;;  %v1308_v46 = vrot.slane %v1306_v29, 5  ;;  %v2312_v50 = vor.u32 %v2310_v20, %v12324_v44  ;;  %v1319_v44 = vld [vmem:[#allocation2 + $0x84] sm:$0x7]  ;;  %v744_v59 = vadd.f32 %v12354_v47, %v743_v26  ;;  %10374 = vmatpush3.bf16.msra.mxu0 %v11341_v56  ;;  %v10021_v16 = vpop.f32.mrf.mxu0 }
 0x192   : > { %10176 = vmatmul.mubr.bf16.gmra.mxu0 %v2309_v19  ;;  %v1311_v24 = vrot.slane %v1309_v30, 6  ;;  %v1301_v51 = vsel %vm12134_vm5, %v1294_v34, %v1300_v15  ;;  %v800_v42 = vmax.f32 %v752_v49, 0.0  ;;  %v2320_v9 = vor.u32 %v2318_v54, %v2316_v33  ;;  %10375 = vmatprep.subr.bf16.mxu0 %v11816_v0  ;;  %v1412_v19 = vld [vmem:[#allocation2 + $0xa4] sm:$0xe]  ;;  %v1374_v29 = vld [vmem:[#allocation2 + $0x98] sm:$0x8] }
 0x193   : > { %10179 = vmatprep.mubr.msk.bf16.mxu0 %vm13546_vm0, %v11816_v0  ;;  %1302 = vst [vmem:[#allocation2 + $0x80] sm:$0x3] %v1301_v51  ;;  %v1350_v27 = vor.u32 %v1348_v28, %v1347_v45  ;;  %v1351_v57 = vrot.slane %v1347_v45, 4  ;;  %v2317_v5 = vsel %vm2257_vm1, %v2312_v50, %v2316_v33  ;;  %v798_v7 = vmax.f32 %v744_v59, 0.0  ;;  %v1415_v30 = vld [vmem:[#allocation2 + $0xa8] sm:$0x3] }
 0x194   : > { %10068 = vmatmul.mubr.bf16.gmra.mxu1 %v11302_v32  ;;  %v1312_v58 = vor.u32 %v1311_v24, %v1308_v46  ;;  %v9614_v6 = vpack.c.bf16 %v800_v42, %v800_v42  ;;  %v2324_v10 = vrot.slane %v2322_v55, 1  ;;  %v755_v12 = vadd.f32 %v12354_v47, %v10018_v39  ;;  %v12386_v34 = vld [vmem:[#allocation2 + $0x50] sm:$0xff]   ;;  %v1377_v39 = vld [vmem:[#allocation2 + $0x9c] sm:$0xf]  ;;  %v1431_v55 = vld [vmem:[#allocation2 + $0xa8] sm:$0xc] }
 0x195   : > { %10071 = vmatprep.mubr.msk.bf16.mxu1 %vm13546_vm0, %v11816_v0  ;;  %v1355_v43 = vsel %vm12142_vm6, %v1350_v27, %v1354_v48  ;;  %v1358_v61 = vsel %vm12152_vm7, %v1351_v57, %v1357_v36  ;;  %v2326_v13 = vshrl.u32 %v12345_v25, 16  ;;  %v9612_v15 = vpack.c.bf16 %v798_v7, %v798_v7  ;;  %10376 = vmatpush3.bf16.msra.mxu0 %v11343_v2  ;;  %v11345_v56 = vld [vmem:[#allocation9 + $0xe0] sm:$0xff]  }
 0x196   : > { %v1313_v62 = vrot.slane %v1312_v58, 4  ;;  %v1317_v63 = vsel %vm12160_vm4, %v1312_v58, %v1316_v37  ;;  %1356 = vst [vmem:[#allocation2 + $0x8c] sm:$0xf] %v1355_v43  ;;  %1359 = vst [vmem:[#allocation2 + $0x90] sm:$0x1] %v1358_v61  ;;  %v1402_v3 = vshrl.u32 %v9614_v6, 16  ;;  %v2325_v25 = vsel %vm2257_vm1, %v2320_v9, %v2324_v10  ;;  %v759_v37 = vpop.f32.mrf.mxu0  ;;  %10377 = vmatprep.subr.bf16.mxu0 %v11816_v0 }
 0x197   : > { %1318 = vst [vmem:[#allocation2 + $0x80] sm:$0xc] %v1317_v63  ;;  %v1405_v14 = vshll.u32 %v9614_v6, 16  ;;  %v2330_v18 = vshll.u32 %v12372_v1, 16  ;;  %v801_v20 = vmax.f32 %v755_v12, 0.0  ;;  %v1364_v23 = vshll.u32 %v9612_v15, 16 }
 0x198   : > { %v1320_v11 = vsel %vm12170_vm8, %v1313_v62, %v1319_v44  ;;  %v1404_v21 = vrot.slane %v1402_v3, 6  ;;  %v1367_v28 = vshrl.u32 %v9612_v15, 16  ;;  %v2328_v33 = vor.u32 %v2326_v13, %v2324_v10  ;;  %v11306_v44 = vld [vmem:[#allocation2 + $0x48] sm:$0xff]   ;;  %v10022_v62 = vpop.f32.mrf.mxu0 }
 0x199   : > { %1321 = vst [vmem:[#allocation2 + $0x84] sm:$0x7] %v1320_v11  ;;  %v1407_v26 = vrot.slane %v1405_v14, 7  ;;  %v9615_v32 = vpack.c.bf16 %v801_v20, %v801_v20  ;;  %v1366_v48 = vrot.slane %v1364_v23, 5  ;;  %v747_v46 = vadd.f32 %v12354_v47, %v746_v60  ;;  %10378 = vmatpush3.bf16.msra.mxu0 %v11345_v56  ;;  %v11317_v22 = vld [vmem:[#allocation2 + $0x68] sm:$0xff]  }
 0x19a   : > { %10180 = vmatmul.mubr.bf16.gmra.mxu0 %v2317_v5  ;;  %v1369_v36 = vrot.slane %v1367_v28, 4  ;;  %v768_v24 = vadd.f32 %v12354_v47, %v10021_v16  ;;  %v2334_v27 = vshrl.u32 %v12372_v1, 16  ;;  %v760_v61 = vadd.f32 %v12354_v47, %v759_v37  ;;  %v1434_v5 = vld [vmem:[#allocation2 + $0xac] sm:$0x7]  ;;  %10379 = vmatprep.subr.bf16.mxu0 %v11816_v0  ;;  %v1392_v16 = vld [vmem:[#allocation2 + $0xa0] sm:$0xf] }
 0x19b   : > { %10183 = vmatprep.mubr.msk.bf16.mxu0 %vm13546_vm0, %v11816_v0  ;;  %v1408_v35 = vor.u32 %v1407_v26, %v1404_v21  ;;  %v1421_v40 = vshrl.u32 %v9615_v32, 16  ;;  %v1424_v45 = vshll.u32 %v9615_v32, 16  ;;  %v1375_v54 = vsel %vm12112_vm13, %v1366_v48, %v1374_v29  ;;  %v762_v32 = vpop.f32.mrf.mxu0 }
 0x19c   : > { %10072 = vmatmul.mubr.bf16.gmra.mxu1 %v11304_v38  ;;  %v1370_v51 = vor.u32 %v1369_v36, %v1366_v48  ;;  %1376 = vst [vmem:[#allocation2 + $0x98] sm:$0x8] %v1375_v54  ;;  %v799_v42 = vmax.f32 %v747_v46, 0.0  ;;  %v804_v43 = vmax.f32 %v768_v24, 0.0  ;;  %v2332_v63 = vrot.slane %v2330_v18, 1  ;;  %v11347_v38 = vld [vmem:[#allocation9 + $0xd8] sm:$0xff]  }
 0x19d   : > { %10075 = vmatprep.mubr.msk.bf16.mxu1 %vm13546_vm0, %v11816_v0  ;;  %v1409_v49 = vrot.slane %v1408_v35, 4  ;;  %v1413_v50 = vsel %vm12128_vm3, %v1408_v35, %v1412_v19  ;;  %v1423_v57 = vrot.slane %v1421_v40, 5  ;;  %v1426_v58 = vrot.slane %v1424_v45, 6  ;;  %v1395_v18 = vld [vmem:[#allocation2 + $0xa4] sm:$0x1]  ;;  %v11350_v35 = vld [vmem:[#allocation9 + $0xd0] sm:$0xff]   ;;  %10380 = vmatpush3.bf16.msra.mxu0 %v11347_v38 }
 0x19e   : > { %1414 = vst [vmem:[#allocation2 + $0xa4] sm:$0xe] %v1413_v50  ;;  %v1371_v60 = vrot.slane %v1370_v51, 4  ;;  %v9613_v6 = vpack.c.bf16 %v799_v42, %v799_v42  ;;  %v771_v7 = vadd.f32 %v12354_v47, %v10022_v62  ;;  %v2338_v9 = vshll.u32 %v12386_v34, 16  ;;  %v11309_v48 = vld [vmem:[#allocation2 + $0x50] sm:$0xff]   ;;  %10381 = vmatprep.subr.bf16.mxu0 %v11816_v0 }
 0x19f   : > { %v1416_v59 = vsel %vm12134_vm5, %v1409_v49, %v1415_v30  ;;  %v1427_v1 = vor.u32 %v1426_v58, %v1423_v57  ;;  %v9618_v11 = vpack.c.bf16 %v804_v43, %v804_v43  ;;  %v802_v12 = vmax.f32 %v760_v61, 0.0  ;;  %v1451_v30 = vld [vmem:[#allocation2 + $0xac] sm:$0x8]  ;;  %v1492_v24 = vld [vmem:[#allocation2 + $0xbc] sm:$0x3] }
 0x1a0   : > { %1417 = vst [vmem:[#allocation2 + $0xa8] sm:$0x3] %v1416_v59  ;;  %v1378_v10 = vsel %vm12122_vm2, %v1371_v60, %v1377_v39  ;;  %v1383_v14 = vshrl.u32 %v9613_v6, 16  ;;  %v1386_v15 = vshll.u32 %v9613_v6, 16  ;;  %v805_v21 = vmax.f32 %v771_v7, 0.0  ;;  %v11353_v6 = vld [vmem:[#allocation9 + $0xc8] sm:$0xff]  }
 0x1a1   : > { %1379 = vst [vmem:[#allocation2 + $0x9c] sm:$0xf] %v1378_v10  ;;  %v1428_v13 = vrot.slane %v1427_v1, 4  ;;  %v1432_v3 = vsel %vm12160_vm4, %v1427_v1, %v1431_v55  ;;  %v1479_v19 = vshrl.u32 %v9618_v11, 16  ;;  %v1482_v20 = vshll.u32 %v9618_v11, 16  ;;  %10382 = vmatpush3.bf16.msra.mxu0 %v11350_v35 }
 0x1a2   : > { %10184 = vmatmul.mubr.bf16.gmra.mxu0 %v2325_v25  ;;  %1433 = vst [vmem:[#allocation2 + $0xa8] sm:$0xc] %v1432_v3  ;;  %v9616_v2 = vpack.c.bf16 %v802_v12, %v802_v12  ;;  %v2333_v26 = vsel %vm2257_vm1, %v2328_v33, %v2332_v63  ;;  %v2336_v23 = vor.u32 %v2334_v27, %v2332_v63  ;;  %v1385_v29 = vrot.slane %v1383_v14, 7  ;;  %v1489_v25 = vld [vmem:[#allocation2 + $0xb8] sm:$0xe] }
 0x1a3   : > { %10187 = vmatprep.mubr.msk.bf16.mxu0 %vm13546_vm0, %v11816_v0  ;;  %v1435_v28 = vsel %vm12170_vm8, %v1428_v13, %v1434_v5  ;;  %v1481_v36 = vrot.slane %v1479_v19, 6  ;;  %v1484_v37 = vrot.slane %v1482_v20, 7  ;;  %v12413_v45 = vrot.slane %v2338_v9, 1  ;;  %v1454_v57 = vld [vmem:[#allocation2 + $0xb0] sm:$0xf]  ;;  %10383 = vmatprep.subr.bf16.mxu0 %v11816_v0 }
 0x1a4   : > { %10076 = vmatmul.mubr.bf16.gmra.mxu1 %v11306_v44  ;;  %1436 = vst [vmem:[#allocation2 + $0xac] sm:$0x7] %v1435_v28  ;;  %v1441_v39 = vshll.u32 %v9616_v2, 16  ;;  %v1444_v40 = vshrl.u32 %v9616_v2, 16  ;;  %v1388_v46 = vor.u32 %v1386_v15, %v1385_v29  ;;  %v1389_v33 = vrot.slane %v1385_v29, 4  ;;  %v12423_v44 = vld [vmem:[#allocation2 + $0x58] sm:$0xff]  }
 0x1a5   : > { %10079 = vmatprep.mubr.msk.bf16.mxu1 %vm13546_vm0, %v11816_v0  ;;  %v9619_v49 = vpack.c.bf16 %v805_v21, %v805_v21  ;;  %v1485_v50 = vor.u32 %v1484_v37, %v1481_v36  ;;  %v763_v55 = vadd.f32 %v12354_v47, %v762_v32  ;;  %v1508_v5 = vld [vmem:[#allocation2 + $0xbc] sm:$0xc]  ;;  %v1511_v7 = vld [vmem:[#allocation2 + $0xc0] sm:$0x7]  ;;  %v2341_v10 = vsel %vm2257_vm1, %v2336_v23, %v12413_v45  ;;  %v11355_v15 = vld [vmem:[#allocation9 + $0xc0] sm:$0xff]  }
 0x1a6   : > { %v1443_v51 = vrot.slane %v1441_v39, 5  ;;  %v1446_v54 = vrot.slane %v1444_v40, 4  ;;  %v1393_v56 = vsel %vm12142_vm6, %v1388_v46, %v1392_v16  ;;  %v1396_v27 = vsel %vm12152_vm7, %v1389_v33, %v1395_v18  ;;  %10384 = vmatpush3.bf16.msra.mxu0 %v11353_v6  ;;  %v11311_v16 = vld [vmem:[#allocation2 + $0x58] sm:$0xff]   ;;  %v1469_v18 = vld [vmem:[#allocation2 + $0xb4] sm:$0xf]  ;;  %v11314_v2 = vld [vmem:[#allocation2 + $0x60] sm:$0xff]  }
 0x1a7   : > { %v1498_v58 = vshrl.u32 %v9619_v49, 16  ;;  %v1501_v42 = vshll.u32 %v9619_v49, 16  ;;  %1394 = vst [vmem:[#allocation2 + $0xa0] sm:$0xf] %v1393_v56  ;;  %1397 = vst [vmem:[#allocation2 + $0xa4] sm:$0x1] %v1396_v27  ;;  %v1490_v47 = vsel %vm12128_vm3, %v1485_v50, %v1489_v25  ;;  %10385 = vmatprep.subr.bf16.mxu0 %v11816_v0 }
 0x1a8   : > { %v1486_v59 = vrot.slane %v1485_v50, 4  ;;  %v1447_v60 = vor.u32 %v1446_v54, %v1443_v51  ;;  %v1452_v43 = vsel %vm12112_vm13, %v1443_v51, %v1451_v30  ;;  %1491 = vst [vmem:[#allocation2 + $0xb8] sm:$0xe] %v1490_v47  ;;  %v803_v63 = vmax.f32 %v763_v55, 0.0  ;;  %v11313_v28 = vld [vmem:[#allocation2 + $0x60] sm:$0xff]   ;;  %v11316_v36 = vld [vmem:[#allocation2 + $0x68] sm:$0xff]  }
 0x1a9   : > { %1453 = vst [vmem:[#allocation2 + $0xac] sm:$0x8] %v1452_v43  ;;  %v1500_v61 = vrot.slane %v1498_v58, 5  ;;  %v1503_v62 = vrot.slane %v1501_v42, 6  ;;  %v2342_v11 = vshrl.u32 %v12386_v34, 16  ;;  %v2346_v12 = vshll.u32 %v12423_v44, 16 }
 0x1aa   : > { %10188 = vmatmul.mubr.bf16.gmra.mxu0 %v2333_v26  ;;  %v1493_v1 = vsel %vm12134_vm5, %v1486_v59, %v1492_v24  ;;  %v1448_v8 = vrot.slane %v1447_v60, 4  ;;  %v9617_v9 = vpack.c.bf16 %v803_v63, %v803_v63  ;;  %v2350_v25 = vshrl.u32 %v12423_v44, 16  ;;  %v11318_v24 = vld [vmem:[#allocation2 + $0x70] sm:$0xff]   ;;  %v11321_v54 = vld [vmem:[#allocation2 + $0x78] sm:$0xff]   ;;  %v11324_v42 = vld [vmem:[#allocation2 + $0x80] sm:$0xff]  }
 0x1ab   : > { %10191 = vmatprep.mubr.msk.bf16.mxu0 %vm13546_vm0, %v11816_v0  ;;  %1494 = vst [vmem:[#allocation2 + $0xbc] sm:$0x3] %v1493_v1  ;;  %v1504_v53 = vor.u32 %v1503_v62, %v1500_v61  ;;  %10386 = vmatpush3.bf16.msra.mxu0 %v11355_v15  ;;  %v2344_v19 = vor.u32 %v2342_v11, %v12413_v45  ;;  %v2348_v20 = vrot.slane %v2346_v12, 1  ;;  %v2354_v30 = vshll.u32 %v11314_v2, 16  ;;  %v11319_v45 = vld [vmem:[#allocation2 + $0x70] sm:$0xff]   ;;  %v11320_v27 = vld [vmem:[#allocation2 + $0x78] sm:$0xff]  }
 0x1ac   : > { %10080 = vmatmul.mubr.bf16.gmra.mxu1 %v11309_v48  ;;  %v1455_v38 = vsel %vm12122_vm2, %v1448_v8, %v1454_v57  ;;  %v1460_v3 = vshrl.u32 %v9617_v9, 16  ;;  %v1463_v14 = vshll.u32 %v9617_v9, 16  ;;  %10603 = vmatprep.subr.bf16.mxu0 %v11816_v0  ;;  %v2358_v48 = vshrl.u32 %v11314_v2, 16  ;;  %v11323_v43 = vld [vmem:[#allocation2 + $0x80] sm:$0xff]   ;;  %v11326_v63 = vld [vmem:[#allocation2 + $0x88] sm:$0xff]   ;;  %vm13549_vm2 = vmmov %vm13547_vm14 }
 0x1ad   : > { %10083 = vmatprep.mubr.msk.bf16.mxu1 %vm13546_vm0, %v11816_v0  ;;  %1456 = vst [vmem:[#allocation2 + $0xb0] sm:$0xf] %v1455_v38  ;;  %v1505_v17 = vrot.slane %v1504_v53, 4  ;;  %v1509_v13 = vsel %vm12160_vm4, %v1504_v53, %v1508_v5  ;;  %v2349_v29 = vsel %vm2257_vm1, %v2344_v19, %v2348_v20  ;;  %v2352_v32 = vor.u32 %v2350_v25, %v2348_v20  ;;  %v11325_v5 = vld [vmem:[#allocation2 + $0x88] sm:$0xff]   ;;  %v11327_v38 = vld [vmem:[#allocation2 + $0x90] sm:$0xff]   ;;  %vm13550_vm3 = vmmov %vm13549_vm2 }
 0x1ae   : > { %1510 = vst [vmem:[#allocation2 + $0xbc] sm:$0xc] %v1509_v13  ;;  %v1462_v34 = vrot.slane %v1460_v3, 7  ;;  %v2356_v35 = vrot.slane %v2354_v30, 1  ;;  %v2362_v37 = vshll.u32 %v11317_v22, 16  ;;  %v2366_v33 = vshrl.u32 %v11317_v22, 16  ;;  %vm13551_vm5 = vmmov %vm13549_vm2 }
 0x1af   : > { %v1512_v4 = vsel %vm12170_vm8, %v1505_v17, %v1511_v7  ;;  %v2370_v49 = vshll.u32 %v11319_v45, 16  ;;  %v2374_v56 = vshrl.u32 %v11319_v45, 16  ;;  %v2378_v57 = vshll.u32 %v11321_v54, 16  ;;  %v11328_v7 = vld [vmem:[#allocation2 + $0x90] sm:$0xff]   ;;  %v11331_v3 = vld [vmem:[#allocation2 + $0x98] sm:$0xff]   ;;  %v11332_v2 = vld [vmem:[#allocation2 + $0xa0] sm:$0xff]  }
 0x1b0   : > { %1513 = vst [vmem:[#allocation2 + $0xc0] sm:$0x7] %v1512_v4  ;;  %v1465_v21 = vor.u32 %v1463_v14, %v1462_v34  ;;  %v1466_v26 = vrot.slane %v1462_v34, 4  ;;  %v2357_v31 = vsel %vm2257_vm1, %v2352_v32, %v2356_v35  ;;  %v2360_v39 = vor.u32 %v2358_v48, %v2356_v35  ;;  %v11330_v4 = vld [vmem:[#allocation2 + $0x98] sm:$0xff]   ;;  %v11334_v30 = vld [vmem:[#allocation2 + $0xa8] sm:$0xff]   ;;  %vm13554_vm4 = vmmov %vm13549_vm2 }
 0x1b1   : > { %v2364_v40 = vrot.slane %v2362_v37, 1  ;;  %v2372_v51 = vrot.slane %v2370_v49, 1  ;;  %v2380_v44 = vrot.slane %v2378_v57, 1  ;;  %v2382_v47 = vshrl.u32 %v11321_v54, 16  ;;  %vm13555_vm8 = vmmov %vm13549_vm2 }
 0x1b2   : > { %10192 = vmatmul.mubr.bf16.gmra.mxu0 %v2341_v10  ;;  %v1470_v52 = vsel %vm12142_vm6, %v1465_v21, %v1469_v18  ;;  %v1473_v23 = vsel %vm12152_vm7, %v1466_v26, %v1472_v41  ;;  %v2386_v60 = vshll.u32 %v11324_v42, 16  ;;  %v2390_v1 = vshrl.u32 %v11324_v42, 16  ;;  %v11333_v41 = vld [vmem:[#allocation2 + $0xa0] sm:$0xff]   ;;  %vm13552_vm6 = vmmov %vm13549_vm2 }
 0x1b3   : > { %10195 = vmatprep.mubr.msk.bf16.mxu0 %vm13546_vm0, %v11816_v0  ;;  %1471 = vst [vmem:[#allocation2 + $0xb4] sm:$0xf] %v1470_v52  ;;  %1474 = vst [vmem:[#allocation2 + $0xb8] sm:$0x1] %v1473_v23  ;;  %v2365_v46 = vsel %vm2257_vm1, %v2360_v39, %v2364_v40  ;;  %v2368_v50 = vor.u32 %v2366_v33, %v2364_v40  ;;  %v2376_v58 = vor.u32 %v2374_v56, %v2372_v51  ;;  %v11335_v52 = vld [vmem:[#allocation2 + $0xa8] sm:$0xff]   ;;  %vm7700_vm13 = vcmask 1044480  }
 0x1b4   : > { %10084 = vmatmul.mubr.bf16.gmra.mxu1 %v11311_v16  ;;  %v2384_v61 = vor.u32 %v2382_v47, %v2380_v44  ;;  %v2388_v62 = vrot.slane %v2386_v60, 1  ;;  %v2394_v6 = vshll.u32 %v11326_v63, 16  ;;  %v2398_v11 = vshrl.u32 %v11326_v63, 16  ;;  %vm13553_vm7 = vmmov %vm13549_vm2 }
 0x1b5   : > { %10087 = vmatprep.mubr.msk.bf16.mxu1 %vm13546_vm0, %v11816_v0  ;;  %v2373_v55 = vsel %vm2257_vm1, %v2368_v50, %v2372_v51  ;;  %v2381_v59 = vsel %vm2257_vm1, %v2376_v58, %v2380_v44  ;;  %v2402_v12 = vshll.u32 %v11328_v7, 16  ;;  %v2406_v15 = vshrl.u32 %v11328_v7, 16  ;;  %v11349_v58 = vld [vmem:[#allocation2 + $0x8] sm:$0xff]   ;;  %v11348_v44 = vld [vmem:[#allocation2] sm:$0xfe]  }
 0x1b6   : > { %v2389_v8 = vsel %vm2257_vm1, %v2384_v61, %v2388_v62  ;;  %v2392_v53 = vor.u32 %v2390_v1, %v2388_v62  ;;  %v2396_v9 = vrot.slane %v2394_v6, 1  ;;  %v2410_v16 = vshll.u32 %v11331_v3, 16 }
 0x1b7   : > { %v2404_v13 = vrot.slane %v2402_v12, 1  ;;  %v2414_v20 = vshrl.u32 %v11331_v3, 16  ;;  %v2418_v21 = vshll.u32 %v11333_v41, 16  ;;  %v2426_v25 = vshll.u32 %v11335_v52, 16  ;;  %v11346_v50 = vld [vmem:[#allocation2 + $0xc0] sm:$0xff]  }
 0x1b8   : > { %v2397_v10 = vsel %vm2257_vm1, %v2392_v53, %v2396_v9  ;;  %v2400_v17 = vor.u32 %v2398_v11, %v2396_v9  ;;  %v2412_v18 = vrot.slane %v2410_v16, 1  ;;  %v2430_v48 = vshrl.u32 %v11335_v52, 16  ;;  %v11344_v57 = vld [vmem:[#allocation2 + $0xc0] sm:$0xff]   ;;  %v11368_v16 = vld [vmem:[#allocation9 + $0x128] sm:$0xff]  }
 0x1b9   : > { %v2408_v34 = vor.u32 %v2406_v15, %v2404_v13  ;;  %v2420_v23 = vrot.slane %v2418_v21, 1  ;;  %v2428_v35 = vrot.slane %v2426_v25, 1  ;;  %v2450_v56 = vshll.u32 %v11346_v50, 16  ;;  %v11357_v15 = vld [vmem:[#allocation2 + $0xc] sm:$0xff]   ;;  %v11376_v52 = vld [vmem:[#allocation9 + $0x120] sm:$0xff]  }
 0x1ba   : > { %10196 = vmatmul.mubr.bf16.gmra.mxu0 %v2349_v29  ;;  %v2405_v14 = vsel %vm2257_vm1, %v2400_v17, %v2404_v13  ;;  %v2416_v26 = vor.u32 %v2414_v20, %v2412_v18  ;;  %v2422_v29 = vshrl.u32 %v11333_v41, 16  ;;  %v11338_v22 = vld [vmem:[#allocation2 + $0xb0] sm:$0xff]   ;;  %v11342_v45 = vld [vmem:[#allocation2 + $0xb8] sm:$0xff]   ;;  %v3116_v61 = vrot.slane %v11349_v58, 1  ;;  %v11356_v20 = vld [vmem:[#allocation2 + $0x4] sm:$0xfe]  }
 0x1bb   : > { %10199 = vmatprep.mubr.msk.bf16.mxu0 %vm13546_vm0, %v11816_v0  ;;  %v2413_v19 = vsel %vm2257_vm1, %v2408_v34, %v2412_v18  ;;  %v11337_v37 = vld [vmem:[#allocation2 + $0xb0] sm:$0xff]   ;;  %v2432_v39 = vor.u32 %v2430_v48, %v2428_v35  ;;  %v2438_v33 = vshrl.u32 %v11338_v22, 16  ;;  %v11340_v49 = vld [vmem:[#allocation2 + $0xb8] sm:$0xff]   ;;  %v2452_v60 = vrot.slane %v2450_v56, 1 }
 0x1bc   : > { %10088 = vmatmul.mubr.bf16.gmra.mxu1 %v11313_v28  ;;  %v2421_v28 = vsel %vm2257_vm1, %v2416_v26, %v2420_v23  ;;  %v2424_v32 = vor.u32 %v2422_v29, %v2420_v23  ;;  %v3115_v1 = vrot.slane %v11348_v44, 1  ;;  %v11358_v18 = vld [vmem:[#allocation2 + $0x18] sm:$0xff]   ;;  %v3819_v26 = vrot.slane %v11357_v15, 1 }
 0x1bd   : > { %10091 = vmatprep.mubr.msk.bf16.mxu1 %vm13546_vm0, %v11816_v0  ;;  %v3818_v25 = vrot.slane %v11356_v20, 1  ;;  %v11383_v48 = vld [vmem:[#allocation9 + $0x118] sm:$0xff]  }
 0x1be   : > { %v3117_v7 = vsel %vm3114_vm9, %v3115_v1, %v3116_v61  ;;  %v11362_v58 = vld [vmem:[#allocation2 + $0x1c] sm:$0xff]  }
 0x1c2   : > { %10200 = vmatmul.mubr.bf16.gmra.mxu0 %v2357_v31  ;;  %v2429_v31 = vsel %vm2257_vm1, %v2424_v32, %v2428_v35 }
 0x1c3   : > { %10203 = vmatprep.mubr.msk.bf16.mxu0 %vm13546_vm0, %v11816_v0 }
 0x1c4   : > { %10092 = vmatmul.mubr.bf16.gmra.mxu1 %v11316_v36  ;;  %v2434_v36 = vshll.u32 %v11338_v22, 16  ;;  %v3820_v22 = vsel %vm3114_vm9, %v3818_v25, %v3819_v26 }
 0x1c5   : > { %10095 = vmatprep.mubr.msk.bf16.mxu1 %vm13546_vm0, %v11816_v0 }
 0x1c6   : > { %v2436_v40 = vrot.slane %v2434_v36, 1 }
 0x1c8   : > { %v2440_v51 = vor.u32 %v2438_v33, %v2436_v40 }
 0x1ca   : > { %10204 = vmatmul.mubr.bf16.gmra.mxu0 %v2365_v46  ;;  %v2437_v46 = vsel %vm2257_vm1, %v2432_v39, %v2436_v40 }
 0x1cb   : > { %10207 = vmatprep.mubr.msk.bf16.mxu0 %vm13546_vm0, %v11816_v0 }
 0x1cc   : > { %10096 = vmatmul.mubr.bf16.gmra.mxu1 %v11318_v24  ;;  %v2442_v24 = vshll.u32 %v11342_v45, 16 }
 0x1cd   : > { %10099 = vmatprep.mubr.msk.bf16.mxu1 %vm13546_vm0, %v11816_v0 }
 0x1ce   : > { %v2444_v54 = vrot.slane %v2442_v24, 1 }
 0x1d2   : > { %10208 = vmatmul.mubr.bf16.gmra.mxu0 %v2373_v55  ;;  %v2446_v55 = vshrl.u32 %v11342_v45, 16  ;;  %v11360_v45 = vld [vmem:[#allocation2 + $0x20] sm:$0xff]  }
 0x1d3   : > { %10211 = vmatprep.mubr.msk.bf16.mxu0 %vm13546_vm0, %v11816_v0 }
 0x1d4   : > { %10100 = vmatmul.mubr.bf16.gmra.mxu1 %v11320_v27  ;;  %v2445_v27 = vsel %vm2257_vm1, %v2440_v51, %v2444_v54  ;;  %v2448_v47 = vor.u32 %v2446_v55, %v2444_v54  ;;  %v3122_v55 = vrot.slane %v11360_v45, 1 }
 0x1d5   : > { %10103 = vmatprep.mubr.msk.bf16.mxu1 %vm13546_vm0, %v11816_v0 }
 0x1d6   : > { %v2453_v63 = vsel %vm2257_vm1, %v2448_v47, %v2452_v60 }
 0x1da   : > { %10212 = vmatmul.mubr.bf16.gmra.mxu0 %v2381_v59  ;;  %v11352_v59 = vld [vmem:[#allocation2 + $0xc8] ss:$0 sps:$4 sm:$0x11]  }
 0x1db   : > { %10215 = vmatprep.mubr.msk.bf16.mxu0 %vm13546_vm0, %v11816_v0  ;;  %v2458_v6 = vshll.u32 %v11352_v59, 16 }
 0x1dc   : > { %10104 = vmatmul.mubr.bf16.gmra.mxu1 %v11323_v43 }
 0x1dd   : > { %10107 = vmatprep.mubr.msk.bf16.mxu1 %vm13546_vm0, %v11816_v0  ;;  %v2460_v12 = vrot.slane %v2458_v6, 1 }
 0x1e2   : > { %10216 = vmatmul.mubr.bf16.gmra.mxu0 %v2389_v8  ;;  %v11351_v8 = vld [vmem:[#allocation9 + $0x138] sm:$0xff]  }
 0x1e3   : > { %10219 = vmatprep.mubr.msk.bf16.mxu0 %vm13546_vm0, %v11816_v0 }
 0x1e4   : > { %10108 = vmatmul.mubr.bf16.gmra.mxu1 %v11325_v5  ;;  %v2454_v5 = vshrl.u32 %v11346_v50, 16 }
 0x1e5   : > { %10111 = vmatprep.mubr.msk.bf16.mxu1 %vm13546_vm0, %v11816_v0 }
 0x1e6   : > { %v2456_v11 = vor.u32 %v2454_v5, %v2452_v60  ;;  %v11363_v60 = vld [vmem:[#allocation2 + $0x28] sm:$0xff]  }
 0x1e7   : > { %v3124_v6 = vrot.slane %v11363_v60, 1 }
 0x1e8   : > { %v2461_v3 = vsel %vm2257_vm1, %v2456_v11, %v2460_v12 }
 0x1ea   : > { %10220 = vmatmul.mubr.bf16.gmra.mxu0 %v2397_v10  ;;  %v11354_v10 = vld [vmem:[#allocation2 + $0x10] sm:$0xff]  }
 0x1eb   : > { %10223 = vmatprep.mubr.msk.bf16.mxu0 %vm13546_vm0, %v11816_v0 }
 0x1ec   : > { %10112 = vmatmul.mubr.bf16.gmra.mxu1 %v11327_v38  ;;  %v11361_v38 = vld [vmem:[#allocation9 + $0x130] sm:$0xff]  }
 0x1ed   : > { %10115 = vmatprep.mubr.msk.bf16.mxu1 %vm13546_vm0, %v11816_v0 }
 0x1f2   : > { %10224 = vmatmul.mubr.bf16.gmra.mxu0 %v2405_v14  ;;  %v3118_v14 = vrot.slane %v11354_v10, 1  ;;  %v11364_v10 = vld [vmem:[#allocation2 + $0x24] sm:$0xff]  }
 0x1f3   : > { %10227 = vmatprep.mubr.msk.bf16.mxu0 %vm13546_vm0, %v11816_v0  ;;  %v3825_v15 = vrot.slane %v11364_v10, 1 }
 0x1f4   : > { %10116 = vmatmul.mubr.bf16.gmra.mxu1 %v11330_v4 }
 0x1f5   : > { %10119 = vmatprep.mubr.msk.bf16.mxu1 %vm13546_vm0, %v11816_v0 }
 0x1fa   : > { %10228 = vmatmul.mubr.bf16.gmra.mxu0 %v2413_v19  ;;  %v3119_v19 = vsel %vm3114_vm9, %v3116_v61, %v3118_v14 }
 0x1fb   : > { %10231 = vmatprep.mubr.msk.bf16.mxu0 %vm13546_vm0, %v11816_v0 }
 0x1fc   : > { %10120 = vmatmul.mubr.bf16.gmra.mxu1 %v11332_v2 }
 0x1fd   : > { %10123 = vmatprep.mubr.msk.bf16.mxu1 %vm13546_vm0, %v11816_v0 }
 0x202   : > { %10232 = vmatmul.mubr.bf16.gmra.mxu0 %v2421_v28 }
 0x203   : > { %10235 = vmatprep.mubr.msk.bf16.mxu0 %vm13546_vm0, %v11816_v0 }
 0x204   : > { %10124 = vmatmul.mubr.bf16.gmra.mxu1 %v11334_v30  ;;  %v3120_v30 = vrot.slane %v11358_v18, 1 }
 0x205   : > { %10127 = vmatprep.mubr.msk.bf16.mxu1 %vm13546_vm0, %v11816_v0 }
 0x206   : > { %v3121_v40 = vsel %vm3114_vm9, %v3118_v14, %v3120_v30  ;;  %v3123_v47 = vsel %vm3114_vm9, %v3120_v30, %v3122_v55 }
 0x20a   : > { %10236 = vmatmul.mubr.bf16.gmra.mxu0 %v2429_v31  ;;  %v11359_v31 = vld [vmem:[#allocation2 + $0x14] sm:$0xff]  }
 0x20b   : > { %10239 = vmatprep.mubr.msk.bf16.mxu0 %vm13546_vm0, %v11816_v0  ;;  %v3821_v24 = vrot.slane %v11359_v31, 1 }
 0x20c   : > { %10128 = vmatmul.mubr.bf16.gmra.mxu1 %v11337_v37 }
 0x20d   : > { %10131 = vmatprep.mubr.msk.bf16.mxu1 %vm13546_vm0, %v11816_v0 }
 0x212   : > { %10240 = vmatmul.mubr.bf16.gmra.mxu0 %v2437_v46 }
 0x213   : > { %10243 = vmatprep.mubr.msk.bf16.mxu0 %vm13546_vm0, %v11816_v0 }
 0x214   : > { %10132 = vmatmul.mubr.bf16.gmra.mxu1 %v11340_v49  ;;  %v11390_v49 = vld [vmem:[#allocation9 + $0x110] sm:$0xff]  }
 0x215   : > { %10135 = vmatprep.mubr.msk.bf16.mxu1 %vm13546_vm0, %v11816_v0 }
 0x21a   : > { %10244 = vmatmul.mubr.bf16.gmra.mxu0 %v2445_v27 }
 0x21b   : > { %10247 = vmatprep.mubr.msk.bf16.mxu0 %vm13546_vm0, %v11816_v0  ;;  %v1812_v42 = vpop.f32.mrf.mxu1 }
 0x21c   : > { %10136 = vmatmul.mubr.bf16.gmra.mxu1 %v11344_v57  ;;  %v3822_v57 = vsel %vm3114_vm9, %v3819_v26, %v3821_v24 }
 0x21d   : > { %10271 = vmatprep.mubr.msk.bf16.mxu1 %vm13546_vm0, %v11816_v0  ;;  %v10041_v43 = vpop.f32.mrf.mxu1 }
 0x21f   : > { %v1815_v62 = vpop.f32.mrf.mxu1 }
 0x221   : > { %v10042_v53 = vpop.f32.mrf.mxu1 }
 0x222   : > { %10248 = vmatmul.mubr.bf16.gmra.mxu0 %v2453_v63  ;;  %v11397_v63 = vld [vmem:[#allocation9 + $0x108] sm:$0xff]  }
 0x223   : > { %10251 = vmatprep.mubr.msk.bf16.mxu0 %vm13546_vm0, %v11816_v0  ;;  %v1820_v9 = vpop.f32.mrf.mxu1 }
 0x224   : > { %10272 = vmatmul.mubr.bf16.vlgmr.msra.gmra.mxu1 %v3117_v7 }
 0x225   : > { %10488 = vmatpush3.bf16.msra.mxu1 %v11351_v8  ;;  %10275 = vmatprep.mubr.msk.bf16.mxu1 %vm13546_vm0, %v11816_v0  ;;  %v10045_v17 = vpop.f32.mrf.mxu1 }
 0x226   : > { %10489 = vmatprep.subr.bf16.mxu1 %v11816_v0  ;;  %v3125_v17 = vsel %vm3114_vm9, %v3122_v55, %v3124_v6 }
 0x227   : > { %v1823_v13 = vpop.f32.mrf.mxu1 }
 0x229   : > { %10490 = vmatpush3.bf16.msra.mxu1 %v11361_v38  ;;  %v10046_v34 = vpop.f32.mrf.mxu1 }
 0x22a   : > { %v2569_v4 = vpop.f32.mrf.mxu0  ;;  %10252 = vmatmul.mubr.bf16.gmra.mxu0 %v2461_v3  ;;  %10491 = vmatprep.subr.bf16.mxu1 %v11816_v0 }
 0x22b   : > { %v2818_v41 = vadd.f32 %v2569_v4, %v1812_v42  ;;  %10387 = vmatprep.mubr.msk.bf16.mxu0 %vm13546_vm0, %v11816_v0  ;;  %v1828_v21 = vpop.f32.mrf.mxu1 }
 0x22c   : > { %v10157_v2 = vpop.f32.mrf.mxu0  ;;  %10276 = vmatmul.mubr.bf16.gmra.mxu1 %v3119_v19 }
 0x22d   : > { %2868 = vst [vmem:[#allocation3] sm:$0xff] %v2818_v41  ;;  %10279 = vmatprep.mubr.msk.bf16.mxu1 %vm13546_vm0, %v11816_v0  ;;  %10492 = vmatpush3.bf16.msra.mxu1 %v11368_v16  ;;  %v10049_v28 = vpop.f32.mrf.mxu1  ;;  %v11366_v2 = vld [vmem:[#allocation2 + $0x2c] sm:$0xff]  }
 0x22e   : > { %v2572_v23 = vpop.f32.mrf.mxu0  ;;  %10493 = vmatprep.subr.bf16.mxu1 %v11816_v0  ;;  %v3827_v30 = vrot.slane %v11366_v2, 1 }
 0x22f   : > { %v2819_v29 = vadd.f32 %v2572_v23, %v1815_v62  ;;  %v1831_v35 = vpop.f32.mrf.mxu1  ;;  %v3823_v62 = vrot.slane %v11362_v58, 1 }
 0x230   : > { %v10158_v32 = vpop.f32.mrf.mxu0 }
 0x231   : > { %2869 = vst [vmem:[#allocation3 + $0x8] sm:$0xff] %v2819_v29  ;;  %10494 = vmatpush3.bf16.msra.mxu1 %v11376_v52  ;;  %v10050_v37 = vpop.f32.mrf.mxu1  ;;  %v3826_v20 = vsel %vm3114_vm9, %v3823_v62, %v3825_v15  ;;  %v11367_v52 = vld [vmem:[#allocation2 + $0x38] sm:$0xff]  }
 0x232   : > { %v2577_v36 = vpop.f32.mrf.mxu0  ;;  %10388 = vmatmul.mubr.bf16.vlgmr.msra.gmra.mxu0 %v3820_v22  ;;  %10495 = vmatprep.subr.bf16.mxu1 %v11816_v0  ;;  %v3128_v22 = vrot.slane %v11367_v52, 1  ;;  %v3828_v37 = vsel %vm3114_vm9, %v3825_v15, %v3827_v30 }
 0x233   : > { %v2820_v39 = vadd.f32 %v2577_v36, %v1820_v9  ;;  %10391 = vmatprep.mubr.msk.bf16.mxu0 %vm13546_vm0, %v11816_v0  ;;  %v3824_v9 = vsel %vm3114_vm9, %v3821_v24, %v3823_v62  ;;  %v11372_v62 = vld [vmem:[#allocation2 + $0x48] sm:$0xff]  }
 0x234   : > { %v10161_v46 = vpop.f32.mrf.mxu0  ;;  %v1836_v33 = vpop.f32.mrf.mxu1  ;;  %10280 = vmatmul.mubr.bf16.gmra.mxu1 %v3121_v40 }
 0x235   : > { %2870 = vst [vmem:[#allocation3 + $0x10] sm:$0xff] %v2820_v39  ;;  %10283 = vmatprep.mubr.msk.bf16.mxu1 %vm13546_vm0, %v11816_v0  ;;  %10496 = vmatpush3.bf16.msra.mxu1 %v11383_v48  ;;  %v11369_v39 = vld [vmem:[#allocation2 + $0x34] sm:$0xff]   ;;  %v11370_v46 = vld [vmem:[#allocation2 + $0x40] sm:$0xff]  }
 0x236   : > { %v2580_v50 = vpop.f32.mrf.mxu0  ;;  %v10053_v51 = vpop.f32.mrf.mxu1  ;;  %10497 = vmatprep.subr.bf16.mxu1 %v11816_v0 }
 0x237   : > { %v2821_v54 = vadd.f32 %v2580_v50, %v1823_v13  ;;  %v11365_v13 = vld [vmem:[#allocation2 + $0x30] sm:$0xff]   ;;  %v3829_v51 = vrot.slane %v11369_v39, 1 }
 0x238   : > { %v10162_v56 = vpop.f32.mrf.mxu0  ;;  %v1839_v27 = vpop.f32.mrf.mxu1  ;;  %v3126_v18 = vrot.slane %v11365_v13, 1 }
 0x239   : > { %2871 = vst [vmem:[#allocation3 + $0x18] sm:$0xff] %v2821_v54  ;;  %10498 = vmatpush3.bf16.msra.mxu1 %v11390_v49  ;;  %v3130_v56 = vrot.slane %v11370_v46, 1 }
 0x23a   : > { %v2585_v42 = vpop.f32.mrf.mxu0  ;;  %10392 = vmatmul.mubr.bf16.gmra.mxu0 %v3822_v57  ;;  %v10054_v44 = vpop.f32.mrf.mxu1  ;;  %10499 = vmatprep.subr.bf16.mxu1 %v11816_v0  ;;  %v3127_v28 = vsel %vm3114_vm9, %v3124_v6, %v3126_v18  ;;  %v3129_v24 = vsel %vm3114_vm9, %v3126_v18, %v3128_v22 }
 0x23b   : > { %v2822_v59 = vadd.f32 %v2585_v42, %v1828_v21  ;;  %10395 = vmatprep.mubr.msk.bf16.mxu0 %vm13546_vm0, %v11816_v0  ;;  %v11371_v42 = vld [vmem:[#allocation2 + $0x3c] sm:$0xff]   ;;  %v3830_v44 = vsel %vm3114_vm9, %v3827_v30, %v3829_v51 }
 0x23c   : > { %v10165_v43 = vpop.f32.mrf.mxu0  ;;  %v1844_v61 = vpop.f32.mrf.mxu1  ;;  %10284 = vmatmul.mubr.bf16.gmra.mxu1 %v3123_v47 }
 0x23d   : > { %2872 = vst [vmem:[#allocation3 + $0x20] sm:$0xff] %v2822_v59  ;;  %10287 = vmatprep.mubr.msk.bf16.mxu1 %vm13546_vm0, %v11816_v0  ;;  %10500 = vmatpush3.bf16.msra.mxu1 %v11397_v63  ;;  %v11404_v59 = vld [vmem:[#allocation9 + $0x100] sm:$0xff]  }
 0x23e   : > { %v2588_v1 = vpop.f32.mrf.mxu0  ;;  %v10057_v8 = vpop.f32.mrf.mxu1  ;;  %10501 = vmatprep.subr.bf16.mxu1 %v11816_v0 }
 0x23f   : > { %v2823_v5 = vadd.f32 %v2588_v1, %v1831_v35  ;;  %v3831_v8 = vrot.slane %v11371_v42, 1 }
 0x240   : > { %v10166_v53 = vpop.f32.mrf.mxu0  ;;  %v1847_v7 = vpop.f32.mrf.mxu1 }
 0x241   : > { %2873 = vst [vmem:[#allocation3 + $0x28] sm:$0xff] %v2823_v5  ;;  %10502 = vmatpush3.bf16.msra.mxu1 %v11404_v59  ;;  %v11407_v5 = vld [vmem:[#allocation9 + $0x178] sm:$0xff]   ;;  %v11421_v59 = vld [vmem:[#allocation9 + $0x148] sm:$0xff]  }
 0x242   : > { %v2593_v11 = vpop.f32.mrf.mxu0  ;;  %10396 = vmatmul.mubr.bf16.gmra.mxu0 %v3824_v9  ;;  %v10058_v12 = vpop.f32.mrf.mxu1  ;;  %10719 = vmatprep.subr.bf16.mxu1 %v11816_v0  ;;  %v3132_v9 = vrot.slane %v11372_v62, 1 }
 0x243   : > { %v2824_v38 = vadd.f32 %v2593_v11, %v1836_v33  ;;  %10399 = vmatprep.mubr.msk.bf16.mxu0 %vm13546_vm0, %v11816_v0  ;;  %10604 = vmatpush3.bf16.msra.mxu0 %v11407_v5  ;;  %v11373_v12 = vld [vmem:[#allocation2 + $0x44] sm:$0xff]  }
 0x244   : > { %v10169_v3 = vpop.f32.mrf.mxu0  ;;  %v1852_v14 = vpop.f32.mrf.mxu1  ;;  %10288 = vmatmul.mubr.bf16.gmra.mxu1 %v3125_v17  ;;  %10605 = vmatprep.subr.bf16.mxu0 %v11816_v0  ;;  %v11409_v17 = vld [vmem:[#allocation9 + $0x170] sm:$0xff]   ;;  %v3133_v15 = vsel %vm3114_vm9, %v3130_v56, %v3132_v9  ;;  %v3833_v18 = vrot.slane %v11373_v12, 1  ;;  %v11423_v5 = vld [vmem:[#allocation9 + $0x140] sm:$0xff]  }
 0x245   : > { %2874 = vst [vmem:[#allocation3 + $0x30] sm:$0xff] %v2824_v38  ;;  %10291 = vmatprep.mubr.msk.bf16.mxu1 %vm13546_vm0, %v11816_v0  ;;  %v3832_v38 = vsel %vm3114_vm9, %v3829_v51, %v3831_v8  ;;  %v11418_v51 = vld [vmem:[#allocation9 + $0x150] sm:$0xff]  }
 0x246   : > { %v2596_v16 = vpop.f32.mrf.mxu0  ;;  %v10061_v4 = vpop.f32.mrf.mxu1 }
 0x247   : > { %v2825_v34 = vadd.f32 %v2596_v16, %v1839_v27  ;;  %v11374_v16 = vld [vmem:[#allocation2 + $0x50] sm:$0xff]   ;;  %10606 = vmatpush3.bf16.msra.mxu0 %v11409_v17 }
 0x248   : > { %v10170_v41 = vpop.f32.mrf.mxu0  ;;  %v1855_v19 = vpop.f32.mrf.mxu1  ;;  %10607 = vmatprep.subr.bf16.mxu0 %v11816_v0 }
 0x249   : > { %2875 = vst [vmem:[#allocation3 + $0x38] sm:$0xff] %v2825_v34  ;;  %v11411_v41 = vld [vmem:[#allocation9 + $0x168] sm:$0xff]  }
 0x24a   : > { %v2601_v21 = vpop.f32.mrf.mxu0  ;;  %10400 = vmatmul.mubr.bf16.gmra.mxu0 %v3826_v20  ;;  %v10062_v26 = vpop.f32.mrf.mxu1 }
 0x24b   : > { %v2826_v23 = vadd.f32 %v2601_v21, %v1844_v61  ;;  %10403 = vmatprep.mubr.msk.bf16.mxu0 %vm13546_vm0, %v11816_v0  ;;  %v3131_v61 = vsel %vm3114_vm9, %v3128_v22, %v3130_v56  ;;  %v3134_v21 = vrot.slane %v11374_v16, 1  ;;  %10608 = vmatpush3.bf16.msra.mxu0 %v11411_v41  ;;  %v11377_v22 = vld [vmem:[#allocation2 + $0x58] sm:$0xff]  }
 0x24c   : > { %v10173_v29 = vpop.f32.mrf.mxu0  ;;  %v1860_v25 = vpop.f32.mrf.mxu1  ;;  %10292 = vmatmul.mubr.bf16.gmra.mxu1 %v3127_v28  ;;  %10609 = vmatprep.subr.bf16.mxu0 %v11816_v0  ;;  %v11375_v28 = vld [vmem:[#allocation2 + $0x4c] sm:$0xff]   ;;  %v3136_v46 = vrot.slane %v11377_v22, 1 }
 0x24d   : > { %2876 = vst [vmem:[#allocation3 + $0x40] sm:$0xff] %v2826_v23  ;;  %10295 = vmatprep.mubr.msk.bf16.mxu1 %vm13546_vm0, %v11816_v0  ;;  %v3834_v23 = vsel %vm3114_vm9, %v3831_v8, %v3833_v18  ;;  %v11413_v29 = vld [vmem:[#allocation9 + $0x160] sm:$0xff]   ;;  %v11380_v8 = vld [vmem:[#allocation2 + $0x5c] sm:$0xff]   ;;  %v11385_v22 = vld [vmem:[#allocation2 + $0x6c] sm:$0xff]  }
 0x24e   : > { %v2604_v32 = vpop.f32.mrf.mxu0  ;;  %v10065_v35 = vpop.f32.mrf.mxu1  ;;  %v3839_v12 = vrot.slane %v11380_v8, 1 }
 0x24f   : > { %v2827_v31 = vadd.f32 %v2604_v32, %v1847_v7  ;;  %v3135_v35 = vsel %vm3114_vm9, %v3132_v9, %v3134_v21  ;;  %10610 = vmatpush3.bf16.msra.mxu0 %v11413_v29 }
 0x250   : > { %v10174_v48 = vpop.f32.mrf.mxu0  ;;  %v1863_v36 = vpop.f32.mrf.mxu1  ;;  %10611 = vmatprep.subr.bf16.mxu0 %v11816_v0 }
 0x251   : > { %2877 = vst [vmem:[#allocation3 + $0x48] sm:$0xff] %v2827_v31 }
 0x252   : > { %v2609_v40 = vpop.f32.mrf.mxu0  ;;  %10404 = vmatmul.mubr.bf16.gmra.mxu0 %v3828_v37  ;;  %v10066_v45 = vpop.f32.mrf.mxu1  ;;  %v11415_v37 = vld [vmem:[#allocation9 + $0x158] sm:$0xff]  }
 0x253   : > { %v2828_v33 = vadd.f32 %v2609_v40, %v1852_v14  ;;  %10407 = vmatprep.mubr.msk.bf16.mxu0 %vm13546_vm0, %v11816_v0  ;;  %10612 = vmatpush3.bf16.msra.mxu0 %v11415_v37 }
 0x254   : > { %v10177_v49 = vpop.f32.mrf.mxu0  ;;  %v1868_v50 = vpop.f32.mrf.mxu1  ;;  %10296 = vmatmul.mubr.bf16.gmra.mxu1 %v3129_v24  ;;  %10613 = vmatprep.subr.bf16.mxu0 %v11816_v0 }
 0x255   : > { %2878 = vst [vmem:[#allocation3 + $0x50] sm:$0xff] %v2828_v33  ;;  %10299 = vmatprep.mubr.msk.bf16.mxu1 %vm13546_vm0, %v11816_v0 }
 0x256   : > { %v2612_v54 = vpop.f32.mrf.mxu0  ;;  %v10069_v55 = vpop.f32.mrf.mxu1 }
 0x257   : > { %v2829_v27 = vadd.f32 %v2612_v54, %v1855_v19  ;;  %10614 = vmatpush3.bf16.msra.mxu0 %v11418_v51 }
 0x258   : > { %v10178_v57 = vpop.f32.mrf.mxu0  ;;  %v1871_v58 = vpop.f32.mrf.mxu1  ;;  %10615 = vmatprep.subr.bf16.mxu0 %v11816_v0 }
 0x259   : > { %2879 = vst [vmem:[#allocation3 + $0x58] sm:$0xff] %v2829_v27  ;;  %v3137_v27 = vsel %vm3114_vm9, %v3134_v21, %v3136_v46  ;;  %v11379_v57 = vld [vmem:[#allocation2 + $0x60] sm:$0xff]  }
 0x25a   : > { %v2617_v47 = vpop.f32.mrf.mxu0  ;;  %10408 = vmatmul.mubr.bf16.gmra.mxu0 %v3830_v44  ;;  %v10070_v60 = vpop.f32.mrf.mxu1 }
 0x25b   : > { %v2830_v43 = vadd.f32 %v2617_v47, %v1860_v25  ;;  %10411 = vmatprep.mubr.msk.bf16.mxu0 %vm13546_vm0, %v11816_v0  ;;  %10616 = vmatpush3.bf16.msra.mxu0 %v11421_v59 }
 0x25c   : > { %v10181_v63 = vpop.f32.mrf.mxu0  ;;  %v1876_v1 = vpop.f32.mrf.mxu1  ;;  %10300 = vmatmul.mubr.bf16.gmra.mxu1 %v3131_v61  ;;  %v3138_v61 = vrot.slane %v11379_v57, 1  ;;  %10617 = vmatprep.subr.bf16.mxu0 %v11816_v0 }
 0x25d   : > { %2880 = vst [vmem:[#allocation3 + $0x60] sm:$0xff] %v2830_v43  ;;  %10303 = vmatprep.mubr.msk.bf16.mxu1 %vm13546_vm0, %v11816_v0 }
 0x25e   : > { %v2620_v6 = vpop.f32.mrf.mxu0  ;;  %v10073_v53 = vpop.f32.mrf.mxu1  ;;  %v3139_v9 = vsel %vm3114_vm9, %v3136_v46, %v3138_v61  ;;  %v3843_v46 = vrot.slane %v11385_v22, 1 }
 0x25f   : > { %v2831_v7 = vadd.f32 %v2620_v6, %v1863_v36  ;;  %v3835_v36 = vrot.slane %v11375_v28, 1  ;;  %10618 = vmatpush3.bf16.msra.mxu0 %v11423_v5 }
 0x260   : > { %v10182_v10 = vpop.f32.mrf.mxu0  ;;  %v1879_v11 = vpop.f32.mrf.mxu1  ;;  %10835 = vmatprep.subr.bf16.mxu0 %v11816_v0 }
 0x261   : > { %2881 = vst [vmem:[#allocation3 + $0x68] sm:$0xff] %v2831_v7  ;;  %v3836_v49 = vsel %vm3114_vm9, %v3833_v18, %v3835_v36 }
 0x262   : > { %v2625_v13 = vpop.f32.mrf.mxu0  ;;  %10412 = vmatmul.mubr.bf16.gmra.mxu0 %v3832_v38  ;;  %v10074_v3 = vpop.f32.mrf.mxu1  ;;  %v11381_v38 = vld [vmem:[#allocation2 + $0x68] sm:$0xff]  }
 0x263   : > { %v2832_v14 = vadd.f32 %v2625_v13, %v1868_v50  ;;  %10415 = vmatprep.mubr.msk.bf16.mxu0 %vm13546_vm0, %v11816_v0  ;;  %v11378_v50 = vld [vmem:[#allocation2 + $0x54] sm:$0xff]  }
 0x264   : > { %v10185_v4 = vpop.f32.mrf.mxu0  ;;  %v1884_v34 = vpop.f32.mrf.mxu1  ;;  %10304 = vmatmul.mubr.bf16.gmra.mxu1 %v3133_v15  ;;  %v3837_v44 = vrot.slane %v11378_v50, 1 }
 0x265   : > { %2882 = vst [vmem:[#allocation3 + $0x70] sm:$0xff] %v2832_v14  ;;  %10307 = vmatprep.mubr.msk.bf16.mxu1 %vm13546_vm0, %v11816_v0  ;;  %v3140_v4 = vrot.slane %v11381_v38, 1 }
 0x266   : > { %v2628_v19 = vpop.f32.mrf.mxu0  ;;  %v10077_v20 = vpop.f32.mrf.mxu1  ;;  %v3840_v16 = vsel %vm3114_vm9, %v3837_v44, %v3839_v12 }
 0x267   : > { %v2833_v2 = vadd.f32 %v2628_v19, %v1871_v58  ;;  %v3141_v20 = vsel %vm3114_vm9, %v3138_v61, %v3140_v4 }
 0x268   : > { %v10186_v26 = vpop.f32.mrf.mxu0  ;;  %v1887_v52 = vpop.f32.mrf.mxu1 }
 0x269   : > { %2883 = vst [vmem:[#allocation3 + $0x78] sm:$0xff] %v2833_v2  ;;  %v11384_v2 = vld [vmem:[#allocation2 + $0x70] sm:$0xff]  }
 0x26a   : > { %v2633_v25 = vpop.f32.mrf.mxu0  ;;  %10416 = vmatmul.mubr.bf16.gmra.mxu0 %v3834_v23  ;;  %v10078_v30 = vpop.f32.mrf.mxu1 }
 0x26b   : > { %v2834_v32 = vadd.f32 %v2633_v25, %v1876_v1  ;;  %10419 = vmatprep.mubr.msk.bf16.mxu0 %vm13546_vm0, %v11816_v0  ;;  %v3838_v1 = vsel %vm3114_vm9, %v3835_v36, %v3837_v44  ;;  %v3142_v25 = vrot.slane %v11384_v2, 1  ;;  %v11388_v44 = vld [vmem:[#allocation2 + $0x80] sm:$0xff]  }
 0x26c   : > { %v10189_v31 = vpop.f32.mrf.mxu0  ;;  %v1892_v48 = vpop.f32.mrf.mxu1  ;;  %10308 = vmatmul.mubr.bf16.gmra.mxu1 %v3135_v35 }
 0x26d   : > { %2884 = vst [vmem:[#allocation3 + $0x80] sm:$0xff] %v2834_v32  ;;  %10311 = vmatprep.mubr.msk.bf16.mxu1 %vm13546_vm0, %v11816_v0  ;;  %v3143_v37 = vsel %vm3114_vm9, %v3140_v4, %v3142_v25 }
 0x26e   : > { %v2636_v39 = vpop.f32.mrf.mxu0  ;;  %v10081_v40 = vpop.f32.mrf.mxu1 }
 0x26f   : > { %v2835_v45 = vadd.f32 %v2636_v39, %v1879_v11  ;;  %v11386_v39 = vld [vmem:[#allocation2 + $0x78] sm:$0xff]  }
 0x270   : > { %v10190_v33 = vpop.f32.mrf.mxu0  ;;  %v1895_v24 = vpop.f32.mrf.mxu1  ;;  %v3144_v50 = vrot.slane %v11386_v39, 1 }
 0x271   : > { %2885 = vst [vmem:[#allocation3 + $0x88] sm:$0xff] %v2835_v45 }
 0x272   : > { %v2641_v54 = vpop.f32.mrf.mxu0  ;;  %10420 = vmatmul.mubr.bf16.gmra.mxu0 %v3836_v49  ;;  %v10082_v55 = vpop.f32.mrf.mxu1 }
 0x273   : > { %v2836_v56 = vadd.f32 %v2641_v54, %v1884_v34  ;;  %10423 = vmatprep.mubr.msk.bf16.mxu0 %vm13546_vm0, %v11816_v0  ;;  %v11382_v34 = vld [vmem:[#allocation2 + $0x64] sm:$0xff]  }
 0x274   : > { %v10193_v58 = vpop.f32.mrf.mxu0  ;;  %v1900_v42 = vpop.f32.mrf.mxu1  ;;  %10312 = vmatmul.mubr.bf16.gmra.mxu1 %v3137_v27 }
 0x275   : > { %2886 = vst [vmem:[#allocation3 + $0x90] sm:$0xff] %v2836_v56  ;;  %10315 = vmatprep.mubr.msk.bf16.mxu1 %vm13546_vm0, %v11816_v0  ;;  %v11387_v56 = vld [vmem:[#allocation2 + $0x74] sm:$0xff]  }
 0x276   : > { %v2644_v47 = vpop.f32.mrf.mxu0  ;;  %v10085_v60 = vpop.f32.mrf.mxu1 }
 0x277   : > { %v2837_v43 = vadd.f32 %v2644_v47, %v1887_v52  ;;  %v3841_v52 = vrot.slane %v11382_v34, 1  ;;  %v3845_v60 = vrot.slane %v11387_v56, 1 }
 0x278   : > { %v10194_v62 = vpop.f32.mrf.mxu0  ;;  %v1903_v63 = vpop.f32.mrf.mxu1 }
 0x279   : > { %2887 = vst [vmem:[#allocation3 + $0x98] sm:$0xff] %v2837_v43  ;;  %v3842_v35 = vsel %vm3114_vm9, %v3839_v12, %v3841_v52  ;;  %v3844_v55 = vsel %vm3114_vm9, %v3841_v52, %v3843_v46  ;;  %v3846_v5 = vsel %vm3114_vm9, %v3843_v46, %v3845_v60 }
 0x27a   : > { %v2649_v6 = vpop.f32.mrf.mxu0  ;;  %10424 = vmatmul.mubr.bf16.gmra.mxu0 %v3838_v1  ;;  %v10086_v53 = vpop.f32.mrf.mxu1 }
 0x27b   : > { %v2838_v7 = vadd.f32 %v2649_v6, %v1892_v48  ;;  %10427 = vmatprep.mubr.msk.bf16.mxu0 %vm13546_vm0, %v11816_v0  ;;  %v11389_v6 = vld [vmem:[#allocation2 + $0x7c] sm:$0xff]  }
 0x27c   : > { %v10197_v10 = vpop.f32.mrf.mxu0  ;;  %v1908_v11 = vpop.f32.mrf.mxu1  ;;  %10316 = vmatmul.mubr.bf16.gmra.mxu1 %v3139_v9 }
 0x27d   : > { %2888 = vst [vmem:[#allocation3 + $0xa0] sm:$0xff] %v2838_v7  ;;  %10319 = vmatprep.mubr.msk.bf16.mxu1 %vm13546_vm0, %v11816_v0 }
 0x27e   : > { %v2652_v17 = vpop.f32.mrf.mxu0  ;;  %v10089_v13 = vpop.f32.mrf.mxu1 }
 0x27f   : > { %v2839_v3 = vadd.f32 %v2652_v17, %v1895_v24  ;;  %v3847_v17 = vrot.slane %v11389_v6, 1 }
 0x280   : > { %v10198_v14 = vpop.f32.mrf.mxu0  ;;  %v1911_v15 = vpop.f32.mrf.mxu1 }
 0x281   : > { %2889 = vst [vmem:[#allocation3 + $0xa8] sm:$0xff] %v2839_v3  ;;  %v3848_v34 = vsel %vm3114_vm9, %v3845_v60, %v3847_v17 }
 0x282   : > { %v2657_v18 = vpop.f32.mrf.mxu0  ;;  %10428 = vmatmul.mubr.bf16.gmra.mxu0 %v3840_v16  ;;  %v10090_v41 = vpop.f32.mrf.mxu1 }
 0x283   : > { %v2840_v19 = vadd.f32 %v2657_v18, %v1900_v42  ;;  %10431 = vmatprep.mubr.msk.bf16.mxu0 %vm13546_vm0, %v11816_v0  ;;  %v3145_v42 = vsel %vm3114_vm9, %v3142_v25, %v3144_v50  ;;  %v11392_v18 = vld [vmem:[#allocation2 + $0x84] sm:$0xff]  }
 0x284   : > { %v10201_v21 = vpop.f32.mrf.mxu0  ;;  %v1916_v26 = vpop.f32.mrf.mxu1  ;;  %10320 = vmatmul.mubr.bf16.gmra.mxu1 %v3141_v20 }
 0x285   : > { %2890 = vst [vmem:[#allocation3 + $0xb0] sm:$0xff] %v2840_v19  ;;  %10323 = vmatprep.mubr.msk.bf16.mxu1 %vm13546_vm0, %v11816_v0  ;;  %v11393_v21 = vld [vmem:[#allocation2 + $0x90] sm:$0xff]  }
 0x286   : > { %v2660_v23 = vpop.f32.mrf.mxu0  ;;  %v10093_v28 = vpop.f32.mrf.mxu1 }
 0x287   : > { %v2841_v29 = vadd.f32 %v2660_v23, %v1903_v63  ;;  %v3146_v63 = vrot.slane %v11388_v44, 1  ;;  %v3849_v23 = vrot.slane %v11392_v18, 1 }
 0x288   : > { %v10202_v30 = vpop.f32.mrf.mxu0  ;;  %v1919_v32 = vpop.f32.mrf.mxu1 }
 0x289   : > { %2891 = vst [vmem:[#allocation3 + $0xb8] sm:$0xff] %v2841_v29  ;;  %v3147_v10 = vsel %vm3114_vm9, %v3144_v50, %v3146_v63  ;;  %v3150_v30 = vrot.slane %v11393_v21, 1  ;;  %v3850_v22 = vsel %vm3114_vm9, %v3847_v17, %v3849_v23 }
 0x28a   : > { %v2665_v31 = vpop.f32.mrf.mxu0  ;;  %10432 = vmatmul.mubr.bf16.gmra.mxu0 %v3842_v35  ;;  %v10094_v48 = vpop.f32.mrf.mxu1 }
 0x28b   : > { %v2842_v36 = vadd.f32 %v2665_v31, %v1908_v11  ;;  %10435 = vmatprep.mubr.msk.bf16.mxu0 %vm13546_vm0, %v11816_v0  ;;  %v11391_v11 = vld [vmem:[#allocation2 + $0x88] sm:$0xff]  }
 0x28c   : > { %v10205_v40 = vpop.f32.mrf.mxu0  ;;  %v1924_v45 = vpop.f32.mrf.mxu1  ;;  %10324 = vmatmul.mubr.bf16.gmra.mxu1 %v3143_v37  ;;  %v11394_v31 = vld [vmem:[#allocation2 + $0x8c] sm:$0xff]  }
 0x28d   : > { %2892 = vst [vmem:[#allocation3 + $0xc0] sm:$0xff] %v2842_v36  ;;  %10327 = vmatprep.mubr.msk.bf16.mxu1 %vm13546_vm0, %v11816_v0  ;;  %v11395_v40 = vld [vmem:[#allocation2 + $0x98] sm:$0xff]  }
 0x28e   : > { %v2668_v33 = vpop.f32.mrf.mxu0  ;;  %v10097_v24 = vpop.f32.mrf.mxu1 }
 0x28f   : > { %v2843_v49 = vadd.f32 %v2668_v33, %v1911_v15  ;;  %v3148_v15 = vrot.slane %v11391_v11, 1  ;;  %v3851_v33 = vrot.slane %v11394_v31, 1 }
 0x290   : > { %v10206_v51 = vpop.f32.mrf.mxu0  ;;  %v1927_v54 = vpop.f32.mrf.mxu1 }
 0x291   : > { %2893 = vst [vmem:[#allocation3 + $0xc8] sm:$0xff] %v2843_v49  ;;  %v3149_v2 = vsel %vm3114_vm9, %v3146_v63, %v3148_v15  ;;  %v3151_v39 = vsel %vm3114_vm9, %v3148_v15, %v3150_v30  ;;  %v3152_v51 = vrot.slane %v11395_v40, 1  ;;  %v3852_v56 = vsel %vm3114_vm9, %v3849_v23, %v3851_v33 }
 0x292   : > { %v2673_v27 = vpop.f32.mrf.mxu0  ;;  %10436 = vmatmul.mubr.bf16.gmra.mxu0 %v3844_v55  ;;  %v10098_v57 = vpop.f32.mrf.mxu1 }
 0x293   : > { %v2844_v58 = vadd.f32 %v2673_v27, %v1916_v26  ;;  %10439 = vmatprep.mubr.msk.bf16.mxu0 %vm13546_vm0, %v11816_v0  ;;  %v11396_v27 = vld [vmem:[#allocation2 + $0x94] sm:$0xff]   ;;  %v3153_v44 = vsel %vm3114_vm9, %v3150_v30, %v3152_v51 }
 0x294   : > { %v10209_v59 = vpop.f32.mrf.mxu0  ;;  %v1932_v47 = vpop.f32.mrf.mxu1  ;;  %10328 = vmatmul.mubr.bf16.gmra.mxu1 %v3145_v42 }
 0x295   : > { %2894 = vst [vmem:[#allocation3 + $0xd0] sm:$0xff] %v2844_v58  ;;  %10331 = vmatprep.mubr.msk.bf16.mxu1 %vm13546_vm0, %v11816_v0  ;;  %v11398_v59 = vld [vmem:[#allocation2 + $0xa0] sm:$0xff]  }
 0x296   : > { %v2676_v43 = vpop.f32.mrf.mxu0  ;;  %v10101_v61 = vpop.f32.mrf.mxu1 }
 0x297   : > { %v2845_v62 = vadd.f32 %v2676_v43, %v1919_v32  ;;  %v3853_v43 = vrot.slane %v11396_v27, 1 }
 0x298   : > { %v10210_v1 = vpop.f32.mrf.mxu0  ;;  %v1935_v8 = vpop.f32.mrf.mxu1 }
 0x299   : > { %2895 = vst [vmem:[#allocation3 + $0xd8] sm:$0xff] %v2845_v62  ;;  %v3154_v1 = vrot.slane %v11398_v59, 1  ;;  %v3854_v6 = vsel %vm3114_vm9, %v3851_v33, %v3853_v43 }
 0x29a   : > { %v2681_v53 = vpop.f32.mrf.mxu0  ;;  %10440 = vmatmul.mubr.bf16.gmra.mxu0 %v3846_v5  ;;  %v10102_v7 = vpop.f32.mrf.mxu1 }
 0x29b   : > { %v2846_v9 = vadd.f32 %v2681_v53, %v1924_v45  ;;  %10443 = vmatprep.mubr.msk.bf16.mxu0 %vm13546_vm0, %v11816_v0  ;;  %v11399_v53 = vld [vmem:[#allocation2 + $0x9c] sm:$0xff]   ;;  %v3155_v11 = vsel %vm3114_vm9, %v3152_v51, %v3154_v1 }
 0x29c   : > { %v10213_v12 = vpop.f32.mrf.mxu0  ;;  %v1940_v38 = vpop.f32.mrf.mxu1  ;;  %10332 = vmatmul.mubr.bf16.gmra.mxu1 %v3147_v10 }
 0x29d   : > { %2896 = vst [vmem:[#allocation3 + $0xe0] sm:$0xff] %v2846_v9  ;;  %10335 = vmatprep.mubr.msk.bf16.mxu1 %vm13546_vm0, %v11816_v0  ;;  %v11400_v12 = vld [vmem:[#allocation2 + $0xa8] sm:$0xff]  }
 0x29e   : > { %v2684_v13 = vpop.f32.mrf.mxu0  ;;  %v10105_v3 = vpop.f32.mrf.mxu1 }
 0x29f   : > { %v2847_v14 = vadd.f32 %v2684_v13, %v1927_v54  ;;  %v3855_v13 = vrot.slane %v11399_v53, 1 }
 0x2a0   : > { %v10214_v16 = vpop.f32.mrf.mxu0  ;;  %v1943_v4 = vpop.f32.mrf.mxu1 }
 0x2a1   : > { %2897 = vst [vmem:[#allocation3 + $0xe8] sm:$0xff] %v2847_v14  ;;  %v3156_v16 = vrot.slane %v11400_v12, 1  ;;  %v3856_v18 = vsel %vm3114_vm9, %v3853_v43, %v3855_v13 }
 0x2a2   : > { %v2689_v41 = vpop.f32.mrf.mxu0  ;;  %10444 = vmatmul.mubr.bf16.gmra.mxu0 %v3848_v34  ;;  %v10106_v19 = vpop.f32.mrf.mxu1 }
 0x2a3   : > { %v2848_v20 = vadd.f32 %v2689_v41, %v1932_v47  ;;  %10447 = vmatprep.mubr.msk.bf16.mxu0 %vm13546_vm0, %v11816_v0  ;;  %v11401_v41 = vld [vmem:[#allocation2 + $0xa4] sm:$0xff]   ;;  %v3157_v21 = vsel %vm3114_vm9, %v3154_v1, %v3156_v16 }
 0x2a4   : > { %v10217_v26 = vpop.f32.mrf.mxu0  ;;  %v1948_v52 = vpop.f32.mrf.mxu1  ;;  %10336 = vmatmul.mubr.bf16.gmra.mxu1 %v3149_v2 }
 0x2a5   : > { %2898 = vst [vmem:[#allocation3 + $0xf0] sm:$0xff] %v2848_v20  ;;  %10339 = vmatprep.mubr.msk.bf16.mxu1 %vm13546_vm0, %v11816_v0  ;;  %v11402_v26 = vld [vmem:[#allocation2 + $0xb0] sm:$0xff]  }
 0x2a6   : > { %v2692_v28 = vpop.f32.mrf.mxu0  ;;  %v10109_v29 = vpop.f32.mrf.mxu1 }
 0x2a7   : > { %v2849_v25 = vadd.f32 %v2692_v28, %v1935_v8  ;;  %v3857_v28 = vrot.slane %v11401_v41, 1 }
 0x2a8   : > { %v10218_v32 = vpop.f32.mrf.mxu0  ;;  %v1951_v35 = vpop.f32.mrf.mxu1 }
 0x2a9   : > { %2899 = vst [vmem:[#allocation3 + $0xf8] sm:$0xff] %v2849_v25  ;;  %v3158_v32 = vrot.slane %v11402_v26, 1  ;;  %v3858_v31 = vsel %vm3114_vm9, %v3855_v13, %v3857_v28  ;;  %v11414_v26 = vld [vmem:[#allocation2 + $0xc4] sm:$0xff]  }
 0x2aa   : > { %v2697_v48 = vpop.f32.mrf.mxu0  ;;  %10448 = vmatmul.mubr.bf16.gmra.mxu0 %v3850_v22  ;;  %v10110_v36 = vpop.f32.mrf.mxu1 }
 0x2ab   : > { %v2850_v37 = vadd.f32 %v2697_v48, %v1940_v38  ;;  %10451 = vmatprep.mubr.msk.bf16.mxu0 %vm13546_vm0, %v11816_v0  ;;  %v11403_v48 = vld [vmem:[#allocation2 + $0xac] sm:$0xff]   ;;  %v3159_v40 = vsel %vm3114_vm9, %v3156_v16, %v3158_v32 }
 0x2ac   : > { %v10221_v45 = vpop.f32.mrf.mxu0  ;;  %v1956_v46 = vpop.f32.mrf.mxu1  ;;  %10340 = vmatmul.mubr.bf16.gmra.mxu1 %v3151_v39 }
 0x2ad   : > { %2900 = vst [vmem:[#allocation3 + $0x100] sm:$0xff] %v2850_v37  ;;  %10343 = vmatprep.mubr.msk.bf16.mxu1 %vm13546_vm0, %v11816_v0  ;;  %v11405_v45 = vld [vmem:[#allocation2 + $0xb8] sm:$0xff]  }
 0x2ae   : > { %v2700_v24 = vpop.f32.mrf.mxu0  ;;  %v10113_v49 = vpop.f32.mrf.mxu1 }
 0x2af   : > { %v2851_v50 = vadd.f32 %v2700_v24, %v1943_v4  ;;  %v3859_v24 = vrot.slane %v11403_v48, 1 }
 0x2b0   : > { %v10222_v54 = vpop.f32.mrf.mxu0  ;;  %v1959_v55 = vpop.f32.mrf.mxu1 }
 0x2b1   : > { %2901 = vst [vmem:[#allocation3 + $0x108] sm:$0xff] %v2851_v50  ;;  %v3160_v54 = vrot.slane %v11405_v45, 1  ;;  %v3860_v27 = vsel %vm3114_vm9, %v3857_v28, %v3859_v24 }
 0x2b2   : > { %v2705_v57 = vpop.f32.mrf.mxu0  ;;  %10452 = vmatmul.mubr.bf16.gmra.mxu0 %v3852_v56  ;;  %v10114_v58 = vpop.f32.mrf.mxu1 }
 0x2b3   : > { %v2852_v42 = vadd.f32 %v2705_v57, %v1948_v52  ;;  %10455 = vmatprep.mubr.msk.bf16.mxu0 %vm13546_vm0, %v11816_v0  ;;  %v11406_v57 = vld [vmem:[#allocation2 + $0xb4] sm:$0xff]   ;;  %v3161_v59 = vsel %vm3114_vm9, %v3158_v32, %v3160_v54 }
 0x2b4   : > { %v10225_v47 = vpop.f32.mrf.mxu0  ;;  %v1964_v60 = vpop.f32.mrf.mxu1  ;;  %10344 = vmatmul.mubr.bf16.gmra.mxu1 %v3153_v44 }
 0x2b5   : > { %2902 = vst [vmem:[#allocation3 + $0x110] sm:$0xff] %v2852_v42  ;;  %10347 = vmatprep.mubr.msk.bf16.mxu1 %vm13546_vm0, %v11816_v0  ;;  %v11408_v47 = vld [vmem:[#allocation2 + $0xc0] sm:$0xff]  }
 0x2b6   : > { %v2708_v61 = vpop.f32.mrf.mxu0  ;;  %v10117_v62 = vpop.f32.mrf.mxu1 }
 0x2b7   : > { %v2853_v63 = vadd.f32 %v2708_v61, %v1951_v35  ;;  %v3861_v61 = vrot.slane %v11406_v57, 1 }
 0x2b8   : > { %v10226_v8 = vpop.f32.mrf.mxu0  ;;  %v1967_v5 = vpop.f32.mrf.mxu1 }
 0x2b9   : > { %2903 = vst [vmem:[#allocation3 + $0x118] sm:$0xff] %v2853_v63  ;;  %v3162_v8 = vrot.slane %v11408_v47, 1  ;;  %v3862_v53 = vsel %vm3114_vm9, %v3859_v24, %v3861_v61 }
 0x2ba   : > { %v2713_v7 = vpop.f32.mrf.mxu0  ;;  %10456 = vmatmul.mubr.bf16.gmra.mxu0 %v3854_v6  ;;  %v10118_v9 = vpop.f32.mrf.mxu1 }
 0x2bb   : > { %v2854_v10 = vadd.f32 %v2713_v7, %v1956_v46  ;;  %10459 = vmatprep.mubr.msk.bf16.mxu0 %vm13546_vm0, %v11816_v0  ;;  %v11410_v7 = vld [vmem:[#allocation2 + $0xbc] sm:$0xff]   ;;  %v3163_v12 = vsel %vm3114_vm9, %v3160_v54, %v3162_v8 }
 0x2bc   : > { %v10229_v38 = vpop.f32.mrf.mxu0  ;;  %v1972_v17 = vpop.f32.mrf.mxu1  ;;  %10348 = vmatmul.mubr.bf16.gmra.mxu1 %v3155_v11 }
 0x2bd   : > { %2904 = vst [vmem:[#allocation3 + $0x120] sm:$0xff] %v2854_v10  ;;  %10351 = vmatprep.mubr.msk.bf16.mxu1 %vm13546_vm0, %v11816_v0  ;;  %v11412_v38 = vld [vmem:[#allocation2 + $0xc8] ss:$0 sps:$4 sm:$0x11]  }
 0x2be   : > { %v2716_v3 = vpop.f32.mrf.mxu0  ;;  %v10121_v14 = vpop.f32.mrf.mxu1 }
 0x2bf   : > { %v2855_v15 = vadd.f32 %v2716_v3, %v1959_v55  ;;  %v3863_v14 = vrot.slane %v11410_v7, 1 }
 0x2c0   : > { %v10230_v4 = vpop.f32.mrf.mxu0  ;;  %v1975_v34 = vpop.f32.mrf.mxu1 }
 0x2c1   : > { %2905 = vst [vmem:[#allocation3 + $0x128] sm:$0xff] %v2855_v15  ;;  %v11416_v15 = vld [vmem:[#allocation2 + $0x4] sm:$0xfe]  }
 0x2c2   : > { %v2721_v19 = vpop.f32.mrf.mxu0  ;;  %10460 = vmatmul.mubr.bf16.gmra.mxu0 %v3856_v18  ;;  %v10122_v20 = vpop.f32.mrf.mxu1  ;;  %v3164_v18 = vrot.slane %v11412_v38, 1 }
 0x2c3   : > { %v2856_v2 = vadd.f32 %v2721_v19, %v1964_v60  ;;  %10463 = vmatprep.mubr.msk.bf16.mxu0 %vm13546_vm0, %v11816_v0 }
 0x2c4   : > { %v10233_v52 = vpop.f32.mrf.mxu0  ;;  %v1980_v23 = vpop.f32.mrf.mxu1  ;;  %10352 = vmatmul.mubr.bf16.gmra.mxu1 %v3157_v21  ;;  %v3864_v21 = vsel %vm3114_vm9, %v3861_v61, %v3863_v14  ;;  %v3165_v32 = vsel %vm3114_vm9, %v3162_v8, %v3164_v18 }
 0x2c5   : > { %2906 = vst [vmem:[#allocation3 + $0x130] sm:$0xff] %v2856_v2  ;;  %10355 = vmatprep.mubr.msk.bf16.mxu1 %vm13546_vm0, %v11816_v0  ;;  %v4523_v52 = vshrl.u32 %v11416_v15, 16 }
 0x2c6   : > { %v2724_v29 = vpop.f32.mrf.mxu0  ;;  %v10125_v25 = vpop.f32.mrf.mxu1 }
 0x2c7   : > { %v2857_v30 = vadd.f32 %v2724_v29, %v1967_v5  ;;  %v11422_v25 = vld [vmem:[#allocation2 + $0x14] sm:$0xff]  }
 0x2c8   : > { %v10234_v35 = vpop.f32.mrf.mxu0  ;;  %v1983_v22 = vpop.f32.mrf.mxu1 }
 0x2c9   : > { %2907 = vst [vmem:[#allocation3 + $0x138] sm:$0xff] %v2857_v30 }
 0x2ca   : > { %v2729_v36 = vpop.f32.mrf.mxu0  ;;  %10464 = vmatmul.mubr.bf16.gmra.mxu0 %v3858_v31  ;;  %v10126_v37 = vpop.f32.mrf.mxu1 }
 0x2cb   : > { %v2858_v39 = vadd.f32 %v2729_v36, %v1972_v17  ;;  %10467 = vmatprep.mubr.msk.bf16.mxu0 %vm13546_vm0, %v11816_v0  ;;  %v11417_v17 = vld [vmem:[#allocation2 + $0xc] sm:$0xff]   ;;  %v3865_v36 = vrot.slane %v11414_v26, 1  ;;  %v4525_v37 = vrot.slane %v4523_v52, 1  ;;  %v11444_v52 = vld [vmem:[#allocation9 + $0x1a0] sm:$0xff]  }
 0x2cc   : > { %v10237_v46 = vpop.f32.mrf.mxu0  ;;  %v1988_v33 = vpop.f32.mrf.mxu1  ;;  %10356 = vmatmul.mubr.bf16.gmra.mxu1 %v3159_v40  ;;  %v4531_v41 = vshrl.u32 %v11417_v17, 16  ;;  %v4534_v19 = vshll.u32 %v11417_v17, 16  ;;  %v12695_v17 = vld [vmem:[#allocation2 + $0xc] sm:$0xff]  }
 0x2cd   : > { %2908 = vst [vmem:[#allocation3 + $0x140] sm:$0xff] %v2858_v39  ;;  %10359 = vmatprep.mubr.msk.bf16.mxu1 %vm13546_vm0, %v11816_v0  ;;  %v4540_v46 = vshrl.u32 %v11422_v25, 16  ;;  %v5409_v26 = vrot.slane %v12695_v17, 2 }
 0x2ce   : > { %v2732_v49 = vpop.f32.mrf.mxu0  ;;  %v10129_v50 = vpop.f32.mrf.mxu1  ;;  %v4533_v35 = vrot.slane %v4531_v41, 1  ;;  %v11428_v41 = vld [vmem:[#allocation2 + $0x24] sm:$0xff]  }
 0x2cf   : > { %v2859_v51 = vadd.f32 %v2732_v49, %v1975_v34  ;;  %v11420_v49 = vld [vmem:[#allocation2 + $0xcc] ss:$0 sps:$4 sm:$0x11]   ;;  %v4543_v50 = vshll.u32 %v11422_v25, 16 }
 0x2d0   : > { %v10238_v55 = vpop.f32.mrf.mxu0  ;;  %v1991_v56 = vpop.f32.mrf.mxu1 }
 0x2d1   : > { %2909 = vst [vmem:[#allocation3 + $0x148] sm:$0xff] %v2859_v51  ;;  %v3866_v55 = vsel %vm3114_vm9, %v3863_v14, %v3865_v36 }
 0x2d2   : > { %v2737_v58 = vpop.f32.mrf.mxu0  ;;  %10468 = vmatmul.mubr.bf16.gmra.mxu0 %v3860_v27  ;;  %v10130_v42 = vpop.f32.mrf.mxu1  ;;  %v11419_v27 = vld [vmem:[#allocation9 + $0x1b8] sm:$0xff]  }
 0x2d3   : > { %v2860_v44 = vadd.f32 %v2737_v58, %v1980_v23  ;;  %10471 = vmatprep.mubr.msk.bf16.mxu0 %vm13546_vm0, %v11816_v0  ;;  %v4526_v23 = vshll.u32 %v11416_v15, 16  ;;  %v4542_v42 = vrot.slane %v4540_v46, 1  ;;  %v11424_v15 = vld [vmem:[#allocation2 + $0x4] sm:$0xfc]  }
 0x2d4   : > { %v10241_v60 = vpop.f32.mrf.mxu0  ;;  %v1996_v43 = vpop.f32.mrf.mxu1  ;;  %10360 = vmatmul.mubr.bf16.gmra.mxu1 %v3161_v59 }
 0x2d5   : > { %2910 = vst [vmem:[#allocation3 + $0x150] sm:$0xff] %v2860_v44  ;;  %10363 = vmatprep.mubr.msk.bf16.mxu1 %vm13546_vm0, %v11816_v0  ;;  %v4528_v39 = vrot.slane %v4526_v23, 2  ;;  %v11426_v44 = vld [vmem:[#allocation2 + $0x1c] sm:$0xff]   ;;  %v3867_v60 = vrot.slane %v11420_v49, 1 }
 0x2d6   : > { %v2740_v62 = vpop.f32.mrf.mxu0  ;;  %v10133_v63 = vpop.f32.mrf.mxu1 }
 0x2d7   : > { %v2861_v1 = vadd.f32 %v2740_v62, %v1983_v22  ;;  %v4536_v22 = vrot.slane %v4534_v19, 2  ;;  %v11429_v63 = vld [vmem:[#allocation9 + $0x1b0] sm:$0xff]   ;;  %v3473_v19 = vld [vmem:[#allocation3 + $0x8] sm:$0xff] }
 0x2d8   : > { %v10242_v5 = vpop.f32.mrf.mxu0  ;;  %v1999_v6 = vpop.f32.mrf.mxu1 }
 0x2d9   : > { %2911 = vst [vmem:[#allocation3 + $0x158] sm:$0xff] %v2861_v1  ;;  %v4537_v24 = vor.u32 %v4536_v22, %v4533_v35  ;;  %v4549_v5 = vshrl.u32 %v11426_v44, 16  ;;  %v4561_v35 = vshll.u32 %v11428_v41, 16  ;;  %v3474_v22 = vld [vmem:[#allocation3 + $0x10] sm:$0xff] }
 0x2da   : > { %v2745_v9 = vpop.f32.mrf.mxu0  ;;  %10472 = vmatmul.mubr.bf16.gmra.mxu0 %v3862_v53  ;;  %v10134_v10 = vpop.f32.mrf.mxu1  ;;  %v3868_v53 = vsel %vm3114_vm9, %v3865_v36, %v3867_v60 }
 0x2db   : > { %v2862_v11 = vadd.f32 %v2745_v9, %v1988_v33  ;;  %10475 = vmatprep.mubr.msk.bf16.mxu0 %vm13546_vm0, %v11816_v0  ;;  %v4552_v9 = vshll.u32 %v11426_v44, 16  ;;  %v3472_v10 = vld [vmem:[#allocation3] sm:$0xff] }
 0x2dc   : > { %v10245_v13 = vpop.f32.mrf.mxu0  ;;  %v2004_v3 = vpop.f32.mrf.mxu1  ;;  %10364 = vmatmul.mubr.bf16.gmra.mxu1 %v3163_v12 }
 0x2dd   : > { %2912 = vst [vmem:[#allocation3 + $0x160] sm:$0xff] %v2862_v11  ;;  %10367 = vmatprep.mubr.msk.bf16.mxu1 %vm13546_vm0, %v11816_v0  ;;  %v11436_v13 = vld [vmem:[#allocation9 + $0x1a8] sm:$0xff]   ;;  %v4554_v18 = vrot.slane %v4552_v9, 2 }
 0x2de   : > { %v2748_v16 = vpop.f32.mrf.mxu0  ;;  %v10137_v4 = vpop.f32.mrf.mxu1 }
 0x2df   : > { %v2863_v34 = vadd.f32 %v2748_v16, %v1991_v56  ;;  %v4529_v56 = vor.u32 %v4528_v39, %v4525_v37  ;;  %v12706_v39 = vld [vmem:[#allocation2 + $0x14] sm:$0xff]  }
 0x2e0   : > { %v10246_v20 = vpop.f32.mrf.mxu0  ;;  %v2007_v2 = vpop.f32.mrf.mxu1 }
 0x2e1   : > { %2913 = vst [vmem:[#allocation3 + $0x168] sm:$0xff] %v2863_v34  ;;  %v4538_v47 = vsel %vm4521_vm10, %v4529_v56, %v4537_v24  ;;  %v4551_v34 = vrot.slane %v4549_v5, 1  ;;  %v12717_v5 = vld [vmem:[#allocation2 + $0x1c] sm:$0xff]  }
 0x2e2   : > { %v2753_v28 = vpop.f32.mrf.mxu0  ;;  %10476 = vmatmul.mubr.bf16.gmra.mxu0 %v3864_v21  ;;  %v10138_v29 = vpop.f32.mrf.mxu1 }
 0x2e3   : > { %v2864_v30 = vadd.f32 %v2753_v28, %v1996_v43  ;;  %10479 = vmatprep.mubr.msk.bf16.mxu0 %vm13546_vm0, %v11816_v0  ;;  %v4545_v43 = vrot.slane %v4543_v50, 2  ;;  %v5408_v29 = vrot.slane %v11424_v15, 2  ;;  %v4563_v50 = vrot.slane %v4561_v35, 2  ;;  %v11465_v15 = vld [vmem:[#allocation9 + $0x188] sm:$0xff]  }
 0x2e4   : > { %v10249_v31 = vpop.f32.mrf.mxu0  ;;  %v3273_v48 = vpop.f32.mrf.mxu1  ;;  %10368 = vmatmul.mubr.bf16.gmra.mxu1 %v3165_v32  ;;  %v4558_v32 = vshrl.u32 %v11428_v41, 16 }
 0x2e5   : > { %2914 = vst [vmem:[#allocation3 + $0x170] sm:$0xff] %v2864_v30  ;;  %10503 = vmatprep.mubr.msk.bf16.mxu1 %vm13546_vm0, %v11816_v0  ;;  %v4546_v7 = vor.u32 %v4545_v43, %v4542_v42  ;;  %v3522_v38 = vadd.f32 %v3472_v10, %v3273_v48  ;;  %v4555_v30 = vor.u32 %v4554_v18, %v4551_v34 }
 0x2e6   : > { %v2756_v40 = vpop.f32.mrf.mxu0  ;;  %v10273_v45 = vpop.f32.mrf.mxu1  ;;  %v5410_v37 = vsel %vm5407_vm11, %v5408_v29, %v5409_v26  ;;  %v4560_v49 = vrot.slane %v4558_v32, 1 }
 0x2e7   : > { %v2865_v33 = vadd.f32 %v2756_v40, %v1999_v6  ;;  %v4547_v4 = vsel %vm4521_vm10, %v4537_v24, %v4546_v7  ;;  %v11451_v40 = vld [vmem:[#allocation9 + $0x198] sm:$0xff]   ;;  %v4556_v24 = vsel %vm4521_vm10, %v4546_v7, %v4555_v30 }
 0x2e8   : > { %v10250_v51 = vpop.f32.mrf.mxu0  ;;  %v3276_v54 = vpop.f32.mrf.mxu1 }
 0x2e9   : > { %2915 = vst [vmem:[#allocation3 + $0x178] sm:$0xff] %v2865_v33  ;;  %v3523_v21 = vadd.f32 %v3473_v19, %v3276_v54  ;;  %v11431_v51 = vld [vmem:[#allocation2 + $0x2c] sm:$0xff]  }
 0x2ea   : > { %v2761_v57 = vpop.f32.mrf.mxu0  ;;  %10480 = vmatmul.mubr.bf16.gmra.mxu0 %v3866_v55  ;;  %v10274_v58 = vpop.f32.mrf.mxu1  ;;  %v3475_v54 = vld [vmem:[#allocation3 + $0x18] sm:$0xff]  ;;  %v4567_v60 = vshrl.u32 %v11431_v51, 16  ;;  %v4570_v43 = vshll.u32 %v11431_v51, 16 }
 0x2eb   : > { %v2866_v59 = vadd.f32 %v2761_v57, %v2004_v3  ;;  %10483 = vmatprep.mubr.msk.bf16.mxu0 %vm13546_vm0, %v11816_v0  ;;  %v5411_v57 = vrot.slane %v12706_v39, 2  ;;  %v11458_v58 = vld [vmem:[#allocation9 + $0x190] sm:$0xff]  }
 0x2ec   : > { %v10253_v61 = vpop.f32.mrf.mxu0  ;;  %v3281_v62 = vpop.f32.mrf.mxu1  ;;  %10504 = vmatmul.mubr.bf16.vlgmr.msra.gmra.mxu1 %v4538_v47  ;;  %v4564_v47 = vor.u32 %v4563_v50, %v4560_v49  ;;  %v4569_v10 = vrot.slane %v4567_v60, 1  ;;  %v3480_v50 = vld [vmem:[#allocation3 + $0x40] sm:$0xff]  ;;  %v11438_v60 = vld [vmem:[#allocation2 + $0x44] sm:$0xff]  }
 0x2ed   : > { %2916 = vst [vmem:[#allocation3 + $0x180] sm:$0xff] %v2866_v59  ;;  %10720 = vmatpush3.bf16.msra.mxu1 %v11419_v27  ;;  %10507 = vmatprep.mubr.msk.bf16.mxu1 %vm13546_vm0, %v11816_v0  ;;  %v3524_v36 = vadd.f32 %v3474_v22, %v3281_v62  ;;  %v3476_v61 = vld [vmem:[#allocation3 + $0x20] sm:$0xff]  ;;  %v11435_v22 = vld [vmem:[#allocation2 + $0x3c] sm:$0xff]  }
 0x2ee   : > { %v2764_v1 = vpop.f32.mrf.mxu0  ;;  %v10277_v8 = vpop.f32.mrf.mxu1  ;;  %10721 = vmatprep.subr.bf16.mxu1 %v11816_v0  ;;  %v4565_v9 = vsel %vm4521_vm10, %v4555_v30, %v4564_v47  ;;  %v4588_v49 = vshll.u32 %v11435_v22, 16 }
 0x2ef   : > { %v2867_v6 = vadd.f32 %v2764_v1, %v2007_v2  ;;  %v5412_v8 = vsel %vm5407_vm11, %v5409_v26, %v5411_v57 }
 0x2f0   : > { %v10254_v11 = vpop.f32.mrf.mxu0  ;;  %v3284_v12 = vpop.f32.mrf.mxu1 }
 0x2f1   : > { %2917 = vst [vmem:[#allocation3 + $0x188] sm:$0xff] %v2867_v6  ;;  %10722 = vmatpush3.bf16.msra.mxu1 %v11429_v63  ;;  %v3525_v27 = vadd.f32 %v3475_v54, %v3284_v12  ;;  %v4572_v11 = vrot.slane %v4570_v43, 2  ;;  %v11433_v12 = vld [vmem:[#allocation2 + $0x34] sm:$0xff]   ;;  %v3481_v43 = vld [vmem:[#allocation3 + $0x48] sm:$0xff] }
 0x2f2   : > { %v3976_v3 = vpop.f32.mrf.mxu0  ;;  %10484 = vmatmul.mubr.bf16.gmra.mxu0 %v3868_v53  ;;  %v10278_v14 = vpop.f32.mrf.mxu1  ;;  %10723 = vmatprep.subr.bf16.mxu1 %v11816_v0  ;;  %v4576_v41 = vshrl.u32 %v11433_v12, 16  ;;  %v4579_v19 = vshll.u32 %v11433_v12, 16 }
 0x2f3   : > { %v4225_v16 = vadd.f32 %v3976_v3, %v3522_v38  ;;  %10619 = vmatprep.mubr.msk.bf16.mxu0 %vm13546_vm0, %v11816_v0  ;;  %v3477_v38 = vld [vmem:[#allocation3 + $0x28] sm:$0xff]  ;;  %v5413_v14 = vrot.slane %v12717_v5, 2  ;;  %v4573_v18 = vor.u32 %v4572_v11, %v4569_v10  ;;  %v3482_v10 = vld [vmem:[#allocation3 + $0x50] sm:$0xff] }
 0x2f4   : > { %v10389_v20 = vpop.f32.mrf.mxu0  ;;  %v3289_v2 = vpop.f32.mrf.mxu1  ;;  %10508 = vmatmul.mubr.bf16.gmra.mxu1 %v4547_v4  ;;  %v4578_v32 = vrot.slane %v4576_v41, 1  ;;  %v4581_v35 = vrot.slane %v4579_v19, 2  ;;  %v3483_v41 = vld [vmem:[#allocation3 + $0x58] sm:$0xff] }
 0x2f5   : > { %4275 = vst [vmem:[#allocation3] sm:$0xff] %v4225_v16  ;;  %10511 = vmatprep.mubr.msk.bf16.mxu1 %vm13546_vm0, %v11816_v0  ;;  %10724 = vmatpush3.bf16.msra.mxu1 %v11436_v13  ;;  %v3526_v1 = vadd.f32 %v3476_v61, %v3289_v2  ;;  %v3478_v20 = vld [vmem:[#allocation3 + $0x30] sm:$0xff]  ;;  %v4574_v30 = vsel %vm4521_vm10, %v4564_v47, %v4573_v18  ;;  %v4590_v47 = vrot.slane %v4588_v49, 2  ;;  %v3485_v49 = vld [vmem:[#allocation3 + $0x68] sm:$0xff] }
 0x2f6   : > { %v3979_v23 = vpop.f32.mrf.mxu0  ;;  %v10281_v28 = vpop.f32.mrf.mxu1  ;;  %10725 = vmatprep.subr.bf16.mxu1 %v11816_v0 }
 0x2f7   : > { %v4226_v25 = vadd.f32 %v3979_v23, %v3523_v21  ;;  %v11432_v23 = vld [vmem:[#allocation2 + $0x24] sm:$0xff]  }
 0x2f8   : > { %v10390_v31 = vpop.f32.mrf.mxu0  ;;  %v3292_v48 = vpop.f32.mrf.mxu1  ;;  %v5415_v39 = vrot.slane %v11432_v23, 2 }
 0x2f9   : > { %4276 = vst [vmem:[#allocation3 + $0x8] sm:$0xff] %v4226_v25  ;;  %10726 = vmatpush3.bf16.msra.mxu1 %v11444_v52  ;;  %v3527_v3 = vadd.f32 %v3477_v38, %v3292_v48  ;;  %v5414_v52 = vsel %vm5407_vm11, %v5411_v57, %v5413_v14  ;;  %v3479_v31 = vld [vmem:[#allocation3 + $0x38] sm:$0xff] }
 0x2fa   : > { %v3984_v45 = vpop.f32.mrf.mxu0  ;;  %10620 = vmatmul.mubr.bf16.vlgmr.msra.gmra.mxu0 %v5410_v37  ;;  %v10282_v46 = vpop.f32.mrf.mxu1  ;;  %10727 = vmatprep.subr.bf16.mxu1 %v11816_v0 }
 0x2fb   : > { %v4227_v33 = vadd.f32 %v3984_v45, %v3524_v36  ;;  %10623 = vmatprep.mubr.msk.bf16.mxu0 %vm13546_vm0, %v11816_v0 }
 0x2fc   : > { %v10393_v55 = vpop.f32.mrf.mxu0  ;;  %v3297_v56 = vpop.f32.mrf.mxu1  ;;  %10512 = vmatmul.mubr.bf16.gmra.mxu1 %v4556_v24  ;;  %v4585_v24 = vshrl.u32 %v11435_v22, 16 }
 0x2fd   : > { %4277 = vst [vmem:[#allocation3 + $0x10] sm:$0xff] %v4227_v33  ;;  %10515 = vmatprep.mubr.msk.bf16.mxu1 %vm13546_vm0, %v11816_v0  ;;  %10728 = vmatpush3.bf16.msra.mxu1 %v11451_v40  ;;  %v3528_v26 = vadd.f32 %v3478_v20, %v3297_v56  ;;  %v4582_v33 = vor.u32 %v4581_v35, %v4578_v32 }
 0x2fe   : > { %v3987_v42 = vpop.f32.mrf.mxu0  ;;  %v10285_v44 = vpop.f32.mrf.mxu1  ;;  %10729 = vmatprep.subr.bf16.mxu1 %v11816_v0  ;;  %v5416_v56 = vsel %vm5407_vm11, %v5413_v14, %v5415_v39 }
 0x2ff   : > { %v4228_v59 = vadd.f32 %v3987_v42, %v3525_v27  ;;  %v11434_v27 = vld [vmem:[#allocation2 + $0x2c] sm:$0xff]   ;;  %v4583_v44 = vsel %vm4521_vm10, %v4573_v18, %v4582_v33 }
 0x300   : > { %v10394_v62 = vpop.f32.mrf.mxu0  ;;  %v3300_v63 = vpop.f32.mrf.mxu1  ;;  %v11440_v18 = vld [vmem:[#allocation2 + $0x4c] sm:$0xff]  }
 0x301   : > { %4278 = vst [vmem:[#allocation3 + $0x18] sm:$0xff] %v4228_v59  ;;  %10730 = vmatpush3.bf16.msra.mxu1 %v11458_v58  ;;  %v3529_v37 = vadd.f32 %v3479_v31, %v3300_v63  ;;  %v4587_v59 = vrot.slane %v4585_v24, 1  ;;  %v11442_v24 = vld [vmem:[#allocation2 + $0x54] sm:$0xff]  }
 0x302   : > { %v3992_v6 = vpop.f32.mrf.mxu0  ;;  %10624 = vmatmul.mubr.bf16.gmra.mxu0 %v5412_v8  ;;  %v10286_v53 = vpop.f32.mrf.mxu1  ;;  %10731 = vmatprep.subr.bf16.mxu1 %v11816_v0 }
 0x303   : > { %v4229_v7 = vadd.f32 %v3992_v6, %v3526_v1  ;;  %10627 = vmatprep.mubr.msk.bf16.mxu0 %vm13546_vm0, %v11816_v0  ;;  %v5417_v1 = vrot.slane %v11434_v27, 2  ;;  %v4591_v53 = vor.u32 %v4590_v47, %v4587_v59  ;;  %v4615_v59 = vshll.u32 %v11442_v24, 16  ;;  %v3486_v47 = vld [vmem:[#allocation3 + $0x70] sm:$0xff] }
 0x304   : > { %v10397_v17 = vpop.f32.mrf.mxu0  ;;  %v3305_v13 = vpop.f32.mrf.mxu1  ;;  %10516 = vmatmul.mubr.bf16.gmra.mxu1 %v4565_v9  ;;  %v4597_v9 = vshll.u32 %v11438_v60, 16 }
 0x305   : > { %4279 = vst [vmem:[#allocation3 + $0x20] sm:$0xff] %v4229_v7  ;;  %10519 = vmatprep.mubr.msk.bf16.mxu1 %vm13546_vm0, %v11816_v0  ;;  %10732 = vmatpush3.bf16.msra.mxu1 %v11465_v15  ;;  %v3530_v55 = vadd.f32 %v3480_v50, %v3305_v13  ;;  %v4594_v7 = vshrl.u32 %v11438_v60, 16  ;;  %v5418_v17 = vsel %vm5407_vm11, %v5415_v39, %v5417_v1  ;;  %v12740_v13 = vld [vmem:[#allocation2 + $0x34] sm:$0xff]  }
 0x306   : > { %v3995_v16 = vpop.f32.mrf.mxu0  ;;  %v10289_v4 = vpop.f32.mrf.mxu1  ;;  %10733 = vmatprep.subr.bf16.mxu1 %v11816_v0 }
 0x307   : > { %v4230_v34 = vadd.f32 %v3995_v16, %v3527_v3  ;;  %v4592_v16 = vsel %vm4521_vm10, %v4582_v33, %v4591_v53  ;;  %v4596_v4 = vrot.slane %v4594_v7, 1 }
 0x308   : > { %v10398_v2 = vpop.f32.mrf.mxu0  ;;  %v3308_v21 = vpop.f32.mrf.mxu1 }
 0x309   : > { %4280 = vst [vmem:[#allocation3 + $0x28] sm:$0xff] %v4230_v34  ;;  %v3531_v63 = vadd.f32 %v3481_v43, %v3308_v21  ;;  %v4599_v34 = vrot.slane %v4597_v9, 2  ;;  %v5419_v21 = vrot.slane %v12740_v13, 2  ;;  %v4617_v9 = vrot.slane %v4615_v59, 2 }
 0x30a   : > { %v4000_v28 = vpop.f32.mrf.mxu0  ;;  %10628 = vmatmul.mubr.bf16.gmra.mxu0 %v5414_v52  ;;  %v10290_v29 = vpop.f32.mrf.mxu1 }
 0x30b   : > { %v4231_v25 = vadd.f32 %v4000_v28, %v3528_v26  ;;  %10631 = vmatprep.mubr.msk.bf16.mxu0 %vm13546_vm0, %v11816_v0  ;;  %v4600_v28 = vor.u32 %v4599_v34, %v4596_v4  ;;  %v4603_v29 = vshrl.u32 %v11440_v18, 16  ;;  %v5420_v31 = vsel %vm5407_vm11, %v5417_v1, %v5419_v21  ;;  %v11477_v1 = vld [vmem:[#allocation9 + $0x1f0] sm:$0xff]  }
 0x30c   : > { %v10401_v48 = vpop.f32.mrf.mxu0  ;;  %v3313_v36 = vpop.f32.mrf.mxu1  ;;  %10520 = vmatmul.mubr.bf16.gmra.mxu1 %v4574_v30  ;;  %v3484_v30 = vld [vmem:[#allocation3 + $0x60] sm:$0xff] }
 0x30d   : > { %4281 = vst [vmem:[#allocation3 + $0x30] sm:$0xff] %v4231_v25  ;;  %10523 = vmatprep.mubr.msk.bf16.mxu1 %vm13546_vm0, %v11816_v0  ;;  %v3532_v38 = vadd.f32 %v3482_v10, %v3313_v36  ;;  %v4606_v25 = vshll.u32 %v11440_v18, 16  ;;  %v12749_v48 = vld [vmem:[#allocation2 + $0x3c] sm:$0xff]   ;;  %v11472_v36 = vld [vmem:[#allocation9 + $0x180] sm:$0xff]  }
 0x30e   : > { %v4003_v40 = vpop.f32.mrf.mxu0  ;;  %v10293_v45 = vpop.f32.mrf.mxu1  ;;  %10734 = vmatpush3.bf16.msra.mxu1 %v11472_v36  ;;  %v11445_v10 = vld [vmem:[#allocation2 + $0x5c] sm:$0xff]  }
 0x30f   : > { %v4232_v46 = vadd.f32 %v4003_v40, %v3529_v37  ;;  %v4601_v45 = vsel %vm4521_vm10, %v4591_v53, %v4600_v28  ;;  %v4608_v33 = vrot.slane %v4606_v25, 2  ;;  %10951 = vmatprep.subr.bf16.mxu1 %v11816_v0  ;;  %v4621_v34 = vshrl.u32 %v11445_v10, 16 }
 0x310   : > { %v10402_v51 = vpop.f32.mrf.mxu0  ;;  %v3316_v54 = vpop.f32.mrf.mxu1  ;;  %v4624_v18 = vshll.u32 %v11445_v10, 16 }
 0x311   : > { %4282 = vst [vmem:[#allocation3 + $0x38] sm:$0xff] %v4232_v46  ;;  %v3533_v2 = vadd.f32 %v3483_v41, %v3316_v54  ;;  %v4605_v46 = vrot.slane %v4603_v29, 1  ;;  %v3488_v41 = vld [vmem:[#allocation3 + $0x80] sm:$0xff] }
 0x312   : > { %v4008_v57 = vpop.f32.mrf.mxu0  ;;  %10632 = vmatmul.mubr.bf16.gmra.mxu0 %v5416_v56  ;;  %v10294_v58 = vpop.f32.mrf.mxu1  ;;  %v11475_v56 = vld [vmem:[#allocation9 + $0x1f8] sm:$0xff]  }
 0x313   : > { %v4233_v42 = vadd.f32 %v4008_v57, %v3530_v55  ;;  %10635 = vmatprep.mubr.msk.bf16.mxu0 %vm13546_vm0, %v11816_v0  ;;  %v5421_v55 = vrot.slane %v12749_v48, 2  ;;  %10836 = vmatpush3.bf16.msra.mxu0 %v11475_v56 }
 0x314   : > { %v10405_v61 = vpop.f32.mrf.mxu0  ;;  %v3321_v62 = vpop.f32.mrf.mxu1  ;;  %10524 = vmatmul.mubr.bf16.gmra.mxu1 %v4583_v44  ;;  %v4612_v44 = vshrl.u32 %v11442_v24, 16  ;;  %10837 = vmatprep.subr.bf16.mxu0 %v11816_v0 }
 0x315   : > { %4283 = vst [vmem:[#allocation3 + $0x40] sm:$0xff] %v4233_v42  ;;  %10527 = vmatprep.mubr.msk.bf16.mxu1 %vm13546_vm0, %v11816_v0  ;;  %v3534_v22 = vadd.f32 %v3484_v30, %v3321_v62  ;;  %v4609_v42 = vor.u32 %v4608_v33, %v4605_v46  ;;  %v5422_v62 = vsel %vm5407_vm11, %v5419_v21, %v5421_v55  ;;  %v4623_v30 = vrot.slane %v4621_v34, 1 }
 0x316   : > { %v4011_v8 = vpop.f32.mrf.mxu0  ;;  %v10297_v5 = vpop.f32.mrf.mxu1  ;;  %v4614_v7 = vrot.slane %v4612_v44, 1 }
 0x317   : > { %v4234_v6 = vadd.f32 %v4011_v8, %v3531_v63  ;;  %v12760_v63 = vld [vmem:[#allocation2 + $0x44] sm:$0xff]   ;;  %v4610_v53 = vsel %vm4521_vm10, %v4600_v28, %v4609_v42  ;;  %10838 = vmatpush3.bf16.msra.mxu0 %v11477_v1 }
 0x318   : > { %v10406_v11 = vpop.f32.mrf.mxu0  ;;  %v3324_v12 = vpop.f32.mrf.mxu1  ;;  %10839 = vmatprep.subr.bf16.mxu0 %v11816_v0  ;;  %v5423_v13 = vrot.slane %v12760_v63, 2  ;;  %v4618_v4 = vor.u32 %v4617_v9, %v4614_v7 }
 0x319   : > { %4284 = vst [vmem:[#allocation3 + $0x48] sm:$0xff] %v4234_v6  ;;  %v3535_v54 = vadd.f32 %v3485_v49, %v3324_v12  ;;  %v3487_v11 = vld [vmem:[#allocation3 + $0x78] sm:$0xff] }
 0x31a   : > { %v4016_v3 = vpop.f32.mrf.mxu0  ;;  %10636 = vmatmul.mubr.bf16.gmra.mxu0 %v5418_v17  ;;  %v10298_v14 = vpop.f32.mrf.mxu1  ;;  %v5424_v21 = vsel %vm5407_vm11, %v5421_v55, %v5423_v13  ;;  %v4619_v25 = vsel %vm4521_vm10, %v4609_v42, %v4618_v4 }
 0x31b   : > { %v4235_v15 = vadd.f32 %v4016_v3, %v3532_v38  ;;  %10639 = vmatprep.mubr.msk.bf16.mxu0 %vm13546_vm0, %v11816_v0  ;;  %v11479_v3 = vld [vmem:[#allocation9 + $0x1e8] sm:$0xff]  }
 0x31c   : > { %v10409_v19 = vpop.f32.mrf.mxu0  ;;  %v3329_v20 = vpop.f32.mrf.mxu1  ;;  %10528 = vmatmul.mubr.bf16.gmra.mxu1 %v4592_v16  ;;  %10840 = vmatpush3.bf16.msra.mxu0 %v11479_v3 }
 0x31d   : > { %4285 = vst [vmem:[#allocation3 + $0x50] sm:$0xff] %v4235_v15  ;;  %10531 = vmatprep.mubr.msk.bf16.mxu1 %vm13546_vm0, %v11816_v0  ;;  %v3536_v61 = vadd.f32 %v3486_v47, %v3329_v20  ;;  %10841 = vmatprep.subr.bf16.mxu0 %v11816_v0 }
 0x31e   : > { %v4019_v26 = vpop.f32.mrf.mxu0  ;;  %v10301_v52 = vpop.f32.mrf.mxu1 }
 0x31f   : > { %v4236_v23 = vadd.f32 %v4019_v26, %v3533_v2  ;;  %v12771_v26 = vld [vmem:[#allocation2 + $0x4c] sm:$0xff]   ;;  %v11481_v52 = vld [vmem:[#allocation9 + $0x1e0] sm:$0xff]  }
 0x320   : > { %v10410_v32 = vpop.f32.mrf.mxu0  ;;  %v3332_v35 = vpop.f32.mrf.mxu1  ;;  %10842 = vmatpush3.bf16.msra.mxu0 %v11481_v52 }
 0x321   : > { %4286 = vst [vmem:[#allocation3 + $0x58] sm:$0xff] %v4236_v23  ;;  %v3537_v17 = vadd.f32 %v3487_v11, %v3332_v35  ;;  %v4626_v32 = vrot.slane %v4624_v18, 2  ;;  %v11447_v35 = vld [vmem:[#allocation2 + $0x64] sm:$0xff]   ;;  %10843 = vmatprep.subr.bf16.mxu0 %v11816_v0 }
 0x322   : > { %v4024_v37 = vpop.f32.mrf.mxu0  ;;  %10640 = vmatmul.mubr.bf16.gmra.mxu0 %v5420_v31  ;;  %v10302_v39 = vpop.f32.mrf.mxu1  ;;  %v4630_v24 = vshrl.u32 %v11447_v35, 16  ;;  %v4633_v49 = vshll.u32 %v11447_v35, 16 }
 0x323   : > { %v4237_v40 = vadd.f32 %v4024_v37, %v3534_v22  ;;  %10643 = vmatprep.mubr.msk.bf16.mxu0 %vm13546_vm0, %v11816_v0  ;;  %v3489_v22 = vld [vmem:[#allocation3 + $0x88] sm:$0xff]  ;;  %v5425_v37 = vrot.slane %v12771_v26, 2  ;;  %v4627_v33 = vor.u32 %v4626_v32, %v4623_v30 }
 0x324   : > { %v10413_v50 = vpop.f32.mrf.mxu0  ;;  %v3337_v51 = vpop.f32.mrf.mxu1  ;;  %10532 = vmatmul.mubr.bf16.gmra.mxu1 %v4601_v45  ;;  %v11483_v39 = vld [vmem:[#allocation9 + $0x1d8] sm:$0xff]   ;;  %v4632_v47 = vrot.slane %v4630_v24, 1 }
 0x325   : > { %4287 = vst [vmem:[#allocation3 + $0x60] sm:$0xff] %v4237_v40  ;;  %10535 = vmatprep.mubr.msk.bf16.mxu1 %vm13546_vm0, %v11816_v0  ;;  %v3538_v2 = vadd.f32 %v3488_v41, %v3337_v51  ;;  %10844 = vmatpush3.bf16.msra.mxu0 %v11483_v39  ;;  %v3490_v50 = vld [vmem:[#allocation3 + $0x90] sm:$0xff]  ;;  %v5426_v56 = vsel %vm5407_vm11, %v5423_v13, %v5425_v37 }
 0x326   : > { %v4027_v27 = vpop.f32.mrf.mxu0  ;;  %v10305_v57 = vpop.f32.mrf.mxu1  ;;  %10845 = vmatprep.subr.bf16.mxu0 %v11816_v0  ;;  %v4628_v59 = vsel %vm4521_vm10, %v4618_v4, %v4627_v33  ;;  %v11450_v39 = vld [vmem:[#allocation2 + $0x64] sm:$0xff]  }
 0x327   : > { %v4238_v58 = vadd.f32 %v4027_v27, %v3535_v54  ;;  %v12782_v27 = vld [vmem:[#allocation2 + $0x54] sm:$0xff]  }
 0x328   : > { %v10414_v60 = vpop.f32.mrf.mxu0  ;;  %v3340_v43 = vpop.f32.mrf.mxu1  ;;  %v11486_v57 = vld [vmem:[#allocation9 + $0x1d0] sm:$0xff]  }
 0x329   : > { %4288 = vst [vmem:[#allocation3 + $0x68] sm:$0xff] %v4238_v58  ;;  %v3539_v36 = vadd.f32 %v3489_v22, %v3340_v43  ;;  %v4635_v60 = vrot.slane %v4633_v49, 2  ;;  %v11449_v43 = vld [vmem:[#allocation2 + $0x6c] sm:$0xff]   ;;  %10846 = vmatpush3.bf16.msra.mxu0 %v11486_v57  ;;  %v3494_v22 = vld [vmem:[#allocation3 + $0xb0] sm:$0xff] }
 0x32a   : > { %v4032_v8 = vpop.f32.mrf.mxu0  ;;  %10644 = vmatmul.mubr.bf16.gmra.mxu0 %v5422_v62  ;;  %v10306_v5 = vpop.f32.mrf.mxu1  ;;  %10847 = vmatprep.subr.bf16.mxu0 %v11816_v0  ;;  %v4639_v10 = vshrl.u32 %v11449_v43, 16  ;;  %v4642_v11 = vshll.u32 %v11449_v43, 16 }
 0x32b   : > { %v4239_v6 = vadd.f32 %v4032_v8, %v3536_v61  ;;  %10647 = vmatprep.mubr.msk.bf16.mxu0 %vm13546_vm0, %v11816_v0  ;;  %v3491_v61 = vld [vmem:[#allocation3 + $0x98] sm:$0xff]  ;;  %v5427_v8 = vrot.slane %v12782_v27, 2  ;;  %v4636_v9 = vor.u32 %v4635_v60, %v4632_v47  ;;  %v5431_v27 = vrot.slane %v11450_v39, 2  ;;  %v3496_v60 = vld [vmem:[#allocation3 + $0xc0] sm:$0xff] }
 0x32c   : > { %v10417_v12 = vpop.f32.mrf.mxu0  ;;  %v3345_v38 = vpop.f32.mrf.mxu1  ;;  %10536 = vmatmul.mubr.bf16.gmra.mxu1 %v4610_v53  ;;  %v11489_v5 = vld [vmem:[#allocation9 + $0x1c8] sm:$0xff]   ;;  %v4641_v41 = vrot.slane %v4639_v10, 1  ;;  %v11456_v10 = vld [vmem:[#allocation2 + $0x84] sm:$0xff]  }
 0x32d   : > { %4289 = vst [vmem:[#allocation3 + $0x70] sm:$0xff] %v4239_v6  ;;  %10539 = vmatprep.mubr.msk.bf16.mxu1 %vm13546_vm0, %v11816_v0  ;;  %v3540_v55 = vadd.f32 %v3490_v50, %v3345_v38  ;;  %10848 = vmatpush3.bf16.msra.mxu0 %v11489_v5  ;;  %v3492_v12 = vld [vmem:[#allocation3 + $0xa0] sm:$0xff]  ;;  %v5428_v3 = vsel %vm5407_vm11, %v5425_v37, %v5427_v8  ;;  %v11454_v50 = vld [vmem:[#allocation2 + $0x7c] sm:$0xff]  }
 0x32e   : > { %v4035_v14 = vpop.f32.mrf.mxu0  ;;  %v10309_v15 = vpop.f32.mrf.mxu1  ;;  %10849 = vmatprep.subr.bf16.mxu0 %v11816_v0  ;;  %v4637_v18 = vsel %vm4521_vm10, %v4627_v33, %v4636_v9  ;;  %v4660_v47 = vshll.u32 %v11454_v50, 16 }
 0x32f   : > { %v4240_v16 = vadd.f32 %v4035_v14, %v3537_v17  ;;  %v12793_v14 = vld [vmem:[#allocation2 + $0x5c] sm:$0xff]   ;;  %v11491_v15 = vld [vmem:[#allocation9 + $0x1c0] sm:$0xff]  }
 0x330   : > { %v10418_v19 = vpop.f32.mrf.mxu0  ;;  %v3348_v20 = vpop.f32.mrf.mxu1 }
 0x331   : > { %4290 = vst [vmem:[#allocation3 + $0x78] sm:$0xff] %v4240_v16  ;;  %v3541_v1 = vadd.f32 %v3491_v61, %v3348_v20  ;;  %v4644_v19 = vrot.slane %v4642_v11, 2  ;;  %v11452_v20 = vld [vmem:[#allocation2 + $0x74] sm:$0xff]   ;;  %10850 = vmatpush3.bf16.msra.mxu0 %v11491_v15  ;;  %v3497_v11 = vld [vmem:[#allocation3 + $0xc8] sm:$0xff] }
 0x332   : > { %v4040_v23 = vpop.f32.mrf.mxu0  ;;  %10648 = vmatmul.mubr.bf16.gmra.mxu0 %v5424_v21  ;;  %v10310_v28 = vpop.f32.mrf.mxu1  ;;  %v4648_v32 = vshrl.u32 %v11452_v20, 16  ;;  %v4651_v35 = vshll.u32 %v11452_v20, 16 }
 0x333   : > { %v4241_v29 = vadd.f32 %v4040_v23, %v3538_v2  ;;  %10651 = vmatprep.mubr.msk.bf16.mxu0 %vm13546_vm0, %v11816_v0  ;;  %v3493_v2 = vld [vmem:[#allocation3 + $0xa8] sm:$0xff]  ;;  %v5429_v23 = vrot.slane %v12793_v14, 2  ;;  %v4645_v30 = vor.u32 %v4644_v19, %v4641_v41 }
 0x334   : > { %v10421_v31 = vpop.f32.mrf.mxu0  ;;  %v3353_v48 = vpop.f32.mrf.mxu1  ;;  %10540 = vmatmul.mubr.bf16.gmra.mxu1 %v4619_v25  ;;  %v4650_v24 = vrot.slane %v4648_v32, 1  ;;  %v4653_v49 = vrot.slane %v4651_v35, 2  ;;  %v3499_v32 = vld [vmem:[#allocation3 + $0xd8] sm:$0xff] }
 0x335   : > { %4291 = vst [vmem:[#allocation3 + $0x80] sm:$0xff] %v4241_v29  ;;  %10543 = vmatprep.mubr.msk.bf16.mxu1 %vm13546_vm0, %v11816_v0  ;;  %v3542_v13 = vadd.f32 %v3492_v12, %v3353_v48  ;;  %v5430_v37 = vsel %vm5407_vm11, %v5427_v8, %v5429_v23  ;;  %v4646_v33 = vsel %vm4521_vm10, %v4636_v9, %v4645_v30  ;;  %v4662_v9 = vrot.slane %v4660_v47, 2 }
 0x336   : > { %v4043_v40 = vpop.f32.mrf.mxu0  ;;  %v10313_v45 = vpop.f32.mrf.mxu1 }
 0x337   : > { %v4242_v46 = vadd.f32 %v4043_v40, %v3539_v36 }
 0x338   : > { %v10422_v51 = vpop.f32.mrf.mxu0  ;;  %v3356_v54 = vpop.f32.mrf.mxu1 }
 0x339   : > { %4292 = vst [vmem:[#allocation3 + $0x88] sm:$0xff] %v4242_v46  ;;  %v3543_v52 = vadd.f32 %v3493_v2, %v3356_v54  ;;  %v3495_v51 = vld [vmem:[#allocation3 + $0xb8] sm:$0xff] }
 0x33a   : > { %v4048_v58 = vpop.f32.mrf.mxu0  ;;  %10652 = vmatmul.mubr.bf16.gmra.mxu0 %v5426_v56  ;;  %v10314_v42 = vpop.f32.mrf.mxu1 }
 0x33b   : > { %v4243_v44 = vadd.f32 %v4048_v58, %v3540_v55  ;;  %10655 = vmatprep.mubr.msk.bf16.mxu0 %vm13546_vm0, %v11816_v0 }
 0x33c   : > { %v10425_v62 = vpop.f32.mrf.mxu0  ;;  %v3361_v63 = vpop.f32.mrf.mxu1  ;;  %10544 = vmatmul.mubr.bf16.gmra.mxu1 %v4628_v59  ;;  %v4657_v59 = vshrl.u32 %v11454_v50, 16 }
 0x33d   : > { %4293 = vst [vmem:[#allocation3 + $0x90] sm:$0xff] %v4243_v44  ;;  %10547 = vmatprep.mubr.msk.bf16.mxu1 %vm13546_vm0, %v11816_v0  ;;  %v3544_v36 = vadd.f32 %v3494_v22, %v3361_v63  ;;  %v4654_v44 = vor.u32 %v4653_v49, %v4650_v24  ;;  %v5432_v63 = vsel %vm5407_vm11, %v5429_v23, %v5431_v27 }
 0x33e   : > { %v4051_v6 = vpop.f32.mrf.mxu0  ;;  %v10317_v53 = vpop.f32.mrf.mxu1 }
 0x33f   : > { %v4244_v7 = vadd.f32 %v4051_v6, %v3541_v1  ;;  %v11453_v1 = vld [vmem:[#allocation2 + $0x6c] sm:$0xff]   ;;  %v4655_v53 = vsel %vm4521_vm10, %v4645_v30, %v4654_v44 }
 0x340   : > { %v10426_v38 = vpop.f32.mrf.mxu0  ;;  %v3364_v17 = vpop.f32.mrf.mxu1  ;;  %v11459_v30 = vld [vmem:[#allocation2 + $0x8c] sm:$0xff]  }
 0x341   : > { %4294 = vst [vmem:[#allocation3 + $0x98] sm:$0xff] %v4244_v7  ;;  %v3545_v56 = vadd.f32 %v3495_v51, %v3364_v17  ;;  %v4659_v7 = vrot.slane %v4657_v59, 1  ;;  %v3501_v59 = vld [vmem:[#allocation3 + $0xe8] sm:$0xff] }
 0x342   : > { %v4056_v16 = vpop.f32.mrf.mxu0  ;;  %10656 = vmatmul.mubr.bf16.gmra.mxu0 %v5428_v3  ;;  %v10318_v4 = vpop.f32.mrf.mxu1 }
 0x343   : > { %v4245_v34 = vadd.f32 %v4056_v16, %v3542_v13  ;;  %10659 = vmatprep.mubr.msk.bf16.mxu0 %vm13546_vm0, %v11816_v0  ;;  %v5433_v13 = vrot.slane %v11453_v1, 2  ;;  %v4663_v16 = vor.u32 %v4662_v9, %v4659_v7  ;;  %v4666_v4 = vshrl.u32 %v11456_v10, 16 }
 0x344   : > { %v10429_v21 = vpop.f32.mrf.mxu0  ;;  %v3369_v26 = vpop.f32.mrf.mxu1  ;;  %10548 = vmatmul.mubr.bf16.gmra.mxu1 %v4637_v18  ;;  %v3498_v18 = vld [vmem:[#allocation3 + $0xd0] sm:$0xff] }
 0x345   : > { %4295 = vst [vmem:[#allocation3 + $0xa0] sm:$0xff] %v4245_v34  ;;  %10551 = vmatprep.mubr.msk.bf16.mxu1 %vm13546_vm0, %v11816_v0  ;;  %v3546_v62 = vadd.f32 %v3496_v60, %v3369_v26  ;;  %v4669_v34 = vshll.u32 %v11456_v10, 16  ;;  %v5434_v2 = vsel %vm5407_vm11, %v5431_v27, %v5433_v13  ;;  %v11455_v21 = vld [vmem:[#allocation2 + $0x74] sm:$0xff]  }
 0x346   : > { %v4059_v28 = vpop.f32.mrf.mxu0  ;;  %v10321_v29 = vpop.f32.mrf.mxu1 }
 0x347   : > { %v4246_v25 = vadd.f32 %v4059_v28, %v3543_v52  ;;  %v4664_v28 = vsel %vm4521_vm10, %v4654_v44, %v4663_v16  ;;  %v4668_v29 = vrot.slane %v4666_v4, 1  ;;  %v11461_v44 = vld [vmem:[#allocation2 + $0x94] sm:$0xff]   ;;  %v3503_v4 = vld [vmem:[#allocation3 + $0xf8] sm:$0xff] }
 0x348   : > { %v10430_v31 = vpop.f32.mrf.mxu0  ;;  %v3372_v48 = vpop.f32.mrf.mxu1 }
 0x349   : > { %4296 = vst [vmem:[#allocation3 + $0xa8] sm:$0xff] %v4246_v25  ;;  %v3547_v17 = vadd.f32 %v3497_v11, %v3372_v48  ;;  %v4671_v25 = vrot.slane %v4669_v34, 2  ;;  %v5435_v48 = vrot.slane %v11455_v21, 2 }
 0x34a   : > { %v4064_v40 = vpop.f32.mrf.mxu0  ;;  %10660 = vmatmul.mubr.bf16.gmra.mxu0 %v5430_v37  ;;  %v10322_v45 = vpop.f32.mrf.mxu1 }
 0x34b   : > { %v4247_v46 = vadd.f32 %v4064_v40, %v3544_v36  ;;  %10663 = vmatprep.mubr.msk.bf16.mxu0 %vm13546_vm0, %v11816_v0  ;;  %v4672_v40 = vor.u32 %v4671_v25, %v4668_v29  ;;  %v4675_v45 = vshrl.u32 %v11459_v30, 16  ;;  %v5436_v51 = vsel %vm5407_vm11, %v5433_v13, %v5435_v48 }
 0x34c   : > { %v10433_v54 = vpop.f32.mrf.mxu0  ;;  %v3377_v55 = vpop.f32.mrf.mxu1  ;;  %10552 = vmatmul.mubr.bf16.gmra.mxu1 %v4646_v33  ;;  %v3500_v33 = vld [vmem:[#allocation3 + $0xe0] sm:$0xff] }
 0x34d   : > { %4297 = vst [vmem:[#allocation3 + $0xb0] sm:$0xff] %v4247_v46  ;;  %10555 = vmatprep.mubr.msk.bf16.mxu1 %vm13546_vm0, %v11816_v0  ;;  %v3548_v20 = vadd.f32 %v3498_v18, %v3377_v55  ;;  %v4678_v46 = vshll.u32 %v11459_v30, 16  ;;  %v11457_v54 = vld [vmem:[#allocation2 + $0x7c] sm:$0xff]  }
 0x34e   : > { %v4067_v57 = vpop.f32.mrf.mxu0  ;;  %v10325_v58 = vpop.f32.mrf.mxu1 }
 0x34f   : > { %v4248_v42 = vadd.f32 %v4067_v57, %v3545_v56  ;;  %v4673_v57 = vsel %vm4521_vm10, %v4663_v16, %v4672_v40  ;;  %v4677_v58 = vrot.slane %v4675_v45, 1  ;;  %v11463_v16 = vld [vmem:[#allocation2 + $0x9c] sm:$0xff]  }
 0x350   : > { %v10434_v43 = vpop.f32.mrf.mxu0  ;;  %v3380_v61 = vpop.f32.mrf.mxu1  ;;  %v3505_v45 = vld [vmem:[#allocation3 + $0x108] sm:$0xff] }
 0x351   : > { %4298 = vst [vmem:[#allocation3 + $0xb8] sm:$0xff] %v4248_v42  ;;  %v3549_v31 = vadd.f32 %v3499_v32, %v3380_v61  ;;  %v4680_v42 = vrot.slane %v4678_v46, 2  ;;  %v5437_v61 = vrot.slane %v11457_v54, 2 }
 0x352   : > { %v4072_v8 = vpop.f32.mrf.mxu0  ;;  %10664 = vmatmul.mubr.bf16.gmra.mxu0 %v5432_v63  ;;  %v10326_v5 = vpop.f32.mrf.mxu1 }
 0x353   : > { %v4249_v6 = vadd.f32 %v4072_v8, %v3546_v62  ;;  %10667 = vmatprep.mubr.msk.bf16.mxu0 %vm13546_vm0, %v11816_v0  ;;  %v4681_v8 = vor.u32 %v4680_v42, %v4677_v58  ;;  %v4684_v5 = vshrl.u32 %v11461_v44, 16  ;;  %v5438_v11 = vsel %vm5407_vm11, %v5435_v48, %v5437_v61 }
 0x354   : > { %v10437_v12 = vpop.f32.mrf.mxu0  ;;  %v3385_v38 = vpop.f32.mrf.mxu1  ;;  %10556 = vmatmul.mubr.bf16.gmra.mxu1 %v4655_v53  ;;  %v3502_v53 = vld [vmem:[#allocation3 + $0xf0] sm:$0xff] }
 0x355   : > { %4299 = vst [vmem:[#allocation3 + $0xc0] sm:$0xff] %v4249_v6  ;;  %10559 = vmatprep.mubr.msk.bf16.mxu1 %vm13546_vm0, %v11816_v0  ;;  %v3550_v50 = vadd.f32 %v3500_v33, %v3385_v38  ;;  %v4687_v6 = vshll.u32 %v11461_v44, 16  ;;  %v11460_v12 = vld [vmem:[#allocation2 + $0x84] sm:$0xff]  }
 0x356   : > { %v4075_v3 = vpop.f32.mrf.mxu0  ;;  %v10329_v14 = vpop.f32.mrf.mxu1 }
 0x357   : > { %v4250_v15 = vadd.f32 %v4075_v3, %v3547_v17  ;;  %v4682_v3 = vsel %vm4521_vm10, %v4672_v40, %v4681_v8  ;;  %v4686_v14 = vrot.slane %v4684_v5, 1  ;;  %v11466_v40 = vld [vmem:[#allocation2 + $0xa4] sm:$0xff]   ;;  %v3507_v5 = vld [vmem:[#allocation3 + $0x118] sm:$0xff] }
 0x358   : > { %v10438_v41 = vpop.f32.mrf.mxu0  ;;  %v3388_v19 = vpop.f32.mrf.mxu1 }
 0x359   : > { %4300 = vst [vmem:[#allocation3 + $0xc8] sm:$0xff] %v4250_v15  ;;  %v3551_v43 = vadd.f32 %v3501_v59, %v3388_v19  ;;  %v4689_v15 = vrot.slane %v4687_v6, 2  ;;  %v5439_v19 = vrot.slane %v11460_v12, 2 }
 0x35a   : > { %v4080_v26 = vpop.f32.mrf.mxu0  ;;  %10668 = vmatmul.mubr.bf16.gmra.mxu0 %v5434_v2  ;;  %v10330_v52 = vpop.f32.mrf.mxu1 }
 0x35b   : > { %v4251_v23 = vadd.f32 %v4080_v26, %v3548_v20  ;;  %10671 = vmatprep.mubr.msk.bf16.mxu0 %vm13546_vm0, %v11816_v0  ;;  %v4690_v26 = vor.u32 %v4689_v15, %v4686_v14  ;;  %v4693_v52 = vshrl.u32 %v11463_v16, 16  ;;  %v5440_v32 = vsel %vm5407_vm11, %v5437_v61, %v5439_v19 }
 0x35c   : > { %v10441_v35 = vpop.f32.mrf.mxu0  ;;  %v3393_v22 = vpop.f32.mrf.mxu1  ;;  %10560 = vmatmul.mubr.bf16.gmra.mxu1 %v4664_v28  ;;  %v3504_v28 = vld [vmem:[#allocation3 + $0x100] sm:$0xff] }
 0x35d   : > { %4301 = vst [vmem:[#allocation3 + $0xd0] sm:$0xff] %v4251_v23  ;;  %10563 = vmatprep.mubr.msk.bf16.mxu1 %vm13546_vm0, %v11816_v0  ;;  %v3552_v10 = vadd.f32 %v3502_v53, %v3393_v22  ;;  %v4696_v23 = vshll.u32 %v11463_v16, 16  ;;  %v11462_v35 = vld [vmem:[#allocation2 + $0x8c] sm:$0xff]  }
 0x35e   : > { %v4083_v36 = vpop.f32.mrf.mxu0  ;;  %v10333_v37 = vpop.f32.mrf.mxu1 }
 0x35f   : > { %v4252_v39 = vadd.f32 %v4083_v36, %v3549_v31  ;;  %v4691_v36 = vsel %vm4521_vm10, %v4681_v8, %v4690_v26  ;;  %v4695_v37 = vrot.slane %v4693_v52, 1  ;;  %v11468_v8 = vld [vmem:[#allocation2 + $0xac] sm:$0xff]   ;;  %v3509_v52 = vld [vmem:[#allocation3 + $0x128] sm:$0xff] }
 0x360   : > { %v10442_v24 = vpop.f32.mrf.mxu0  ;;  %v3396_v49 = vpop.f32.mrf.mxu1 }
 0x361   : > { %4302 = vst [vmem:[#allocation3 + $0xd8] sm:$0xff] %v4252_v39  ;;  %v3553_v41 = vadd.f32 %v3503_v4, %v3396_v49  ;;  %v4698_v39 = vrot.slane %v4696_v23, 2  ;;  %v5441_v49 = vrot.slane %v11462_v35, 2 }
 0x362   : > { %v4088_v55 = vpop.f32.mrf.mxu0  ;;  %10672 = vmatmul.mubr.bf16.gmra.mxu0 %v5436_v51  ;;  %v10334_v56 = vpop.f32.mrf.mxu1 }
 0x363   : > { %v4253_v27 = vadd.f32 %v4088_v55, %v3550_v50  ;;  %10675 = vmatprep.mubr.msk.bf16.mxu0 %vm13546_vm0, %v11816_v0  ;;  %v4699_v55 = vor.u32 %v4698_v39, %v4695_v37  ;;  %v4702_v56 = vshrl.u32 %v11466_v40, 16  ;;  %v5442_v59 = vsel %vm5407_vm11, %v5439_v19, %v5441_v49 }
 0x364   : > { %v10445_v47 = vpop.f32.mrf.mxu0  ;;  %v3401_v60 = vpop.f32.mrf.mxu1  ;;  %10564 = vmatmul.mubr.bf16.gmra.mxu1 %v4673_v57  ;;  %v3506_v57 = vld [vmem:[#allocation3 + $0x110] sm:$0xff] }
 0x365   : > { %4303 = vst [vmem:[#allocation3 + $0xe0] sm:$0xff] %v4253_v27  ;;  %10567 = vmatprep.mubr.msk.bf16.mxu1 %vm13546_vm0, %v11816_v0  ;;  %v3554_v30 = vadd.f32 %v3504_v28, %v3401_v60  ;;  %v4705_v27 = vshll.u32 %v11466_v40, 16  ;;  %v11464_v47 = vld [vmem:[#allocation2 + $0x94] sm:$0xff]  }
 0x366   : > { %v4091_v62 = vpop.f32.mrf.mxu0  ;;  %v10337_v63 = vpop.f32.mrf.mxu1 }
 0x367   : > { %v4254_v1 = vadd.f32 %v4091_v62, %v3551_v43  ;;  %v4700_v62 = vsel %vm4521_vm10, %v4690_v26, %v4699_v55  ;;  %v4704_v63 = vrot.slane %v4702_v56, 1  ;;  %v11470_v26 = vld [vmem:[#allocation2 + $0xb4] sm:$0xff]   ;;  %v3511_v56 = vld [vmem:[#allocation3 + $0x138] sm:$0xff] }
 0x368   : > { %v10446_v7 = vpop.f32.mrf.mxu0  ;;  %v3404_v9 = vpop.f32.mrf.mxu1 }
 0x369   : > { %4304 = vst [vmem:[#allocation3 + $0xe8] sm:$0xff] %v4254_v1  ;;  %v3555_v24 = vadd.f32 %v3505_v45, %v3404_v9  ;;  %v4707_v1 = vrot.slane %v4705_v27, 2  ;;  %v5443_v9 = vrot.slane %v11464_v47, 2 }
 0x36a   : > { %v4096_v38 = vpop.f32.mrf.mxu0  ;;  %10676 = vmatmul.mubr.bf16.gmra.mxu0 %v5438_v11  ;;  %v10338_v17 = vpop.f32.mrf.mxu1 }
 0x36b   : > { %v4255_v13 = vadd.f32 %v4096_v38, %v3552_v10  ;;  %10679 = vmatprep.mubr.msk.bf16.mxu0 %vm13546_vm0, %v11816_v0  ;;  %v4708_v38 = vor.u32 %v4707_v1, %v4704_v63  ;;  %v4711_v17 = vshrl.u32 %v11468_v8, 16  ;;  %v5444_v4 = vsel %vm5407_vm11, %v5441_v49, %v5443_v9 }
 0x36c   : > { %v10449_v34 = vpop.f32.mrf.mxu0  ;;  %v3409_v18 = vpop.f32.mrf.mxu1  ;;  %10568 = vmatmul.mubr.bf16.gmra.mxu1 %v4682_v3  ;;  %v3508_v3 = vld [vmem:[#allocation3 + $0x120] sm:$0xff] }
 0x36d   : > { %4305 = vst [vmem:[#allocation3 + $0xf0] sm:$0xff] %v4255_v13  ;;  %10571 = vmatprep.mubr.msk.bf16.mxu1 %vm13546_vm0, %v11816_v0  ;;  %v3556_v44 = vadd.f32 %v3506_v57, %v3409_v18  ;;  %v4714_v13 = vshll.u32 %v11468_v8, 16  ;;  %v11467_v34 = vld [vmem:[#allocation2 + $0x9c] sm:$0xff]  }
 0x36e   : > { %v4099_v20 = vpop.f32.mrf.mxu0  ;;  %v10341_v2 = vpop.f32.mrf.mxu1 }
 0x36f   : > { %v4256_v21 = vadd.f32 %v4099_v20, %v3553_v41  ;;  %v4709_v20 = vsel %vm4521_vm10, %v4699_v55, %v4708_v38  ;;  %v4713_v2 = vrot.slane %v4711_v17, 1  ;;  %v11473_v55 = vld [vmem:[#allocation2 + $0xbc] sm:$0xff]  }
 0x370   : > { %v10450_v29 = vpop.f32.mrf.mxu0  ;;  %v3412_v25 = vpop.f32.mrf.mxu1  ;;  %v3513_v17 = vld [vmem:[#allocation3 + $0x148] sm:$0xff] }
 0x371   : > { %4306 = vst [vmem:[#allocation3 + $0xf8] sm:$0xff] %v4256_v21  ;;  %v3557_v7 = vadd.f32 %v3507_v5, %v3412_v25  ;;  %v4716_v21 = vrot.slane %v4714_v13, 2  ;;  %v5445_v25 = vrot.slane %v11467_v34, 2 }
 0x372   : > { %v4104_v22 = vpop.f32.mrf.mxu0  ;;  %10680 = vmatmul.mubr.bf16.gmra.mxu0 %v5440_v32  ;;  %v10342_v31 = vpop.f32.mrf.mxu1 }
 0x373   : > { %v4257_v48 = vadd.f32 %v4104_v22, %v3554_v30  ;;  %10683 = vmatprep.mubr.msk.bf16.mxu0 %vm13546_vm0, %v11816_v0  ;;  %v4717_v22 = vor.u32 %v4716_v21, %v4713_v2  ;;  %v4720_v31 = vshrl.u32 %v11470_v26, 16  ;;  %v5446_v45 = vsel %vm5407_vm11, %v5443_v9, %v5445_v25 }
 0x374   : > { %v10453_v46 = vpop.f32.mrf.mxu0  ;;  %v3417_v33 = vpop.f32.mrf.mxu1  ;;  %10572 = vmatmul.mubr.bf16.gmra.mxu1 %v4691_v36  ;;  %v3510_v36 = vld [vmem:[#allocation3 + $0x130] sm:$0xff] }
 0x375   : > { %4307 = vst [vmem:[#allocation3 + $0x100] sm:$0xff] %v4257_v48  ;;  %10575 = vmatprep.mubr.msk.bf16.mxu1 %vm13546_vm0, %v11816_v0  ;;  %v3558_v16 = vadd.f32 %v3508_v3, %v3417_v33  ;;  %v4723_v48 = vshll.u32 %v11470_v26, 16  ;;  %v11469_v46 = vld [vmem:[#allocation2 + $0xa4] sm:$0xff]  }
 0x376   : > { %v4107_v50 = vpop.f32.mrf.mxu0  ;;  %v10345_v51 = vpop.f32.mrf.mxu1 }
 0x377   : > { %v4258_v54 = vadd.f32 %v4107_v50, %v3555_v24  ;;  %v4718_v50 = vsel %vm4521_vm10, %v4708_v38, %v4717_v22  ;;  %v4722_v51 = vrot.slane %v4720_v31, 1  ;;  %v11476_v38 = vld [vmem:[#allocation2 + $0xc4] sm:$0xff]   ;;  %v3515_v31 = vld [vmem:[#allocation3 + $0x158] sm:$0xff] }
 0x378   : > { %v10454_v58 = vpop.f32.mrf.mxu0  ;;  %v3420_v42 = vpop.f32.mrf.mxu1 }
 0x379   : > { %4308 = vst [vmem:[#allocation3 + $0x108] sm:$0xff] %v4258_v54  ;;  %v3559_v29 = vadd.f32 %v3509_v52, %v3420_v42  ;;  %v4725_v54 = vrot.slane %v4723_v48, 2  ;;  %v5447_v42 = vrot.slane %v11469_v46, 2 }
 0x37a   : > { %v4112_v60 = vpop.f32.mrf.mxu0  ;;  %10684 = vmatmul.mubr.bf16.gmra.mxu0 %v5442_v59  ;;  %v10346_v43 = vpop.f32.mrf.mxu1 }
 0x37b   : > { %v4259_v61 = vadd.f32 %v4112_v60, %v3556_v44  ;;  %10687 = vmatprep.mubr.msk.bf16.mxu0 %vm13546_vm0, %v11816_v0  ;;  %v4726_v60 = vor.u32 %v4725_v54, %v4722_v51  ;;  %v4729_v43 = vshrl.u32 %v11473_v55, 16  ;;  %v5448_v5 = vsel %vm5407_vm11, %v5445_v25, %v5447_v42 }
 0x37c   : > { %v10457_v6 = vpop.f32.mrf.mxu0  ;;  %v3425_v53 = vpop.f32.mrf.mxu1  ;;  %10576 = vmatmul.mubr.bf16.gmra.mxu1 %v4700_v62  ;;  %v3512_v62 = vld [vmem:[#allocation3 + $0x140] sm:$0xff] }
 0x37d   : > { %4309 = vst [vmem:[#allocation3 + $0x110] sm:$0xff] %v4259_v61  ;;  %10579 = vmatprep.mubr.msk.bf16.mxu1 %vm13546_vm0, %v11816_v0  ;;  %v3560_v40 = vadd.f32 %v3510_v36, %v3425_v53  ;;  %v4732_v61 = vshll.u32 %v11473_v55, 16  ;;  %v11471_v6 = vld [vmem:[#allocation2 + $0xac] sm:$0xff]  }
 0x37e   : > { %v4115_v10 = vpop.f32.mrf.mxu0  ;;  %v10349_v11 = vpop.f32.mrf.mxu1 }
 0x37f   : > { %v4260_v12 = vadd.f32 %v4115_v10, %v3557_v7  ;;  %v4727_v10 = vsel %vm4521_vm10, %v4717_v22, %v4726_v60  ;;  %v4731_v11 = vrot.slane %v4729_v43, 1 }
 0x380   : > { %v10458_v14 = vpop.f32.mrf.mxu0  ;;  %v3428_v15 = vpop.f32.mrf.mxu1 }
 0x381   : > { %4310 = vst [vmem:[#allocation3 + $0x118] sm:$0xff] %v4260_v12  ;;  %v3561_v58 = vadd.f32 %v3511_v56, %v3428_v15  ;;  %v4734_v12 = vrot.slane %v4732_v61, 2  ;;  %v5449_v15 = vrot.slane %v11471_v6, 2 }
 0x382   : > { %v4120_v18 = vpop.f32.mrf.mxu0  ;;  %10688 = vmatmul.mubr.bf16.gmra.mxu0 %v5444_v4  ;;  %v10350_v41 = vpop.f32.mrf.mxu1 }
 0x383   : > { %v4261_v19 = vadd.f32 %v4120_v18, %v3558_v16  ;;  %10691 = vmatprep.mubr.msk.bf16.mxu0 %vm13546_vm0, %v11816_v0  ;;  %v4735_v18 = vor.u32 %v4734_v12, %v4731_v11  ;;  %v4738_v41 = vshrl.u32 %v11476_v38, 16  ;;  %v5450_v52 = vsel %vm5407_vm11, %v5447_v42, %v5449_v15 }
 0x384   : > { %v10461_v23 = vpop.f32.mrf.mxu0  ;;  %v3433_v28 = vpop.f32.mrf.mxu1  ;;  %10580 = vmatmul.mubr.bf16.gmra.mxu1 %v4709_v20  ;;  %v3514_v20 = vld [vmem:[#allocation3 + $0x150] sm:$0xff] }
 0x385   : > { %4311 = vst [vmem:[#allocation3 + $0x120] sm:$0xff] %v4261_v19  ;;  %10583 = vmatprep.mubr.msk.bf16.mxu1 %vm13546_vm0, %v11816_v0  ;;  %v3562_v8 = vadd.f32 %v3512_v62, %v3433_v28  ;;  %v4741_v19 = vshll.u32 %v11476_v38, 16  ;;  %v11474_v23 = vld [vmem:[#allocation2 + $0xb4] sm:$0xff]   ;;  %v11480_v28 = vld [vmem:[#allocation2 + $0xcc] ss:$0 sps:$4 sm:$0x33]  }
 0x386   : > { %v4123_v30 = vpop.f32.mrf.mxu0  ;;  %v10353_v32 = vpop.f32.mrf.mxu1  ;;  %v11482_v38 = vld [vmem:[#allocation2 + $0xc4] sm:$0xff]  }
 0x387   : > { %v4262_v35 = vadd.f32 %v4123_v30, %v3559_v29  ;;  %v4736_v32 = vsel %vm4521_vm10, %v4726_v60, %v4735_v18  ;;  %v4743_v22 = vrot.slane %v4741_v19, 2  ;;  %v3517_v60 = vld [vmem:[#allocation3 + $0x168] sm:$0xff] }
 0x388   : > { %v10462_v37 = vpop.f32.mrf.mxu0  ;;  %v3436_v39 = vpop.f32.mrf.mxu1 }
 0x389   : > { %4312 = vst [vmem:[#allocation3 + $0x128] sm:$0xff] %v4262_v35  ;;  %v3563_v14 = vadd.f32 %v3513_v17, %v3436_v39  ;;  %v4740_v35 = vrot.slane %v4738_v41, 1  ;;  %v5451_v39 = vrot.slane %v11474_v23, 2  ;;  %v11485_v41 = vld [vmem:[#allocation2 + $0x10] sm:$0xff]  }
 0x38a   : > { %v4128_v33 = vpop.f32.mrf.mxu0  ;;  %10692 = vmatmul.mubr.bf16.gmra.mxu0 %v5446_v45  ;;  %v10354_v24 = vpop.f32.mrf.mxu1  ;;  %v4750_v45 = vshll.u32 %v11480_v28, 16 }
 0x38b   : > { %v4263_v49 = vadd.f32 %v4128_v33, %v3560_v40  ;;  %10695 = vmatprep.mubr.msk.bf16.mxu0 %vm13546_vm0, %v11816_v0  ;;  %v4747_v40 = vshrl.u32 %v11480_v28, 16  ;;  %v5452_v56 = vsel %vm5407_vm11, %v5449_v15, %v5451_v39  ;;  %v3519_v15 = vld [vmem:[#allocation3 + $0x178] sm:$0xff] }
 0x38c   : > { %v10465_v27 = vpop.f32.mrf.mxu0  ;;  %v3441_v57 = vpop.f32.mrf.mxu1  ;;  %10584 = vmatmul.mubr.bf16.gmra.mxu1 %v4718_v50  ;;  %v3516_v50 = vld [vmem:[#allocation3 + $0x160] sm:$0xff] }
 0x38d   : > { %4313 = vst [vmem:[#allocation3 + $0x130] sm:$0xff] %v4263_v49  ;;  %10587 = vmatprep.mubr.msk.bf16.mxu1 %vm13546_vm0, %v11816_v0  ;;  %v3564_v26 = vadd.f32 %v3514_v20, %v3441_v57  ;;  %v4744_v49 = vor.u32 %v4743_v22, %v4740_v35  ;;  %v11478_v27 = vld [vmem:[#allocation2 + $0xbc] sm:$0xff]   ;;  %v4749_v57 = vrot.slane %v4747_v40, 1  ;;  %v11492_v35 = vld [vmem:[#allocation2 + $0x8] sm:$0xfc]   ;;  %v11493_v40 = vld [vmem:[#allocation2 + $0x10] sm:$0xff]  }
 0x38e   : > { %v4131_v44 = vpop.f32.mrf.mxu0  ;;  %v10357_v59 = vpop.f32.mrf.mxu1 }
 0x38f   : > { %v4264_v47 = vadd.f32 %v4131_v44, %v3561_v58  ;;  %v4752_v58 = vrot.slane %v4750_v45, 2  ;;  %v3521_v45 = vld [vmem:[#allocation3 + $0x188] sm:$0xff] }
 0x390   : > { %v10466_v63 = vpop.f32.mrf.mxu0  ;;  %v3444_v1 = vpop.f32.mrf.mxu1 }
 0x391   : > { %4314 = vst [vmem:[#allocation3 + $0x138] sm:$0xff] %v4264_v47  ;;  %v3565_v37 = vadd.f32 %v3515_v31, %v3444_v1  ;;  %v4745_v47 = vsel %vm4521_vm10, %v4735_v18, %v4744_v49  ;;  %v5453_v63 = vrot.slane %v11478_v27, 2  ;;  %v4753_v1 = vor.u32 %v4752_v58, %v4749_v57 }
 0x392   : > { %v4136_v53 = vpop.f32.mrf.mxu0  ;;  %10696 = vmatmul.mubr.bf16.gmra.mxu0 %v5448_v5  ;;  %v10358_v7 = vpop.f32.mrf.mxu1  ;;  %v5455_v18 = vrot.slane %v11482_v38, 2  ;;  %v6824_v58 = vshrl.u32 %v11493_v40, 16 }
 0x393   : > { %v4265_v9 = vadd.f32 %v4136_v53, %v3562_v8  ;;  %10699 = vmatprep.mubr.msk.bf16.mxu0 %vm13546_vm0, %v11816_v0  ;;  %v3518_v53 = vld [vmem:[#allocation3 + $0x170] sm:$0xff]  ;;  %v5454_v11 = vsel %vm5407_vm11, %v5451_v39, %v5453_v63  ;;  %v4754_v12 = vsel %vm4521_vm10, %v4744_v49, %v4753_v1  ;;  %v6816_v49 = vshrl.u32 %v11492_v35, 16 }
 0x394   : > { %v10469_v13 = vpop.f32.mrf.mxu0  ;;  %v3449_v3 = vpop.f32.mrf.mxu1  ;;  %10588 = vmatmul.mubr.bf16.gmra.mxu1 %v4727_v10 }
 0x395   : > { %4315 = vst [vmem:[#allocation3 + $0x140] sm:$0xff] %v4265_v9  ;;  %10591 = vmatprep.mubr.msk.bf16.mxu1 %vm13546_vm0, %v11816_v0  ;;  %v3566_v55 = vadd.f32 %v3516_v50, %v3449_v3  ;;  %v6819_v50 = vshll.u32 %v11492_v35, 16  ;;  %v12905_v35 = vld [vmem:[#allocation2 + $0x28] sm:$0xff]  }
 0x396   : > { %v4139_v16 = vpop.f32.mrf.mxu0  ;;  %v10361_v4 = vpop.f32.mrf.mxu1 }
 0x397   : > { %v4266_v34 = vadd.f32 %v4139_v16, %v3563_v14  ;;  %v11484_v14 = vld [vmem:[#allocation2 + $0x8] sm:$0xfc]  }
 0x398   : > { %v10470_v2 = vpop.f32.mrf.mxu0  ;;  %v3452_v21 = vpop.f32.mrf.mxu1 }
 0x399   : > { %4316 = vst [vmem:[#allocation3 + $0x148] sm:$0xff] %v4266_v34  ;;  %v3567_v62 = vadd.f32 %v3517_v60, %v3452_v21  ;;  %v6111_v21 = vrot.slane %v11484_v14, 2  ;;  %v11512_v14 = vld [vmem:[#allocation9 + $0x220] sm:$0xff]  }
 0x39a   : > { %v4144_v29 = vpop.f32.mrf.mxu0  ;;  %10700 = vmatmul.mubr.bf16.gmra.mxu0 %v5450_v52  ;;  %v10362_v25 = vpop.f32.mrf.mxu1  ;;  %v3520_v52 = vld [vmem:[#allocation3 + $0x180] sm:$0xff] }
 0x39b   : > { %v4267_v30 = vadd.f32 %v4144_v29, %v3564_v26  ;;  %10703 = vmatprep.mubr.msk.bf16.mxu0 %vm13546_vm0, %v11816_v0  ;;  %v11488_v26 = vld [vmem:[#allocation2 + $0xcc] ss:$0 sps:$4 sm:$0x33]   ;;  %v5456_v25 = vsel %vm5407_vm11, %v5453_v63, %v5455_v18 }
 0x39c   : > { %v10473_v48 = vpop.f32.mrf.mxu0  ;;  %v3457_v36 = vpop.f32.mrf.mxu1  ;;  %10592 = vmatmul.mubr.bf16.gmra.mxu1 %v4736_v32  ;;  %v11487_v32 = vld [vmem:[#allocation9 + $0x238] sm:$0xff]   ;;  %v5457_v39 = vrot.slane %v11488_v26, 2  ;;  %v11504_v63 = vld [vmem:[#allocation9 + $0x228] sm:$0xff]  }
 0x39d   : > { %4317 = vst [vmem:[#allocation3 + $0x150] sm:$0xff] %v4267_v30  ;;  %10595 = vmatprep.mubr.msk.bf16.mxu1 %vm13546_vm0, %v11816_v0  ;;  %v3568_v10 = vadd.f32 %v3518_v53, %v3457_v36  ;;  %v6112_v30 = vrot.slane %v11485_v41, 2  ;;  %v12880_v48 = vld [vmem:[#allocation2 + $0x18] sm:$0xff]   ;;  %v6826_v53 = vrot.slane %v6824_v58, 2  ;;  %v5063_v41 = vld [vmem:[#allocation3 + $0x10] sm:$0xff] }
 0x39e   : > { %v4147_v46 = vpop.f32.mrf.mxu0  ;;  %v10365_v33 = vpop.f32.mrf.mxu1  ;;  %v5458_v57 = vsel %vm5407_vm11, %v5455_v18, %v5457_v39  ;;  %v11500_v58 = vld [vmem:[#allocation2 + $0x28] sm:$0xff]  }
 0x39f   : > { %v4268_v24 = vadd.f32 %v4147_v46, %v3565_v37  ;;  %v6113_v37 = vsel %vm5407_vm11, %v6111_v21, %v6112_v30 }
 0x3a0   : > { %v10474_v51 = vpop.f32.mrf.mxu0  ;;  %v3460_v54 = vpop.f32.mrf.mxu1 }
 0x3a1   : > { %4318 = vst [vmem:[#allocation3 + $0x158] sm:$0xff] %v4268_v24  ;;  %v3569_v34 = vadd.f32 %v3519_v15, %v3460_v54  ;;  %v11497_v51 = vld [vmem:[#allocation9 + $0x230] sm:$0xff]  }
 0x3a2   : > { %v4152_v42 = vpop.f32.mrf.mxu0  ;;  %10704 = vmatmul.mubr.bf16.gmra.mxu0 %v5452_v56  ;;  %v10366_v44 = vpop.f32.mrf.mxu1  ;;  %v6114_v56 = vrot.slane %v12880_v48, 2 }
 0x3a3   : > { %v4269_v59 = vadd.f32 %v4152_v42, %v3566_v55  ;;  %10707 = vmatprep.mubr.msk.bf16.mxu0 %vm13546_vm0, %v11816_v0  ;;  %v6827_v42 = vshll.u32 %v11493_v40, 16  ;;  %v5061_v44 = vld [vmem:[#allocation3] sm:$0xff] }
 0x3a4   : > { %v10477_v43 = vpop.f32.mrf.mxu0  ;;  %v3465_v61 = vpop.f32.mrf.mxu1  ;;  %10596 = vmatmul.mubr.bf16.gmra.mxu1 %v4745_v47 }
 0x3a5   : > { %4319 = vst [vmem:[#allocation3 + $0x160] sm:$0xff] %v4269_v59  ;;  %10599 = vmatprep.mubr.msk.bf16.mxu1 %vm13546_vm0, %v11816_v0  ;;  %v3570_v29 = vadd.f32 %v3520_v52, %v3465_v61  ;;  %v6818_v43 = vrot.slane %v6816_v49, 2  ;;  %v6821_v61 = vrot.slane %v6819_v50, 3  ;;  %v6118_v49 = vrot.slane %v12905_v35, 2  ;;  %v5065_v50 = vld [vmem:[#allocation3 + $0x20] sm:$0xff] }
 0x3a6   : > { %v4155_v8 = vpop.f32.mrf.mxu0  ;;  %v10369_v5 = vpop.f32.mrf.mxu1 }
 0x3a7   : > { %v4270_v6 = vadd.f32 %v4155_v8, %v3567_v62  ;;  %v11495_v62 = vld [vmem:[#allocation2 + $0x18] sm:$0xff]  }
 0x3a8   : > { %v10478_v7 = vpop.f32.mrf.mxu0  ;;  %v3468_v9 = vpop.f32.mrf.mxu1 }
 0x3a9   : > { %4320 = vst [vmem:[#allocation3 + $0x168] sm:$0xff] %v4270_v6  ;;  %v3571_v24 = vadd.f32 %v3521_v45, %v3468_v9  ;;  %v6115_v6 = vsel %vm5407_vm11, %v6112_v30, %v6114_v56  ;;  %v6829_v7 = vrot.slane %v6827_v42, 3  ;;  %v12894_v9 = vld [vmem:[#allocation2 + $0x20] sm:$0xff]   ;;  %v11526_v45 = vld [vmem:[#allocation9 + $0x210] sm:$0xff]  }
 0x3aa   : > { %v4160_v17 = vpop.f32.mrf.mxu0  ;;  %10708 = vmatmul.mubr.bf16.gmra.mxu0 %v5454_v11  ;;  %v10370_v13 = vpop.f32.mrf.mxu1  ;;  %v6116_v18 = vrot.slane %v12894_v9, 2 }
 0x3ab   : > { %v4271_v3 = vadd.f32 %v4160_v17, %v3568_v10  ;;  %10711 = vmatprep.mubr.msk.bf16.mxu0 %vm13546_vm0, %v11816_v0  ;;  %v5062_v10 = vld [vmem:[#allocation3 + $0x8] sm:$0xff]  ;;  %v6822_v17 = vor.u32 %v6821_v61, %v6818_v43  ;;  %v6833_v13 = vshrl.u32 %v11495_v62, 16 }
 0x3ac   : > { %v10481_v16 = vpop.f32.mrf.mxu0  ;;  %v4862_v4 = vpop.f32.mrf.mxu1  ;;  %10600 = vmatmul.mubr.bf16.gmra.mxu1 %v4754_v12  ;;  %v5066_v43 = vld [vmem:[#allocation3 + $0x28] sm:$0xff] }
 0x3ad   : > { %4321 = vst [vmem:[#allocation3 + $0x170] sm:$0xff] %v4271_v3  ;;  %10735 = vmatprep.mubr.msk.bf16.mxu1 %vm13546_vm0, %v11816_v0  ;;  %v5111_v60 = vadd.f32 %v5061_v44, %v4862_v4  ;;  %v6836_v3 = vshll.u32 %v11495_v62, 16  ;;  %v6835_v26 = vrot.slane %v6833_v13, 2 }
 0x3ae   : > { %v4163_v19 = vpop.f32.mrf.mxu0  ;;  %v10505_v20 = vpop.f32.mrf.mxu1 }
 0x3af   : > { %v4272_v2 = vadd.f32 %v4163_v19, %v3569_v34  ;;  %v6830_v34 = vor.u32 %v6829_v7, %v6826_v53  ;;  %v6838_v52 = vrot.slane %v6836_v3, 3 }
 0x3b0   : > { %v10482_v23 = vpop.f32.mrf.mxu0  ;;  %v4865_v28 = vpop.f32.mrf.mxu1 }
 0x3b1   : > { %4322 = vst [vmem:[#allocation3 + $0x178] sm:$0xff] %v4272_v2  ;;  %v5112_v38 = vadd.f32 %v5062_v10, %v4865_v28  ;;  %v6831_v21 = vsel %vm6814_vm12, %v6822_v17, %v6830_v34  ;;  %v11498_v23 = vld [vmem:[#allocation2 + $0x20] sm:$0xff]  }
 0x3b2   : > { %v4168_v22 = vpop.f32.mrf.mxu0  ;;  %10712 = vmatmul.mubr.bf16.gmra.mxu0 %v5456_v25  ;;  %v10506_v31 = vpop.f32.mrf.mxu1  ;;  %v11519_v28 = vld [vmem:[#allocation9 + $0x218] sm:$0xff]   ;;  %v6842_v39 = vshrl.u32 %v11498_v23, 16  ;;  %v6845_v40 = vshll.u32 %v11498_v23, 16 }
 0x3b3   : > { %v4273_v36 = vadd.f32 %v4168_v22, %v3570_v29  ;;  %10715 = vmatprep.mubr.msk.bf16.mxu0 %vm13546_vm0, %v11816_v0  ;;  %v5064_v22 = vld [vmem:[#allocation3 + $0x18] sm:$0xff] }
 0x3b4   : > { %v10485_v46 = vpop.f32.mrf.mxu0  ;;  %v4870_v33 = vpop.f32.mrf.mxu1  ;;  %10736 = vmatmul.mubr.bf16.vlgmr.msra.gmra.mxu1 %v6113_v37  ;;  %v6839_v37 = vor.u32 %v6838_v52, %v6835_v26 }
 0x3b5   : > { %4323 = vst [vmem:[#allocation3 + $0x180] sm:$0xff] %v4273_v36  ;;  %10952 = vmatpush3.bf16.msra.mxu1 %v11487_v32  ;;  %10739 = vmatprep.mubr.msk.bf16.mxu1 %vm13546_vm0, %v11816_v0  ;;  %v5113_v2 = vadd.f32 %v5063_v41, %v4870_v33  ;;  %v6117_v32 = vsel %vm5407_vm11, %v6114_v56, %v6116_v18  ;;  %v11501_v41 = vld [vmem:[#allocation2 + $0x38] sm:$0xff]  }
 0x3b6   : > { %v4171_v54 = vpop.f32.mrf.mxu0  ;;  %v10509_v55 = vpop.f32.mrf.mxu1  ;;  %10953 = vmatprep.subr.bf16.mxu1 %v11816_v0  ;;  %v6840_v56 = vsel %vm6814_vm12, %v6830_v34, %v6839_v37 }
 0x3b7   : > { %v4274_v27 = vadd.f32 %v4171_v54, %v3571_v24 }
 0x3b8   : > { %v10486_v59 = vpop.f32.mrf.mxu0  ;;  %v4873_v47 = vpop.f32.mrf.mxu1 }
 0x3b9   : > { %4324 = vst [vmem:[#allocation3 + $0x188] sm:$0xff] %v4274_v27  ;;  %10954 = vmatpush3.bf16.msra.mxu1 %v11497_v51  ;;  %v5114_v36 = vadd.f32 %v5064_v22, %v4873_v47  ;;  %v6844_v27 = vrot.slane %v6842_v39, 2  ;;  %v6119_v47 = vsel %vm5407_vm11, %v6116_v18, %v6118_v49  ;;  %v11505_v39 = vld [vmem:[#allocation2 + $0x38] sm:$0xff]  }
 0x3ba   : > { %v5566_v1 = vpop.f32.mrf.mxu0  ;;  %10716 = vmatmul.mubr.bf16.gmra.mxu0 %v5458_v57  ;;  %v10510_v8 = vpop.f32.mrf.mxu1  ;;  %10955 = vmatprep.subr.bf16.mxu1 %v11816_v0  ;;  %v6847_v57 = vrot.slane %v6845_v40, 3 }
 0x3bb   : > { %v5815_v5 = vadd.f32 %v5566_v1, %v5111_v60  ;;  %10851 = vmatprep.mubr.msk.bf16.mxu0 %vm13546_vm0, %v11816_v0  ;;  %v12916_v60 = vld [vmem:[#allocation2 + $0x30] sm:$0xff]   ;;  %v6851_v8 = vshrl.u32 %v11500_v58, 16 }
 0x3bc   : > { %v10621_v11 = vpop.f32.mrf.mxu0  ;;  %v4878_v12 = vpop.f32.mrf.mxu1  ;;  %10740 = vmatmul.mubr.bf16.gmra.mxu1 %v6115_v6  ;;  %v6848_v1 = vor.u32 %v6847_v57, %v6844_v27  ;;  %v11533_v6 = vld [vmem:[#allocation9 + $0x208] sm:$0xff]   ;;  %v6120_v10 = vrot.slane %v12916_v60, 2  ;;  %v6872_v27 = vshll.u32 %v11505_v39, 16 }
 0x3bd   : > { %5865 = vst [vmem:[#allocation3] sm:$0xff] %v5815_v5  ;;  %10743 = vmatprep.mubr.msk.bf16.mxu1 %vm13546_vm0, %v11816_v0  ;;  %10956 = vmatpush3.bf16.msra.mxu1 %v11504_v63  ;;  %v5115_v55 = vadd.f32 %v5065_v50, %v4878_v12  ;;  %v6854_v5 = vshll.u32 %v11500_v58, 16  ;;  %v5067_v11 = vld [vmem:[#allocation3 + $0x30] sm:$0xff]  ;;  %v6853_v3 = vrot.slane %v6851_v8, 2 }
 0x3be   : > { %v5569_v15 = vpop.f32.mrf.mxu0  ;;  %v10513_v16 = vpop.f32.mrf.mxu1  ;;  %10957 = vmatprep.subr.bf16.mxu1 %v11816_v0  ;;  %v6849_v13 = vsel %vm6814_vm12, %v6839_v37, %v6848_v1  ;;  %v6121_v18 = vsel %vm5407_vm11, %v6118_v49, %v6120_v10  ;;  %v5070_v49 = vld [vmem:[#allocation3 + $0x48] sm:$0xff] }
 0x3bf   : > { %v5816_v4 = vadd.f32 %v5569_v15, %v5112_v38  ;;  %v11502_v15 = vld [vmem:[#allocation2 + $0x30] sm:$0xff]  }
 0x3c0   : > { %v10622_v19 = vpop.f32.mrf.mxu0  ;;  %v4881_v20 = vpop.f32.mrf.mxu1  ;;  %v6860_v52 = vshrl.u32 %v11502_v15, 16  ;;  %v6863_v23 = vshll.u32 %v11502_v15, 16 }
 0x3c1   : > { %5866 = vst [vmem:[#allocation3 + $0x8] sm:$0xff] %v5816_v4  ;;  %10958 = vmatpush3.bf16.msra.mxu1 %v11512_v14  ;;  %v5116_v63 = vadd.f32 %v5066_v43, %v4881_v20  ;;  %v6856_v14 = vrot.slane %v6854_v5, 3  ;;  %v5068_v19 = vld [vmem:[#allocation3 + $0x38] sm:$0xff] }
 0x3c2   : > { %v5574_v29 = vpop.f32.mrf.mxu0  ;;  %10852 = vmatmul.mubr.bf16.vlgmr.msra.gmra.mxu0 %v6831_v21  ;;  %v10514_v25 = vpop.f32.mrf.mxu1  ;;  %10959 = vmatprep.subr.bf16.mxu1 %v11816_v0  ;;  %v6865_v37 = vrot.slane %v6863_v23, 3 }
 0x3c3   : > { %v5817_v30 = vadd.f32 %v5574_v29, %v5113_v2  ;;  %10855 = vmatprep.mubr.msk.bf16.mxu0 %vm13546_vm0, %v11816_v0  ;;  %v6857_v26 = vor.u32 %v6856_v14, %v6853_v3 }
 0x3c4   : > { %v10625_v31 = vpop.f32.mrf.mxu0  ;;  %v4886_v48 = vpop.f32.mrf.mxu1  ;;  %10744 = vmatmul.mubr.bf16.gmra.mxu1 %v6117_v32  ;;  %v5069_v32 = vld [vmem:[#allocation3 + $0x40] sm:$0xff] }
 0x3c5   : > { %5867 = vst [vmem:[#allocation3 + $0x10] sm:$0xff] %v5817_v30  ;;  %10747 = vmatprep.mubr.msk.bf16.mxu1 %vm13546_vm0, %v11816_v0  ;;  %10960 = vmatpush3.bf16.msra.mxu1 %v11519_v28  ;;  %v5117_v17 = vadd.f32 %v5067_v11, %v4886_v48  ;;  %v6122_v30 = vrot.slane %v11501_v41, 2  ;;  %v6858_v48 = vsel %vm6814_vm12, %v6848_v1, %v6857_v26  ;;  %v11507_v1 = vld [vmem:[#allocation2 + $0x40] sm:$0xff]  }
 0x3c6   : > { %v5577_v46 = vpop.f32.mrf.mxu0  ;;  %v10517_v33 = vpop.f32.mrf.mxu1  ;;  %10961 = vmatprep.subr.bf16.mxu1 %v11816_v0 }
 0x3c7   : > { %v5818_v24 = vadd.f32 %v5577_v46, %v5114_v36  ;;  %v6862_v36 = vrot.slane %v6860_v52, 2  ;;  %v6123_v33 = vsel %vm5407_vm11, %v6120_v10, %v6122_v30 }
 0x3c8   : > { %v10626_v51 = vpop.f32.mrf.mxu0  ;;  %v4889_v54 = vpop.f32.mrf.mxu1 }
 0x3c9   : > { %5868 = vst [vmem:[#allocation3 + $0x18] sm:$0xff] %v5818_v24  ;;  %10962 = vmatpush3.bf16.msra.mxu1 %v11526_v45  ;;  %v5118_v21 = vadd.f32 %v5068_v19, %v4889_v54  ;;  %v11503_v24 = vld [vmem:[#allocation2 + $0x40] sm:$0xff]  }
 0x3ca   : > { %v5582_v42 = vpop.f32.mrf.mxu0  ;;  %10856 = vmatmul.mubr.bf16.gmra.mxu0 %v6840_v56  ;;  %v10518_v44 = vpop.f32.mrf.mxu1  ;;  %10963 = vmatprep.subr.bf16.mxu1 %v11816_v0  ;;  %v6869_v56 = vshrl.u32 %v11505_v39, 16 }
 0x3cb   : > { %v5819_v59 = vadd.f32 %v5582_v42, %v5115_v55  ;;  %10859 = vmatprep.mubr.msk.bf16.mxu0 %vm13546_vm0, %v11816_v0  ;;  %v6866_v55 = vor.u32 %v6865_v37, %v6862_v36  ;;  %v6124_v44 = vrot.slane %v11503_v24, 2 }
 0x3cc   : > { %v10629_v61 = vpop.f32.mrf.mxu0  ;;  %v4894_v62 = vpop.f32.mrf.mxu1  ;;  %10748 = vmatmul.mubr.bf16.gmra.mxu1 %v6119_v47 }
 0x3cd   : > { %5869 = vst [vmem:[#allocation3 + $0x20] sm:$0xff] %v5819_v59  ;;  %10751 = vmatprep.mubr.msk.bf16.mxu1 %vm13546_vm0, %v11816_v0  ;;  %10964 = vmatpush3.bf16.msra.mxu1 %v11533_v6  ;;  %v5119_v31 = vadd.f32 %v5069_v32, %v4894_v62  ;;  %v5071_v59 = vld [vmem:[#allocation3 + $0x50] sm:$0xff]  ;;  %v6867_v61 = vsel %vm6814_vm12, %v6857_v26, %v6866_v55  ;;  %v6871_v62 = vrot.slane %v6869_v56, 2 }
 0x3ce   : > { %v5585_v53 = vpop.f32.mrf.mxu0  ;;  %v10521_v7 = vpop.f32.mrf.mxu1  ;;  %10965 = vmatprep.subr.bf16.mxu1 %v11816_v0  ;;  %v11540_v26 = vld [vmem:[#allocation9 + $0x200] sm:$0xff]  }
 0x3cf   : > { %v5820_v9 = vadd.f32 %v5585_v53, %v5116_v63  ;;  %v6874_v63 = vrot.slane %v6872_v27, 3  ;;  %v6125_v53 = vsel %vm5407_vm11, %v6122_v30, %v6124_v44  ;;  %v11506_v7 = vld [vmem:[#allocation2 + $0x48] sm:$0xff]   ;;  %v5074_v30 = vld [vmem:[#allocation3 + $0x68] sm:$0xff] }
 0x3d0   : > { %v10630_v12 = vpop.f32.mrf.mxu0  ;;  %v4897_v38 = vpop.f32.mrf.mxu1 }
 0x3d1   : > { %5870 = vst [vmem:[#allocation3 + $0x28] sm:$0xff] %v5820_v9  ;;  %v5120_v54 = vadd.f32 %v5070_v49, %v4897_v38  ;;  %v5072_v9 = vld [vmem:[#allocation3 + $0x58] sm:$0xff]  ;;  %v6875_v38 = vor.u32 %v6874_v63, %v6871_v62  ;;  %10966 = vmatpush3.bf16.msra.mxu1 %v11540_v26 }
 0x3d2   : > { %v5590_v16 = vpop.f32.mrf.mxu0  ;;  %10860 = vmatmul.mubr.bf16.gmra.mxu0 %v6849_v13  ;;  %v10522_v4 = vpop.f32.mrf.mxu1  ;;  %v6881_v13 = vshll.u32 %v11507_v1, 16 }
 0x3d3   : > { %v5821_v34 = vadd.f32 %v5590_v16, %v5117_v17  ;;  %10863 = vmatprep.mubr.msk.bf16.mxu0 %vm13546_vm0, %v11816_v0  ;;  %v6878_v17 = vshrl.u32 %v11507_v1, 16  ;;  %v6126_v16 = vrot.slane %v11506_v7, 2  ;;  %v5073_v4 = vld [vmem:[#allocation3 + $0x60] sm:$0xff]  ;;  %v6876_v19 = vsel %vm6814_vm12, %v6866_v55, %v6875_v38 }
 0x3d4   : > { %v10633_v20 = vpop.f32.mrf.mxu0  ;;  %v4902_v2 = vpop.f32.mrf.mxu1  ;;  %10752 = vmatmul.mubr.bf16.gmra.mxu1 %v6121_v18  ;;  %v11511_v55 = vld [vmem:[#allocation2 + $0x50] sm:$0xff]  }
 0x3d5   : > { %5871 = vst [vmem:[#allocation3 + $0x30] sm:$0xff] %v5821_v34  ;;  %10755 = vmatprep.mubr.msk.bf16.mxu1 %vm13546_vm0, %v11816_v0  ;;  %v5121_v43 = vadd.f32 %v5071_v59, %v4902_v2  ;;  %v6880_v20 = vrot.slane %v6878_v17, 2  ;;  %v6883_v2 = vrot.slane %v6881_v13, 3  ;;  %v6899_v62 = vshll.u32 %v11511_v55, 16 }
 0x3d6   : > { %v5593_v28 = vpop.f32.mrf.mxu0  ;;  %v10525_v29 = vpop.f32.mrf.mxu1 }
 0x3d7   : > { %v5822_v25 = vadd.f32 %v5593_v28, %v5118_v21  ;;  %v11509_v21 = vld [vmem:[#allocation2 + $0x48] sm:$0xff]   ;;  %v6127_v29 = vsel %vm5407_vm11, %v6124_v44, %v6126_v16 }
 0x3d8   : > { %v10634_v35 = vpop.f32.mrf.mxu0  ;;  %v4905_v22 = vpop.f32.mrf.mxu1  ;;  %v6890_v36 = vshll.u32 %v11509_v21, 16  ;;  %v5076_v44 = vld [vmem:[#allocation3 + $0x78] sm:$0xff] }
 0x3d9   : > { %5872 = vst [vmem:[#allocation3 + $0x38] sm:$0xff] %v5822_v25  ;;  %v5122_v12 = vadd.f32 %v5072_v9, %v4905_v22  ;;  %v11508_v25 = vld [vmem:[#allocation2 + $0x50] sm:$0xff]  }
 0x3da   : > { %v5598_v40 = vpop.f32.mrf.mxu0  ;;  %10864 = vmatmul.mubr.bf16.gmra.mxu0 %v6858_v48  ;;  %v10526_v45 = vpop.f32.mrf.mxu1  ;;  %v6887_v48 = vshrl.u32 %v11509_v21, 16 }
 0x3db   : > { %v5823_v46 = vadd.f32 %v5598_v40, %v5119_v31  ;;  %10867 = vmatprep.mubr.msk.bf16.mxu0 %vm13546_vm0, %v11816_v0  ;;  %v6884_v31 = vor.u32 %v6883_v2, %v6880_v20  ;;  %v6128_v45 = vrot.slane %v11508_v25, 2 }
 0x3dc   : > { %v10637_v50 = vpop.f32.mrf.mxu0  ;;  %v4910_v51 = vpop.f32.mrf.mxu1  ;;  %10756 = vmatmul.mubr.bf16.gmra.mxu1 %v6123_v33 }
 0x3dd   : > { %5873 = vst [vmem:[#allocation3 + $0x40] sm:$0xff] %v5823_v46  ;;  %10759 = vmatprep.mubr.msk.bf16.mxu1 %vm13546_vm0, %v11816_v0  ;;  %v5123_v41 = vadd.f32 %v5073_v4, %v4910_v51  ;;  %v5075_v46 = vld [vmem:[#allocation3 + $0x70] sm:$0xff]  ;;  %v6885_v50 = vsel %vm6814_vm12, %v6875_v38, %v6884_v31  ;;  %v6889_v51 = vrot.slane %v6887_v48, 2  ;;  %v11514_v38 = vld [vmem:[#allocation2 + $0x58] sm:$0xff]  }
 0x3de   : > { %v5601_v57 = vpop.f32.mrf.mxu0  ;;  %v10529_v58 = vpop.f32.mrf.mxu1  ;;  %v6908_v20 = vshll.u32 %v11514_v38, 16 }
 0x3df   : > { %v5824_v42 = vadd.f32 %v5601_v57, %v5120_v54  ;;  %v6892_v54 = vrot.slane %v6890_v36, 3  ;;  %v6129_v58 = vsel %vm5407_vm11, %v6126_v16, %v6128_v45  ;;  %v5078_v16 = vld [vmem:[#allocation3 + $0x88] sm:$0xff] }
 0x3e0   : > { %v10638_v47 = vpop.f32.mrf.mxu0  ;;  %v4913_v60 = vpop.f32.mrf.mxu1 }
 0x3e1   : > { %5874 = vst [vmem:[#allocation3 + $0x48] sm:$0xff] %v5824_v42  ;;  %v5124_v22 = vadd.f32 %v5074_v30, %v4913_v60  ;;  %v11510_v42 = vld [vmem:[#allocation2 + $0x58] sm:$0xff]  }
 0x3e2   : > { %v5606_v8 = vpop.f32.mrf.mxu0  ;;  %10868 = vmatmul.mubr.bf16.gmra.mxu0 %v6867_v61  ;;  %v10530_v5 = vpop.f32.mrf.mxu1  ;;  %v6896_v61 = vshrl.u32 %v11511_v55, 16 }
 0x3e3   : > { %v5825_v6 = vadd.f32 %v5606_v8, %v5121_v43  ;;  %10871 = vmatprep.mubr.msk.bf16.mxu0 %vm13546_vm0, %v11816_v0  ;;  %v6893_v43 = vor.u32 %v6892_v54, %v6889_v51  ;;  %v6130_v5 = vrot.slane %v11510_v42, 2 }
 0x3e4   : > { %v10641_v10 = vpop.f32.mrf.mxu0  ;;  %v4918_v11 = vpop.f32.mrf.mxu1  ;;  %10760 = vmatmul.mubr.bf16.gmra.mxu1 %v6125_v53 }
 0x3e5   : > { %5875 = vst [vmem:[#allocation3 + $0x50] sm:$0xff] %v5825_v6  ;;  %10763 = vmatprep.mubr.msk.bf16.mxu1 %vm13546_vm0, %v11816_v0  ;;  %v5125_v49 = vadd.f32 %v5075_v46, %v4918_v11  ;;  %v5077_v6 = vld [vmem:[#allocation3 + $0x80] sm:$0xff]  ;;  %v6894_v10 = vsel %vm6814_vm12, %v6884_v31, %v6893_v43  ;;  %v6898_v11 = vrot.slane %v6896_v61, 2  ;;  %v11515_v46 = vld [vmem:[#allocation2 + $0x68] sm:$0xff]  }
 0x3e6   : > { %v5609_v3 = vpop.f32.mrf.mxu0  ;;  %v10533_v14 = vpop.f32.mrf.mxu1 }
 0x3e7   : > { %v5826_v15 = vadd.f32 %v5609_v3, %v5122_v12  ;;  %v6901_v12 = vrot.slane %v6899_v62, 3  ;;  %v6131_v14 = vsel %vm5407_vm11, %v6128_v45, %v6130_v5 }
 0x3e8   : > { %v10642_v34 = vpop.f32.mrf.mxu0  ;;  %v4921_v18 = vpop.f32.mrf.mxu1 }
 0x3e9   : > { %5876 = vst [vmem:[#allocation3 + $0x58] sm:$0xff] %v5826_v15  ;;  %v5126_v60 = vadd.f32 %v5076_v44, %v4921_v18  ;;  %v11513_v15 = vld [vmem:[#allocation2 + $0x60] sm:$0xff]  }
 0x3ea   : > { %v5614_v52 = vpop.f32.mrf.mxu0  ;;  %10872 = vmatmul.mubr.bf16.gmra.mxu0 %v6876_v19  ;;  %v10534_v23 = vpop.f32.mrf.mxu1  ;;  %v6905_v19 = vshrl.u32 %v11514_v38, 16 }
 0x3eb   : > { %v5827_v28 = vadd.f32 %v5614_v52, %v5123_v41  ;;  %10875 = vmatprep.mubr.msk.bf16.mxu0 %vm13546_vm0, %v11816_v0  ;;  %v6902_v41 = vor.u32 %v6901_v12, %v6898_v11  ;;  %v6132_v52 = vrot.slane %v11513_v15, 2  ;;  %v5079_v23 = vld [vmem:[#allocation3 + $0x90] sm:$0xff] }
 0x3ec   : > { %v10645_v32 = vpop.f32.mrf.mxu0  ;;  %v4926_v35 = vpop.f32.mrf.mxu1  ;;  %10764 = vmatmul.mubr.bf16.gmra.mxu1 %v6127_v29 }
 0x3ed   : > { %5877 = vst [vmem:[#allocation3 + $0x60] sm:$0xff] %v5827_v28  ;;  %10767 = vmatprep.mubr.msk.bf16.mxu1 %vm13546_vm0, %v11816_v0  ;;  %v5127_v9 = vadd.f32 %v5077_v6, %v4926_v35  ;;  %v6903_v30 = vsel %vm6814_vm12, %v6893_v43, %v6902_v41  ;;  %v6907_v32 = vrot.slane %v6905_v19, 2  ;;  %v6910_v35 = vrot.slane %v6908_v20, 3 }
 0x3ee   : > { %v5617_v37 = vpop.f32.mrf.mxu0  ;;  %v10537_v39 = vpop.f32.mrf.mxu1 }
 0x3ef   : > { %v5828_v40 = vadd.f32 %v5617_v37, %v5124_v22  ;;  %v11516_v22 = vld [vmem:[#allocation2 + $0x60] sm:$0xff]   ;;  %v6133_v37 = vsel %vm5407_vm11, %v6130_v5, %v6132_v52  ;;  %v5080_v39 = vld [vmem:[#allocation3 + $0x98] sm:$0xff] }
 0x3f0   : > { %v10646_v33 = vpop.f32.mrf.mxu0  ;;  %v4929_v24 = vpop.f32.mrf.mxu1 }
 0x3f1   : > { %5878 = vst [vmem:[#allocation3 + $0x68] sm:$0xff] %v5828_v40  ;;  %v5128_v18 = vadd.f32 %v5078_v16, %v4929_v24  ;;  %v6911_v24 = vor.u32 %v6910_v35, %v6907_v32 }
 0x3f2   : > { %v5622_v56 = vpop.f32.mrf.mxu0  ;;  %10876 = vmatmul.mubr.bf16.gmra.mxu0 %v6885_v50  ;;  %v10538_v27 = vpop.f32.mrf.mxu1  ;;  %v6917_v50 = vshll.u32 %v11516_v22, 16 }
 0x3f3   : > { %v5829_v57 = vadd.f32 %v5622_v56, %v5125_v49  ;;  %10879 = vmatprep.mubr.msk.bf16.mxu0 %vm13546_vm0, %v11816_v0  ;;  %v6914_v49 = vshrl.u32 %v11516_v22, 16  ;;  %v5081_v56 = vld [vmem:[#allocation3 + $0xa0] sm:$0xff]  ;;  %v6912_v44 = vsel %vm6814_vm12, %v6902_v41, %v6911_v24 }
 0x3f4   : > { %v10649_v59 = vpop.f32.mrf.mxu0  ;;  %v4934_v47 = vpop.f32.mrf.mxu1  ;;  %10768 = vmatmul.mubr.bf16.gmra.mxu1 %v6129_v58  ;;  %v6134_v58 = vrot.slane %v11515_v46, 2 }
 0x3f5   : > { %5879 = vst [vmem:[#allocation3 + $0x70] sm:$0xff] %v5829_v57  ;;  %10771 = vmatprep.mubr.msk.bf16.mxu1 %vm13546_vm0, %v11816_v0  ;;  %v5129_v25 = vadd.f32 %v5079_v23, %v4934_v47  ;;  %v6916_v59 = vrot.slane %v6914_v49, 2  ;;  %v6919_v47 = vrot.slane %v6917_v50, 3 }
 0x3f6   : > { %v5625_v63 = vpop.f32.mrf.mxu0  ;;  %v10541_v1 = vpop.f32.mrf.mxu1  ;;  %v6135_v62 = vsel %vm5407_vm11, %v6132_v52, %v6134_v58 }
 0x3f7   : > { %v5830_v8 = vadd.f32 %v5625_v63, %v5126_v60  ;;  %v11517_v63 = vld [vmem:[#allocation2 + $0x70] sm:$0xff]   ;;  %v11518_v1 = vld [vmem:[#allocation2 + $0x68] sm:$0xff]  }
 0x3f8   : > { %v10650_v53 = vpop.f32.mrf.mxu0  ;;  %v4937_v7 = vpop.f32.mrf.mxu1  ;;  %v6136_v12 = vrot.slane %v11517_v63, 2  ;;  %v6923_v38 = vshrl.u32 %v11518_v1, 16 }
 0x3f9   : > { %5880 = vst [vmem:[#allocation3 + $0x78] sm:$0xff] %v5830_v8  ;;  %v5130_v33 = vadd.f32 %v5080_v39, %v4937_v7  ;;  %v5082_v8 = vld [vmem:[#allocation3 + $0xa8] sm:$0xff]  ;;  %v6920_v7 = vor.u32 %v6919_v47, %v6916_v59 }
 0x3fa   : > { %v5630_v17 = vpop.f32.mrf.mxu0  ;;  %10880 = vmatmul.mubr.bf16.gmra.mxu0 %v6894_v10  ;;  %v10542_v13 = vpop.f32.mrf.mxu1  ;;  %v6137_v19 = vsel %vm5407_vm11, %v6134_v58, %v6136_v12  ;;  %v6925_v20 = vrot.slane %v6923_v38, 2  ;;  %v5088_v38 = vld [vmem:[#allocation3 + $0xd8] sm:$0xff] }
 0x3fb   : > { %v5831_v3 = vadd.f32 %v5630_v17, %v5127_v9  ;;  %10883 = vmatprep.mubr.msk.bf16.mxu0 %vm13546_vm0, %v11816_v0  ;;  %v6926_v17 = vshll.u32 %v11518_v1, 16  ;;  %v5083_v13 = vld [vmem:[#allocation3 + $0xb0] sm:$0xff]  ;;  %v6921_v16 = vsel %vm6814_vm12, %v6911_v24, %v6920_v7 }
 0x3fc   : > { %v10653_v4 = vpop.f32.mrf.mxu0  ;;  %v4942_v34 = vpop.f32.mrf.mxu1  ;;  %10772 = vmatmul.mubr.bf16.gmra.mxu1 %v6131_v14 }
 0x3fd   : > { %5881 = vst [vmem:[#allocation3 + $0x80] sm:$0xff] %v5831_v3  ;;  %10775 = vmatprep.mubr.msk.bf16.mxu1 %vm13546_vm0, %v11816_v0  ;;  %v5131_v42 = vadd.f32 %v5081_v56, %v4942_v34  ;;  %v11521_v4 = vld [vmem:[#allocation2 + $0x70] sm:$0xff]  }
 0x3fe   : > { %v5633_v2 = vpop.f32.mrf.mxu0  ;;  %v10545_v21 = vpop.f32.mrf.mxu1 }
 0x3ff   : > { %v5832_v26 = vadd.f32 %v5633_v2, %v5128_v18  ;;  %v6928_v2 = vrot.slane %v6926_v17, 3  ;;  %v11520_v21 = vld [vmem:[#allocation2 + $0x78] sm:$0xff]  }
 0x400   : > { %v10654_v28 = vpop.f32.mrf.mxu0  ;;  %v4945_v29 = vpop.f32.mrf.mxu1 }
 0x401   : > { %5882 = vst [vmem:[#allocation3 + $0x88] sm:$0xff] %v5832_v26  ;;  %v5132_v53 = vadd.f32 %v5082_v8, %v4945_v29  ;;  %v5084_v26 = vld [vmem:[#allocation3 + $0xb8] sm:$0xff]  ;;  %v6932_v29 = vshrl.u32 %v11521_v4, 16  ;;  %v6929_v22 = vor.u32 %v6928_v2, %v6925_v20 }
 0x402   : > { %v5638_v31 = vpop.f32.mrf.mxu0  ;;  %10884 = vmatmul.mubr.bf16.gmra.mxu0 %v6903_v30  ;;  %v10546_v48 = vpop.f32.mrf.mxu1 }
 0x403   : > { %v5833_v36 = vadd.f32 %v5638_v31, %v5129_v25  ;;  %10887 = vmatprep.mubr.msk.bf16.mxu0 %vm13546_vm0, %v11816_v0  ;;  %v6935_v25 = vshll.u32 %v11521_v4, 16  ;;  %v6138_v31 = vrot.slane %v11520_v21, 2  ;;  %v5085_v48 = vld [vmem:[#allocation3 + $0xc0] sm:$0xff] }
 0x404   : > { %v10657_v40 = vpop.f32.mrf.mxu0  ;;  %v4950_v45 = vpop.f32.mrf.mxu1  ;;  %10776 = vmatmul.mubr.bf16.gmra.mxu1 %v6133_v37 }
 0x405   : > { %5883 = vst [vmem:[#allocation3 + $0x90] sm:$0xff] %v5833_v36  ;;  %10779 = vmatprep.mubr.msk.bf16.mxu1 %vm13546_vm0, %v11816_v0  ;;  %v5133_v15 = vadd.f32 %v5083_v13, %v4950_v45  ;;  %v6930_v40 = vsel %vm6814_vm12, %v6920_v7, %v6929_v22  ;;  %v6934_v45 = vrot.slane %v6932_v29, 2  ;;  %v6937_v46 = vrot.slane %v6935_v25, 3 }
 0x406   : > { %v5641_v51 = vpop.f32.mrf.mxu0  ;;  %v10549_v54 = vpop.f32.mrf.mxu1 }
 0x407   : > { %v5834_v55 = vadd.f32 %v5641_v51, %v5130_v33  ;;  %v11523_v33 = vld [vmem:[#allocation2 + $0x78] sm:$0xff]   ;;  %v6139_v51 = vsel %vm5407_vm11, %v6136_v12, %v6138_v31  ;;  %v11522_v54 = vld [vmem:[#allocation2 + $0x80] sm:$0xff]   ;;  %v6938_v58 = vor.u32 %v6937_v46, %v6934_v45  ;;  %v11524_v12 = vld [vmem:[#allocation2 + $0x88] sm:$0xff]  }
 0x408   : > { %v10658_v27 = vpop.f32.mrf.mxu0  ;;  %v4953_v57 = vpop.f32.mrf.mxu1 }
 0x409   : > { %5884 = vst [vmem:[#allocation3 + $0x98] sm:$0xff] %v5834_v55  ;;  %v5134_v28 = vadd.f32 %v5084_v26, %v4953_v57  ;;  %v5086_v55 = vld [vmem:[#allocation3 + $0xc8] sm:$0xff]  ;;  %v6939_v8 = vsel %vm6814_vm12, %v6929_v22, %v6938_v58 }
 0x40a   : > { %v5646_v60 = vpop.f32.mrf.mxu0  ;;  %10888 = vmatmul.mubr.bf16.gmra.mxu0 %v6912_v44  ;;  %v10550_v43 = vpop.f32.mrf.mxu1  ;;  %v6944_v44 = vshll.u32 %v11523_v33, 16  ;;  %v5090_v22 = vld [vmem:[#allocation3 + $0xe8] sm:$0xff] }
 0x40b   : > { %v5835_v61 = vadd.f32 %v5646_v60, %v5131_v42  ;;  %10891 = vmatprep.mubr.msk.bf16.mxu0 %vm13546_vm0, %v11816_v0  ;;  %v6941_v42 = vshrl.u32 %v11523_v33, 16  ;;  %v6140_v43 = vrot.slane %v11522_v54, 2 }
 0x40c   : > { %v10661_v5 = vpop.f32.mrf.mxu0  ;;  %v4958_v6 = vpop.f32.mrf.mxu1  ;;  %10780 = vmatmul.mubr.bf16.gmra.mxu1 %v6135_v62 }
 0x40d   : > { %5885 = vst [vmem:[#allocation3 + $0xa0] sm:$0xff] %v5835_v61  ;;  %10783 = vmatprep.mubr.msk.bf16.mxu1 %vm13546_vm0, %v11816_v0  ;;  %v5135_v39 = vadd.f32 %v5085_v48, %v4958_v6  ;;  %v5087_v61 = vld [vmem:[#allocation3 + $0xd0] sm:$0xff]  ;;  %v6943_v5 = vrot.slane %v6941_v42, 2  ;;  %v6946_v6 = vrot.slane %v6944_v44, 3 }
 0x40e   : > { %v5649_v9 = vpop.f32.mrf.mxu0  ;;  %v10553_v10 = vpop.f32.mrf.mxu1 }
 0x40f   : > { %v5836_v11 = vadd.f32 %v5649_v9, %v5132_v53  ;;  %v11525_v53 = vld [vmem:[#allocation2 + $0x80] sm:$0xff]  }
 0x410   : > { %v10662_v3 = vpop.f32.mrf.mxu0  ;;  %v4961_v14 = vpop.f32.mrf.mxu1 }
 0x411   : > { %5886 = vst [vmem:[#allocation3 + $0xa8] sm:$0xff] %v5836_v11  ;;  %v5136_v57 = vadd.f32 %v5086_v55, %v4961_v14  ;;  %v6141_v11 = vsel %vm5407_vm11, %v6138_v31, %v6140_v43  ;;  %v6947_v14 = vor.u32 %v6946_v6, %v6943_v5 }
 0x412   : > { %v5654_v34 = vpop.f32.mrf.mxu0  ;;  %10892 = vmatmul.mubr.bf16.gmra.mxu0 %v6921_v16  ;;  %v10554_v18 = vpop.f32.mrf.mxu1  ;;  %v6953_v16 = vshll.u32 %v11525_v53, 16 }
 0x413   : > { %v5837_v41 = vadd.f32 %v5654_v34, %v5133_v15  ;;  %10895 = vmatprep.mubr.msk.bf16.mxu0 %vm13546_vm0, %v11816_v0  ;;  %v6950_v15 = vshrl.u32 %v11525_v53, 16  ;;  %v6948_v26 = vsel %vm6814_vm12, %v6938_v58, %v6947_v14 }
 0x414   : > { %v10665_v52 = vpop.f32.mrf.mxu0  ;;  %v4966_v23 = vpop.f32.mrf.mxu1  ;;  %10784 = vmatmul.mubr.bf16.gmra.mxu1 %v6137_v19  ;;  %v5089_v19 = vld [vmem:[#allocation3 + $0xe0] sm:$0xff] }
 0x415   : > { %5887 = vst [vmem:[#allocation3 + $0xb0] sm:$0xff] %v5837_v41  ;;  %10787 = vmatprep.mubr.msk.bf16.mxu1 %vm13546_vm0, %v11816_v0  ;;  %v5137_v1 = vadd.f32 %v5087_v61, %v4966_v23  ;;  %v6142_v41 = vrot.slane %v11524_v12, 2  ;;  %v6952_v52 = vrot.slane %v6950_v15, 2  ;;  %v6955_v23 = vrot.slane %v6953_v16, 3 }
 0x416   : > { %v5657_v30 = vpop.f32.mrf.mxu0  ;;  %v10557_v32 = vpop.f32.mrf.mxu1 }
 0x417   : > { %v5838_v35 = vadd.f32 %v5657_v30, %v5134_v28  ;;  %v11528_v28 = vld [vmem:[#allocation2 + $0x88] sm:$0xff]   ;;  %v6143_v32 = vsel %vm5407_vm11, %v6140_v43, %v6142_v41 }
 0x418   : > { %v10666_v36 = vpop.f32.mrf.mxu0  ;;  %v4969_v37 = vpop.f32.mrf.mxu1 }
 0x419   : > { %5888 = vst [vmem:[#allocation3 + $0xb8] sm:$0xff] %v5838_v35  ;;  %v5138_v3 = vadd.f32 %v5088_v38, %v4969_v37  ;;  %v11527_v35 = vld [vmem:[#allocation2 + $0x90] sm:$0xff]   ;;  %v6956_v37 = vor.u32 %v6955_v23, %v6952_v52 }
 0x41a   : > { %v5662_v24 = vpop.f32.mrf.mxu0  ;;  %10896 = vmatmul.mubr.bf16.gmra.mxu0 %v6930_v40  ;;  %v10558_v49 = vpop.f32.mrf.mxu1  ;;  %v6962_v40 = vshll.u32 %v11528_v28, 16 }
 0x41b   : > { %v5839_v50 = vadd.f32 %v5662_v24, %v5135_v39  ;;  %10899 = vmatprep.mubr.msk.bf16.mxu0 %vm13546_vm0, %v11816_v0  ;;  %v6959_v39 = vshrl.u32 %v11528_v28, 16  ;;  %v6144_v24 = vrot.slane %v11527_v35, 2  ;;  %v5091_v49 = vld [vmem:[#allocation3 + $0xf0] sm:$0xff]  ;;  %v6957_v55 = vsel %vm6814_vm12, %v6947_v14, %v6956_v37 }
 0x41c   : > { %v10669_v56 = vpop.f32.mrf.mxu0  ;;  %v4974_v27 = vpop.f32.mrf.mxu1  ;;  %10788 = vmatmul.mubr.bf16.gmra.mxu1 %v6139_v51 }
 0x41d   : > { %5889 = vst [vmem:[#allocation3 + $0xc0] sm:$0xff] %v5839_v50  ;;  %10791 = vmatprep.mubr.msk.bf16.mxu1 %vm13546_vm0, %v11816_v0  ;;  %v5139_v21 = vadd.f32 %v5089_v19, %v4974_v27  ;;  %v6961_v56 = vrot.slane %v6959_v39, 2  ;;  %v6964_v27 = vrot.slane %v6962_v40, 3 }
 0x41e   : > { %v5665_v59 = vpop.f32.mrf.mxu0  ;;  %v10561_v47 = vpop.f32.mrf.mxu1 }
 0x41f   : > { %v5840_v60 = vadd.f32 %v5665_v59, %v5136_v57  ;;  %v11530_v57 = vld [vmem:[#allocation2 + $0x90] sm:$0xff]   ;;  %v6145_v59 = vsel %vm5407_vm11, %v6142_v41, %v6144_v24  ;;  %v11529_v47 = vld [vmem:[#allocation2 + $0x98] sm:$0xff]  }
 0x420   : > { %v10670_v62 = vpop.f32.mrf.mxu0  ;;  %v4977_v63 = vpop.f32.mrf.mxu1 }
 0x421   : > { %5890 = vst [vmem:[#allocation3 + $0xc8] sm:$0xff] %v5840_v60  ;;  %v5140_v36 = vadd.f32 %v5090_v22, %v4977_v63  ;;  %v5092_v60 = vld [vmem:[#allocation3 + $0xf8] sm:$0xff]  ;;  %v6965_v63 = vor.u32 %v6964_v27, %v6961_v56 }
 0x422   : > { %v5670_v7 = vpop.f32.mrf.mxu0  ;;  %10900 = vmatmul.mubr.bf16.gmra.mxu0 %v6939_v8  ;;  %v10562_v9 = vpop.f32.mrf.mxu1  ;;  %v6971_v8 = vshll.u32 %v11530_v57, 16 }
 0x423   : > { %v5841_v10 = vadd.f32 %v5670_v7, %v5137_v1  ;;  %10903 = vmatprep.mubr.msk.bf16.mxu0 %vm13546_vm0, %v11816_v0  ;;  %v6968_v1 = vshrl.u32 %v11530_v57, 16  ;;  %v6146_v7 = vrot.slane %v11529_v47, 2  ;;  %v5093_v9 = vld [vmem:[#allocation3 + $0x100] sm:$0xff]  ;;  %v6966_v38 = vsel %vm6814_vm12, %v6956_v37, %v6965_v63 }
 0x424   : > { %v10673_v17 = vpop.f32.mrf.mxu0  ;;  %v4982_v13 = vpop.f32.mrf.mxu1  ;;  %10792 = vmatmul.mubr.bf16.gmra.mxu1 %v6141_v11 }
 0x425   : > { %5891 = vst [vmem:[#allocation3 + $0xd0] sm:$0xff] %v5841_v10  ;;  %10795 = vmatprep.mubr.msk.bf16.mxu1 %vm13546_vm0, %v11816_v0  ;;  %v5141_v54 = vadd.f32 %v5091_v49, %v4982_v13  ;;  %v6970_v17 = vrot.slane %v6968_v1, 2  ;;  %v6973_v13 = vrot.slane %v6971_v8, 3 }
 0x426   : > { %v5673_v4 = vpop.f32.mrf.mxu0  ;;  %v10565_v34 = vpop.f32.mrf.mxu1 }
 0x427   : > { %v5842_v18 = vadd.f32 %v5673_v4, %v5138_v3  ;;  %v11532_v3 = vld [vmem:[#allocation2 + $0x98] sm:$0xff]   ;;  %v6147_v4 = vsel %vm5407_vm11, %v6144_v24, %v6146_v7  ;;  %v11531_v34 = vld [vmem:[#allocation2 + $0xa0] sm:$0xff]  }
 0x428   : > { %v10674_v20 = vpop.f32.mrf.mxu0  ;;  %v4985_v2 = vpop.f32.mrf.mxu1 }
 0x429   : > { %5892 = vst [vmem:[#allocation3 + $0xd8] sm:$0xff] %v5842_v18  ;;  %v5142_v62 = vadd.f32 %v5092_v60, %v4985_v2  ;;  %v5094_v18 = vld [vmem:[#allocation3 + $0x108] sm:$0xff]  ;;  %v6974_v2 = vor.u32 %v6973_v13, %v6970_v17 }
 0x42a   : > { %v5678_v29 = vpop.f32.mrf.mxu0  ;;  %10904 = vmatmul.mubr.bf16.gmra.mxu0 %v6948_v26  ;;  %v10566_v25 = vpop.f32.mrf.mxu1  ;;  %v6980_v26 = vshll.u32 %v11532_v3, 16 }
 0x42b   : > { %v5843_v30 = vadd.f32 %v5678_v29, %v5139_v21  ;;  %10907 = vmatprep.mubr.msk.bf16.mxu0 %vm13546_vm0, %v11816_v0  ;;  %v6977_v21 = vshrl.u32 %v11532_v3, 16  ;;  %v6148_v29 = vrot.slane %v11531_v34, 2  ;;  %v5095_v25 = vld [vmem:[#allocation3 + $0x110] sm:$0xff]  ;;  %v6975_v22 = vsel %vm6814_vm12, %v6965_v63, %v6974_v2 }
 0x42c   : > { %v10677_v31 = vpop.f32.mrf.mxu0  ;;  %v4990_v48 = vpop.f32.mrf.mxu1  ;;  %10796 = vmatmul.mubr.bf16.gmra.mxu1 %v6143_v32 }
 0x42d   : > { %5893 = vst [vmem:[#allocation3 + $0xe0] sm:$0xff] %v5843_v30  ;;  %10799 = vmatprep.mubr.msk.bf16.mxu1 %vm13546_vm0, %v11816_v0  ;;  %v5143_v12 = vadd.f32 %v5093_v9, %v4990_v48  ;;  %v6979_v31 = vrot.slane %v6977_v21, 2  ;;  %v6982_v48 = vrot.slane %v6980_v26, 3 }
 0x42e   : > { %v5681_v45 = vpop.f32.mrf.mxu0  ;;  %v10569_v46 = vpop.f32.mrf.mxu1 }
 0x42f   : > { %v5844_v33 = vadd.f32 %v5681_v45, %v5140_v36  ;;  %v11535_v36 = vld [vmem:[#allocation2 + $0xa0] sm:$0xff]   ;;  %v6149_v45 = vsel %vm5407_vm11, %v6146_v7, %v6148_v29  ;;  %v11534_v46 = vld [vmem:[#allocation2 + $0xa8] sm:$0xff]  }
 0x430   : > { %v10678_v50 = vpop.f32.mrf.mxu0  ;;  %v4993_v51 = vpop.f32.mrf.mxu1 }
 0x431   : > { %5894 = vst [vmem:[#allocation3 + $0xe8] sm:$0xff] %v5844_v33  ;;  %v5144_v20 = vadd.f32 %v5094_v18, %v4993_v51  ;;  %v5096_v33 = vld [vmem:[#allocation3 + $0x118] sm:$0xff]  ;;  %v6983_v51 = vor.u32 %v6982_v48, %v6979_v31 }
 0x432   : > { %v5686_v58 = vpop.f32.mrf.mxu0  ;;  %10908 = vmatmul.mubr.bf16.gmra.mxu0 %v6957_v55  ;;  %v10570_v42 = vpop.f32.mrf.mxu1  ;;  %v6989_v55 = vshll.u32 %v11535_v36, 16 }
 0x433   : > { %v5845_v44 = vadd.f32 %v5686_v58, %v5141_v54  ;;  %10911 = vmatprep.mubr.msk.bf16.mxu0 %vm13546_vm0, %v11816_v0  ;;  %v6986_v54 = vshrl.u32 %v11535_v36, 16  ;;  %v6150_v58 = vrot.slane %v11534_v46, 2  ;;  %v5097_v42 = vld [vmem:[#allocation3 + $0x120] sm:$0xff]  ;;  %v6984_v60 = vsel %vm6814_vm12, %v6974_v2, %v6983_v51 }
 0x434   : > { %v10681_v43 = vpop.f32.mrf.mxu0  ;;  %v4998_v61 = vpop.f32.mrf.mxu1  ;;  %10800 = vmatmul.mubr.bf16.gmra.mxu1 %v6145_v59 }
 0x435   : > { %5895 = vst [vmem:[#allocation3 + $0xf0] sm:$0xff] %v5845_v44  ;;  %10803 = vmatprep.mubr.msk.bf16.mxu1 %vm13546_vm0, %v11816_v0  ;;  %v5145_v35 = vadd.f32 %v5095_v25, %v4998_v61  ;;  %v6988_v43 = vrot.slane %v6986_v54, 2  ;;  %v6991_v61 = vrot.slane %v6989_v55, 3 }
 0x436   : > { %v5689_v5 = vpop.f32.mrf.mxu0  ;;  %v10573_v6 = vpop.f32.mrf.mxu1 }
 0x437   : > { %v5846_v53 = vadd.f32 %v5689_v5, %v5142_v62  ;;  %v11537_v62 = vld [vmem:[#allocation2 + $0xa8] sm:$0xff]   ;;  %v6151_v5 = vsel %vm5407_vm11, %v6148_v29, %v6150_v58  ;;  %v11536_v6 = vld [vmem:[#allocation2 + $0xb0] sm:$0xff]  }
 0x438   : > { %v10682_v10 = vpop.f32.mrf.mxu0  ;;  %v5001_v11 = vpop.f32.mrf.mxu1 }
 0x439   : > { %5896 = vst [vmem:[#allocation3 + $0xf8] sm:$0xff] %v5846_v53  ;;  %v5146_v50 = vadd.f32 %v5096_v33, %v5001_v11  ;;  %v5098_v53 = vld [vmem:[#allocation3 + $0x128] sm:$0xff]  ;;  %v6992_v11 = vor.u32 %v6991_v61, %v6988_v43 }
 0x43a   : > { %v5694_v14 = vpop.f32.mrf.mxu0  ;;  %10912 = vmatmul.mubr.bf16.gmra.mxu0 %v6966_v38  ;;  %v10574_v15 = vpop.f32.mrf.mxu1  ;;  %v6998_v38 = vshll.u32 %v11537_v62, 16 }
 0x43b   : > { %v5847_v16 = vadd.f32 %v5694_v14, %v5143_v12  ;;  %10915 = vmatprep.mubr.msk.bf16.mxu0 %vm13546_vm0, %v11816_v0  ;;  %v6995_v12 = vshrl.u32 %v11537_v62, 16  ;;  %v6152_v14 = vrot.slane %v11536_v6, 2  ;;  %v5099_v15 = vld [vmem:[#allocation3 + $0x130] sm:$0xff]  ;;  %v6993_v18 = vsel %vm6814_vm12, %v6983_v51, %v6992_v11 }
 0x43c   : > { %v10685_v41 = vpop.f32.mrf.mxu0  ;;  %v5006_v19 = vpop.f32.mrf.mxu1  ;;  %10804 = vmatmul.mubr.bf16.gmra.mxu1 %v6147_v4 }
 0x43d   : > { %5897 = vst [vmem:[#allocation3 + $0x100] sm:$0xff] %v5847_v16  ;;  %10807 = vmatprep.mubr.msk.bf16.mxu1 %vm13546_vm0, %v11816_v0  ;;  %v5147_v47 = vadd.f32 %v5097_v42, %v5006_v19  ;;  %v6997_v41 = vrot.slane %v6995_v12, 2  ;;  %v7000_v19 = vrot.slane %v6998_v38, 3 }
 0x43e   : > { %v5697_v52 = vpop.f32.mrf.mxu0  ;;  %v10577_v23 = vpop.f32.mrf.mxu1 }
 0x43f   : > { %v5848_v28 = vadd.f32 %v5697_v52, %v5144_v20  ;;  %v11539_v20 = vld [vmem:[#allocation2 + $0xb0] sm:$0xff]   ;;  %v6153_v52 = vsel %vm5407_vm11, %v6150_v58, %v6152_v14  ;;  %v11538_v23 = vld [vmem:[#allocation2 + $0xb8] sm:$0xff]  }
 0x440   : > { %v10686_v30 = vpop.f32.mrf.mxu0  ;;  %v5009_v32 = vpop.f32.mrf.mxu1 }
 0x441   : > { %5898 = vst [vmem:[#allocation3 + $0x108] sm:$0xff] %v5848_v28  ;;  %v5148_v10 = vadd.f32 %v5098_v53, %v5009_v32  ;;  %v5100_v28 = vld [vmem:[#allocation3 + $0x138] sm:$0xff]  ;;  %v7001_v32 = vor.u32 %v7000_v19, %v6997_v41 }
 0x442   : > { %v5702_v37 = vpop.f32.mrf.mxu0  ;;  %10916 = vmatmul.mubr.bf16.gmra.mxu0 %v6975_v22  ;;  %v10578_v39 = vpop.f32.mrf.mxu1  ;;  %v7007_v22 = vshll.u32 %v11539_v20, 16 }
 0x443   : > { %v5849_v40 = vadd.f32 %v5702_v37, %v5145_v35  ;;  %10919 = vmatprep.mubr.msk.bf16.mxu0 %vm13546_vm0, %v11816_v0  ;;  %v7004_v35 = vshrl.u32 %v11539_v20, 16  ;;  %v6154_v37 = vrot.slane %v11538_v23, 2  ;;  %v5101_v39 = vld [vmem:[#allocation3 + $0x140] sm:$0xff]  ;;  %v7002_v33 = vsel %vm6814_vm12, %v6992_v11, %v7001_v32  ;;  %v11546_v23 = vld [vmem:[#allocation2 + $0xc8] sm:$0xff]  }
 0x444   : > { %v10689_v24 = vpop.f32.mrf.mxu0  ;;  %v5014_v49 = vpop.f32.mrf.mxu1  ;;  %10808 = vmatmul.mubr.bf16.gmra.mxu1 %v6149_v45 }
 0x445   : > { %5899 = vst [vmem:[#allocation3 + $0x110] sm:$0xff] %v5849_v40  ;;  %10811 = vmatprep.mubr.msk.bf16.mxu1 %vm13546_vm0, %v11816_v0  ;;  %v5149_v34 = vadd.f32 %v5099_v15, %v5014_v49  ;;  %v7006_v24 = vrot.slane %v7004_v35, 2  ;;  %v7009_v49 = vrot.slane %v7007_v22, 3 }
 0x446   : > { %v5705_v56 = vpop.f32.mrf.mxu0  ;;  %v10581_v27 = vpop.f32.mrf.mxu1 }
 0x447   : > { %v5850_v57 = vadd.f32 %v5705_v56, %v5146_v50  ;;  %v11542_v50 = vld [vmem:[#allocation2 + $0xb8] sm:$0xff]   ;;  %v6155_v56 = vsel %vm5407_vm11, %v6152_v14, %v6154_v37  ;;  %v11541_v27 = vld [vmem:[#allocation2 + $0xc0] sm:$0xff]  }
 0x448   : > { %v10690_v44 = vpop.f32.mrf.mxu0  ;;  %v5017_v59 = vpop.f32.mrf.mxu1 }
 0x449   : > { %5900 = vst [vmem:[#allocation3 + $0x118] sm:$0xff] %v5850_v57  ;;  %v5150_v30 = vadd.f32 %v5100_v28, %v5017_v59  ;;  %v5102_v57 = vld [vmem:[#allocation3 + $0x148] sm:$0xff]  ;;  %v7010_v59 = vor.u32 %v7009_v49, %v7006_v24  ;;  %v7034_v24 = vshll.u32 %v11546_v23, 16 }
 0x44a   : > { %v5710_v63 = vpop.f32.mrf.mxu0  ;;  %10920 = vmatmul.mubr.bf16.gmra.mxu0 %v6984_v60  ;;  %v10582_v1 = vpop.f32.mrf.mxu1  ;;  %v7016_v60 = vshll.u32 %v11542_v50, 16 }
 0x44b   : > { %v5851_v8 = vadd.f32 %v5710_v63, %v5147_v47  ;;  %10923 = vmatprep.mubr.msk.bf16.mxu0 %vm13546_vm0, %v11816_v0  ;;  %v7013_v47 = vshrl.u32 %v11542_v50, 16  ;;  %v6156_v63 = vrot.slane %v11541_v27, 2  ;;  %v5103_v1 = vld [vmem:[#allocation3 + $0x150] sm:$0xff]  ;;  %v7011_v53 = vsel %vm6814_vm12, %v7001_v32, %v7010_v59  ;;  %v11545_v32 = vld [vmem:[#allocation2 + $0xd0] ss:$0 sps:$4 sm:$0x33]  }
 0x44c   : > { %v10693_v7 = vpop.f32.mrf.mxu0  ;;  %v5022_v9 = vpop.f32.mrf.mxu1  ;;  %10812 = vmatmul.mubr.bf16.gmra.mxu1 %v6151_v5 }
 0x44d   : > { %5901 = vst [vmem:[#allocation3 + $0x120] sm:$0xff] %v5851_v8  ;;  %10815 = vmatprep.mubr.msk.bf16.mxu1 %vm13546_vm0, %v11816_v0  ;;  %v5151_v46 = vadd.f32 %v5101_v39, %v5022_v9  ;;  %v7015_v7 = vrot.slane %v7013_v47, 2  ;;  %v7018_v9 = vrot.slane %v7016_v60, 3 }
 0x44e   : > { %v5713_v17 = vpop.f32.mrf.mxu0  ;;  %v10585_v13 = vpop.f32.mrf.mxu1 }
 0x44f   : > { %v5852_v3 = vadd.f32 %v5713_v17, %v5148_v10  ;;  %v11544_v10 = vld [vmem:[#allocation2 + $0xc0] sm:$0xff]   ;;  %v6157_v17 = vsel %vm5407_vm11, %v6154_v37, %v6156_v63  ;;  %v11543_v13 = vld [vmem:[#allocation2 + $0xc8] sm:$0xff]  }
 0x450   : > { %v10694_v16 = vpop.f32.mrf.mxu0  ;;  %v5025_v4 = vpop.f32.mrf.mxu1 }
 0x451   : > { %5902 = vst [vmem:[#allocation3 + $0x128] sm:$0xff] %v5852_v3  ;;  %v5152_v44 = vadd.f32 %v5102_v57, %v5025_v4  ;;  %v5104_v3 = vld [vmem:[#allocation3 + $0x158] sm:$0xff]  ;;  %v7019_v4 = vor.u32 %v7018_v9, %v7015_v7 }
 0x452   : > { %v5718_v2 = vpop.f32.mrf.mxu0  ;;  %10924 = vmatmul.mubr.bf16.gmra.mxu0 %v6993_v18  ;;  %v10586_v21 = vpop.f32.mrf.mxu1  ;;  %v7025_v18 = vshll.u32 %v11544_v10, 16  ;;  %v11548_v7 = vld [vmem:[#allocation2 + $0x10] sm:$0xff]  }
 0x453   : > { %v5853_v26 = vadd.f32 %v5718_v2, %v5149_v34  ;;  %10927 = vmatprep.mubr.msk.bf16.mxu0 %vm13546_vm0, %v11816_v0  ;;  %v7022_v34 = vshrl.u32 %v11544_v10, 16  ;;  %v6158_v2 = vrot.slane %v11543_v13, 2  ;;  %v5105_v21 = vld [vmem:[#allocation3 + $0x160] sm:$0xff] }
 0x454   : > { %v10697_v29 = vpop.f32.mrf.mxu0  ;;  %v5030_v25 = vpop.f32.mrf.mxu1  ;;  %10816 = vmatmul.mubr.bf16.gmra.mxu1 %v6153_v52  ;;  %v5109_v13 = vld [vmem:[#allocation3 + $0x180] sm:$0xff] }
 0x455   : > { %5903 = vst [vmem:[#allocation3 + $0x130] sm:$0xff] %v5853_v26  ;;  %10819 = vmatprep.mubr.msk.bf16.mxu1 %vm13546_vm0, %v11816_v0  ;;  %v5153_v6 = vadd.f32 %v5103_v1, %v5030_v25  ;;  %v7020_v29 = vsel %vm6814_vm12, %v7010_v59, %v7019_v4  ;;  %v7024_v25 = vrot.slane %v7022_v34, 2  ;;  %v7036_v59 = vrot.slane %v7034_v24, 3  ;;  %v5108_v1 = vld [vmem:[#allocation3 + $0x178] sm:$0xff] }
 0x456   : > { %v5721_v31 = vpop.f32.mrf.mxu0  ;;  %v10589_v48 = vpop.f32.mrf.mxu1 }
 0x457   : > { %v5854_v36 = vadd.f32 %v5721_v31, %v5150_v30  ;;  %v7027_v30 = vrot.slane %v7025_v18, 3  ;;  %v6159_v48 = vsel %vm5407_vm11, %v6156_v63, %v6158_v2 }
 0x458   : > { %v10698_v40 = vpop.f32.mrf.mxu0  ;;  %v5033_v45 = vpop.f32.mrf.mxu1 }
 0x459   : > { %5904 = vst [vmem:[#allocation3 + $0x138] sm:$0xff] %v5854_v36  ;;  %v5154_v16 = vadd.f32 %v5104_v3, %v5033_v45  ;;  %v5106_v36 = vld [vmem:[#allocation3 + $0x168] sm:$0xff]  ;;  %v7031_v40 = vshrl.u32 %v11546_v23, 16 }
 0x45a   : > { %v5726_v51 = vpop.f32.mrf.mxu0  ;;  %10928 = vmatmul.mubr.bf16.gmra.mxu0 %v7002_v33  ;;  %v10590_v54 = vpop.f32.mrf.mxu1  ;;  %v6160_v33 = vrot.slane %v11545_v32, 2 }
 0x45b   : > { %v5855_v55 = vadd.f32 %v5726_v51, %v5151_v46  ;;  %10931 = vmatprep.mubr.msk.bf16.mxu0 %vm13546_vm0, %v11816_v0  ;;  %v7028_v46 = vor.u32 %v7027_v30, %v7024_v25  ;;  %v11549_v54 = vld [vmem:[#allocation2 + $0xd0] ss:$0 sps:$4 sm:$0x77]   ;;  %v7033_v57 = vrot.slane %v7031_v40, 2 }
 0x45c   : > { %v10701_v58 = vpop.f32.mrf.mxu0  ;;  %v5038_v42 = vpop.f32.mrf.mxu1  ;;  %10820 = vmatmul.mubr.bf16.gmra.mxu1 %v6155_v56  ;;  %v7043_v63 = vshll.u32 %v11549_v54, 16 }
 0x45d   : > { %5905 = vst [vmem:[#allocation3 + $0x140] sm:$0xff] %v5855_v55  ;;  %10823 = vmatprep.mubr.msk.bf16.mxu1 %vm13546_vm0, %v11816_v0  ;;  %v5155_v28 = vadd.f32 %v5105_v21, %v5038_v42  ;;  %v5107_v55 = vld [vmem:[#allocation3 + $0x170] sm:$0xff]  ;;  %v7029_v42 = vsel %vm6814_vm12, %v7019_v4, %v7028_v46  ;;  %v7702_v4 = vrot.slane %v11548_v7, 3  ;;  %v5110_v21 = vld [vmem:[#allocation3 + $0x188] sm:$0xff]  ;;  %v6472_v7 = vld [vmem:[#allocation3 + $0x20] sm:$0xff] }
 0x45e   : > { %v5729_v43 = vpop.f32.mrf.mxu0  ;;  %v10593_v61 = vpop.f32.mrf.mxu1 }
 0x45f   : > { %v5856_v62 = vadd.f32 %v5729_v43, %v5152_v44  ;;  %v6161_v44 = vsel %vm5407_vm11, %v6158_v2, %v6160_v33  ;;  %v11547_v61 = vld [vmem:[#allocation2 + $0x8] sm:$0xf8]   ;;  %v11550_v2 = vld [vmem:[#allocation2 + $0x18] sm:$0xff]  }
 0x460   : > { %v10702_v8 = vpop.f32.mrf.mxu0  ;;  %v5041_v5 = vpop.f32.mrf.mxu1  ;;  %v7704_v32 = vrot.slane %v11550_v2, 3 }
 0x461   : > { %5906 = vst [vmem:[#allocation3 + $0x148] sm:$0xff] %v5856_v62  ;;  %v5156_v45 = vadd.f32 %v5106_v36, %v5041_v5  ;;  %v7040_v62 = vshrl.u32 %v11549_v54, 16 }
 0x462   : > { %v5734_v11 = vpop.f32.mrf.mxu0  ;;  %10932 = vmatmul.mubr.bf16.gmra.mxu0 %v7011_v53  ;;  %v10594_v12 = vpop.f32.mrf.mxu1  ;;  %v7037_v53 = vor.u32 %v7036_v59, %v7033_v57  ;;  %v7705_v40 = vsel %vm7700_vm13, %v7702_v4, %v7704_v32 }
 0x463   : > { %v5857_v38 = vadd.f32 %v5734_v11, %v5153_v6  ;;  %10935 = vmatprep.mubr.msk.bf16.mxu0 %vm13546_vm0, %v11816_v0  ;;  %v7701_v12 = vrot.slane %v11547_v61, 3  ;;  %v6471_v61 = vld [vmem:[#allocation3 + $0x18] sm:$0xff] }
 0x464   : > { %v10705_v14 = vpop.f32.mrf.mxu0  ;;  %v5046_v15 = vpop.f32.mrf.mxu1  ;;  %10824 = vmatmul.mubr.bf16.gmra.mxu1 %v6157_v17  ;;  %v7045_v17 = vrot.slane %v7043_v63, 3 }
 0x465   : > { %5907 = vst [vmem:[#allocation3 + $0x150] sm:$0xff] %v5857_v38  ;;  %10827 = vmatprep.mubr.msk.bf16.mxu1 %vm13546_vm0, %v11816_v0  ;;  %v5157_v58 = vadd.f32 %v5107_v55, %v5046_v15  ;;  %v7042_v38 = vrot.slane %v7040_v62, 2 }
 0x466   : > { %v5737_v41 = vpop.f32.mrf.mxu0  ;;  %v10597_v19 = vpop.f32.mrf.mxu1 }
 0x467   : > { %v5858_v20 = vadd.f32 %v5737_v41, %v5154_v16  ;;  %v7038_v16 = vsel %vm6814_vm12, %v7028_v46, %v7037_v53  ;;  %v7703_v19 = vsel %vm7700_vm13, %v7701_v12, %v7702_v4  ;;  %v6469_v46 = vld [vmem:[#allocation3 + $0x8] sm:$0xff] }
 0x468   : > { %v10706_v26 = vpop.f32.mrf.mxu0  ;;  %v5049_v52 = vpop.f32.mrf.mxu1 }
 0x469   : > { %5908 = vst [vmem:[#allocation3 + $0x158] sm:$0xff] %v5858_v20  ;;  %v5158_v6 = vadd.f32 %v5108_v1, %v5049_v52  ;;  %v7046_v20 = vor.u32 %v7045_v17, %v7042_v38 }
 0x46a   : > { %v5742_v35 = vpop.f32.mrf.mxu0  ;;  %10936 = vmatmul.mubr.bf16.gmra.mxu0 %v7020_v29  ;;  %v10598_v22 = vpop.f32.mrf.mxu1 }
 0x46b   : > { %v5859_v31 = vadd.f32 %v5742_v35, %v5155_v28  ;;  %10939 = vmatprep.mubr.msk.bf16.mxu0 %vm13546_vm0, %v11816_v0  ;;  %v7047_v30 = vsel %vm6814_vm12, %v7037_v53, %v7046_v20  ;;  %v6468_v35 = vld [vmem:[#allocation3] sm:$0xff]  ;;  %v6474_v20 = vld [vmem:[#allocation3 + $0x30] sm:$0xff] }
 0x46c   : > { %v10709_v37 = vpop.f32.mrf.mxu0  ;;  %v5054_v39 = vpop.f32.mrf.mxu1  ;;  %10828 = vmatmul.mubr.bf16.gmra.mxu1 %v6159_v48 }
 0x46d   : > { %5909 = vst [vmem:[#allocation3 + $0x160] sm:$0xff] %v5859_v31  ;;  %10831 = vmatprep.mubr.msk.bf16.mxu1 %vm13546_vm0, %v11816_v0  ;;  %v5159_v15 = vadd.f32 %v5109_v13, %v5054_v39 }
 0x46e   : > { %v5745_v49 = vpop.f32.mrf.mxu0  ;;  %v10601_v50 = vpop.f32.mrf.mxu1 }
 0x46f   : > { %v5860_v51 = vadd.f32 %v5745_v49, %v5156_v45  ;;  %v11551_v45 = vld [vmem:[#allocation2 + $0x20] sm:$0xff]  }
 0x470   : > { %v10710_v56 = vpop.f32.mrf.mxu0  ;;  %v5057_v27 = vpop.f32.mrf.mxu1  ;;  %v7706_v55 = vrot.slane %v11551_v45, 3 }
 0x471   : > { %5910 = vst [vmem:[#allocation3 + $0x168] sm:$0xff] %v5860_v51  ;;  %v5160_v23 = vadd.f32 %v5110_v21, %v5057_v27  ;;  %v6470_v56 = vld [vmem:[#allocation3 + $0x10] sm:$0xff] }
 0x472   : > { %v5750_v47 = vpop.f32.mrf.mxu0  ;;  %10940 = vmatmul.mubr.bf16.gmra.mxu0 %v7029_v42  ;;  %v10602_v60 = vpop.f32.mrf.mxu1 }
 0x473   : > { %v5861_v43 = vadd.f32 %v5750_v47, %v5157_v58  ;;  %10943 = vmatprep.mubr.msk.bf16.mxu0 %vm13546_vm0, %v11816_v0  ;;  %v7707_v47 = vsel %vm7700_vm13, %v7704_v32, %v7706_v55  ;;  %v11552_v60 = vld [vmem:[#allocation2 + $0x28] sm:$0xff]  }
 0x474   : > { %v10713_v8 = vpop.f32.mrf.mxu0  ;;  %v6269_v5 = vpop.f32.mrf.mxu1  ;;  %10832 = vmatmul.mubr.bf16.gmra.mxu1 %v6161_v44  ;;  %v7708_v53 = vrot.slane %v11552_v60, 3 }
 0x475   : > { %5911 = vst [vmem:[#allocation3 + $0x170] sm:$0xff] %v5861_v43  ;;  %10967 = vmatprep.mubr.msk.bf16.mxu1 %vm13546_vm0, %v11816_v0  ;;  %v6518_v48 = vadd.f32 %v6468_v35, %v6269_v5  ;;  %v11567_v43 = vld [vmem:[#allocation10 + $0x38] sm:$0xff]  }
 0x476   : > { %v5753_v9 = vpop.f32.mrf.mxu0  ;;  %v10737_v10 = vpop.f32.mrf.mxu1  ;;  %11067 = vmatprep.subr.bf16.mxu0 %v11567_v43  ;;  %v7709_v13 = vsel %vm7700_vm13, %v7706_v55, %v7708_v53 }
 0x477   : > { %v5862_v11 = vadd.f32 %v5753_v9, %v5158_v6  ;;  %11068 = vmatpush3.bf16.msra.mxu0 %v11567_v43 }
 0x478   : > { %v10714_v3 = vpop.f32.mrf.mxu0  ;;  %v6272_v14 = vpop.f32.mrf.mxu1 }
 0x479   : > { %5912 = vst [vmem:[#allocation3 + $0x178] sm:$0xff] %v5862_v11  ;;  %v6519_v49 = vadd.f32 %v6469_v46, %v6272_v14  ;;  %v11553_v3 = vld [vmem:[#allocation2 + $0x30] sm:$0xff]   ;;  %v6473_v14 = vld [vmem:[#allocation3 + $0x28] sm:$0xff] }
 0x47a   : > { %v5758_v34 = vpop.f32.mrf.mxu0  ;;  %10944 = vmatmul.mubr.bf16.gmra.mxu0 %v7038_v16  ;;  %v10738_v18 = vpop.f32.mrf.mxu1 }
 0x47b   : > { %v5863_v41 = vadd.f32 %v5758_v34, %v5159_v15  ;;  %10947 = vmatprep.mubr.msk.bf16.mxu0 %vm13546_vm0, %v11816_v0 }
 0x47c   : > { %v10717_v26 = vpop.f32.mrf.mxu0  ;;  %v6277_v52 = vpop.f32.mrf.mxu1  ;;  %10968 = vmatmul.mubr.bf16.vlgmr.msra.gmra.mxu1 %v7703_v19  ;;  %v7710_v19 = vrot.slane %v11553_v3, 3 }
 0x47d   : > { %5913 = vst [vmem:[#allocation3 + $0x180] sm:$0xff] %v5863_v41  ;;  %10971 = vmatprep.mubr.msk.bf16.mxu1 %vm13546_vm0, %v11816_v0  ;;  %v6520_v58 = vadd.f32 %v6470_v56, %v6277_v52 }
 0x47e   : > { %v5761_v28 = vpop.f32.mrf.mxu0  ;;  %v10741_v29 = vpop.f32.mrf.mxu1 }
 0x47f   : > { %v5864_v25 = vadd.f32 %v5761_v28, %v5160_v23  ;;  %v7711_v29 = vsel %vm7700_vm13, %v7708_v53, %v7710_v19 }
 0x480   : > { %v10718_v22 = vpop.f32.mrf.mxu0  ;;  %v6280_v31 = vpop.f32.mrf.mxu1 }
 0x481   : > { %5914 = vst [vmem:[#allocation3 + $0x188] sm:$0xff] %v5864_v25  ;;  %v6521_v1 = vadd.f32 %v6471_v61, %v6280_v31  ;;  %v11554_v25 = vld [vmem:[#allocation2 + $0x38] sm:$0xff]  }
 0x482   : > { %v7155_v36 = vpop.f32.mrf.mxu0  ;;  %10948 = vmatmul.mubr.bf16.gmra.mxu0 %v7047_v30  ;;  %v10742_v37 = vpop.f32.mrf.mxu1  ;;  %v6475_v30 = vld [vmem:[#allocation3 + $0x38] sm:$0xff] }
 0x483   : > { %v7404_v39 = vadd.f32 %v7155_v36, %v6518_v48  ;;  %v7712_v37 = vrot.slane %v11554_v25, 3 }
 0x484   : > { %v10853_v33 = vpop.f32.mrf.mxu0  ;;  %v6285_v24 = vpop.f32.mrf.mxu1  ;;  %10972 = vmatmul.mubr.bf16.gmra.mxu1 %v7705_v40 }
 0x485   : > { %7454 = vst [vmem:[#allocation3] sm:$0xff] %v7404_v39  ;;  %10975 = vmatprep.mubr.msk.bf16.mxu1 %vm13546_vm0, %v11816_v0  ;;  %v6522_v11 = vadd.f32 %v6472_v7, %v6285_v24  ;;  %v6476_v39 = vld [vmem:[#allocation3 + $0x40] sm:$0xff] }
 0x486   : > { %v7158_v50 = vpop.f32.mrf.mxu0  ;;  %v10745_v51 = vpop.f32.mrf.mxu1 }
 0x487   : > { %v7405_v54 = vadd.f32 %v7158_v50, %v6519_v49  ;;  %v7713_v50 = vsel %vm7700_vm13, %v7710_v19, %v7712_v37  ;;  %v11555_v51 = vld [vmem:[#allocation2 + $0x40] sm:$0xff]  }
 0x488   : > { %v10854_v27 = vpop.f32.mrf.mxu0  ;;  %v6288_v57 = vpop.f32.mrf.mxu1 }
 0x489   : > { %7455 = vst [vmem:[#allocation3 + $0x8] sm:$0xff] %v7405_v54  ;;  %v6523_v4 = vadd.f32 %v6473_v14, %v6288_v57  ;;  %v6477_v54 = vld [vmem:[#allocation3 + $0x48] sm:$0xff]  ;;  %v11571_v27 = vld [vmem:[#allocation10 + $0x30] sm:$0xff]  }
 0x48a   : > { %v7163_v42 = vpop.f32.mrf.mxu0  ;;  %v10746_v44 = vpop.f32.mrf.mxu1  ;;  %11069 = vmatprep.subr.bf16.mxu0 %v11571_v27 }
 0x48b   : > { %v7406_v59 = vadd.f32 %v7163_v42, %v6520_v58  ;;  %11070 = vmatpush3.bf16.msra.mxu0 %v11571_v27 }
 0x48c   : > { %v10857_v62 = vpop.f32.mrf.mxu0  ;;  %v6293_v63 = vpop.f32.mrf.mxu1  ;;  %10976 = vmatmul.mubr.bf16.gmra.mxu1 %v7707_v47  ;;  %v6478_v47 = vld [vmem:[#allocation3 + $0x50] sm:$0xff] }
 0x48d   : > { %7456 = vst [vmem:[#allocation3 + $0x10] sm:$0xff] %v7406_v59  ;;  %10979 = vmatprep.mubr.msk.bf16.mxu1 %vm13546_vm0, %v11816_v0  ;;  %v6524_v26 = vadd.f32 %v6474_v20, %v6293_v63  ;;  %v7714_v59 = vrot.slane %v11555_v51, 3 }
 0x48e   : > { %v7166_v8 = vpop.f32.mrf.mxu0  ;;  %v10749_v5 = vpop.f32.mrf.mxu1 }
 0x48f   : > { %v7407_v6 = vadd.f32 %v7166_v8, %v6521_v1  ;;  %v7715_v8 = vsel %vm7700_vm13, %v7712_v37, %v7714_v59  ;;  %v11556_v5 = vld [vmem:[#allocation2 + $0x48] sm:$0xff]  }
 0x490   : > { %v10858_v9 = vpop.f32.mrf.mxu0  ;;  %v6296_v10 = vpop.f32.mrf.mxu1 }
 0x491   : > { %7457 = vst [vmem:[#allocation3 + $0x18] sm:$0xff] %v7407_v6  ;;  %v6525_v22 = vadd.f32 %v6475_v30, %v6296_v10  ;;  %v6479_v6 = vld [vmem:[#allocation3 + $0x58] sm:$0xff] }
 0x492   : > { %v7171_v12 = vpop.f32.mrf.mxu0  ;;  %v10750_v38 = vpop.f32.mrf.mxu1 }
 0x493   : > { %v7408_v17 = vadd.f32 %v7171_v12, %v6522_v11  ;;  %v7716_v38 = vrot.slane %v11556_v5, 3 }
 0x494   : > { %v10861_v15 = vpop.f32.mrf.mxu0  ;;  %v6301_v16 = vpop.f32.mrf.mxu1  ;;  %10980 = vmatmul.mubr.bf16.gmra.mxu1 %v7709_v13 }
 0x495   : > { %7458 = vst [vmem:[#allocation3 + $0x20] sm:$0xff] %v7408_v17  ;;  %10983 = vmatprep.mubr.msk.bf16.mxu1 %vm13546_vm0, %v11816_v0  ;;  %v6526_v46 = vadd.f32 %v6476_v39, %v6301_v16  ;;  %v6480_v17 = vld [vmem:[#allocation3 + $0x60] sm:$0xff] }
 0x496   : > { %v7174_v34 = vpop.f32.mrf.mxu0  ;;  %v10753_v18 = vpop.f32.mrf.mxu1 }
 0x497   : > { %v7409_v41 = vadd.f32 %v7174_v34, %v6523_v4  ;;  %v7717_v34 = vsel %vm7700_vm13, %v7714_v59, %v7716_v38  ;;  %v11557_v18 = vld [vmem:[#allocation2 + $0x50] sm:$0xff]  }
 0x498   : > { %v10862_v2 = vpop.f32.mrf.mxu0  ;;  %v6304_v21 = vpop.f32.mrf.mxu1 }
 0x499   : > { %7459 = vst [vmem:[#allocation3 + $0x28] sm:$0xff] %v7409_v41  ;;  %v6527_v57 = vadd.f32 %v6477_v54, %v6304_v21  ;;  %v6481_v41 = vld [vmem:[#allocation3 + $0x68] sm:$0xff] }
 0x49a   : > { %v7179_v52 = vpop.f32.mrf.mxu0  ;;  %v10754_v23 = vpop.f32.mrf.mxu1 }
 0x49b   : > { %v7410_v28 = vadd.f32 %v7179_v52, %v6524_v26  ;;  %v7718_v23 = vrot.slane %v11557_v18, 3 }
 0x49c   : > { %v10865_v32 = vpop.f32.mrf.mxu0  ;;  %v6309_v35 = vpop.f32.mrf.mxu1  ;;  %10984 = vmatmul.mubr.bf16.gmra.mxu1 %v7711_v29 }
 0x49d   : > { %7460 = vst [vmem:[#allocation3 + $0x30] sm:$0xff] %v7410_v28  ;;  %10987 = vmatprep.mubr.msk.bf16.mxu1 %vm13546_vm0, %v11816_v0  ;;  %v6528_v61 = vadd.f32 %v6478_v47, %v6309_v35  ;;  %v6482_v28 = vld [vmem:[#allocation3 + $0x70] sm:$0xff] }
 0x49e   : > { %v7182_v31 = vpop.f32.mrf.mxu0  ;;  %v10757_v48 = vpop.f32.mrf.mxu1 }
 0x49f   : > { %v7411_v36 = vadd.f32 %v7182_v31, %v6525_v22  ;;  %v7719_v31 = vsel %vm7700_vm13, %v7716_v38, %v7718_v23  ;;  %v11558_v48 = vld [vmem:[#allocation2 + $0x58] sm:$0xff]  }
 0x4a0   : > { %v10866_v40 = vpop.f32.mrf.mxu0  ;;  %v6312_v45 = vpop.f32.mrf.mxu1 }
 0x4a1   : > { %7461 = vst [vmem:[#allocation3 + $0x38] sm:$0xff] %v7411_v36  ;;  %v6529_v9 = vadd.f32 %v6479_v6, %v6312_v45  ;;  %v6483_v36 = vld [vmem:[#allocation3 + $0x78] sm:$0xff] }
 0x4a2   : > { %v7187_v33 = vpop.f32.mrf.mxu0  ;;  %v10758_v24 = vpop.f32.mrf.mxu1  ;;  %v11575_v40 = vld [vmem:[#allocation10 + $0x28] sm:$0xff]  }
 0x4a3   : > { %v7412_v49 = vadd.f32 %v7187_v33, %v6526_v46  ;;  %11071 = vmatprep.subr.bf16.mxu0 %v11575_v40 }
 0x4a4   : > { %v10869_v55 = vpop.f32.mrf.mxu0  ;;  %v6317_v56 = vpop.f32.mrf.mxu1  ;;  %10988 = vmatmul.mubr.bf16.gmra.mxu1 %v7713_v50  ;;  %11072 = vmatpush3.bf16.msra.mxu0 %v11575_v40  ;;  %v6484_v50 = vld [vmem:[#allocation3 + $0x80] sm:$0xff] }
 0x4a5   : > { %7462 = vst [vmem:[#allocation3 + $0x40] sm:$0xff] %v7412_v49  ;;  %10991 = vmatprep.mubr.msk.bf16.mxu1 %vm13546_vm0, %v11816_v0  ;;  %v6530_v14 = vadd.f32 %v6480_v17, %v6317_v56  ;;  %v7720_v49 = vrot.slane %v11558_v48, 3 }
 0x4a6   : > { %v7190_v58 = vpop.f32.mrf.mxu0  ;;  %v10761_v42 = vpop.f32.mrf.mxu1 }
 0x4a7   : > { %v7413_v44 = vadd.f32 %v7190_v58, %v6527_v57  ;;  %v7721_v58 = vsel %vm7700_vm13, %v7718_v23, %v7720_v49  ;;  %v11559_v42 = vld [vmem:[#allocation2 + $0x60] sm:$0xff]   ;;  %v11561_v23 = vld [vmem:[#allocation2 + $0x70] sm:$0xff]  }
 0x4a8   : > { %v10870_v60 = vpop.f32.mrf.mxu0  ;;  %v6320_v43 = vpop.f32.mrf.mxu1  ;;  %v7726_v48 = vrot.slane %v11561_v23, 3  ;;  %v6496_v23 = vld [vmem:[#allocation3 + $0xe0] sm:$0xff] }
 0x4a9   : > { %7463 = vst [vmem:[#allocation3 + $0x48] sm:$0xff] %v7413_v44  ;;  %v6531_v2 = vadd.f32 %v6481_v41, %v6320_v43  ;;  %v6485_v44 = vld [vmem:[#allocation3 + $0x88] sm:$0xff] }
 0x4aa   : > { %v7195_v62 = vpop.f32.mrf.mxu0  ;;  %v10762_v63 = vpop.f32.mrf.mxu1 }
 0x4ab   : > { %v7414_v1 = vadd.f32 %v7195_v62, %v6528_v61  ;;  %v7722_v63 = vrot.slane %v11559_v42, 3 }
 0x4ac   : > { %v10873_v53 = vpop.f32.mrf.mxu0  ;;  %v6325_v7 = vpop.f32.mrf.mxu1  ;;  %10992 = vmatmul.mubr.bf16.gmra.mxu1 %v7715_v8 }
 0x4ad   : > { %7464 = vst [vmem:[#allocation3 + $0x50] sm:$0xff] %v7414_v1  ;;  %10995 = vmatprep.mubr.msk.bf16.mxu1 %vm13546_vm0, %v11816_v0  ;;  %v6532_v30 = vadd.f32 %v6482_v28, %v6325_v7  ;;  %v6486_v1 = vld [vmem:[#allocation3 + $0x90] sm:$0xff]  ;;  %v11579_v28 = vld [vmem:[#allocation10 + $0x10] sm:$0xff]  }
 0x4ae   : > { %v7198_v10 = vpop.f32.mrf.mxu0  ;;  %v10765_v11 = vpop.f32.mrf.mxu1 }
 0x4af   : > { %v7415_v12 = vadd.f32 %v7198_v10, %v6529_v9  ;;  %v7723_v10 = vsel %vm7700_vm13, %v7720_v49, %v7722_v63  ;;  %v11577_v11 = vld [vmem:[#allocation10 + $0x20] sm:$0xff]  }
 0x4b0   : > { %v10874_v13 = vpop.f32.mrf.mxu0  ;;  %v6328_v3 = vpop.f32.mrf.mxu1  ;;  %11073 = vmatprep.subr.bf16.mxu0 %v11577_v11 }
 0x4b1   : > { %7465 = vst [vmem:[#allocation3 + $0x58] sm:$0xff] %v7415_v12  ;;  %v6533_v45 = vadd.f32 %v6483_v36, %v6328_v3  ;;  %v6487_v12 = vld [vmem:[#allocation3 + $0x98] sm:$0xff]  ;;  %11074 = vmatpush3.bf16.msra.mxu0 %v11577_v11 }
 0x4b2   : > { %v7203_v15 = vpop.f32.mrf.mxu0  ;;  %v10766_v16 = vpop.f32.mrf.mxu1  ;;  %v11560_v3 = vld [vmem:[#allocation2 + $0x68] sm:$0xff]  }
 0x4b3   : > { %v7416_v4 = vadd.f32 %v7203_v15, %v6530_v14  ;;  %v11580_v36 = vld [vmem:[#allocation10 + $0x8] sm:$0xff]  }
 0x4b4   : > { %v10877_v19 = vpop.f32.mrf.mxu0  ;;  %v6333_v20 = vpop.f32.mrf.mxu1  ;;  %10996 = vmatmul.mubr.bf16.gmra.mxu1 %v7717_v34  ;;  %v6488_v34 = vld [vmem:[#allocation3 + $0xa0] sm:$0xff] }
 0x4b5   : > { %7466 = vst [vmem:[#allocation3 + $0x60] sm:$0xff] %v7416_v4  ;;  %10999 = vmatprep.mubr.msk.bf16.mxu1 %vm13546_vm0, %v11816_v0  ;;  %v6534_v55 = vadd.f32 %v6484_v50, %v6333_v20  ;;  %v11578_v4 = vld [vmem:[#allocation10 + $0x18] sm:$0xff]   ;;  %v7724_v20 = vrot.slane %v11560_v3, 3 }
 0x4b6   : > { %v7206_v21 = vpop.f32.mrf.mxu0  ;;  %v10769_v26 = vpop.f32.mrf.mxu1  ;;  %11075 = vmatprep.subr.bf16.mxu0 %v11578_v4  ;;  %v11562_v50 = vld [vmem:[#allocation2 + $0x78] sm:$0xff]  }
 0x4b7   : > { %v7417_v52 = vadd.f32 %v7206_v21, %v6531_v2  ;;  %11076 = vmatpush3.bf16.msra.mxu0 %v11578_v4  ;;  %v7727_v49 = vsel %vm7700_vm13, %v7724_v20, %v7726_v48 }
 0x4b8   : > { %v10878_v29 = vpop.f32.mrf.mxu0  ;;  %v6336_v25 = vpop.f32.mrf.mxu1  ;;  %11077 = vmatprep.subr.bf16.mxu0 %v11579_v28 }
 0x4b9   : > { %7467 = vst [vmem:[#allocation3 + $0x68] sm:$0xff] %v7417_v52  ;;  %v6535_v60 = vadd.f32 %v6485_v44, %v6336_v25  ;;  %v7725_v52 = vsel %vm7700_vm13, %v7722_v63, %v7724_v20  ;;  %v6489_v29 = vld [vmem:[#allocation3 + $0xa8] sm:$0xff]  ;;  %v7728_v44 = vrot.slane %v11562_v50, 3 }
 0x4ba   : > { %v7211_v32 = vpop.f32.mrf.mxu0  ;;  %v10770_v35 = vpop.f32.mrf.mxu1 }
 0x4bb   : > { %v7418_v22 = vadd.f32 %v7211_v32, %v6532_v30  ;;  %11078 = vmatpush3.bf16.msra.mxu0 %v11579_v28 }
 0x4bc   : > { %v10881_v37 = vpop.f32.mrf.mxu0  ;;  %v6341_v39 = vpop.f32.mrf.mxu1  ;;  %11000 = vmatmul.mubr.bf16.gmra.mxu1 %v7719_v31  ;;  %11079 = vmatprep.subr.bf16.mxu0 %v11580_v36 }
 0x4bd   : > { %7468 = vst [vmem:[#allocation3 + $0x70] sm:$0xff] %v7418_v22  ;;  %11003 = vmatprep.mubr.msk.bf16.mxu1 %vm13546_vm0, %v11816_v0  ;;  %v6536_v6 = vadd.f32 %v6486_v1, %v6341_v39  ;;  %v6490_v37 = vld [vmem:[#allocation3 + $0xb0] sm:$0xff]  ;;  %v7729_v1 = vsel %vm7700_vm13, %v7726_v48, %v7728_v44  ;;  %v6497_v48 = vld [vmem:[#allocation3 + $0xe8] sm:$0xff] }
 0x4be   : > { %v7214_v46 = vpop.f32.mrf.mxu0  ;;  %v10773_v33 = vpop.f32.mrf.mxu1 }
 0x4bf   : > { %v7419_v24 = vadd.f32 %v7214_v46, %v6533_v45  ;;  %11080 = vmatpush3.bf16.msra.mxu0 %v11580_v36 }
 0x4c0   : > { %v10882_v51 = vpop.f32.mrf.mxu0  ;;  %v6344_v54 = vpop.f32.mrf.mxu1 }
 0x4c1   : > { %7469 = vst [vmem:[#allocation3 + $0x78] sm:$0xff] %v7419_v24  ;;  %v6537_v13 = vadd.f32 %v6487_v12, %v6344_v54  ;;  %v11581_v51 = vld [vmem:[#allocation10] sm:$0xff]   ;;  %v6491_v54 = vld [vmem:[#allocation3 + $0xb8] sm:$0xff] }
 0x4c2   : > { %v7219_v56 = vpop.f32.mrf.mxu0  ;;  %v10774_v27 = vpop.f32.mrf.mxu1  ;;  %11081 = vmatprep.subr.bf16.mxu0 %v11581_v51 }
 0x4c3   : > { %v7420_v57 = vadd.f32 %v7219_v56, %v6534_v55  ;;  %11082 = vmatpush3.bf16.msra.mxu0 %v11581_v51 }
 0x4c4   : > { %v10885_v59 = vpop.f32.mrf.mxu0  ;;  %v6349_v47 = vpop.f32.mrf.mxu1  ;;  %11004 = vmatmul.mubr.bf16.gmra.mxu1 %v7721_v58 }
 0x4c5   : > { %7470 = vst [vmem:[#allocation3 + $0x80] sm:$0xff] %v7420_v57  ;;  %11007 = vmatprep.mubr.msk.bf16.mxu1 %vm13546_vm0, %v11816_v0  ;;  %v6538_v19 = vadd.f32 %v6488_v34, %v6349_v47  ;;  %v6492_v59 = vld [vmem:[#allocation3 + $0xc0] sm:$0xff]  ;;  %v11564_v34 = vld [vmem:[#allocation2 + $0x88] sm:$0xff]  }
 0x4c6   : > { %v7222_v43 = vpop.f32.mrf.mxu0  ;;  %v10777_v61 = vpop.f32.mrf.mxu1 }
 0x4c7   : > { %v7421_v62 = vadd.f32 %v7222_v43, %v6535_v60 }
 0x4c8   : > { %v10886_v8 = vpop.f32.mrf.mxu0  ;;  %v6352_v5 = vpop.f32.mrf.mxu1 }
 0x4c9   : > { %7471 = vst [vmem:[#allocation3 + $0x88] sm:$0xff] %v7421_v62  ;;  %v6539_v32 = vadd.f32 %v6489_v29, %v6352_v5  ;;  %v11563_v8 = vld [vmem:[#allocation2 + $0x80] sm:$0xff]  }
 0x4ca   : > { %v7227_v53 = vpop.f32.mrf.mxu0  ;;  %v10778_v7 = vpop.f32.mrf.mxu1  ;;  %v6493_v5 = vld [vmem:[#allocation3 + $0xc8] sm:$0xff]  ;;  %v7730_v12 = vrot.slane %v11563_v8, 3 }
 0x4cb   : > { %v7422_v9 = vadd.f32 %v7227_v53, %v6536_v6 }
 0x4cc   : > { %v10889_v38 = vpop.f32.mrf.mxu0  ;;  %v6357_v17 = vpop.f32.mrf.mxu1  ;;  %11008 = vmatmul.mubr.bf16.gmra.mxu1 %v7723_v10  ;;  %v7731_v4 = vsel %vm7700_vm13, %v7728_v44, %v7730_v12 }
 0x4cd   : > { %7472 = vst [vmem:[#allocation3 + $0x90] sm:$0xff] %v7422_v9  ;;  %11011 = vmatprep.mubr.msk.bf16.mxu1 %vm13546_vm0, %v11816_v0  ;;  %v6540_v45 = vadd.f32 %v6490_v37, %v6357_v17  ;;  %v6494_v38 = vld [vmem:[#allocation3 + $0xd0] sm:$0xff] }
 0x4ce   : > { %v7230_v14 = vpop.f32.mrf.mxu0  ;;  %v10781_v15 = vpop.f32.mrf.mxu1 }
 0x4cf   : > { %v7423_v16 = vadd.f32 %v7230_v14, %v6537_v13 }
 0x4d0   : > { %v10890_v18 = vpop.f32.mrf.mxu0  ;;  %v6360_v41 = vpop.f32.mrf.mxu1 }
 0x4d1   : > { %7473 = vst [vmem:[#allocation3 + $0x98] sm:$0xff] %v7423_v16  ;;  %v6541_v27 = vadd.f32 %v6491_v54, %v6360_v41  ;;  %v6495_v18 = vld [vmem:[#allocation3 + $0xd8] sm:$0xff] }
 0x4d2   : > { %v7235_v2 = vpop.f32.mrf.mxu0  ;;  %v10782_v21 = vpop.f32.mrf.mxu1 }
 0x4d3   : > { %v7424_v26 = vadd.f32 %v7235_v2, %v6538_v19 }
 0x4d4   : > { %v10893_v25 = vpop.f32.mrf.mxu0  ;;  %v6365_v30 = vpop.f32.mrf.mxu1  ;;  %11012 = vmatmul.mubr.bf16.gmra.mxu1 %v7725_v52  ;;  %v7732_v52 = vrot.slane %v11564_v34, 3 }
 0x4d5   : > { %7474 = vst [vmem:[#allocation3 + $0xa0] sm:$0xff] %v7424_v26  ;;  %11015 = vmatprep.mubr.msk.bf16.mxu1 %vm13546_vm0, %v11816_v0  ;;  %v6542_v43 = vadd.f32 %v6492_v59, %v6365_v30 }
 0x4d6   : > { %v7238_v35 = vpop.f32.mrf.mxu0  ;;  %v10785_v22 = vpop.f32.mrf.mxu1 }
 0x4d7   : > { %v7425_v31 = vadd.f32 %v7238_v35, %v6539_v32  ;;  %v7733_v22 = vsel %vm7700_vm13, %v7730_v12, %v7732_v52 }
 0x4d8   : > { %v10894_v39 = vpop.f32.mrf.mxu0  ;;  %v6368_v40 = vpop.f32.mrf.mxu1 }
 0x4d9   : > { %7475 = vst [vmem:[#allocation3 + $0xa8] sm:$0xff] %v7425_v31  ;;  %v6543_v7 = vadd.f32 %v6493_v5, %v6368_v40  ;;  %v11565_v31 = vld [vmem:[#allocation2 + $0x90] sm:$0xff]  }
 0x4da   : > { %v7243_v46 = vpop.f32.mrf.mxu0  ;;  %v10786_v33 = vpop.f32.mrf.mxu1 }
 0x4db   : > { %v7426_v24 = vadd.f32 %v7243_v46, %v6540_v45  ;;  %v7734_v33 = vrot.slane %v11565_v31, 3 }
 0x4dc   : > { %v10897_v55 = vpop.f32.mrf.mxu0  ;;  %v6373_v56 = vpop.f32.mrf.mxu1  ;;  %11016 = vmatmul.mubr.bf16.gmra.mxu1 %v7727_v49 }
 0x4dd   : > { %7476 = vst [vmem:[#allocation3 + $0xb0] sm:$0xff] %v7426_v24  ;;  %11019 = vmatprep.mubr.msk.bf16.mxu1 %vm13546_vm0, %v11816_v0  ;;  %v6544_v3 = vadd.f32 %v6494_v38, %v6373_v56  ;;  %v6498_v24 = vld [vmem:[#allocation3 + $0xf0] sm:$0xff] }
 0x4de   : > { %v7246_v57 = vpop.f32.mrf.mxu0  ;;  %v10789_v58 = vpop.f32.mrf.mxu1 }
 0x4df   : > { %v7427_v42 = vadd.f32 %v7246_v57, %v6541_v27  ;;  %v7735_v27 = vsel %vm7700_vm13, %v7732_v52, %v7734_v33  ;;  %v11566_v57 = vld [vmem:[#allocation2 + $0x98] sm:$0xff]   ;;  %v6499_v58 = vld [vmem:[#allocation3 + $0xf8] sm:$0xff] }
 0x4e0   : > { %v10898_v47 = vpop.f32.mrf.mxu0  ;;  %v6376_v60 = vpop.f32.mrf.mxu1 }
 0x4e1   : > { %7477 = vst [vmem:[#allocation3 + $0xb8] sm:$0xff] %v7427_v42  ;;  %v6545_v20 = vadd.f32 %v6495_v18, %v6376_v60 }
 0x4e2   : > { %v7251_v61 = vpop.f32.mrf.mxu0  ;;  %v10790_v62 = vpop.f32.mrf.mxu1 }
 0x4e3   : > { %v7428_v63 = vadd.f32 %v7251_v61, %v6542_v43  ;;  %v7736_v61 = vrot.slane %v11566_v57, 3  ;;  %v6500_v62 = vld [vmem:[#allocation3 + $0x100] sm:$0xff] }
 0x4e4   : > { %v10901_v6 = vpop.f32.mrf.mxu0  ;;  %v6381_v53 = vpop.f32.mrf.mxu1  ;;  %11020 = vmatmul.mubr.bf16.gmra.mxu1 %v7729_v1 }
 0x4e5   : > { %7478 = vst [vmem:[#allocation3 + $0xc0] sm:$0xff] %v7428_v63  ;;  %11023 = vmatprep.mubr.msk.bf16.mxu1 %vm13546_vm0, %v11816_v0  ;;  %v6546_v25 = vadd.f32 %v6496_v23, %v6381_v53 }
 0x4e6   : > { %v7254_v9 = vpop.f32.mrf.mxu0  ;;  %v10793_v10 = vpop.f32.mrf.mxu1 }
 0x4e7   : > { %v7429_v11 = vadd.f32 %v7254_v9, %v6543_v7  ;;  %v7737_v7 = vsel %vm7700_vm13, %v7734_v33, %v7736_v61  ;;  %v11568_v9 = vld [vmem:[#allocation2 + $0xa0] sm:$0xff]  }
 0x4e8   : > { %v10902_v17 = vpop.f32.mrf.mxu0  ;;  %v6384_v13 = vpop.f32.mrf.mxu1  ;;  %v6501_v10 = vld [vmem:[#allocation3 + $0x108] sm:$0xff] }
 0x4e9   : > { %7479 = vst [vmem:[#allocation3 + $0xc8] sm:$0xff] %v7429_v11  ;;  %v6547_v39 = vadd.f32 %v6497_v48, %v6384_v13 }
 0x4ea   : > { %v7259_v14 = vpop.f32.mrf.mxu0  ;;  %v10794_v15 = vpop.f32.mrf.mxu1 }
 0x4eb   : > { %v7430_v16 = vadd.f32 %v7259_v14, %v6544_v3  ;;  %v7738_v14 = vrot.slane %v11568_v9, 3  ;;  %v6502_v15 = vld [vmem:[#allocation3 + $0x110] sm:$0xff] }
 0x4ec   : > { %v10905_v41 = vpop.f32.mrf.mxu0  ;;  %v6389_v19 = vpop.f32.mrf.mxu1  ;;  %11024 = vmatmul.mubr.bf16.gmra.mxu1 %v7731_v4 }
 0x4ed   : > { %7480 = vst [vmem:[#allocation3 + $0xd0] sm:$0xff] %v7430_v16  ;;  %11027 = vmatprep.mubr.msk.bf16.mxu1 %vm13546_vm0, %v11816_v0  ;;  %v6548_v51 = vadd.f32 %v6498_v24, %v6389_v19 }
 0x4ee   : > { %v7262_v2 = vpop.f32.mrf.mxu0  ;;  %v10797_v21 = vpop.f32.mrf.mxu1 }
 0x4ef   : > { %v7431_v26 = vadd.f32 %v7262_v2, %v6545_v20  ;;  %v7739_v20 = vsel %vm7700_vm13, %v7736_v61, %v7738_v14  ;;  %v11569_v2 = vld [vmem:[#allocation2 + $0xa8] sm:$0xff]   ;;  %v11572_v61 = vld [vmem:[#allocation2 + $0xb8] sm:$0xff]  }
 0x4f0   : > { %v10906_v28 = vpop.f32.mrf.mxu0  ;;  %v6392_v29 = vpop.f32.mrf.mxu1  ;;  %v6503_v21 = vld [vmem:[#allocation3 + $0x118] sm:$0xff]  ;;  %v7744_v9 = vrot.slane %v11572_v61, 3 }
 0x4f1   : > { %7481 = vst [vmem:[#allocation3 + $0xd8] sm:$0xff] %v7431_v26  ;;  %v6549_v59 = vadd.f32 %v6499_v58, %v6392_v29 }
 0x4f2   : > { %v7267_v30 = vpop.f32.mrf.mxu0  ;;  %v10798_v32 = vpop.f32.mrf.mxu1 }
 0x4f3   : > { %v7432_v35 = vadd.f32 %v7267_v30, %v6546_v25  ;;  %v7740_v30 = vrot.slane %v11569_v2, 3  ;;  %v6504_v32 = vld [vmem:[#allocation3 + $0x120] sm:$0xff] }
 0x4f4   : > { %v10909_v36 = vpop.f32.mrf.mxu0  ;;  %v6397_v37 = vpop.f32.mrf.mxu1  ;;  %11028 = vmatmul.mubr.bf16.gmra.mxu1 %v7733_v22 }
 0x4f5   : > { %7482 = vst [vmem:[#allocation3 + $0xe0] sm:$0xff] %v7432_v35  ;;  %11031 = vmatprep.mubr.msk.bf16.mxu1 %vm13546_vm0, %v11816_v0  ;;  %v6550_v8 = vadd.f32 %v6500_v62, %v6397_v37  ;;  %v6507_v62 = vld [vmem:[#allocation3 + $0x138] sm:$0xff] }
 0x4f6   : > { %v7270_v40 = vpop.f32.mrf.mxu0  ;;  %v10801_v45 = vpop.f32.mrf.mxu1 }
 0x4f7   : > { %v13100_v46 = vadd.f32 %v7270_v40, %v6547_v39  ;;  %v7741_v39 = vsel %vm7700_vm13, %v7738_v14, %v7740_v30  ;;  %v11570_v40 = vld [vmem:[#allocation2 + $0xb0] sm:$0xff]   ;;  %v6505_v45 = vld [vmem:[#allocation3 + $0x128] sm:$0xff] }
 0x4f8   : > { %v10910_v49 = vpop.f32.mrf.mxu0  ;;  %v6400_v50 = vpop.f32.mrf.mxu1 }
 0x4f9   : > { %v6551_v38 = vadd.f32 %v6501_v10, %v6400_v50  ;;  %v6508_v10 = vld [vmem:[#allocation3 + $0x140] sm:$0xff] }
 0x4fa   : > { %v7275_v54 = vpop.f32.mrf.mxu0  ;;  %v10802_v55 = vpop.f32.mrf.mxu1 }
 0x4fb   : > { %v13102_v56 = vadd.f32 %v7275_v54, %v6548_v51  ;;  %v7742_v55 = vrot.slane %v11570_v40, 3 }
 0x4fc   : > { %v10913_v42 = vpop.f32.mrf.mxu0  ;;  %v6405_v44 = vpop.f32.mrf.mxu1  ;;  %11032 = vmatmul.mubr.bf16.gmra.mxu1 %v7735_v27  ;;  %v6506_v27 = vld [vmem:[#allocation3 + $0x130] sm:$0xff] }
 0x4fd   : > { %11035 = vmatprep.mubr.msk.bf16.mxu1 %vm13546_vm0, %v11816_v0  ;;  %v6552_v34 = vadd.f32 %v6502_v15, %v6405_v44  ;;  %v7745_v15 = vsel %vm7700_vm13, %v7742_v55, %v7744_v9 }
 0x4fe   : > { %v7278_v47 = vpop.f32.mrf.mxu0  ;;  %v10805_v60 = vpop.f32.mrf.mxu1 }
 0x4ff   : > { %v13107_v43 = vadd.f32 %v7278_v47, %v6549_v59  ;;  %v7743_v60 = vsel %vm7700_vm13, %v7740_v30, %v7742_v55 }
 0x500   : > { %v10914_v63 = vpop.f32.mrf.mxu0  ;;  %v6408_v1 = vpop.f32.mrf.mxu1 }
 0x501   : > { %v6553_v23 = vadd.f32 %v6503_v21, %v6408_v1 }
 0x502   : > { %v7283_v5 = vpop.f32.mrf.mxu0  ;;  %v10806_v6 = vpop.f32.mrf.mxu1 }
 0x503   : > { %v13109_v53 = vadd.f32 %v7283_v5, %v6550_v8 }
 0x504   : > { %v10917_v11 = vpop.f32.mrf.mxu0  ;;  %v6413_v12 = vpop.f32.mrf.mxu1  ;;  %11036 = vmatmul.mubr.bf16.gmra.mxu1 %v7737_v7 }
 0x505   : > { %11039 = vmatprep.mubr.msk.bf16.mxu1 %vm13546_vm0, %v11816_v0  ;;  %v6554_v31 = vadd.f32 %v6504_v32, %v6413_v12 }
 0x506   : > { %v7286_v17 = vpop.f32.mrf.mxu0  ;;  %v10809_v13 = vpop.f32.mrf.mxu1 }
 0x507   : > { %v13114_v3 = vadd.f32 %v7286_v17, %v6551_v38 }
 0x508   : > { %v10918_v16 = vpop.f32.mrf.mxu0  ;;  %v6416_v4 = vpop.f32.mrf.mxu1 }
 0x509   : > { %v6555_v49 = vadd.f32 %v6505_v45, %v6416_v4  ;;  %v11573_v16 = vld [vmem:[#allocation2 + $0xc0] sm:$0xff]  }
 0x50a   : > { %v7291_v18 = vpop.f32.mrf.mxu0  ;;  %v10810_v41 = vpop.f32.mrf.mxu1  ;;  %v6509_v4 = vld [vmem:[#allocation3 + $0x148] sm:$0xff] }
 0x50b   : > { %v13116_v19 = vadd.f32 %v7291_v18, %v6552_v34 }
 0x50c   : > { %v10921_v26 = vpop.f32.mrf.mxu0  ;;  %v6421_v52 = vpop.f32.mrf.mxu1  ;;  %11040 = vmatmul.mubr.bf16.gmra.mxu1 %v7739_v20 }
 0x50d   : > { %11043 = vmatprep.mubr.msk.bf16.mxu1 %vm13546_vm0, %v11816_v0  ;;  %v6556_v42 = vadd.f32 %v6506_v27, %v6421_v52  ;;  %v7746_v26 = vrot.slane %v11573_v16, 3  ;;  %v6510_v52 = vld [vmem:[#allocation3 + $0x150] sm:$0xff]  ;;  %v6515_v16 = vld [vmem:[#allocation3 + $0x178] sm:$0xff] }
 0x50e   : > { %v7294_v28 = vpop.f32.mrf.mxu0  ;;  %v10813_v29 = vpop.f32.mrf.mxu1 }
 0x50f   : > { %v13121_v25 = vadd.f32 %v7294_v28, %v6553_v23 }
 0x510   : > { %v10922_v35 = vpop.f32.mrf.mxu0  ;;  %v6424_v22 = vpop.f32.mrf.mxu1 }
 0x511   : > { %v6557_v8 = vadd.f32 %v6507_v62, %v6424_v22  ;;  %v7747_v22 = vsel %vm7700_vm13, %v7744_v9, %v7746_v26  ;;  %v6514_v9 = vld [vmem:[#allocation3 + $0x170] sm:$0xff] }
 0x512   : > { %v7299_v48 = vpop.f32.mrf.mxu0  ;;  %v10814_v36 = vpop.f32.mrf.mxu1 }
 0x513   : > { %v13123_v37 = vadd.f32 %v7299_v48, %v6554_v31  ;;  %v11574_v31 = vld [vmem:[#allocation2 + $0xc8] sm:$0xff]  }
 0x514   : > { %v10925_v33 = vpop.f32.mrf.mxu0  ;;  %v6429_v24 = vpop.f32.mrf.mxu1  ;;  %11044 = vmatmul.mubr.bf16.gmra.mxu1 %v7741_v39  ;;  %v6511_v48 = vld [vmem:[#allocation3 + $0x158] sm:$0xff] }
 0x515   : > { %11047 = vmatprep.mubr.msk.bf16.mxu1 %vm13546_vm0, %v11816_v0  ;;  %v6558_v38 = vadd.f32 %v6508_v10, %v6429_v24 }
 0x516   : > { %v7302_v50 = vpop.f32.mrf.mxu0  ;;  %v10817_v51 = vpop.f32.mrf.mxu1 }
 0x517   : > { %v13128_v54 = vadd.f32 %v7302_v50, %v6555_v49  ;;  %v7748_v49 = vrot.slane %v11574_v31, 3  ;;  %v6512_v50 = vld [vmem:[#allocation3 + $0x160] sm:$0xff] }
 0x518   : > { %v10926_v57 = vpop.f32.mrf.mxu0  ;;  %v6432_v58 = vpop.f32.mrf.mxu1 }
 0x519   : > { %v6559_v41 = vadd.f32 %v6509_v4, %v6432_v58  ;;  %v11576_v57 = vld [vmem:[#allocation2 + $0xd0] ss:$0 sps:$4 sm:$0x77]  }
 0x51a   : > { %v7307_v44 = vpop.f32.mrf.mxu0  ;;  %v10818_v59 = vpop.f32.mrf.mxu1 }
 0x51b   : > { %v13130_v47 = vadd.f32 %v7307_v44, %v6556_v42  ;;  %v7749_v59 = vsel %vm7700_vm13, %v7746_v26, %v7748_v49 }
 0x51c   : > { %v10929_v63 = vpop.f32.mrf.mxu0  ;;  %v6437_v1 = vpop.f32.mrf.mxu1  ;;  %11048 = vmatmul.mubr.bf16.gmra.mxu1 %v7743_v60  ;;  %v6513_v60 = vld [vmem:[#allocation3 + $0x168] sm:$0xff] }
 0x51d   : > { %11051 = vmatprep.mubr.msk.bf16.mxu1 %vm13546_vm0, %v11816_v0  ;;  %v6560_v29 = vadd.f32 %v6510_v52, %v6437_v1  ;;  %v7750_v1 = vrot.slane %v11576_v57, 3  ;;  %v6516_v52 = vld [vmem:[#allocation3 + $0x180] sm:$0xff]  ;;  %v8061_v57 = vld [vmem:[#allocation3 + $0x18] sm:$0xff] }
 0x51e   : > { %v7310_v5 = vpop.f32.mrf.mxu0  ;;  %v10821_v6 = vpop.f32.mrf.mxu1 }
 0x51f   : > { %v13135_v7 = vadd.f32 %v7310_v5, %v6557_v8 }
 0x520   : > { %v10930_v11 = vpop.f32.mrf.mxu0  ;;  %v6440_v12 = vpop.f32.mrf.mxu1 }
 0x521   : > { %v6561_v40 = vadd.f32 %v6511_v48, %v6440_v12 }
 0x522   : > { %v7315_v17 = vpop.f32.mrf.mxu0  ;;  %v10822_v13 = vpop.f32.mrf.mxu1 }
 0x523   : > { %v13137_v14 = vadd.f32 %v7315_v17, %v6558_v38  ;;  %v7751_v38 = vsel %vm7700_vm13, %v7748_v49, %v7750_v1 }
 0x524   : > { %v10933_v34 = vpop.f32.mrf.mxu0  ;;  %v6445_v18 = vpop.f32.mrf.mxu1  ;;  %11052 = vmatmul.mubr.bf16.gmra.mxu1 %v7745_v15 }
 0x525   : > { %11055 = vmatprep.mubr.msk.bf16.mxu1 %vm13546_vm0, %v11816_v0  ;;  %v6562_v27 = vadd.f32 %v6512_v50, %v6445_v18  ;;  %v8058_v18 = vld [vmem:[#allocation3] sm:$0xff] }
 0x526   : > { %v7318_v20 = vpop.f32.mrf.mxu0  ;;  %v10825_v2 = vpop.f32.mrf.mxu1 }
 0x527   : > { %v13142_v21 = vadd.f32 %v7318_v20, %v6559_v41 }
 0x528   : > { %v10934_v23 = vpop.f32.mrf.mxu0  ;;  %v6448_v28 = vpop.f32.mrf.mxu1 }
 0x529   : > { %v6563_v63 = vadd.f32 %v6513_v60, %v6448_v28  ;;  %v13170_v60 = vld [vmem:[%s13495_s4] ss:$0 sm:$0xff] }
 0x52a   : > { %v7323_v30 = vpop.f32.mrf.mxu0  ;;  %v10826_v32 = vpop.f32.mrf.mxu1 }
 0x52b   : > { %v13144_v35 = vadd.f32 %v7323_v30, %v6560_v29  ;;  %v8059_v29 = vld [vmem:[#allocation3 + $0x8] sm:$0xff] }
 0x52c   : > { %v10937_v36 = vpop.f32.mrf.mxu0  ;;  %v6453_v39 = vpop.f32.mrf.mxu1  ;;  %11056 = vmatmul.mubr.bf16.gmra.mxu1 %v7747_v22 }
 0x52d   : > { %11059 = vmatprep.mubr.msk.bf16.mxu1 %vm13546_vm0, %v11816_v0  ;;  %v6564_v12 = vadd.f32 %v6514_v9, %v6453_v39  ;;  %v6517_v36 = vld [vmem:[#allocation3 + $0x188] sm:$0xff] }
 0x52e   : > { %v7326_v45 = vpop.f32.mrf.mxu0  ;;  %v10829_v33 = vpop.f32.mrf.mxu1 }
 0x52f   : > { %v13149_v24 = vadd.f32 %v7326_v45, %v6561_v40  ;;  %v8060_v45 = vld [vmem:[#allocation3 + $0x10] sm:$0xff] }
 0x530   : > { %v10938_v51 = vpop.f32.mrf.mxu0  ;;  %v6456_v55 = vpop.f32.mrf.mxu1 }
 0x532   : > { %v7331_v58 = vpop.f32.mrf.mxu0  ;;  %v10830_v42 = vpop.f32.mrf.mxu1 }
 0x533   : > { %v13151_v44 = vadd.f32 %v7331_v58, %v6562_v27 }
 0x534   : > { %v10941_v61 = vpop.f32.mrf.mxu0  ;;  %v6461_v62 = vpop.f32.mrf.mxu1  ;;  %11060 = vmatmul.mubr.bf16.gmra.mxu1 %v7749_v59 }
 0x535   : > { %11063 = vmatprep.mubr.msk.bf16.mxu1 %vm13546_vm0, %v11816_v0  ;;  %v6565_v0 = vadd.f32 %v6515_v16, %v6456_v55  ;;  %v6566_v30 = vadd.f32 %v6516_v52, %v6461_v62  ;;  %v8062_v62 = vld [vmem:[#allocation3 + $0x20] sm:$0xff]  ;;  %vm13556_vm0 = vmmov %vm13549_vm2 }
 0x536   : > { %v7334_v8 = vpop.f32.mrf.mxu0  ;;  %v10833_v5 = vpop.f32.mrf.mxu1  ;;  %vm13557_vm1 = vmmov %vm13556_vm0 }
 0x537   : > { %v13156_v6 = vadd.f32 %v7334_v8, %v6563_v63  ;;  %vm13558_vm9 = vmmov %vm13556_vm0 }
 0x538   : > { %v10942_v10 = vpop.f32.mrf.mxu0  ;;  %v6464_v11 = vpop.f32.mrf.mxu1  ;;  %vm13559_vm10 = vmmov %vm13556_vm0 }
 0x539   : > { %v6567_v33 = vadd.f32 %v6517_v36, %v6464_v11  ;;  %v8063_v11 = vld [vmem:[#allocation3 + $0x28] sm:$0xff]  ;;  %vm13560_vm11 = vmmov %vm13556_vm0 }
 0x53a   : > { %v7339_v17 = vpop.f32.mrf.mxu0  ;;  %v10834_v13 = vpop.f32.mrf.mxu1  ;;  %vm13561_vm12 = vmmov %vm13556_vm0 }
 0x53b   : > { %v13159_v15 = vadd.f32 %v7339_v17, %v6564_v12  ;;  %vm13562_vm13 = vmmov %vm13556_vm0 }
 0x53c   : > { %v10945_v4 = vpop.f32.mrf.mxu0  ;;  %v7859_v34 = vpop.f32.mrf.mxu1  ;;  %11064 = vmatmul.mubr.bf16.gmra.mxu1 %v7751_v38 }
 0x53d   : > { %v8108_v41 = vadd.f32 %v8058_v18, %v7859_v34  ;;  %v11582_v34 = vld [vmem:[#allocation12 + $0x18] sm:$0xff]  }
 0x53e   : > { %v7342_v20 = vpop.f32.mrf.mxu0  ;;  %v10969_v2 = vpop.f32.mrf.mxu1  ;;  %11115 = vmatprep.subr.bf16.mxu0 %v11582_v34 }
 0x53f   : > { %v13161_v26 = vadd.f32 %v7342_v20, %v6565_v0  ;;  %8158 = vst [vmem:[#allocation3] sm:$0xff] %v8108_v41  ;;  %v8247_v1 = vadd.f32 %v13170_v60, %v8108_v41  ;;  %v8064_v0 = vld [vmem:[#allocation3 + $0x30] sm:$0xff] }
 0x540   : > { %v10946_v23 = vpop.f32.mrf.mxu0  ;;  %v7862_v28 = vpop.f32.mrf.mxu1 }
 0x541   : > { %v8109_v32 = vadd.f32 %v8059_v29, %v7862_v28  ;;  %v8279_v38 = vmax.f32 %v8247_v1, 0.0  ;;  %v8065_v29 = vld [vmem:[#allocation3 + $0x38] sm:$0xff] }
 0x542   : > { %v7347_v22 = vpop.f32.mrf.mxu0  ;;  %v10970_v31 = vpop.f32.mrf.mxu1 }
 0x543   : > { %v13163_v48 = vadd.f32 %v7347_v22, %v6566_v30  ;;  %8159 = vst [vmem:[#allocation3 + $0x8] sm:$0xff] %v8109_v32 }
 0x544   : > { %v10949_v39 = vpop.f32.mrf.mxu0  ;;  %v7867_v40 = vpop.f32.mrf.mxu1 }
 0x545   : > { %v8110_v49 = vadd.f32 %v8060_v45, %v7867_v40  ;;  %v8066_v40 = vld [vmem:[#allocation3 + $0x40] sm:$0xff] }
 0x546   : > { %v7350_v50 = vpop.f32.mrf.mxu0  ;;  %v10973_v51 = vpop.f32.mrf.mxu1 }
 0x547   : > { %v13165_v55 = vadd.f32 %v7350_v50, %v6567_v33  ;;  %8160 = vst [vmem:[#allocation3 + $0x10] sm:$0xff] %v8110_v49  ;;  %v8067_v50 = vld [vmem:[#allocation3 + $0x48] sm:$0xff] }
 0x548   : > { %v7870_v27 = vpop.f32.mrf.mxu1  ;;  %v10950_v58 = vpop.f32.mrf.mxu0 }
 0x549   : > { %v8111_v42 = vadd.f32 %v8061_v57, %v7870_v27 }
 0x54a   : > { %v10974_v59 = vpop.f32.mrf.mxu1 }
 0x54b   : > { %8161 = vst [vmem:[#allocation3 + $0x18] sm:$0xff] %v8111_v42  ;;  %v11583_v59 = vld [vmem:[#allocation12 + $0x10] sm:$0xff]  }
 0x54c   : > { %v7875_v61 = vpop.f32.mrf.mxu1 }
 0x54d   : > { %v8112_v63 = vadd.f32 %v8062_v62, %v7875_v61  ;;  %v8068_v62 = vld [vmem:[#allocation3 + $0x50] sm:$0xff] }
 0x54e   : > { %v10977_v8 = vpop.f32.mrf.mxu1  ;;  %v8209_v5 = vld [vmem:[#allocation3 + $0xa] sm:$0xff] }
 0x54f   : > { %8162 = vst [vmem:[#allocation3 + $0x20] sm:$0xff] %v8112_v63  ;;  %v8248_v9 = vadd.f32 %v13170_v60, %v8209_v5 }
 0x550   : > { %v7878_v10 = vpop.f32.mrf.mxu1 }
 0x551   : > { %v8113_v12 = vadd.f32 %v8063_v11, %v7878_v10  ;;  %v8280_v17 = vmax.f32 %v8248_v9, 0.0 }
 0x552   : > { %v10978_v13 = vpop.f32.mrf.mxu1  ;;  %v8210_v16 = vld [vmem:[#allocation3 + $0x14] sm:$0xff] }
 0x553   : > { %8163 = vst [vmem:[#allocation3 + $0x28] sm:$0xff] %v8113_v12  ;;  %v8311_v4 = vpack.c.bf16 %v8280_v17, %v8279_v38  ;;  %v8249_v41 = vadd.f32 %v13170_v60, %v8210_v16  ;;  %v8251_v27 = vadd.f32 %v13170_v60, %v8113_v12  ;;  %v8069_v38 = vld [vmem:[#allocation3 + $0x58] sm:$0xff] }
 0x554   : > { %v7883_v18 = vpop.f32.mrf.mxu1 }
 0x555   : > { %v8114_v20 = vadd.f32 %v8064_v0, %v7883_v18  ;;  %11083 = vmatprep.mubr.bf16.mxu0 %v8311_v4  ;;  %v8281_v32 = vmax.f32 %v8249_v41, 0.0  ;;  %v8283_v1 = vmax.f32 %v8251_v27, 0.0  ;;  %v8070_v18 = vld [vmem:[#allocation3 + $0x60] sm:$0xff] }
 0x556   : > { %v10981_v2 = vpop.f32.mrf.mxu1  ;;  %v8211_v52 = vld [vmem:[#allocation3 + $0x1e] sm:$0xff] }
 0x557   : > { %8164 = vst [vmem:[#allocation3 + $0x30] sm:$0xff] %v8114_v20  ;;  %v8250_v23 = vadd.f32 %v13170_v60, %v8211_v52  ;;  %v8074_v27 = vld [vmem:[#allocation3 + $0x80] sm:$0xff] }
 0x558   : > { %v7886_v28 = vpop.f32.mrf.mxu1 }
 0x559   : > { %v8115_v30 = vadd.f32 %v8065_v29, %v7886_v28  ;;  %v8282_v22 = vmax.f32 %v8250_v23, 0.0  ;;  %v8071_v28 = vld [vmem:[#allocation3 + $0x68] sm:$0xff] }
 0x55a   : > { %v10982_v31 = vpop.f32.mrf.mxu1 }
 0x55b   : > { %8165 = vst [vmem:[#allocation3 + $0x38] sm:$0xff] %v8115_v30  ;;  %v8312_v36 = vpack.c.bf16 %v8282_v22, %v8281_v32  ;;  %v11584_v32 = vld [vmem:[#allocation12 + $0x8] sm:$0xff]   ;;  %v8072_v31 = vld [vmem:[#allocation3 + $0x70] sm:$0xff] }
 0x55c   : > { %v7891_v39 = vpop.f32.mrf.mxu1 }
 0x55d   : > { %v8116_v45 = vadd.f32 %v8066_v40, %v7891_v39  ;;  %11084 = vmatmul.mubr.bf16.vlgmr.msra.gmra.mxu0 %v8312_v36 }
 0x55e   : > { %v10985_v33 = vpop.f32.mrf.mxu1  ;;  %11116 = vmatpush3.bf16.msra.mxu0 %v11582_v34 }
 0x55f   : > { %8166 = vst [vmem:[#allocation3 + $0x40] sm:$0xff] %v8116_v45  ;;  %11117 = vmatprep.subr.bf16.mxu0 %v11583_v59  ;;  %v8073_v45 = vld [vmem:[#allocation3 + $0x78] sm:$0xff] }
 0x560   : > { %v7894_v49 = vpop.f32.mrf.mxu1 }
 0x561   : > { %v8117_v51 = vadd.f32 %v8067_v50, %v7894_v49 }
 0x562   : > { %v10986_v57 = vpop.f32.mrf.mxu1  ;;  %v8213_v58 = vld [vmem:[#allocation3 + $0x32] sm:$0xff]  ;;  %11118 = vmatpush3.bf16.msra.mxu0 %v11583_v59 }
 0x563   : > { %8167 = vst [vmem:[#allocation3 + $0x48] sm:$0xff] %v8117_v51  ;;  %v8252_v42 = vadd.f32 %v13170_v60, %v8213_v58  ;;  %11119 = vmatprep.subr.bf16.mxu0 %v11584_v32 }
 0x564   : > { %v7899_v61 = vpop.f32.mrf.mxu1 }
 0x565   : > { %v8118_v63 = vadd.f32 %v8068_v62, %v7899_v61  ;;  %v8284_v8 = vmax.f32 %v8252_v42, 0.0 }
 0x566   : > { %v10989_v5 = vpop.f32.mrf.mxu1  ;;  %v8214_v9 = vld [vmem:[#allocation3 + $0x3c] sm:$0xff]  ;;  %11120 = vmatpush3.bf16.msra.mxu0 %v11584_v32 }
 0x567   : > { %8168 = vst [vmem:[#allocation3 + $0x50] sm:$0xff] %v8118_v63  ;;  %v8313_v10 = vpack.c.bf16 %v8284_v8, %v8283_v1  ;;  %v8253_v17 = vadd.f32 %v13170_v60, %v8214_v9  ;;  %v8075_v63 = vld [vmem:[#allocation3 + $0x88] sm:$0xff] }
 0x568   : > { %v7902_v11 = vpop.f32.mrf.mxu1 }
 0x569   : > { %v8119_v12 = vadd.f32 %v8069_v38, %v7902_v11  ;;  %11087 = vmatprep.mubr.bf16.mxu0 %v8313_v10  ;;  %v8285_v20 = vmax.f32 %v8253_v17, 0.0  ;;  %v11585_v11 = vld [vmem:[#allocation12] sm:$0xff]  }
 0x56a   : > { %v10990_v13 = vpop.f32.mrf.mxu1  ;;  %v8215_v16 = vld [vmem:[#allocation3 + $0x46] sm:$0xff]  ;;  %11121 = vmatprep.subr.bf16.mxu0 %v11585_v11 }
 0x56b   : > { %8169 = vst [vmem:[#allocation3 + $0x58] sm:$0xff] %v8119_v12  ;;  %v8254_v4 = vadd.f32 %v13170_v60, %v8215_v16  ;;  %v8076_v12 = vld [vmem:[#allocation3 + $0x90] sm:$0xff]  ;;  %11122 = vmatpush3.bf16.msra.mxu0 %v11585_v11 }
 0x56c   : > { %v7907_v34 = vpop.f32.mrf.mxu1 }
 0x56d   : > { %v8120_v0 = vadd.f32 %v8070_v18, %v7907_v34  ;;  %v8286_v41 = vmax.f32 %v8254_v4, 0.0  ;;  %v8077_v4 = vld [vmem:[#allocation3 + $0x98] sm:$0xff] }
 0x56e   : > { %v10993_v2 = vpop.f32.mrf.mxu1 }
 0x56f   : > { %8170 = vst [vmem:[#allocation3 + $0x60] sm:$0xff] %v8120_v0  ;;  %v8314_v52 = vpack.c.bf16 %v8286_v41, %v8285_v20 }
 0x570   : > { %v7910_v23 = vpop.f32.mrf.mxu1 }
 0x571   : > { %v8121_v29 = vadd.f32 %v8071_v28, %v7910_v23  ;;  %11088 = vmatmul.mubr.bf16.gmra.mxu0 %v8314_v52  ;;  %v8078_v52 = vld [vmem:[#allocation3 + $0xa0] sm:$0xff] }
 0x572   : > { %v10994_v30 = vpop.f32.mrf.mxu1 }
 0x573   : > { %8171 = vst [vmem:[#allocation3 + $0x68] sm:$0xff] %v8121_v29 }
 0x574   : > { %v7915_v22 = vpop.f32.mrf.mxu1 }
 0x575   : > { %v8122_v36 = vadd.f32 %v8072_v31, %v7915_v22 }
 0x576   : > { %v10997_v39 = vpop.f32.mrf.mxu1 }
 0x577   : > { %8172 = vst [vmem:[#allocation3 + $0x70] sm:$0xff] %v8122_v36  ;;  %v8079_v36 = vld [vmem:[#allocation3 + $0xa8] sm:$0xff] }
 0x578   : > { %v7918_v40 = vpop.f32.mrf.mxu1 }
 0x579   : > { %v8123_v33 = vadd.f32 %v8073_v45, %v7918_v40 }
 0x57a   : > { %v10998_v49 = vpop.f32.mrf.mxu1  ;;  %v8216_v50 = vld [vmem:[#allocation3 + $0x64] sm:$0xff] }
 0x57b   : > { %8173 = vst [vmem:[#allocation3 + $0x78] sm:$0xff] %v8123_v33  ;;  %v8255_v58 = vadd.f32 %v13170_v60, %v8216_v50  ;;  %v8257_v18 = vadd.f32 %v13170_v60, %v8123_v33 }
 0x57c   : > { %v7923_v51 = vpop.f32.mrf.mxu1 }
 0x57d   : > { %v8124_v57 = vadd.f32 %v8074_v27, %v7923_v51  ;;  %v8287_v8 = vmax.f32 %v8255_v58, 0.0  ;;  %v8289_v28 = vmax.f32 %v8257_v18, 0.0  ;;  %v8080_v51 = vld [vmem:[#allocation3 + $0xb0] sm:$0xff] }
 0x57e   : > { %v11001_v42 = vpop.f32.mrf.mxu1  ;;  %v8217_v59 = vld [vmem:[#allocation3 + $0x6e] sm:$0xff] }
 0x57f   : > { %8174 = vst [vmem:[#allocation3 + $0x80] sm:$0xff] %v8124_v57  ;;  %v8256_v61 = vadd.f32 %v13170_v60, %v8217_v59 }
 0x580   : > { %v7926_v62 = vpop.f32.mrf.mxu1 }
 0x581   : > { %v8125_v1 = vadd.f32 %v8075_v63, %v7926_v62  ;;  %v8288_v5 = vmax.f32 %v8256_v61, 0.0  ;;  %v8081_v62 = vld [vmem:[#allocation3 + $0xb8] sm:$0xff] }
 0x582   : > { %v11002_v9 = vpop.f32.mrf.mxu1 }
 0x583   : > { %8175 = vst [vmem:[#allocation3 + $0x88] sm:$0xff] %v8125_v1  ;;  %v8315_v10 = vpack.c.bf16 %v8288_v5, %v8287_v8  ;;  %v8082_v5 = vld [vmem:[#allocation3 + $0xc0] sm:$0xff] }
 0x584   : > { %v7931_v38 = vpop.f32.mrf.mxu1 }
 0x585   : > { %v8126_v17 = vadd.f32 %v8076_v12, %v7931_v38  ;;  %11091 = vmatprep.mubr.bf16.mxu0 %v8315_v10 }
 0x586   : > { %v11005_v13 = vpop.f32.mrf.mxu1 }
 0x587   : > { %8176 = vst [vmem:[#allocation3 + $0x90] sm:$0xff] %v8126_v17  ;;  %v8083_v13 = vld [vmem:[#allocation3 + $0xc8] sm:$0xff] }
 0x588   : > { %v7934_v16 = vpop.f32.mrf.mxu1 }
 0x589   : > { %v8127_v34 = vadd.f32 %v8077_v4, %v7934_v16 }
 0x58a   : > { %v11006_v0 = vpop.f32.mrf.mxu1  ;;  %v8219_v20 = vld [vmem:[#allocation3 + $0x82] sm:$0xff] }
 0x58b   : > { %8177 = vst [vmem:[#allocation3 + $0x98] sm:$0xff] %v8127_v34  ;;  %v8258_v41 = vadd.f32 %v13170_v60, %v8219_v20 }
 0x58c   : > { %v7939_v2 = vpop.f32.mrf.mxu1 }
 0x58d   : > { %v8128_v23 = vadd.f32 %v8078_v52, %v7939_v2  ;;  %v8290_v29 = vmax.f32 %v8258_v41, 0.0  ;;  %v8084_v41 = vld [vmem:[#allocation3 + $0xd0] sm:$0xff] }
 0x58e   : > { %v11009_v30 = vpop.f32.mrf.mxu1  ;;  %v8220_v32 = vld [vmem:[#allocation3 + $0x8c] sm:$0xff] }
 0x58f   : > { %8178 = vst [vmem:[#allocation3 + $0xa0] sm:$0xff] %v8128_v23  ;;  %v8316_v22 = vpack.c.bf16 %v8290_v29, %v8289_v28  ;;  %v8259_v40 = vadd.f32 %v13170_v60, %v8220_v32  ;;  %v8261_v10 = vadd.f32 %v13170_v60, %v8128_v23  ;;  %v8085_v28 = vld [vmem:[#allocation3 + $0xd8] sm:$0xff] }
 0x590   : > { %v7942_v31 = vpop.f32.mrf.mxu1 }
 0x591   : > { %v8129_v39 = vadd.f32 %v8079_v36, %v7942_v31  ;;  %11092 = vmatmul.mubr.bf16.gmra.mxu0 %v8316_v22  ;;  %v8291_v57 = vmax.f32 %v8259_v40, 0.0  ;;  %v8293_v4 = vmax.f32 %v8261_v10, 0.0  ;;  %v8086_v22 = vld [vmem:[#allocation3 + $0xe0] sm:$0xff] }
 0x592   : > { %v11010_v45 = vpop.f32.mrf.mxu1  ;;  %v8221_v33 = vld [vmem:[#allocation3 + $0x96] sm:$0xff] }
 0x593   : > { %8179 = vst [vmem:[#allocation3 + $0xa8] sm:$0xff] %v8129_v39  ;;  %v8260_v49 = vadd.f32 %v13170_v60, %v8221_v33 }
 0x594   : > { %v7947_v50 = vpop.f32.mrf.mxu1 }
 0x595   : > { %v8130_v27 = vadd.f32 %v8080_v51, %v7947_v50  ;;  %v8292_v58 = vmax.f32 %v8260_v49, 0.0 }
 0x596   : > { %v11013_v42 = vpop.f32.mrf.mxu1 }
 0x597   : > { %8180 = vst [vmem:[#allocation3 + $0xb0] sm:$0xff] %v8130_v27  ;;  %v8317_v59 = vpack.c.bf16 %v8292_v58, %v8291_v57 }
 0x598   : > { %v7950_v61 = vpop.f32.mrf.mxu1 }
 0x599   : > { %v8131_v63 = vadd.f32 %v8081_v62, %v7950_v61  ;;  %11095 = vmatprep.mubr.bf16.mxu0 %v8317_v59 }
 0x59a   : > { %v11014_v1 = vpop.f32.mrf.mxu1 }
 0x59b   : > { %8181 = vst [vmem:[#allocation3 + $0xb8] sm:$0xff] %v8131_v63 }
 0x59c   : > { %v7955_v8 = vpop.f32.mrf.mxu1 }
 0x59d   : > { %v8132_v9 = vadd.f32 %v8082_v5, %v7955_v8 }
 0x59e   : > { %v11017_v11 = vpop.f32.mrf.mxu1  ;;  %v8223_v38 = vld [vmem:[#allocation3 + $0xaa] sm:$0xff] }
 0x59f   : > { %8182 = vst [vmem:[#allocation3 + $0xc0] sm:$0xff] %v8132_v9  ;;  %v8262_v12 = vadd.f32 %v13170_v60, %v8223_v38 }
 0x5a0   : > { %v7958_v17 = vpop.f32.mrf.mxu1 }
 0x5a1   : > { %v8133_v16 = vadd.f32 %v8083_v13, %v7958_v17  ;;  %v8294_v34 = vmax.f32 %v8262_v12, 0.0 }
 0x5a2   : > { %v11018_v18 = vpop.f32.mrf.mxu1 }
 0x5a3   : > { %8183 = vst [vmem:[#allocation3 + $0xc8] sm:$0xff] %v8133_v16  ;;  %v8318_v0 = vpack.c.bf16 %v8294_v34, %v8293_v4  ;;  %v8263_v45 = vadd.f32 %v13170_v60, %v8133_v16 }
 0x5a4   : > { %v7963_v20 = vpop.f32.mrf.mxu1 }
 0x5a5   : > { %v8134_v2 = vadd.f32 %v8084_v41, %v7963_v20  ;;  %11096 = vmatmul.mubr.bf16.gmra.mxu0 %v8318_v0  ;;  %v8295_v57 = vmax.f32 %v8263_v45, 0.0 }
 0x5a6   : > { %v11021_v52 = vpop.f32.mrf.mxu1 }
 0x5a7   : > { %8184 = vst [vmem:[#allocation3 + $0xd0] sm:$0xff] %v8134_v2 }
 0x5a8   : > { %v7966_v23 = vpop.f32.mrf.mxu1 }
 0x5a9   : > { %v8135_v29 = vadd.f32 %v8085_v28, %v7966_v23 }
 0x5aa   : > { %v11022_v30 = vpop.f32.mrf.mxu1 }
 0x5ab   : > { %8185 = vst [vmem:[#allocation3 + $0xd8] sm:$0xff] %v8135_v29 }
 0x5ac   : > { %v7971_v32 = vpop.f32.mrf.mxu1 }
 0x5ad   : > { %v8136_v31 = vadd.f32 %v8086_v22, %v7971_v32 }
 0x5ae   : > { %v11025_v36 = vpop.f32.mrf.mxu1 }
 0x5af   : > { %8186 = vst [vmem:[#allocation3 + $0xe0] sm:$0xff] %v8136_v31 }
 0x5b0   : > { %v7974_v39 = vpop.f32.mrf.mxu1 }
 0x5b1   : > { %v8137_v40 = vadd.f32 %v7974_v39, %v13100_v46 }
 0x5b2   : > { %v11026_v33 = vpop.f32.mrf.mxu1  ;;  %v8225_v49 = vld [vmem:[#allocation3 + $0xd2] sm:$0xff] }
 0x5b3   : > { %8187 = vst [vmem:[#allocation3 + $0xe8] sm:$0xff] %v8137_v40  ;;  %v8264_v50 = vadd.f32 %v13170_v60, %v8225_v49 }
 0x5b4   : > { %v7979_v51 = vpop.f32.mrf.mxu1 }
 0x5b5   : > { %v8138_v27 = vadd.f32 %v7979_v51, %v13102_v56  ;;  %v8296_v58 = vmax.f32 %v8264_v50, 0.0 }
 0x5b6   : > { %v11029_v42 = vpop.f32.mrf.mxu1  ;;  %v8226_v59 = vld [vmem:[#allocation3 + $0xdc] sm:$0xff] }
 0x5b7   : > { %8188 = vst [vmem:[#allocation3 + $0xf0] sm:$0xff] %v8138_v27  ;;  %v8319_v61 = vpack.c.bf16 %v8296_v58, %v8295_v57  ;;  %v8265_v46 = vadd.f32 %v13170_v60, %v8226_v59  ;;  %v8267_v34 = vadd.f32 %v13170_v60, %v8138_v27 }
 0x5b8   : > { %v7982_v62 = vpop.f32.mrf.mxu1 }
 0x5b9   : > { %v8139_v63 = vadd.f32 %v7982_v62, %v13107_v43  ;;  %11099 = vmatprep.mubr.bf16.mxu0 %v8319_v61  ;;  %v8297_v10 = vmax.f32 %v8265_v46, 0.0  ;;  %v8299_v2 = vmax.f32 %v8267_v34, 0.0 }
 0x5ba   : > { %v11030_v1 = vpop.f32.mrf.mxu1  ;;  %v8227_v8 = vld [vmem:[#allocation3 + $0xe6] sm:$0xff] }
 0x5bb   : > { %8189 = vst [vmem:[#allocation3 + $0xf8] sm:$0xff] %v8139_v63  ;;  %v8266_v5 = vadd.f32 %v13170_v60, %v8227_v8 }
 0x5bc   : > { %v7987_v9 = vpop.f32.mrf.mxu1 }
 0x5bd   : > { %v8140_v56 = vadd.f32 %v7987_v9, %v13109_v53  ;;  %v8298_v11 = vmax.f32 %v8266_v5, 0.0 }
 0x5be   : > { %v11033_v38 = vpop.f32.mrf.mxu1 }
 0x5bf   : > { %8190 = vst [vmem:[#allocation3 + $0x100] sm:$0xff] %v8140_v56  ;;  %v8320_v12 = vpack.c.bf16 %v8298_v11, %v8297_v10 }
 0x5c0   : > { %v7990_v17 = vpop.f32.mrf.mxu1 }
 0x5c1   : > { %v8141_v13 = vadd.f32 %v7990_v17, %v13114_v3  ;;  %11100 = vmatmul.mubr.bf16.gmra.mxu0 %v8320_v12 }
 0x5c2   : > { %v11034_v43 = vpop.f32.mrf.mxu1 }
 0x5c3   : > { %8191 = vst [vmem:[#allocation3 + $0x108] sm:$0xff] %v8141_v13 }
 0x5c4   : > { %v7995_v16 = vpop.f32.mrf.mxu1 }
 0x5c5   : > { %v8142_v4 = vadd.f32 %v7995_v16, %v13116_v19 }
 0x5c6   : > { %v11037_v18 = vpop.f32.mrf.mxu1  ;;  %v8229_v0 = vld [vmem:[#allocation3 + $0xfa] sm:$0xff] }
 0x5c7   : > { %8192 = vst [vmem:[#allocation3 + $0x110] sm:$0xff] %v8142_v4  ;;  %v8268_v53 = vadd.f32 %v13170_v60, %v8229_v0 }
 0x5c8   : > { %v7998_v20 = vpop.f32.mrf.mxu1 }
 0x5c9   : > { %v8143_v41 = vadd.f32 %v7998_v20, %v13121_v25  ;;  %v8300_v52 = vmax.f32 %v8268_v53, 0.0 }
 0x5ca   : > { %v11038_v23 = vpop.f32.mrf.mxu1  ;;  %v8230_v3 = vld [vmem:[#allocation3 + $0x104] sm:$0xff] }
 0x5cb   : > { %8193 = vst [vmem:[#allocation3 + $0x118] sm:$0xff] %v8143_v41  ;;  %v8321_v28 = vpack.c.bf16 %v8300_v52, %v8299_v2  ;;  %v8269_v19 = vadd.f32 %v13170_v60, %v8230_v3 }
 0x5cc   : > { %v8003_v29 = vpop.f32.mrf.mxu1 }
 0x5cd   : > { %v8144_v30 = vadd.f32 %v8003_v29, %v13123_v37  ;;  %11103 = vmatprep.mubr.bf16.mxu0 %v8321_v28  ;;  %v8301_v39 = vmax.f32 %v8269_v19, 0.0 }
 0x5ce   : > { %v11041_v32 = vpop.f32.mrf.mxu1  ;;  %v8231_v22 = vld [vmem:[#allocation3 + $0x10e] sm:$0xff] }
 0x5cf   : > { %8194 = vst [vmem:[#allocation3 + $0x120] sm:$0xff] %v8144_v30  ;;  %v8270_v31 = vadd.f32 %v13170_v60, %v8231_v22 }
 0x5d0   : > { %v8006_v36 = vpop.f32.mrf.mxu1 }
 0x5d1   : > { %v8145_v25 = vadd.f32 %v8006_v36, %v13128_v54  ;;  %v8302_v40 = vmax.f32 %v8270_v31, 0.0 }
 0x5d2   : > { %v11042_v45 = vpop.f32.mrf.mxu1 }
 0x5d3   : > { %8195 = vst [vmem:[#allocation3 + $0x128] sm:$0xff] %v8145_v25  ;;  %v8322_v33 = vpack.c.bf16 %v8302_v40, %v8301_v39 }
 0x5d4   : > { %v8011_v49 = vpop.f32.mrf.mxu1 }
 0x5d5   : > { %v8146_v50 = vadd.f32 %v8011_v49, %v13130_v47  ;;  %11104 = vmatmul.mubr.bf16.gmra.mxu0 %v8322_v33  ;;  %v11586_v33 = vld [vmem:[%s12034_s24] sm:$0xff]  }
 0x5d6   : > { %v11045_v37 = vpop.f32.mrf.mxu1 }
 0x5d7   : > { %8196 = vst [vmem:[#allocation3 + $0x130] sm:$0xff] %v8146_v50  ;;  %v11588_v50 = vld [vmem:[%s12034_s24 + $0x10] sm:$0xff]   ;;  %v11589_v37 = vld [vmem:[%s12034_s24 + $0x18] sm:$0xff]  }
 0x5d8   : > { %v8014_v51 = vpop.f32.mrf.mxu1 }
 0x5d9   : > { %v8147_v27 = vadd.f32 %v8014_v51, %v13135_v7  ;;  %v11591_v51 = vld [vmem:[%s12034_s24 + $0x28] sm:$0xff]  }
 0x5da   : > { %v11046_v57 = vpop.f32.mrf.mxu1 }
 0x5db   : > { %8197 = vst [vmem:[#allocation3 + $0x138] sm:$0xff] %v8147_v27  ;;  %v11592_v27 = vld [vmem:[%s12034_s24 + $0x30] sm:$0xff]   ;;  %v11593_v57 = vld [vmem:[%s12034_s24 + $0x38] sm:$0xff]  }
 0x5dc   : > { %v8019_v58 = vpop.f32.mrf.mxu1 }
 0x5dd   : > { %v8148_v42 = vadd.f32 %v8019_v58, %v13137_v14  ;;  %v11594_v58 = vld [vmem:[%s12034_s24 + $0x40] sm:$0xff]  }
 0x5de   : > { %v11049_v54 = vpop.f32.mrf.mxu1  ;;  %v8232_v59 = vld [vmem:[#allocation3 + $0x12c] sm:$0xff] }
 0x5df   : > { %8198 = vst [vmem:[#allocation3 + $0x140] sm:$0xff] %v8148_v42  ;;  %v8271_v63 = vadd.f32 %v13170_v60, %v8232_v59  ;;  %v8273_v17 = vadd.f32 %v13170_v60, %v8148_v42  ;;  %v11595_v42 = vld [vmem:[%s12034_s24 + $0x48] sm:$0xff]   ;;  %v11596_v54 = vld [vmem:[%s12034_s24 + $0x50] sm:$0xff]   ;;  %v11597_v59 = vld [vmem:[%s12034_s24 + $0x58] sm:$0xff]  }
 0x5e0   : > { %v8022_v61 = vpop.f32.mrf.mxu1 }
 0x5e1   : > { %v8149_v62 = vadd.f32 %v8022_v61, %v13142_v21  ;;  %v8303_v5 = vmax.f32 %v8271_v63, 0.0  ;;  %v8305_v34 = vmax.f32 %v8273_v17, 0.0  ;;  %v11598_v61 = vld [vmem:[%s12034_s24 + $0x60] sm:$0xff]   ;;  %v11600_v63 = vld [vmem:[%s12034_s24 + $0x70] sm:$0xff]  }
 0x5e2   : > { %v11050_v47 = vpop.f32.mrf.mxu1  ;;  %v8233_v46 = vld [vmem:[#allocation3 + $0x136] sm:$0xff] }
 0x5e3   : > { %8199 = vst [vmem:[#allocation3 + $0x148] sm:$0xff] %v8149_v62  ;;  %v8272_v1 = vadd.f32 %v13170_v60, %v8233_v46  ;;  %v11599_v62 = vld [vmem:[%s12034_s24 + $0x68] sm:$0xff]   ;;  %v11601_v47 = vld [vmem:[%s12034_s24 + $0x78] sm:$0xff]  }
 0x5e4   : > { %v8027_v8 = vpop.f32.mrf.mxu1 }
 0x5e5   : > { %v8150_v7 = vadd.f32 %v8027_v8, %v13144_v35  ;;  %v8304_v9 = vmax.f32 %v8272_v1, 0.0 }
 0x5e6   : > { %v11053_v56 = vpop.f32.mrf.mxu1 }
 0x5e7   : > { %8200 = vst [vmem:[#allocation3 + $0x150] sm:$0xff] %v8150_v7  ;;  %v8323_v14 = vpack.c.bf16 %v8304_v9, %v8303_v5 }
 0x5e8   : > { %v8030_v10 = vpop.f32.mrf.mxu1 }
 0x5e9   : > { %v8151_v11 = vadd.f32 %v8030_v10, %v13149_v24  ;;  %11107 = vmatprep.mubr.bf16.mxu0 %v8323_v14 }
 0x5ea   : > { %v11054_v21 = vpop.f32.mrf.mxu1 }
 0x5eb   : > { %8201 = vst [vmem:[#allocation3 + $0x158] sm:$0xff] %v8151_v11 }
 0x5ec   : > { %v8035_v38 = vpop.f32.mrf.mxu1 }
 0x5ed   : > { %v8152_v12 = vadd.f32 %v8035_v38, %v13151_v44 }
 0x5ee   : > { %v11057_v13 = vpop.f32.mrf.mxu1  ;;  %v8235_v43 = vld [vmem:[#allocation3 + $0x14a] sm:$0xff] }
 0x5ef   : > { %8202 = vst [vmem:[#allocation3 + $0x160] sm:$0xff] %v8152_v12  ;;  %v8274_v35 = vadd.f32 %v13170_v60, %v8235_v43 }
 0x5f0   : > { %v8038_v16 = vpop.f32.mrf.mxu1 }
 0x5f1   : > { %v8153_v4 = vadd.f32 %v8038_v16, %v13156_v6  ;;  %v8306_v18 = vmax.f32 %v8274_v35, 0.0 }
 0x5f2   : > { %v11058_v0 = vpop.f32.mrf.mxu1  ;;  %v8236_v24 = vld [vmem:[#allocation3 + $0x154] sm:$0xff] }
 0x5f3   : > { %8203 = vst [vmem:[#allocation3 + $0x168] sm:$0xff] %v8153_v4  ;;  %v8324_v53 = vpack.c.bf16 %v8306_v18, %v8305_v34  ;;  %v8275_v44 = vadd.f32 %v13170_v60, %v8236_v24 }
 0x5f4   : > { %v8043_v20 = vpop.f32.mrf.mxu1 }
 0x5f5   : > { %v8154_v41 = vadd.f32 %v8043_v20, %v13159_v15  ;;  %11108 = vmatmul.mubr.bf16.gmra.mxu0 %v8324_v53  ;;  %v8307_v28 = vmax.f32 %v8275_v44, 0.0 }
 0x5f6   : > { %v11061_v2 = vpop.f32.mrf.mxu1  ;;  %v8237_v52 = vld [vmem:[#allocation3 + $0x15e] sm:$0xff] }
 0x5f7   : > { %8204 = vst [vmem:[#allocation3 + $0x170] sm:$0xff] %v8154_v41  ;;  %v8276_v23 = vadd.f32 %v13170_v60, %v8237_v52 }
 0x5f8   : > { %v8046_v3 = vpop.f32.mrf.mxu1 }
 0x5f9   : > { %v8155_v6 = vadd.f32 %v8046_v3, %v13161_v26  ;;  %v8308_v29 = vmax.f32 %v8276_v23, 0.0  ;;  %v8277_v26 = vadd.f32 %v13170_v60, %v8153_v4 }
 0x5fa   : > { %v11062_v30 = vpop.f32.mrf.mxu1 }
 0x5fb   : > { %8205 = vst [vmem:[#allocation3 + $0x178] sm:$0xff] %v8155_v6  ;;  %v8325_v19 = vpack.c.bf16 %v8308_v29, %v8307_v28  ;;  %v13308_v6 = vld [vmem:[%s13497_s6] ss:$0 sm:$0xff] }
 0x5fc   : > { %v8051_v32 = vpop.f32.mrf.mxu1  ;;  %v13315_v29 = vld [vmem:[%s13499_s8] ss:$0 sm:$0xff] }
 0x5fd   : > { %v8156_v15 = vadd.f32 %v8051_v32, %v13163_v48  ;;  %11111 = vmatprep.mubr.bf16.mxu0 %v8325_v19  ;;  %v8309_v48 = vmax.f32 %v8277_v26, 0.0 }
 0x5fe   : > { %v11065_v22 = vpop.f32.mrf.mxu1 }
 0x5ff   : > { %8206 = vst [vmem:[#allocation3 + $0x180] sm:$0xff] %v8156_v15 }
 0x600   : > { %v8054_v31 = vpop.f32.mrf.mxu1 }
 0x601   : > { %v8157_v36 = vadd.f32 %v8054_v31, %v13165_v55  ;;  %v11587_v55 = vld [vmem:[%s12034_s24 + $0x8] sm:$0xff]  }
 0x602   : > { %v8239_v25 = vld [vmem:[#allocation3 + $0x172] sm:$0xff]  ;;  %v11066_v39 = vpop.f32.mrf.mxu1 }
 0x603   : > { %8207 = vst [vmem:[#allocation3 + $0x188] sm:$0xff] %v8157_v36  ;;  %v8278_v40 = vadd.f32 %v13170_v60, %v8239_v25  ;;  %v11590_v60 = vld [vmem:[%s12034_s24 + $0x20] sm:$0xff]   ;;  %s9030_s24 = sshll.u32 %s13325_s5, 4  ;;  %s13446_s24 = int_to_ptr.vmem [resolvable:$true] %s9030_s24 }
 0x604   : > { %s11735_s14 = scalar_lea.vmem %s13446_s24, 4096  ;;  %p11742_p13 = scmp.lt.s32.totalorder %s13446_s24, %s11740_s20 }
 0x605   : > { %v8310_v45 = vmax.f32 %v8278_v40, 0.0  ;;  %p11736_p10 = scmp.ne.s32.totalorder %s13446_s24, %s11735_s14  ;;  %p11743_p0 = scmp.lt.s32.totalorder %s11741_s21, %s11735_s14 }
 0x607   : > { %v8326_v49 = vpack.c.bf16 %v8310_v45, %v8309_v48  ;;  %p11737_p7 = pnand %p11736_p10, %p13563_p12  ;;  %p11744_p11 = por %p11743_p0, %p11742_p13 }
 0x609   : > { %11112 = vmatmul.mubr.bf16.gmra.mxu0 %v8326_v49  ;;  %p11738_p1 = pneg %p11737_p7 }
 0x60a   : > { %11123 = vmatprep.mubr.msk.bf16.mxu0 %vm13547_vm14, %v11586_v33 }
 0x60b   : > { %p11745_p5 = pnand %p11744_p11, %p11738_p1 }
 0x611   : > { %11124 = vmatmul.mubr.msk.bf16.vlgmr.msra.gmra.mxu0 %vm13548_vm15, %v11587_v55 }
 0x612   : > { %11127 = vmatprep.mubr.msk.bf16.mxu0 %vm13549_vm2, %v11588_v50 }
 0x619   : > { %11128 = vmatmul.mubr.msk.bf16.gmra.mxu0 %vm13550_vm3, %v11589_v37 }
 0x61a   : > { %11131 = vmatprep.mubr.msk.bf16.mxu0 %vm13551_vm5, %v11590_v60 }
 0x61d   : > { %v11085_v46 = vpop.f32.mrf.mxu0 }
 0x61e   : > { %v8441_v19 = vadd.f32 %v11085_v46, %v13308_v6 }
 0x61f   : > { %v8432_v1 = vpop.f32.mrf.mxu0 }
 0x620   : > { %v8433_v22 = vadd.f32 %v13308_v6, %v8432_v1 }
 0x621   : > { %11132 = vmatmul.mubr.msk.bf16.gmra.mxu0 %vm13552_vm6, %v11591_v51  ;;  %v11086_v8 = vpop.f32.mrf.mxu0 }
 0x622   : > { %11135 = vmatprep.mubr.msk.bf16.mxu0 %vm13553_vm7, %v11592_v27  ;;  %v8444_v25 = vadd.f32 %v11086_v8, %v13308_v6 }
 0x623   : > { %v8435_v7 = vpop.f32.mrf.mxu0 }
 0x624   : > { %v8436_v33 = vadd.f32 %v13308_v6, %v8435_v7 }
 0x629   : > { %11136 = vmatmul.mubr.msk.bf16.gmra.mxu0 %vm13554_vm4, %v11593_v57 }
 0x62a   : > { %11139 = vmatprep.mubr.msk.bf16.mxu0 %vm13555_vm8, %v11594_v58 }
 0x631   : > { %11140 = vmatmul.mubr.msk.bf16.gmra.mxu0 %vm13556_vm0, %v11595_v42  ;;  %v11089_v5 = vpop.f32.mrf.mxu0 }
 0x632   : > { %11143 = vmatprep.mubr.msk.bf16.mxu0 %vm13557_vm1, %v11596_v54  ;;  %v8457_v60 = vadd.f32 %v11089_v5, %v13308_v6 }
 0x633   : > { %v8448_v9 = vpop.f32.mrf.mxu0 }
 0x634   : > { %v8449_v42 = vadd.f32 %v13308_v6, %v8448_v9 }
 0x635   : > { %v11090_v56 = vpop.f32.mrf.mxu0 }
 0x637   : > { %v13257_v14 = vpop.f32.mrf.mxu0 }
 0x638   : > { %v8452_v7 = vadd.f32 %v13308_v6, %v13257_v14 }
 0x639   : > { %11144 = vmatmul.mubr.msk.bf16.gmra.mxu0 %vm13558_vm9, %v11597_v59 }
 0x63a   : > { %11147 = vmatprep.mubr.msk.bf16.mxu0 %vm13559_vm10, %v11598_v61 }
 0x641   : > { %11148 = vmatmul.mubr.msk.bf16.gmra.mxu0 %vm13560_vm11, %v11599_v62 }
 0x642   : > { %11151 = vmatprep.mubr.msk.bf16.mxu0 %vm13561_vm12, %v11600_v63  ;;  %v8460_v63 = vadd.f32 %v11090_v56, %v13308_v6 }
 0x649   : > { %11152 = vmatmul.mubr.msk.bf16.gmra.mxu0 %vm13562_vm13, %v11601_v47 }
 0x651   : > { %v13259_v10 = vpop.f32.mrf.mxu0 }
 0x652   : > { %v8473_v56 = vadd.f32 %v13259_v10, %v13308_v6 }
 0x653   : > { %v13261_v11 = vpop.f32.mrf.mxu0 }
 0x654   : > { %v8465_v14 = vadd.f32 %v13308_v6, %v13261_v11 }
 0x655   : > { %v13263_v21 = vpop.f32.mrf.mxu0 }
 0x656   : > { %v8476_v10 = vadd.f32 %v13263_v21, %v13308_v6 }
 0x657   : > { %v13265_v38 = vpop.f32.mrf.mxu0 }
 0x658   : > { %v8468_v11 = vadd.f32 %v13308_v6, %v13265_v38 }
 0x665   : > { %v13267_v12 = vpop.f32.mrf.mxu0 }
 0x666   : > { %v8489_v21 = vadd.f32 %v13267_v12, %v13308_v6 }
 0x667   : > { %v13269_v17 = vpop.f32.mrf.mxu0 }
 0x668   : > { %v8481_v38 = vadd.f32 %v13308_v6, %v13269_v17 }
 0x669   : > { %v13271_v13 = vpop.f32.mrf.mxu0 }
 0x66a   : > { %v8492_v12 = vadd.f32 %v13271_v13, %v13308_v6 }
 0x66b   : > { %v13273_v43 = vpop.f32.mrf.mxu0 }
 0x66c   : > { %v8484_v17 = vadd.f32 %v13308_v6, %v13273_v43 }
 0x681   : > { %v13275_v35 = vpop.f32.mrf.mxu0 }
 0x682   : > { %v8505_v13 = vadd.f32 %v13275_v35, %v13308_v6 }
 0x683   : > { %v13277_v16 = vpop.f32.mrf.mxu0 }
 0x684   : > { %v8497_v43 = vadd.f32 %v13308_v6, %v13277_v16 }
 0x685   : > { %v13279_v4 = vpop.f32.mrf.mxu0 }
 0x686   : > { %v8508_v35 = vadd.f32 %v13279_v4, %v13308_v6 }
 0x687   : > { %v13281_v34 = vpop.f32.mrf.mxu0 }
 0x688   : > { %v8500_v16 = vadd.f32 %v13308_v6, %v13281_v34 }
 0x695   : > { %v13283_v18 = vpop.f32.mrf.mxu0 }
 0x696   : > { %v8521_v4 = vadd.f32 %v13283_v18, %v13308_v6 }
 0x697   : > { %v13285_v0 = vpop.f32.mrf.mxu0 }
 0x698   : > { %v8513_v34 = vadd.f32 %v13308_v6, %v13285_v0 }
 0x699   : > { %v13287_v24 = vpop.f32.mrf.mxu0 }
 0x69a   : > { %v8524_v18 = vadd.f32 %v13287_v24, %v13308_v6 }
 0x69b   : > { %v13289_v53 = vpop.f32.mrf.mxu0 }
 0x69c   : > { %v8516_v0 = vadd.f32 %v13308_v6, %v13289_v53 }
 0x6b5   : > { %v13291_v20 = vpop.f32.mrf.mxu0 }
 0x6b6   : > { %v8537_v24 = vadd.f32 %v13291_v20, %v13308_v6 }
 0x6b7   : > { %v13293_v41 = vpop.f32.mrf.mxu0 }
 0x6b8   : > { %v8529_v53 = vadd.f32 %v13308_v6, %v13293_v41 }
 0x6b9   : > { %v13295_v44 = vpop.f32.mrf.mxu0 }
 0x6ba   : > { %v8540_v20 = vadd.f32 %v13295_v44, %v13308_v6 }
 0x6bb   : > { %v13297_v2 = vpop.f32.mrf.mxu0 }
 0x6bc   : > { %v8532_v41 = vadd.f32 %v13308_v6, %v13297_v2 }
 0x6c9   : > { %v13299_v52 = vpop.f32.mrf.mxu0 }
 0x6ca   : > { %v8553_v44 = vadd.f32 %v13299_v52, %v13308_v6 }
 0x6cb   : > { %v13301_v23 = vpop.f32.mrf.mxu0 }
 0x6cc   : > { %v8545_v2 = vadd.f32 %v13308_v6, %v13301_v23 }
 0x6cd   : > { %v13303_v3 = vpop.f32.mrf.mxu0 }
 0x6ce   : > { %v8556_v52 = vadd.f32 %v13303_v3, %v13308_v6 }
 0x6cf   : > { %v13310_v28 = vpop.f32.mrf.mxu0 }
 0x6d1   : > { %v11125_v30 = vpop.f32.mrf.mxu0 }
 0x6d2   : > { %v8801_v32 = vadd.f32 %v11125_v30, %v13315_v29 }
 0x6d3   : > { %v8792_v15 = vpop.f32.mrf.mxu0 }
 0x6d4   : > { %v8921_v31 = vadd.f32 %v8801_v32, %v8441_v19  ;;  %v8793_v36 = vadd.f32 %v13315_v29, %v8792_v15 }
 0x6d5   : > { %v11126_v26 = vpop.f32.mrf.mxu0 }
 0x6d6   : > { %v8953_v39 = vmax.f32 %v8921_v31, 0.0  ;;  %v8919_v40 = vadd.f32 %v8793_v36, %v8433_v22  ;;  %v8804_v48 = vadd.f32 %v11126_v26, %v13315_v29 }
 0x6d7   : > { %v8795_v45 = vpop.f32.mrf.mxu0 }
 0x6d8   : > { %8985 = vst [vmem:[%s13325_s5 + $0x10] sm:$0xff] %v8953_v39  ;;  %v8951_v49 = vmax.f32 %v8919_v40, 0.0  ;;  %v8922_v55 = vadd.f32 %v8804_v48, %v8444_v25  ;;  %v8796_v50 = vadd.f32 %v13315_v29, %v8795_v45 }
 0x6d9   : > { %v11129_v37 = vpop.f32.mrf.mxu0 }
 0x6da   : > { %8983 = vst [vmem:[%s13325_s5] sm:$0xff] %v8951_v49  ;;  %v8954_v51 = vmax.f32 %v8922_v55, 0.0  ;;  %v8920_v27 = vadd.f32 %v8796_v50, %v8436_v33  ;;  %v8817_v57 = vadd.f32 %v11129_v37, %v13315_v29 }
 0x6db   : > { %v8808_v58 = vpop.f32.mrf.mxu0 }
 0x6dc   : > { %8986 = vst [vmem:[%s13325_s5 + $0x18] sm:$0xff] %v8954_v51  ;;  %v8952_v54 = vmax.f32 %v8920_v27, 0.0  ;;  %v8925_v59 = vadd.f32 %v8817_v57, %v8457_v60  ;;  %v8809_v61 = vadd.f32 %v13315_v29, %v8808_v58 }
 0x6dd   : > { %v11130_v62 = vpop.f32.mrf.mxu0 }
 0x6de   : > { %8984 = vst [vmem:[%s13325_s5 + $0x8] sm:$0xff] %v8952_v54  ;;  %v8957_v47 = vmax.f32 %v8925_v59, 0.0  ;;  %v8923_v46 = vadd.f32 %v8809_v61, %v8449_v42  ;;  %v8820_v1 = vadd.f32 %v11130_v62, %v13315_v29 }
 0x6df   : > { %v8811_v8 = vpop.f32.mrf.mxu0 }
 0x6e0   : > { %8989 = vst [vmem:[%s13325_s5 + $0x30] sm:$0xff] %v8957_v47  ;;  %v8955_v5 = vmax.f32 %v8923_v46, 0.0  ;;  %v8926_v9 = vadd.f32 %v8820_v1, %v8460_v63  ;;  %v8812_v30 = vadd.f32 %v13315_v29, %v8811_v8 }
 0x6e1   : > { %v11133_v19 = vpop.f32.mrf.mxu0 }
 0x6e2   : > { %8987 = vst [vmem:[%s13325_s5 + $0x20] sm:$0xff] %v8955_v5  ;;  %v8958_v32 = vmax.f32 %v8926_v9, 0.0  ;;  %v8924_v15 = vadd.f32 %v8812_v30, %v8452_v7  ;;  %v8833_v22 = vadd.f32 %v11133_v19, %v13315_v29 }
 0x6e3   : > { %v8824_v31 = vpop.f32.mrf.mxu0 }
 0x6e4   : > { %8990 = vst [vmem:[%s13325_s5 + $0x38] sm:$0xff] %v8958_v32  ;;  %v8956_v36 = vmax.f32 %v8924_v15, 0.0  ;;  %v8929_v26 = vadd.f32 %v8833_v22, %v8473_v56  ;;  %v8825_v25 = vadd.f32 %v13315_v29, %v8824_v31 }
 0x6e5   : > { %v11134_v39 = vpop.f32.mrf.mxu0 }
 0x6e6   : > { %8988 = vst [vmem:[%s13325_s5 + $0x28] sm:$0xff] %v8956_v36  ;;  %v8961_v40 = vmax.f32 %v8929_v26, 0.0  ;;  %v8927_v48 = vadd.f32 %v8825_v25, %v8465_v14  ;;  %v8836_v45 = vadd.f32 %v11134_v39, %v13315_v29 }
 0x6e7   : > { %v8827_v33 = vpop.f32.mrf.mxu0 }
 0x6e8   : > { %8993 = vst [vmem:[%s13325_s5 + $0x50] sm:$0xff] %v8961_v40  ;;  %v8959_v49 = vmax.f32 %v8927_v48, 0.0  ;;  %v8930_v55 = vadd.f32 %v8836_v45, %v8476_v10  ;;  %v8828_v50 = vadd.f32 %v13315_v29, %v8827_v33 }
 0x6e9   : > { %v11137_v37 = vpop.f32.mrf.mxu0 }
 0x6ea   : > { %8991 = vst [vmem:[%s13325_s5 + $0x40] sm:$0xff] %v8959_v49  ;;  %v8962_v60 = vmax.f32 %v8930_v55, 0.0  ;;  %v8928_v51 = vadd.f32 %v8828_v50, %v8468_v11  ;;  %v8849_v27 = vadd.f32 %v11137_v37, %v13315_v29 }
 0x6eb   : > { %v8840_v57 = vpop.f32.mrf.mxu0 }
 0x6ec   : > { %8994 = vst [vmem:[%s13325_s5 + $0x58] sm:$0xff] %v8962_v60  ;;  %v8960_v58 = vmax.f32 %v8928_v51, 0.0  ;;  %v8933_v42 = vadd.f32 %v8849_v27, %v8489_v21  ;;  %v8841_v54 = vadd.f32 %v13315_v29, %v8840_v57 }
 0x6ed   : > { %v11138_v59 = vpop.f32.mrf.mxu0 }
 0x6ee   : > { %8992 = vst [vmem:[%s13325_s5 + $0x48] sm:$0xff] %v8960_v58  ;;  %v8965_v61 = vmax.f32 %v8933_v42, 0.0  ;;  %v8931_v62 = vadd.f32 %v8841_v54, %v8481_v38  ;;  %v8852_v63 = vadd.f32 %v11138_v59, %v13315_v29 }
 0x6ef   : > { %v8843_v47 = vpop.f32.mrf.mxu0 }
 0x6f0   : > { %8997 = vst [vmem:[%s13325_s5 + $0x70] sm:$0xff] %v8965_v61  ;;  %v8963_v46 = vmax.f32 %v8931_v62, 0.0  ;;  %v8934_v1 = vadd.f32 %v8852_v63, %v8492_v12  ;;  %v8844_v8 = vadd.f32 %v13315_v29, %v8843_v47 }
 0x6f1   : > { %v11141_v7 = vpop.f32.mrf.mxu0 }
 0x6f2   : > { %8995 = vst [vmem:[%s13325_s5 + $0x60] sm:$0xff] %v8963_v46  ;;  %v8966_v5 = vmax.f32 %v8934_v1, 0.0  ;;  %v8932_v9 = vadd.f32 %v8844_v8, %v8484_v17  ;;  %v8865_v30 = vadd.f32 %v11141_v7, %v13315_v29 }
 0x6f3   : > { %v8856_v19 = vpop.f32.mrf.mxu0 }
 0x6f4   : > { %8998 = vst [vmem:[%s13325_s5 + $0x78] sm:$0xff] %v8966_v5  ;;  %v8964_v56 = vmax.f32 %v8932_v9, 0.0  ;;  %v8937_v32 = vadd.f32 %v8865_v30, %v8505_v13  ;;  %v8857_v15 = vadd.f32 %v13315_v29, %v8856_v19 }
 0x6f5   : > { %v11142_v22 = vpop.f32.mrf.mxu0 }
 0x6f6   : > { %8996 = vst [vmem:[%s13325_s5 + $0x68] sm:$0xff] %v8964_v56  ;;  %v8969_v31 = vmax.f32 %v8937_v32, 0.0  ;;  %v8935_v14 = vadd.f32 %v8857_v15, %v8497_v43  ;;  %v8868_v36 = vadd.f32 %v11142_v22, %v13315_v29 }
 0x6f7   : > { %v8859_v26 = vpop.f32.mrf.mxu0 }
 0x6f8   : > { %9001 = vst [vmem:[%s13325_s5 + $0x90] sm:$0xff] %v8969_v31  ;;  %v8967_v25 = vmax.f32 %v8935_v14, 0.0  ;;  %v8938_v39 = vadd.f32 %v8868_v36, %v8508_v35  ;;  %v8860_v10 = vadd.f32 %v13315_v29, %v8859_v26 }
 0x6f9   : > { %v11145_v40 = vpop.f32.mrf.mxu0 }
 0x6fa   : > { %8999 = vst [vmem:[%s13325_s5 + $0x80] sm:$0xff] %v8967_v25  ;;  %v8970_v48 = vmax.f32 %v8938_v39, 0.0  ;;  %v8936_v45 = vadd.f32 %v8860_v10, %v8500_v16  ;;  %v8881_v33 = vadd.f32 %v11145_v40, %v13315_v29  ;;  %v8548_v16 = vadd.f32 %v13308_v6, %v13310_v28 }
 0x6fb   : > { %v8872_v11 = vpop.f32.mrf.mxu0 }
 0x6fc   : > { %9002 = vst [vmem:[%s13325_s5 + $0x98] sm:$0xff] %v8970_v48  ;;  %v8968_v49 = vmax.f32 %v8936_v45, 0.0  ;;  %v8941_v55 = vadd.f32 %v8881_v33, %v8521_v4  ;;  %v8873_v50 = vadd.f32 %v13315_v29, %v8872_v11 }
 0x6fd   : > { %v11146_v37 = vpop.f32.mrf.mxu0 }
 0x6fe   : > { %9000 = vst [vmem:[%s13325_s5 + $0x88] sm:$0xff] %v8968_v49  ;;  %v8973_v21 = vmax.f32 %v8941_v55, 0.0  ;;  %v8939_v60 = vadd.f32 %v8873_v50, %v8513_v34  ;;  %v8884_v51 = vadd.f32 %v11146_v37, %v13315_v29 }
 0x6ff   : > { %v8875_v27 = vpop.f32.mrf.mxu0 }
 0x700   : > { %9005 = vst [vmem:[%s13325_s5 + $0xb0] sm:$0xff] %v8973_v21  ;;  %v8971_v57 = vmax.f32 %v8939_v60, 0.0  ;;  %v8942_v38 = vadd.f32 %v8884_v51, %v8524_v18  ;;  %v8876_v58 = vadd.f32 %v13315_v29, %v8875_v27 }
 0x701   : > { %v11149_v42 = vpop.f32.mrf.mxu0 }
 0x702   : > { %9003 = vst [vmem:[%s13325_s5 + $0xa0] sm:$0xff] %v8971_v57  ;;  %v8974_v54 = vmax.f32 %v8942_v38, 0.0  ;;  %v8940_v59 = vadd.f32 %v8876_v58, %v8516_v0  ;;  %v8897_v12 = vadd.f32 %v11149_v42, %v13315_v29 }
 0x703   : > { %v8888_v61 = vpop.f32.mrf.mxu0 }
 0x704   : > { %9006 = vst [vmem:[%s13325_s5 + $0xb8] sm:$0xff] %v8974_v54  ;;  %v8972_v62 = vmax.f32 %v8940_v59, 0.0  ;;  %v8945_v63 = vadd.f32 %v8897_v12, %v8537_v24  ;;  %v8889_v47 = vadd.f32 %v13315_v29, %v8888_v61 }
 0x705   : > { %v11150_v17 = vpop.f32.mrf.mxu0 }
 0x706   : > { %9004 = vst [vmem:[%s13325_s5 + $0xa8] sm:$0xff] %v8972_v62  ;;  %v8977_v46 = vmax.f32 %v8945_v63, 0.0  ;;  %v8943_v1 = vadd.f32 %v8889_v47, %v8529_v53  ;;  %v8900_v8 = vadd.f32 %v11150_v17, %v13315_v29 }
 0x707   : > { %v8891_v7 = vpop.f32.mrf.mxu0 }
 0x708   : > { %9009 = vst [vmem:[%s13325_s5 + $0xd0] sm:$0xff] %v8977_v46  ;;  %v8975_v13 = vmax.f32 %v8943_v1, 0.0  ;;  %v8946_v5 = vadd.f32 %v8900_v8, %v8540_v20  ;;  %v8892_v9 = vadd.f32 %v13315_v29, %v8891_v7 }
 0x709   : > { %v11153_v30 = vpop.f32.mrf.mxu0 }
 0x70a   : > { %9007 = vst [vmem:[%s13325_s5 + $0xc0] sm:$0xff] %v8975_v13  ;;  %v8978_v19 = vmax.f32 %v8946_v5, 0.0  ;;  %v8944_v43 = vadd.f32 %v8892_v9, %v8532_v41  ;;  %v8913_v56 = vadd.f32 %v11153_v30, %v13315_v29 }
 0x70b   : > { %v8904_v32 = vpop.f32.mrf.mxu0 }
 0x70c   : > { %9010 = vst [vmem:[%s13325_s5 + $0xd8] sm:$0xff] %v8978_v19  ;;  %v8976_v15 = vmax.f32 %v8944_v43, 0.0  ;;  %v8949_v22 = vadd.f32 %v8913_v56, %v8553_v44  ;;  %v8905_v35 = vadd.f32 %v13315_v29, %v8904_v32 }
 0x70d   : > { %v11154_v31 = vpop.f32.mrf.mxu0 }
 0x70e   : > { %9008 = vst [vmem:[%s13325_s5 + $0xc8] sm:$0xff] %v8976_v15  ;;  %v8981_v14 = vmax.f32 %v8949_v22, 0.0  ;;  %v8947_v36 = vadd.f32 %v8905_v35, %v8545_v2  ;;  %v8916_v26 = vadd.f32 %v11154_v31, %v13315_v29 }
 0x70f   : > { %v8907_v23 = vpop.f32.mrf.mxu0 }
 0x710   : > { %9013 = vst [vmem:[%s13325_s5 + $0xf0] sm:$0xff] %v8981_v14  ;;  %v8979_v25 = vmax.f32 %v8947_v36, 0.0  ;;  %v8950_v39 = vadd.f32 %v8916_v26, %v8556_v52  ;;  %v8908_v10 = vadd.f32 %v13315_v29, %v8907_v23 }
 0x712   : > { %9011 = vst [vmem:[%s13325_s5 + $0xe0] sm:$0xff] %v8979_v25  ;;  %v8982_v3 = vmax.f32 %v8950_v39, 0.0  ;;  %v8948_v40 = vadd.f32 %v8908_v10, %v8548_v16 }
 0x714   : > { %9014 = vst [vmem:[%s13325_s5 + $0xf8] sm:$0xff] %v8982_v3  ;;  %v8980_v6 = vmax.f32 %v8948_v40, 0.0 }
 0x716   : > { %9012 = vst [vmem:[%s13325_s5 + $0xe8] sm:$0xff] %v8980_v6 }
 0x717   : > { %11748 = shalt.err (!%p11745_p5)
}
 0x718   : > { %s11749_s25 = scalar_lea.hbm %s13444_s26, 4096  ;;  %s11753_s29 = scalar_lea.hbm %s13500_s9, 8192 }
 0x719   : > { %p11750_p6 = scmp.ne.s32.totalorder %s13444_s26, %s11749_s25  ;;  %p11754_p9 = scmp.lt.s32.totalorder %s13444_s26, %s13500_s9 }
 0x71a   : > { %p11755_p2 = scmp.lt.s32.totalorder %s11753_s29, %s11749_s25 }
 0x71b   : > { %p11751_p4 = pnand %p11750_p6, %p13563_p12 }
 0x71c   : > { %p11756_p3 = por %p11755_p2, %p11754_p9 }
 0x71d   : > { %p11752_p8 = pneg %p11751_p4 }
 0x71f   : > { %p11757_p10 = pnand %p11756_p3, %p11752_p8 }
 0x721   : > { %11760 = shalt.err (!%p11757_p10)
}
 0x722   : > { %s11820_s15 = smov 128   ;;  %s11821_s17 = smov 8  }
 0x723   : > { %11173 = dma.vmem_to_hbm [thread:$0]  (%p13563_p12), %s13446_s24, 4096, %s13444_s26, %s9016_s27, %s11820_s15, %s11820_s15, %s11821_s17  }
 0x724 PF: > { %s9045_s14 = sand.u32 1, %s11795_s30   ;;  %p13564_p7 = scmp.ne.s32.totalorder %s13514_s16, 0 }
 0x725   : > { %p13565_p1 = scmp.ge.s32.totalorder %s11807_s12, 2  ;;  %s9046_s13 = scalar_lea.sflag [#allocation6], %s9045_s14 }
 0x727   : > { %p11193_p13 = pnand %p13565_p1, %p13564_p7 }
 0x729   : > { %p11194_p0 = pneg %p11193_p13 }
 0x72b   : > { %11790 = dma.done.wait (%p11194_p0), %s9046_s13, 4096  }
 0x72c   : > { %11792 = vsyncadd (%p11194_p0), %s9046_s13, 4294963200  ;;  %p24_p11 = scmp.ge.s32.totalorder %s11972_s18, 4   ;;  %s13566_s30 = smov %s11799_s10 }
 0x72d   : > { %s13567_s10 = smov %s11803_s11  ;;  %s13568_s11 = smov %s11988_s23 }
 0x72e   : > { %s13569_s12 = smov %s11972_s18  ;;  %26 = sbr.rel (!%p24_p11) target bundleno = 11 (0xb), region = 125 }
 0x733   :  { %9051 = vsyncpa [#allocation5], 1 }
 0x734   :  { %9053 = vsyncpa [#allocation5 + $0x1], 1 }
 0x735   :  { %9054 = vsyncpa [#allocation8], 1 }
 0x736   :  { %9055 = vsyncpa [#allocation11], 1 }
 0x737   :  { %9056 = vsyncpa [#allocation6], 1 }
 0x738   :  { %9058 = vsyncpa [#allocation6 + $0x1], 1 }

</bundles_post_ra>
